<compile_context>
chip_gen: v6e
topology: v6e:2x2x1
jax: 0.10.0
libtpu: 0.0.40
codegen_flags: <defaults>
</compile_context>

<pallas_src>
import functools

import jax
import jax.numpy as jnp
from jax.experimental import pallas as pl
from jax.experimental.pallas import tpu as pltpu


_PADS = (0, 1, 1, 1, 1)


def _round_up(x, m):
    return ((x + m - 1) // m) * m


def _row_tile(rows, row_bytes, budget=4 << 20):
    """Largest multiple-of-8 divisor of `rows` whose block stays under budget.

    At the shapes used here this returns `rows` itself (whole-layer blocks);
    the cap only kicks in for much larger batches and keeps the double-buffered
    working set a few MiB, which fits every generation including v7x (64 MiB).
    """
    if rows * row_bytes <= budget:
        return rows
    cap = max(8, (budget // max(row_bytes, 1)) // 8 * 8)
    best = 8
    for d in range(8, min(rows, cap) + 1, 8):
        if rows % d == 0:
            best = d
    return best


# ----------------------------------------------------------------------------
# Pallas kernels
# ----------------------------------------------------------------------------
def mm_bias_act_kernel(a_ref, b_ref, bias_ref, o_ref, *, act):
    """One whole (tm, K) @ (K, N) block: f32 accumulate, fused bias + act."""
    y = jnp.dot(a_ref[...], b_ref[...], preferred_element_type=jnp.float32)
    y = y + bias_ref[...]
    if act == "relu":
        y = jnp.maximum(y, 0.0)
    elif act == "tanh":
        y = jnp.tanh(y)
    o_ref[...] = y.astype(o_ref.dtype)


def mm_stats_kernel(a_ref, b_ref, o_ref, sum_ref, sq_ref):
    """Matmul block with fused per-column sum / sum-of-squares (for BatchNorm).

    The f32 result never round-trips through HBM for the statistics; the
    activation is written back in bf16 while the statistics stay f32.
    """
    y = jnp.dot(a_ref[...], b_ref[...], preferred_element_type=jnp.float32)
    o_ref[...] = y.astype(o_ref.dtype)
    s = jnp.sum(y, axis=0, keepdims=True)
    q = jnp.sum(y * y, axis=0, keepdims=True)
    # Sublane-broadcast to an (8, N) block so the store stays layout friendly.
    sum_ref[...] = jnp.broadcast_to(s, sum_ref.shape)
    sq_ref[...] = jnp.broadcast_to(q, sq_ref.shape)


def bn_act_kernel(x_ref, mean_ref, scale_ref, beta_ref, o_ref, *, act):
    """Fused (x - mean) * scale + beta followed by relu / tanh / identity."""
    y = (x_ref[...].astype(jnp.float32) - mean_ref[...]) * scale_ref[...] \
        + beta_ref[...]
    if act == "relu":
        y = jnp.maximum(y, 0.0)
    elif act == "tanh":
        y = jnp.tanh(y)
    o_ref[...] = y.astype(o_ref.dtype)


# ----------------------------------------------------------------------------
# Pallas wrappers (K and N are always whole blocks; M tiled only if huge)
# ----------------------------------------------------------------------------
def pallas_matmul_bias_act(a, b, bias, *, act, out_dtype):
    """(P,M,K)bf16 @ (P,K,N)bf16 + bias(1,N)f32 with fused activation."""
    P, M, K = a.shape
    N = b.shape[2]
    tm = _row_tile(M, K * 2)
    grid = (P, M // tm)
    return pl.pallas_call(
        functools.partial(mm_bias_act_kernel, act=act),
        out_shape=jax.ShapeDtypeStruct((P, M, N), out_dtype),
        grid=grid,
        in_specs=[
            pl.BlockSpec((None, tm, K), lambda p, i: (p, i, 0)),
            pl.BlockSpec((None, K, N), lambda p, i: (p, 0, 0)),
            pl.BlockSpec((1, N), lambda p, i: (0, 0)),
        ],
        out_specs=pl.BlockSpec((None, tm, N), lambda p, i: (p, i, 0)),
        compiler_params=pltpu.CompilerParams(
            dimension_semantics=("parallel", "parallel")),
    )(a, b, bias)


def pallas_matmul_stats(a, b):
    """(P,M,K)bf16 @ (P,K,N)bf16 -> bf16 activation + f32 column sums/squares."""
    P, M, K = a.shape
    N = b.shape[2]
    tm = _row_tile(M, K * 2)
    mb = M // tm
    grid = (P, mb)
    out, sums, sqs = pl.pallas_call(
        mm_stats_kernel,
        out_shape=(jax.ShapeDtypeStruct((P, M, N), jnp.bfloat16),
                   jax.ShapeDtypeStruct((P * mb, 8, N), jnp.float32),
                   jax.ShapeDtypeStruct((P * mb, 8, N), jnp.float32)),
        grid=grid,
        in_specs=[
            pl.BlockSpec((None, tm, K), lambda p, i: (p, i, 0)),
            pl.BlockSpec((None, K, N), lambda p, i: (p, 0, 0)),
        ],
        out_specs=(
            pl.BlockSpec((None, tm, N), lambda p, i: (p, i, 0)),
            pl.BlockSpec((None, 8, N), lambda p, i: (p * mb + i, 0, 0)),
            pl.BlockSpec((None, 8, N), lambda p, i: (p * mb + i, 0, 0)),
        ),
        compiler_params=pltpu.CompilerParams(
            dimension_semantics=("parallel", "parallel")),
    )(a, b)
    # Rows 1..7 of each stats block are sublane-broadcast copies of row 0.
    return out, sums[:, 0, :], sqs[:, 0, :]


def pallas_bn_act(y, mean, scale, beta, *, act):
    """Fused BatchNorm affine + activation over (P, M, C) bf16 activations."""
    P, M, C = y.shape
    tm = _row_tile(M, C * 8)
    grid = (P, M // tm)
    return pl.pallas_call(
        functools.partial(bn_act_kernel, act=act),
        out_shape=jax.ShapeDtypeStruct((P, M, C), jnp.bfloat16),
        grid=grid,
        in_specs=[
            pl.BlockSpec((None, tm, C), lambda p, i: (p, i, 0)),
            pl.BlockSpec((1, C), lambda p, i: (0, 0)),
            pl.BlockSpec((1, C), lambda p, i: (0, 0)),
            pl.BlockSpec((1, C), lambda p, i: (0, 0)),
        ],
        out_specs=pl.BlockSpec((None, tm, C), lambda p, i: (p, i, 0)),
        compiler_params=pltpu.CompilerParams(
            dimension_semantics=("parallel", "parallel")),
    )(y, mean, scale, beta)


# ----------------------------------------------------------------------------
# Phase-decomposed ConvTranspose2d lowering (stride=2, kernel=4x4), NHWC glue.
#
# out[oc, oh, ow] = sum_{ic,ih,iw} x[ic,ih,iw] * w[ic,oc, oh+p-2ih, ow+p-2iw]
# With oh+p = 2q + r (r in {0,1}): kh = r + 2*dh, ih = q - dh, dh in {0,1}.
# So each output parity phase (rh, rw) is a dense stride-1 2x2 correlation.
# ----------------------------------------------------------------------------
def _phase_cols(x, pad):
    """x: (N,H,W,ICp) bf16 channels-last -> (4, M8, 4*ICp) im2col per phase.

    Built directly in bf16 on the channel-padded activation, so the matmul
    consumes it as-is (no extra pad + cast copy of the 16x-expanded operand).
    """
    Nb, H, W, ICp = x.shape
    xp = jnp.pad(x, ((0, 0), (1, 1), (1, 1), (0, 0)))
    QH = H + 1 - pad
    QW = W + 1 - pad
    M = Nb * QH * QW
    M8 = _round_up(M, 8)
    per_phase = []
    for rh in (0, 1):
        qh0 = max(0, (pad - rh + 1) // 2)
        for rw in (0, 1):
            qw0 = max(0, (pad - rw + 1) // 2)
            slabs = []
            for dh in (0, 1):
                for dw in (0, 1):
                    h0 = qh0 - dh + 1
                    w0 = qw0 - dw + 1
                    slabs.append(xp[:, h0:h0 + QH, w0:w0 + QW, :])
            cols = jnp.stack(slabs, axis=3)            # (N,QH,QW,4,ICp)
            cols = cols.reshape(M, 4 * ICp)
            if M8 != M:
                cols = jnp.pad(cols, ((0, M8 - M), (0, 0)))
            per_phase.append(cols)
    return jnp.stack(per_phase, axis=0), (QH, QW), M


def _phase_weights(w, icp, ocp):
    """PyTorch ConvTranspose2d weight (IC,OC,4,4) -> (4, 4*ICp, OCp) bf16."""
    IC, OC = int(w.shape[0]), int(w.shape[1])
    mats = []
    for rh in (0, 1):
        for rw in (0, 1):
            wp = w[:, :, rh::2, rw::2]                 # (IC, OC, dh, dw)
            wp = wp.transpose(2, 3, 0, 1)              # (dh, dw, IC, OC)
            wp = jnp.pad(wp, ((0, 0), (0, 0), (0, icp - IC), (0, ocp - OC)))
            mats.append(wp.reshape(4 * icp, ocp))
    return jnp.stack(mats, axis=0).astype(jnp.bfloat16)


def _interleave_phases(y, pad):
    """y: (4, N, QH, QW, C) per-phase outputs -> (N, 2*QH, 2*QW, C)."""
    Nb, QH, QW, C = y.shape[1:]
    rows = []
    for s in (0, 1):
        cols_t = []
        for t in (0, 1):
            p = 2 * ((s + pad) % 2) + ((t + pad) % 2)
            cols_t.append(y[p])                        # (N, QH, QW, C)
        rows.append(jnp.stack(cols_t, axis=3))         # (N, QH, QW, 2, C)
    out = jnp.stack(rows, axis=2)                      # (N, QH, 2, QW, 2, C)
    return out.reshape(Nb, 2 * QH, 2 * QW, C)


# ----------------------------------------------------------------------------
# Parameters
# ----------------------------------------------------------------------------
def init_params(key, z_dim, c_dim):
    keys = jax.random.split(key, 8)
    std = 0.02
    p = {
        "lin_w": jax.random.normal(keys[0], (c_dim, 24), jnp.float32) * std,
        "lin_b": jnp.zeros((c_dim,), jnp.float32),
    }
    chans = [(z_dim + c_dim, 512), (512, 256), (256, 128), (128, 64), (64, 3)]
    for i, (ic, oc) in enumerate(chans):
        p[f"w{i}"] = jax.random.normal(keys[i + 1], (ic, oc, 4, 4),
                                       jnp.float32) * std
        p[f"b{i}"] = jnp.zeros((oc,), jnp.float32)
        if i < 4:
            p[f"gamma{i}"] = jnp.ones((oc,), jnp.float32)
            p[f"beta{i}"] = jnp.zeros((oc,), jnp.float32)
    return p


def prepare_params(params, z_dim, c_dim):
    """One-time weight prep (hoisted out of the per-call forward): phase-matrix
    layout, lane padding and bf16 casts for every matmul operand."""
    prep = {}
    cdp = _round_up(c_dim, 128)
    lin_wt = jnp.pad(params["lin_w"].T, ((0, 128 - 24), (0, cdp - c_dim)))
    prep["lin_w"] = lin_wt.reshape(1, 128, cdp).astype(jnp.bfloat16)
    prep["lin_b"] = jnp.pad(params["lin_b"].astype(jnp.float32),
                            (0, cdp - c_dim)).reshape(1, cdp)

    chans = [(z_dim + c_dim, 512), (512, 256), (256, 128), (128, 64), (64, 3)]
    icp = _round_up(z_dim + c_dim, 32)       # 4*icp -> lane-aligned K
    for i, (ic, oc) in enumerate(chans):
        ocp = _round_up(oc, 128)
        prep[f"wmat{i}"] = _phase_weights(params[f"w{i}"], icp, ocp)
        if i < 4:
            # ConvTranspose2d bias is cancelled by the following (training-
            # mode) BatchNorm mean subtraction, so it is dropped.  gamma/beta
            # are zero-padded so padded output channels stay exactly zero.
            prep[f"gamma{i}"] = jnp.pad(
                params[f"gamma{i}"].astype(jnp.float32),
                (0, ocp - oc)).reshape(1, ocp)
            prep[f"beta{i}"] = jnp.pad(
                params[f"beta{i}"].astype(jnp.float32),
                (0, ocp - oc)).reshape(1, ocp)
        else:
            prep[f"b{i}"] = jnp.pad(params[f"b{i}"].astype(jnp.float32),
                                    (0, ocp - oc)).reshape(1, ocp)
        icp = ocp        # next layer consumes the padded channel count as-is
    return prep


# ----------------------------------------------------------------------------
# Generator forward
# ----------------------------------------------------------------------------
@functools.partial(jax.jit, static_argnames=("z_dim", "c_dim"))
def generator_forward(prep, z, cond, *, z_dim, c_dim):
    Nb = z.shape[0]
    eps = 1e-5

    # condExpand: Linear(24 -> c_dim) + ReLU fused into the matmul epilogue.
    m8 = _round_up(Nb, 8)
    a = jnp.pad(cond.astype(jnp.bfloat16),
                ((0, m8 - Nb), (0, 128 - 24))).reshape(1, m8, 128)
    ce = pallas_matmul_bias_act(a, prep["lin_w"], prep["lin_b"],
                                act="relu", out_dtype=jnp.bfloat16)
    ce = ce[0, :Nb, :c_dim]

    # Concatenate z and the expanded condition -> (N,1,1,ICp) channels-last,
    # channel-padded so K = 4*ICp is already lane aligned (no pad in matmul).
    icp0 = prep["wmat0"].shape[1] // 4
    x = jnp.concatenate([z.reshape(Nb, z_dim).astype(jnp.bfloat16), ce],
                        axis=1)
    x = jnp.pad(x, ((0, 0), (0, icp0 - (z_dim + c_dim))))
    x = x.reshape(Nb, 1, 1, icp0)

    for i, pad in enumerate(_PADS):
        wmat = prep[f"wmat{i}"]                    # (4, 4*ICp, OCp) bf16
        ocp = wmat.shape[2]
        cols, (QH, QW), M = _phase_cols(x, pad)    # (4, M8, 4*ICp) bf16

        if i < 4:
            # Matmul with fused per-channel sums / sums-of-squares.  Padded
            # rows and padded channels are exact zeros, so dividing by the
            # real element count N*OH*OW = 4*M gives exact batch statistics.
            y, sums, sqs = pallas_matmul_stats(cols, wmat)
            cnt = jnp.float32(4 * M)
            mean = jnp.sum(sums, axis=0) / cnt
            var = jnp.sum(sqs, axis=0) / cnt - mean * mean
            var = jnp.maximum(var, 0.0)            # guard f32 cancellation
            scale = prep[f"gamma{i}"] / jnp.sqrt(var.reshape(1, ocp) + eps)
            # BatchNorm2d: training-mode batch stats (PyTorch default forward).
            y = pallas_bn_act(y, mean.reshape(1, ocp), scale,
                              prep[f"beta{i}"], act="relu")
        else:
            # Final layer: bias + tanh fused into the matmul epilogue.
            y = pallas_matmul_bias_act(cols, wmat, prep[f"b{i}"],
                                       act="tanh", out_dtype=jnp.float32)

        # Reshape to per-phase NHWC and interleave parities -> next layer.
        y = y[:, :M, :].reshape(4, Nb, QH, QW, ocp)
        x = _interleave_phases(y, pad)             # (N, 2*QH, 2*QW, OCp)

    # Drop padded channels (exact zeros) and return NCHW like PyTorch.
    return x[..., :3].transpose(0, 3, 1, 2)


if __name__ == "__main__":
    Nb, z_dim, c_dim = 2, 16, 8   # z_dim + c_dim = 24 deconv input channels
    key = jax.random.PRNGKey(0)
    kz, kc = jax.random.split(key)
    z = jax.random.normal(kz, (Nb, z_dim), jnp.float32)
    cond = jax.random.normal(kc, (Nb, 24), jnp.float32)

    params = init_params(jax.random.PRNGKey(42), z_dim, c_dim)
    prep = prepare_params(params, z_dim, c_dim)   # one-time weight prep

    out = generator_forward(prep, z, cond, z_dim=z_dim, c_dim=c_dim)
    out = jax.block_until_ready(out)

    assert out.shape == (Nb, 3, 64, 64), out.shape
    assert bool(jnp.all(jnp.isfinite(out)))
    assert bool(jnp.all(jnp.abs(out) <= 1.0 + 1e-6))  # tanh range
    print("KERNEL_OK")
</pallas_src>

<mosaic_0001>
module attributes {stable_mosaic.version = 11 : i64} {
  func.func @mm_bias_act_kernel(%arg0: i32, %arg1: i32, %arg2: memref<1x8x128xbf16, #tpu.memory_space<vmem>>, %arg3: memref<1x128x128xbf16, #tpu.memory_space<vmem>>, %arg4: memref<1x128xf32, #tpu.memory_space<vmem>>, %arg5: memref<1x8x128xbf16, #tpu.memory_space<vmem>>) attributes {dimension_semantics = [#tpu.dimension_semantics<parallel>, #tpu.dimension_semantics<parallel>], iteration_bounds = array<i64: 1, 1>, scalar_prefetch = 0 : i64, scratch_operands = 0 : i64, tpu.core_type = #tpu.core_type<tc>, window_params = [{transform_indices = @transform_0, window_bounds = array<i64: 1, 8, 128>}, {transform_indices = @transform_1, window_bounds = array<i64: 1, 128, 128>}, {pipeline_mode = #tpu.pipeline_mode<synchronous>, transform_indices = @transform_2, window_bounds = array<i64: 1, 128>}, {transform_indices = @transform_3, window_bounds = array<i64: 1, 8, 128>}]} {
    %c0 = arith.constant 0 : index
    %c0_0 = arith.constant 0 : index
    %c0_1 = arith.constant 0 : index
    %0 = vector.load %arg2[%c0, %c0_0, %c0_1] : memref<1x8x128xbf16, #tpu.memory_space<vmem>>, vector<1x8x128xbf16>
    %1 = vector.shape_cast %0 : vector<1x8x128xbf16> to vector<8x128xbf16>
    %c0_2 = arith.constant 0 : index
    %c0_3 = arith.constant 0 : index
    %c0_4 = arith.constant 0 : index
    %2 = vector.load %arg3[%c0_2, %c0_3, %c0_4] : memref<1x128x128xbf16, #tpu.memory_space<vmem>>, vector<1x128x128xbf16>
    %3 = vector.shape_cast %2 : vector<1x128x128xbf16> to vector<128x128xbf16>
    %cst = arith.constant dense<0.000000e+00> : vector<8x128xf32>
    %4 = tpu.matmul %1, %3, %cst {dimension_numbers = #tpu.dot_dimension_numbers<[1], [0], [0], [1], [0, 0, 1, 1], [], []>} : vector<8x128xbf16>, vector<128x128xbf16>, vector<8x128xf32> -> vector<8x128xf32>
    %c0_5 = arith.constant 0 : index
    %c0_6 = arith.constant 0 : index
    %5 = vector.load %arg4[%c0_5, %c0_6] : memref<1x128xf32, #tpu.memory_space<vmem>>, vector<1x128xf32>
    %6 = vector.broadcast %5 : vector<1x128xf32> to vector<8x128xf32>
    %7 = arith.addf %4, %6 : vector<8x128xf32>
    %cst_7 = arith.constant 0.000000e+00 : f32
    %8 = vector.broadcast %cst_7 : f32 to vector<8x128xf32>
    %9 = arith.maximumf %7, %8 : vector<8x128xf32>
    %10 = arith.truncf %9 : vector<8x128xf32> to vector<8x128xbf16>
    %c0_8 = arith.constant 0 : index
    %c0_9 = arith.constant 0 : index
    %c0_10 = arith.constant 0 : index
    %11 = vector.load %arg5[%c0_8, %c0_9, %c0_10] : memref<1x8x128xbf16, #tpu.memory_space<vmem>>, vector<1x8x128xbf16>
    %12 = vector.shape_cast %11 : vector<1x8x128xbf16> to vector<8x128xbf16>
    %13 = vector.shape_cast %10 : vector<8x128xbf16> to vector<1x8x128xbf16>
    tpu.vector_store %arg5[%c0_8, %c0_9, %c0_10], %13 {strides = array<i32>} : memref<1x8x128xbf16, #tpu.memory_space<vmem>>, vector<1x8x128xbf16>,
    return
  }
  func.func @transform_0(%arg0: i32, %arg1: i32) -> (i32, i32, i32) {
    %c0_i32 = arith.constant 0 : i32
    %c0_i32_0 = arith.constant 0 : i32
    return %arg0, %arg1, %c0_i32 : i32, i32, i32
  }
  func.func @transform_1(%arg0: i32, %arg1: i32) -> (i32, i32, i32) {
    %c0_i32 = arith.constant 0 : i32
    %c0_i32_0 = arith.constant 0 : i32
    %c0_i32_1 = arith.constant 0 : i32
    return %arg0, %c0_i32, %c0_i32_0 : i32, i32, i32
  }
  func.func @transform_2(%arg0: i32, %arg1: i32) -> (i32, i32) {
    %c0_i32 = arith.constant 0 : i32
    %c0_i32_0 = arith.constant 0 : i32
    %c0_i32_1 = arith.constant 0 : i32
    return %c0_i32, %c0_i32_0 : i32, i32
  }
  func.func @transform_3(%arg0: i32, %arg1: i32) -> (i32, i32, i32) {
    %c0_i32 = arith.constant 0 : i32
    %c0_i32_0 = arith.constant 0 : i32
    return %arg0, %arg1, %c0_i32 : i32, i32, i32
  }
}

module attributes {stable_mosaic.version = 11 : i64} {
  func.func @mm_stats_kernel(%arg0: i32, %arg1: i32, %arg2: memref<1x8x128xbf16, #tpu.memory_space<vmem>>, %arg3: memref<1x128x512xbf16, #tpu.memory_space<vmem>>, %arg4: memref<1x8x512xbf16, #tpu.memory_space<vmem>>, %arg5: memref<1x8x512xf32, #tpu.memory_space<vmem>>, %arg6: memref<1x8x512xf32, #tpu.memory_space<vmem>>) attributes {dimension_semantics = [#tpu.dimension_semantics<parallel>, #tpu.dimension_semantics<parallel>], iteration_bounds = array<i64: 4, 1>, scalar_prefetch = 0 : i64, scratch_operands = 0 : i64, tpu.core_type = #tpu.core_type<tc>, window_params = [{transform_indices = @transform_0, window_bounds = array<i64: 1, 8, 128>}, {transform_indices = @transform_1, window_bounds = array<i64: 1, 128, 512>}, {transform_indices = @transform_2, window_bounds = array<i64: 1, 8, 512>}, {transform_indices = @transform_3, window_bounds = array<i64: 1, 8, 512>}, {transform_indices = @transform_4, window_bounds = array<i64: 1, 8, 512>}]} {
    %c0 = arith.constant 0 : index
    %c0_0 = arith.constant 0 : index
    %c0_1 = arith.constant 0 : index
    %0 = vector.load %arg2[%c0, %c0_0, %c0_1] : memref<1x8x128xbf16, #tpu.memory_space<vmem>>, vector<1x8x128xbf16>
    %1 = vector.shape_cast %0 : vector<1x8x128xbf16> to vector<8x128xbf16>
    %c0_2 = arith.constant 0 : index
    %c0_3 = arith.constant 0 : index
    %c0_4 = arith.constant 0 : index
    %2 = vector.load %arg3[%c0_2, %c0_3, %c0_4] : memref<1x128x512xbf16, #tpu.memory_space<vmem>>, vector<1x128x512xbf16>
    %3 = vector.shape_cast %2 : vector<1x128x512xbf16> to vector<128x512xbf16>
    %cst = arith.constant dense<0.000000e+00> : vector<8x512xf32>
    %4 = tpu.matmul %1, %3, %cst {dimension_numbers = #tpu.dot_dimension_numbers<[1], [0], [0], [1], [0, 0, 1, 1], [], []>} : vector<8x128xbf16>, vector<128x512xbf16>, vector<8x512xf32> -> vector<8x512xf32>
    %5 = arith.truncf %4 : vector<8x512xf32> to vector<8x512xbf16>
    %c0_5 = arith.constant 0 : index
    %c0_6 = arith.constant 0 : index
    %c0_7 = arith.constant 0 : index
    %6 = vector.load %arg4[%c0_5, %c0_6, %c0_7] : memref<1x8x512xbf16, #tpu.memory_space<vmem>>, vector<1x8x512xbf16>
    %7 = vector.shape_cast %6 : vector<1x8x512xbf16> to vector<8x512xbf16>
    %8 = vector.shape_cast %5 : vector<8x512xbf16> to vector<1x8x512xbf16>
    tpu.vector_store %arg4[%c0_5, %c0_6, %c0_7], %8 {strides = array<i32>} : memref<1x8x512xbf16, #tpu.memory_space<vmem>>, vector<1x8x512xbf16>,
    %cst_8 = arith.constant dense<0.000000e+00> : vector<512xf32>
    %9 = vector.multi_reduction <add>, %4, %cst_8 [0] : vector<8x512xf32> to vector<512xf32>
    %10 = vector.shape_cast %9 : vector<512xf32> to vector<1x512xf32>
    %11 = arith.mulf %4, %4 : vector<8x512xf32>
    %cst_9 = arith.constant dense<0.000000e+00> : vector<512xf32>
    %12 = vector.multi_reduction <add>, %11, %cst_9 [0] : vector<8x512xf32> to vector<512xf32>
    %13 = vector.shape_cast %12 : vector<512xf32> to vector<1x512xf32>
    %14 = vector.shape_cast %10 : vector<1x512xf32> to vector<1x512xf32>
    %15 = vector.broadcast %14 : vector<1x512xf32> to vector<8x512xf32>
    %c0_10 = arith.constant 0 : index
    %c0_11 = arith.constant 0 : index
    %c0_12 = arith.constant 0 : index
    %16 = vector.load %arg5[%c0_10, %c0_11, %c0_12] : memref<1x8x512xf32, #tpu.memory_space<vmem>>, vector<1x8x512xf32>
    %17 = vector.shape_cast %16 : vector<1x8x512xf32> to vector<8x512xf32>
    %18 = vector.shape_cast %15 : vector<8x512xf32> to vector<1x8x512xf32>
    tpu.vector_store %arg5[%c0_10, %c0_11, %c0_12], %18 {strides = array<i32>} : memref<1x8x512xf32, #tpu.memory_space<vmem>>, vector<1x8x512xf32>,
    %19 = vector.shape_cast %13 : vector<1x512xf32> to vector<1x512xf32>
    %20 = vector.broadcast %19 : vector<1x512xf32> to vector<8x512xf32>
    %c0_13 = arith.constant 0 : index
    %c0_14 = arith.constant 0 : index
    %c0_15 = arith.constant 0 : index
    %21 = vector.load %arg6[%c0_13, %c0_14, %c0_15] : memref<1x8x512xf32, #tpu.memory_space<vmem>>, vector<1x8x512xf32>
    %22 = vector.shape_cast %21 : vector<1x8x512xf32> to vector<8x512xf32>
    %23 = vector.shape_cast %20 : vector<8x512xf32> to vector<1x8x512xf32>
    tpu.vector_store %arg6[%c0_13, %c0_14, %c0_15], %23 {strides = array<i32>} : memref<1x8x512xf32, #tpu.memory_space<vmem>>, vector<1x8x512xf32>,
    return
  }
  func.func @transform_0(%arg0: i32, %arg1: i32) -> (i32, i32, i32) {
    %c0_i32 = arith.constant 0 : i32
    %c0_i32_0 = arith.constant 0 : i32
    return %arg0, %arg1, %c0_i32 : i32, i32, i32
  }
  func.func @transform_1(%arg0: i32, %arg1: i32) -> (i32, i32, i32) {
    %c0_i32 = arith.constant 0 : i32
    %c0_i32_0 = arith.constant 0 : i32
    %c0_i32_1 = arith.constant 0 : i32
    return %arg0, %c0_i32, %c0_i32_0 : i32, i32, i32
  }
  func.func @transform_2(%arg0: i32, %arg1: i32) -> (i32, i32, i32) {
    %c0_i32 = arith.constant 0 : i32
    %c0_i32_0 = arith.constant 0 : i32
    return %arg0, %arg1, %c0_i32 : i32, i32, i32
  }
  func.func @transform_3(%arg0: i32, %arg1: i32) -> (i32, i32, i32) {
    %c1_i32 = arith.constant 1 : i32
    %0 = arith.muli %arg0, %c1_i32 : i32
    %1 = arith.addi %0, %arg1 : i32
    %c0_i32 = arith.constant 0 : i32
    %c0_i32_0 = arith.constant 0 : i32
    %c0_i32_1 = arith.constant 0 : i32
    return %1, %c0_i32, %c0_i32_0 : i32, i32, i32
  }
  func.func @transform_4(%arg0: i32, %arg1: i32) -> (i32, i32, i32) {
    %c1_i32 = arith.constant 1 : i32
    %0 = arith.muli %arg0, %c1_i32 : i32
    %1 = arith.addi %0, %arg1 : i32
    %c0_i32 = arith.constant 0 : i32
    %c0_i32_0 = arith.constant 0 : i32
    %c0_i32_1 = arith.constant 0 : i32
    return %1, %c0_i32, %c0_i32_0 : i32, i32, i32
  }
}

module attributes {stable_mosaic.version = 11 : i64} {
  func.func @bn_act_kernel(%arg0: i32, %arg1: i32, %arg2: memref<1x8x512xbf16, #tpu.memory_space<vmem>>, %arg3: memref<1x512xf32, #tpu.memory_space<vmem>>, %arg4: memref<1x512xf32, #tpu.memory_space<vmem>>, %arg5: memref<1x512xf32, #tpu.memory_space<vmem>>, %arg6: memref<1x8x512xbf16, #tpu.memory_space<vmem>>) attributes {dimension_semantics = [#tpu.dimension_semantics<parallel>, #tpu.dimension_semantics<parallel>], iteration_bounds = array<i64: 4, 1>, scalar_prefetch = 0 : i64, scratch_operands = 0 : i64, tpu.core_type = #tpu.core_type<tc>, window_params = [{transform_indices = @transform_0, window_bounds = array<i64: 1, 8, 512>}, {pipeline_mode = #tpu.pipeline_mode<synchronous>, transform_indices = @transform_1, window_bounds = array<i64: 1, 512>}, {pipeline_mode = #tpu.pipeline_mode<synchronous>, transform_indices = @transform_2, window_bounds = array<i64: 1, 512>}, {pipeline_mode = #tpu.pipeline_mode<synchronous>, transform_indices = @transform_3, window_bounds = array<i64: 1, 512>}, {transform_indices = @transform_4, window_bounds = array<i64: 1, 8, 512>}]} {
    %c0 = arith.constant 0 : index
    %c0_0 = arith.constant 0 : index
    %c0_1 = arith.constant 0 : index
    %0 = vector.load %arg2[%c0, %c0_0, %c0_1] : memref<1x8x512xbf16, #tpu.memory_space<vmem>>, vector<1x8x512xbf16>
    %1 = vector.shape_cast %0 : vector<1x8x512xbf16> to vector<8x512xbf16>
    %2 = arith.extf %1 : vector<8x512xbf16> to vector<8x512xf32>
    %c0_2 = arith.constant 0 : index
    %c0_3 = arith.constant 0 : index
    %3 = vector.load %arg3[%c0_2, %c0_3] : memref<1x512xf32, #tpu.memory_space<vmem>>, vector<1x512xf32>
    %4 = vector.broadcast %3 : vector<1x512xf32> to vector<8x512xf32>
    %5 = arith.subf %2, %4 : vector<8x512xf32>
    %c0_4 = arith.constant 0 : index
    %c0_5 = arith.constant 0 : index
    %6 = vector.load %arg4[%c0_4, %c0_5] : memref<1x512xf32, #tpu.memory_space<vmem>>, vector<1x512xf32>
    %7 = vector.broadcast %6 : vector<1x512xf32> to vector<8x512xf32>
    %8 = arith.mulf %5, %7 : vector<8x512xf32>
    %c0_6 = arith.constant 0 : index
    %c0_7 = arith.constant 0 : index
    %9 = vector.load %arg5[%c0_6, %c0_7] : memref<1x512xf32, #tpu.memory_space<vmem>>, vector<1x512xf32>
    %10 = vector.broadcast %9 : vector<1x512xf32> to vector<8x512xf32>
    %11 = arith.addf %8, %10 : vector<8x512xf32>
    %cst = arith.constant 0.000000e+00 : f32
    %12 = vector.broadcast %cst : f32 to vector<8x512xf32>
    %13 = arith.maximumf %11, %12 : vector<8x512xf32>
    %14 = arith.truncf %13 : vector<8x512xf32> to vector<8x512xbf16>
    %c0_8 = arith.constant 0 : index
    %c0_9 = arith.constant 0 : index
    %c0_10 = arith.constant 0 : index
    %15 = vector.load %arg6[%c0_8, %c0_9, %c0_10] : memref<1x8x512xbf16, #tpu.memory_space<vmem>>, vector<1x8x512xbf16>
    %16 = vector.shape_cast %15 : vector<1x8x512xbf16> to vector<8x512xbf16>
    %17 = vector.shape_cast %14 : vector<8x512xbf16> to vector<1x8x512xbf16>
    tpu.vector_store %arg6[%c0_8, %c0_9, %c0_10], %17 {strides = array<i32>} : memref<1x8x512xbf16, #tpu.memory_space<vmem>>, vector<1x8x512xbf16>,
    return
  }
  func.func @transform_0(%arg0: i32, %arg1: i32) -> (i32, i32, i32) {
    %c0_i32 = arith.constant 0 : i32
    %c0_i32_0 = arith.constant 0 : i32
    return %arg0, %arg1, %c0_i32 : i32, i32, i32
  }
  func.func @transform_1(%arg0: i32, %arg1: i32) -> (i32, i32) {
    %c0_i32 = arith.constant 0 : i32
    %c0_i32_0 = arith.constant 0 : i32
    %c0_i32_1 = arith.constant 0 : i32
    return %c0_i32, %c0_i32_0 : i32, i32
  }
  func.func @transform_2(%arg0: i32, %arg1: i32) -> (i32, i32) {
    %c0_i32 = arith.constant 0 : i32
    %c0_i32_0 = arith.constant 0 : i32
    %c0_i32_1 = arith.constant 0 : i32
    return %c0_i32, %c0_i32_0 : i32, i32
  }
  func.func @transform_3(%arg0: i32, %arg1: i32) -> (i32, i32) {
    %c0_i32 = arith.constant 0 : i32
    %c0_i32_0 = arith.constant 0 : i32
    %c0_i32_1 = arith.constant 0 : i32
    return %c0_i32, %c0_i32_0 : i32, i32
  }
  func.func @transform_4(%arg0: i32, %arg1: i32) -> (i32, i32, i32) {
    %c0_i32 = arith.constant 0 : i32
    %c0_i32_0 = arith.constant 0 : i32
    return %arg0, %arg1, %c0_i32 : i32, i32, i32
  }
}

module attributes {stable_mosaic.version = 11 : i64} {
  func.func @mm_stats_kernel(%arg0: i32, %arg1: i32, %arg2: memref<1x32x2048xbf16, #tpu.memory_space<vmem>>, %arg3: memref<1x2048x256xbf16, #tpu.memory_space<vmem>>, %arg4: memref<1x32x256xbf16, #tpu.memory_space<vmem>>, %arg5: memref<1x8x256xf32, #tpu.memory_space<vmem>>, %arg6: memref<1x8x256xf32, #tpu.memory_space<vmem>>) attributes {dimension_semantics = [#tpu.dimension_semantics<parallel>, #tpu.dimension_semantics<parallel>], iteration_bounds = array<i64: 4, 1>, scalar_prefetch = 0 : i64, scratch_operands = 0 : i64, tpu.core_type = #tpu.core_type<tc>, window_params = [{transform_indices = @transform_0, window_bounds = array<i64: 1, 32, 2048>}, {transform_indices = @transform_1, window_bounds = array<i64: 1, 2048, 256>}, {transform_indices = @transform_2, window_bounds = array<i64: 1, 32, 256>}, {transform_indices = @transform_3, window_bounds = array<i64: 1, 8, 256>}, {transform_indices = @transform_4, window_bounds = array<i64: 1, 8, 256>}]} {
    %c0 = arith.constant 0 : index
    %c0_0 = arith.constant 0 : index
    %c0_1 = arith.constant 0 : index
    %0 = vector.load %arg2[%c0, %c0_0, %c0_1] : memref<1x32x2048xbf16, #tpu.memory_space<vmem>>, vector<1x32x2048xbf16>
    %1 = vector.shape_cast %0 : vector<1x32x2048xbf16> to vector<32x2048xbf16>
    %c0_2 = arith.constant 0 : index
    %c0_3 = arith.constant 0 : index
    %c0_4 = arith.constant 0 : index
    %2 = vector.load %arg3[%c0_2, %c0_3, %c0_4] : memref<1x2048x256xbf16, #tpu.memory_space<vmem>>, vector<1x2048x256xbf16>
    %3 = vector.shape_cast %2 : vector<1x2048x256xbf16> to vector<2048x256xbf16>
    %cst = arith.constant dense<0.000000e+00> : vector<32x256xf32>
    %4 = tpu.matmul %1, %3, %cst {dimension_numbers = #tpu.dot_dimension_numbers<[1], [0], [0], [1], [0, 0, 1, 1], [], []>} : vector<32x2048xbf16>, vector<2048x256xbf16>, vector<32x256xf32> -> vector<32x256xf32>
    %5 = arith.truncf %4 : vector<32x256xf32> to vector<32x256xbf16>
    %c0_5 = arith.constant 0 : index
    %c0_6 = arith.constant 0 : index
    %c0_7 = arith.constant 0 : index
    %6 = vector.load %arg4[%c0_5, %c0_6, %c0_7] : memref<1x32x256xbf16, #tpu.memory_space<vmem>>, vector<1x32x256xbf16>
    %7 = vector.shape_cast %6 : vector<1x32x256xbf16> to vector<32x256xbf16>
    %8 = vector.shape_cast %5 : vector<32x256xbf16> to vector<1x32x256xbf16>
    tpu.vector_store %arg4[%c0_5, %c0_6, %c0_7], %8 {strides = array<i32>} : memref<1x32x256xbf16, #tpu.memory_space<vmem>>, vector<1x32x256xbf16>,
    %cst_8 = arith.constant dense<0.000000e+00> : vector<256xf32>
    %9 = vector.multi_reduction <add>, %4, %cst_8 [0] : vector<32x256xf32> to vector<256xf32>
    %10 = vector.shape_cast %9 : vector<256xf32> to vector<1x256xf32>
    %11 = arith.mulf %4, %4 : vector<32x256xf32>
    %cst_9 = arith.constant dense<0.000000e+00> : vector<256xf32>
    %12 = vector.multi_reduction <add>, %11, %cst_9 [0] : vector<32x256xf32> to vector<256xf32>
    %13 = vector.shape_cast %12 : vector<256xf32> to vector<1x256xf32>
    %14 = vector.shape_cast %10 : vector<1x256xf32> to vector<1x256xf32>
    %15 = vector.broadcast %14 : vector<1x256xf32> to vector<8x256xf32>
    %c0_10 = arith.constant 0 : index
    %c0_11 = arith.constant 0 : index
    %c0_12 = arith.constant 0 : index
    %16 = vector.load %arg5[%c0_10, %c0_11, %c0_12] : memref<1x8x256xf32, #tpu.memory_space<vmem>>, vector<1x8x256xf32>
    %17 = vector.shape_cast %16 : vector<1x8x256xf32> to vector<8x256xf32>
    %18 = vector.shape_cast %15 : vector<8x256xf32> to vector<1x8x256xf32>
    tpu.vector_store %arg5[%c0_10, %c0_11, %c0_12], %18 {strides = array<i32>} : memref<1x8x256xf32, #tpu.memory_space<vmem>>, vector<1x8x256xf32>,
    %19 = vector.shape_cast %13 : vector<1x256xf32> to vector<1x256xf32>
    %20 = vector.broadcast %19 : vector<1x256xf32> to vector<8x256xf32>
    %c0_13 = arith.constant 0 : index
    %c0_14 = arith.constant 0 : index
    %c0_15 = arith.constant 0 : index
    %21 = vector.load %arg6[%c0_13, %c0_14, %c0_15] : memref<1x8x256xf32, #tpu.memory_space<vmem>>, vector<1x8x256xf32>
    %22 = vector.shape_cast %21 : vector<1x8x256xf32> to vector<8x256xf32>
    %23 = vector.shape_cast %20 : vector<8x256xf32> to vector<1x8x256xf32>
    tpu.vector_store %arg6[%c0_13, %c0_14, %c0_15], %23 {strides = array<i32>} : memref<1x8x256xf32, #tpu.memory_space<vmem>>, vector<1x8x256xf32>,
    return
  }
  func.func @transform_0(%arg0: i32, %arg1: i32) -> (i32, i32, i32) {
    %c0_i32 = arith.constant 0 : i32
    %c0_i32_0 = arith.constant 0 : i32
    return %arg0, %arg1, %c0_i32 : i32, i32, i32
  }
  func.func @transform_1(%arg0: i32, %arg1: i32) -> (i32, i32, i32) {
    %c0_i32 = arith.constant 0 : i32
    %c0_i32_0 = arith.constant 0 : i32
    %c0_i32_1 = arith.constant 0 : i32
    return %arg0, %c0_i32, %c0_i32_0 : i32, i32, i32
  }
  func.func @transform_2(%arg0: i32, %arg1: i32) -> (i32, i32, i32) {
    %c0_i32 = arith.constant 0 : i32
    %c0_i32_0 = arith.constant 0 : i32
    return %arg0, %arg1, %c0_i32 : i32, i32, i32
  }
  func.func @transform_3(%arg0: i32, %arg1: i32) -> (i32, i32, i32) {
    %c1_i32 = arith.constant 1 : i32
    %0 = arith.muli %arg0, %c1_i32 : i32
    %1 = arith.addi %0, %arg1 : i32
    %c0_i32 = arith.constant 0 : i32
    %c0_i32_0 = arith.constant 0 : i32
    %c0_i32_1 = arith.constant 0 : i32
    return %1, %c0_i32, %c0_i32_0 : i32, i32, i32
  }
  func.func @transform_4(%arg0: i32, %arg1: i32) -> (i32, i32, i32) {
    %c1_i32 = arith.constant 1 : i32
    %0 = arith.muli %arg0, %c1_i32 : i32
    %1 = arith.addi %0, %arg1 : i32
    %c0_i32 = arith.constant 0 : i32
    %c0_i32_0 = arith.constant 0 : i32
    %c0_i32_1 = arith.constant 0 : i32
    return %1, %c0_i32, %c0_i32_0 : i32, i32, i32
  }
}

module attributes {stable_mosaic.version = 11 : i64} {
  func.func @bn_act_kernel(%arg0: i32, %arg1: i32, %arg2: memref<1x32x256xbf16, #tpu.memory_space<vmem>>, %arg3: memref<1x256xf32, #tpu.memory_space<vmem>>, %arg4: memref<1x256xf32, #tpu.memory_space<vmem>>, %arg5: memref<1x256xf32, #tpu.memory_space<vmem>>, %arg6: memref<1x32x256xbf16, #tpu.memory_space<vmem>>) attributes {dimension_semantics = [#tpu.dimension_semantics<parallel>, #tpu.dimension_semantics<parallel>], iteration_bounds = array<i64: 4, 1>, scalar_prefetch = 0 : i64, scratch_operands = 0 : i64, tpu.core_type = #tpu.core_type<tc>, window_params = [{transform_indices = @transform_0, window_bounds = array<i64: 1, 32, 256>}, {pipeline_mode = #tpu.pipeline_mode<synchronous>, transform_indices = @transform_1, window_bounds = array<i64: 1, 256>}, {pipeline_mode = #tpu.pipeline_mode<synchronous>, transform_indices = @transform_2, window_bounds = array<i64: 1, 256>}, {pipeline_mode = #tpu.pipeline_mode<synchronous>, transform_indices = @transform_3, window_bounds = array<i64: 1, 256>}, {transform_indices = @transform_4, window_bounds = array<i64: 1, 32, 256>}]} {
    %c0 = arith.constant 0 : index
    %c0_0 = arith.constant 0 : index
    %c0_1 = arith.constant 0 : index
    %0 = vector.load %arg2[%c0, %c0_0, %c0_1] : memref<1x32x256xbf16, #tpu.memory_space<vmem>>, vector<1x32x256xbf16>
    %1 = vector.shape_cast %0 : vector<1x32x256xbf16> to vector<32x256xbf16>
    %2 = arith.extf %1 : vector<32x256xbf16> to vector<32x256xf32>
    %c0_2 = arith.constant 0 : index
    %c0_3 = arith.constant 0 : index
    %3 = vector.load %arg3[%c0_2, %c0_3] : memref<1x256xf32, #tpu.memory_space<vmem>>, vector<1x256xf32>
    %4 = vector.broadcast %3 : vector<1x256xf32> to vector<32x256xf32>
    %5 = arith.subf %2, %4 : vector<32x256xf32>
    %c0_4 = arith.constant 0 : index
    %c0_5 = arith.constant 0 : index
    %6 = vector.load %arg4[%c0_4, %c0_5] : memref<1x256xf32, #tpu.memory_space<vmem>>, vector<1x256xf32>
    %7 = vector.broadcast %6 : vector<1x256xf32> to vector<32x256xf32>
    %8 = arith.mulf %5, %7 : vector<32x256xf32>
    %c0_6 = arith.constant 0 : index
    %c0_7 = arith.constant 0 : index
    %9 = vector.load %arg5[%c0_6, %c0_7] : memref<1x256xf32, #tpu.memory_space<vmem>>, vector<1x256xf32>
    %10 = vector.broadcast %9 : vector<1x256xf32> to vector<32x256xf32>
    %11 = arith.addf %8, %10 : vector<32x256xf32>
    %cst = arith.constant 0.000000e+00 : f32
    %12 = vector.broadcast %cst : f32 to vector<32x256xf32>
    %13 = arith.maximumf %11, %12 : vector<32x256xf32>
    %14 = arith.truncf %13 : vector<32x256xf32> to vector<32x256xbf16>
    %c0_8 = arith.constant 0 : index
    %c0_9 = arith.constant 0 : index
    %c0_10 = arith.constant 0 : index
    %15 = vector.load %arg6[%c0_8, %c0_9, %c0_10] : memref<1x32x256xbf16, #tpu.memory_space<vmem>>, vector<1x32x256xbf16>
    %16 = vector.shape_cast %15 : vector<1x32x256xbf16> to vector<32x256xbf16>
    %17 = vector.shape_cast %14 : vector<32x256xbf16> to vector<1x32x256xbf16>
    tpu.vector_store %arg6[%c0_8, %c0_9, %c0_10], %17 {strides = array<i32>} : memref<1x32x256xbf16, #tpu.memory_space<vmem>>, vector<1x32x256xbf16>,
    return
  }
  func.func @transform_0(%arg0: i32, %arg1: i32) -> (i32, i32, i32) {
    %c0_i32 = arith.constant 0 : i32
    %c0_i32_0 = arith.constant 0 : i32
    return %arg0, %arg1, %c0_i32 : i32, i32, i32
  }
  func.func @transform_1(%arg0: i32, %arg1: i32) -> (i32, i32) {
    %c0_i32 = arith.constant 0 : i32
    %c0_i32_0 = arith.constant 0 : i32
    %c0_i32_1 = arith.constant 0 : i32
    return %c0_i32, %c0_i32_0 : i32, i32
  }
  func.func @transform_2(%arg0: i32, %arg1: i32) -> (i32, i32) {
    %c0_i32 = arith.constant 0 : i32
    %c0_i32_0 = arith.constant 0 : i32
    %c0_i32_1 = arith.constant 0 : i32
    return %c0_i32, %c0_i32_0 : i32, i32
  }
  func.func @transform_3(%arg0: i32, %arg1: i32) -> (i32, i32) {
    %c0_i32 = arith.constant 0 : i32
    %c0_i32_0 = arith.constant 0 : i32
    %c0_i32_1 = arith.constant 0 : i32
    return %c0_i32, %c0_i32_0 : i32, i32
  }
  func.func @transform_4(%arg0: i32, %arg1: i32) -> (i32, i32, i32) {
    %c0_i32 = arith.constant 0 : i32
    %c0_i32_0 = arith.constant 0 : i32
    return %arg0, %arg1, %c0_i32 : i32, i32, i32
  }
}

module attributes {stable_mosaic.version = 11 : i64} {
  func.func @mm_stats_kernel(%arg0: i32, %arg1: i32, %arg2: memref<1x128x1024xbf16, #tpu.memory_space<vmem>>, %arg3: memref<1x1024x128xbf16, #tpu.memory_space<vmem>>, %arg4: memref<1x128x128xbf16, #tpu.memory_space<vmem>>, %arg5: memref<1x8x128xf32, #tpu.memory_space<vmem>>, %arg6: memref<1x8x128xf32, #tpu.memory_space<vmem>>) attributes {dimension_semantics = [#tpu.dimension_semantics<parallel>, #tpu.dimension_semantics<parallel>], iteration_bounds = array<i64: 4, 1>, scalar_prefetch = 0 : i64, scratch_operands = 0 : i64, tpu.core_type = #tpu.core_type<tc>, window_params = [{transform_indices = @transform_0, window_bounds = array<i64: 1, 128, 1024>}, {transform_indices = @transform_1, window_bounds = array<i64: 1, 1024, 128>}, {transform_indices = @transform_2, window_bounds = array<i64: 1, 128, 128>}, {transform_indices = @transform_3, window_bounds = array<i64: 1, 8, 128>}, {transform_indices = @transform_4, window_bounds = array<i64: 1, 8, 128>}]} {
    %c0 = arith.constant 0 : index
    %c0_0 = arith.constant 0 : index
    %c0_1 = arith.constant 0 : index
    %0 = vector.load %arg2[%c0, %c0_0, %c0_1] : memref<1x128x1024xbf16, #tpu.memory_space<vmem>>, vector<1x128x1024xbf16>
    %1 = vector.shape_cast %0 : vector<1x128x1024xbf16> to vector<128x1024xbf16>
    %c0_2 = arith.constant 0 : index
    %c0_3 = arith.constant 0 : index
    %c0_4 = arith.constant 0 : index
    %2 = vector.load %arg3[%c0_2, %c0_3, %c0_4] : memref<1x1024x128xbf16, #tpu.memory_space<vmem>>, vector<1x1024x128xbf16>
    %3 = vector.shape_cast %2 : vector<1x1024x128xbf16> to vector<1024x128xbf16>
    %cst = arith.constant dense<0.000000e+00> : vector<128x128xf32>
    %4 = tpu.matmul %1, %3, %cst {dimension_numbers = #tpu.dot_dimension_numbers<[1], [0], [0], [1], [0, 0, 1, 1], [], []>} : vector<128x1024xbf16>, vector<1024x128xbf16>, vector<128x128xf32> -> vector<128x128xf32>
    %5 = arith.truncf %4 : vector<128x128xf32> to vector<128x128xbf16>
    %c0_5 = arith.constant 0 : index
    %c0_6 = arith.constant 0 : index
    %c0_7 = arith.constant 0 : index
    %6 = vector.load %arg4[%c0_5, %c0_6, %c0_7] : memref<1x128x128xbf16, #tpu.memory_space<vmem>>, vector<1x128x128xbf16>
    %7 = vector.shape_cast %6 : vector<1x128x128xbf16> to vector<128x128xbf16>
    %8 = vector.shape_cast %5 : vector<128x128xbf16> to vector<1x128x128xbf16>
    tpu.vector_store %arg4[%c0_5, %c0_6, %c0_7], %8 {strides = array<i32>} : memref<1x128x128xbf16, #tpu.memory_space<vmem>>, vector<1x128x128xbf16>,
    %cst_8 = arith.constant dense<0.000000e+00> : vector<128xf32>
    %9 = vector.multi_reduction <add>, %4, %cst_8 [0] : vector<128x128xf32> to vector<128xf32>
    %10 = vector.shape_cast %9 : vector<128xf32> to vector<1x128xf32>
    %11 = arith.mulf %4, %4 : vector<128x128xf32>
    %cst_9 = arith.constant dense<0.000000e+00> : vector<128xf32>
    %12 = vector.multi_reduction <add>, %11, %cst_9 [0] : vector<128x128xf32> to vector<128xf32>
    %13 = vector.shape_cast %12 : vector<128xf32> to vector<1x128xf32>
    %14 = vector.shape_cast %10 : vector<1x128xf32> to vector<1x128xf32>
    %15 = vector.broadcast %14 : vector<1x128xf32> to vector<8x128xf32>
    %c0_10 = arith.constant 0 : index
    %c0_11 = arith.constant 0 : index
    %c0_12 = arith.constant 0 : index
    %16 = vector.load %arg5[%c0_10, %c0_11, %c0_12] : memref<1x8x128xf32, #tpu.memory_space<vmem>>, vector<1x8x128xf32>
    %17 = vector.shape_cast %16 : vector<1x8x128xf32> to vector<8x128xf32>
    %18 = vector.shape_cast %15 : vector<8x128xf32> to vector<1x8x128xf32>
    tpu.vector_store %arg5[%c0_10, %c0_11, %c0_12], %18 {strides = array<i32>} : memref<1x8x128xf32, #tpu.memory_space<vmem>>, vector<1x8x128xf32>,
    %19 = vector.shape_cast %13 : vector<1x128xf32> to vector<1x128xf32>
    %20 = vector.broadcast %19 : vector<1x128xf32> to vector<8x128xf32>
    %c0_13 = arith.constant 0 : index
    %c0_14 = arith.constant 0 : index
    %c0_15 = arith.constant 0 : index
    %21 = vector.load %arg6[%c0_13, %c0_14, %c0_15] : memref<1x8x128xf32, #tpu.memory_space<vmem>>, vector<1x8x128xf32>
    %22 = vector.shape_cast %21 : vector<1x8x128xf32> to vector<8x128xf32>
    %23 = vector.shape_cast %20 : vector<8x128xf32> to vector<1x8x128xf32>
    tpu.vector_store %arg6[%c0_13, %c0_14, %c0_15], %23 {strides = array<i32>} : memref<1x8x128xf32, #tpu.memory_space<vmem>>, vector<1x8x128xf32>,
    return
  }
  func.func @transform_0(%arg0: i32, %arg1: i32) -> (i32, i32, i32) {
    %c0_i32 = arith.constant 0 : i32
    %c0_i32_0 = arith.constant 0 : i32
    return %arg0, %arg1, %c0_i32 : i32, i32, i32
  }
  func.func @transform_1(%arg0: i32, %arg1: i32) -> (i32, i32, i32) {
    %c0_i32 = arith.constant 0 : i32
    %c0_i32_0 = arith.constant 0 : i32
    %c0_i32_1 = arith.constant 0 : i32
    return %arg0, %c0_i32, %c0_i32_0 : i32, i32, i32
  }
  func.func @transform_2(%arg0: i32, %arg1: i32) -> (i32, i32, i32) {
    %c0_i32 = arith.constant 0 : i32
    %c0_i32_0 = arith.constant 0 : i32
    return %arg0, %arg1, %c0_i32 : i32, i32, i32
  }
  func.func @transform_3(%arg0: i32, %arg1: i32) -> (i32, i32, i32) {
    %c1_i32 = arith.constant 1 : i32
    %0 = arith.muli %arg0, %c1_i32 : i32
    %1 = arith.addi %0, %arg1 : i32
    %c0_i32 = arith.constant 0 : i32
    %c0_i32_0 = arith.constant 0 : i32
    %c0_i32_1 = arith.constant 0 : i32
    return %1, %c0_i32, %c0_i32_0 : i32, i32, i32
  }
  func.func @transform_4(%arg0: i32, %arg1: i32) -> (i32, i32, i32) {
    %c1_i32 = arith.constant 1 : i32
    %0 = arith.muli %arg0, %c1_i32 : i32
    %1 = arith.addi %0, %arg1 : i32
    %c0_i32 = arith.constant 0 : i32
    %c0_i32_0 = arith.constant 0 : i32
    %c0_i32_1 = arith.constant 0 : i32
    return %1, %c0_i32, %c0_i32_0 : i32, i32, i32
  }
}

module attributes {stable_mosaic.version = 11 : i64} {
  func.func @bn_act_kernel(%arg0: i32, %arg1: i32, %arg2: memref<1x128x128xbf16, #tpu.memory_space<vmem>>, %arg3: memref<1x128xf32, #tpu.memory_space<vmem>>, %arg4: memref<1x128xf32, #tpu.memory_space<vmem>>, %arg5: memref<1x128xf32, #tpu.memory_space<vmem>>, %arg6: memref<1x128x128xbf16, #tpu.memory_space<vmem>>) attributes {dimension_semantics = [#tpu.dimension_semantics<parallel>, #tpu.dimension_semantics<parallel>], iteration_bounds = array<i64: 4, 1>, scalar_prefetch = 0 : i64, scratch_operands = 0 : i64, tpu.core_type = #tpu.core_type<tc>, window_params = [{transform_indices = @transform_0, window_bounds = array<i64: 1, 128, 128>}, {pipeline_mode = #tpu.pipeline_mode<synchronous>, transform_indices = @transform_1, window_bounds = array<i64: 1, 128>}, {pipeline_mode = #tpu.pipeline_mode<synchronous>, transform_indices = @transform_2, window_bounds = array<i64: 1, 128>}, {pipeline_mode = #tpu.pipeline_mode<synchronous>, transform_indices = @transform_3, window_bounds = array<i64: 1, 128>}, {transform_indices = @transform_4, window_bounds = array<i64: 1, 128, 128>}]} {
    %c0 = arith.constant 0 : index
    %c0_0 = arith.constant 0 : index
    %c0_1 = arith.constant 0 : index
    %0 = vector.load %arg2[%c0, %c0_0, %c0_1] : memref<1x128x128xbf16, #tpu.memory_space<vmem>>, vector<1x128x128xbf16>
    %1 = vector.shape_cast %0 : vector<1x128x128xbf16> to vector<128x128xbf16>
    %2 = arith.extf %1 : vector<128x128xbf16> to vector<128x128xf32>
    %c0_2 = arith.constant 0 : index
    %c0_3 = arith.constant 0 : index
    %3 = vector.load %arg3[%c0_2, %c0_3] : memref<1x128xf32, #tpu.memory_space<vmem>>, vector<1x128xf32>
    %4 = vector.broadcast %3 : vector<1x128xf32> to vector<128x128xf32>
    %5 = arith.subf %2, %4 : vector<128x128xf32>
    %c0_4 = arith.constant 0 : index
    %c0_5 = arith.constant 0 : index
    %6 = vector.load %arg4[%c0_4, %c0_5] : memref<1x128xf32, #tpu.memory_space<vmem>>, vector<1x128xf32>
    %7 = vector.broadcast %6 : vector<1x128xf32> to vector<128x128xf32>
    %8 = arith.mulf %5, %7 : vector<128x128xf32>
    %c0_6 = arith.constant 0 : index
    %c0_7 = arith.constant 0 : index
    %9 = vector.load %arg5[%c0_6, %c0_7] : memref<1x128xf32, #tpu.memory_space<vmem>>, vector<1x128xf32>
    %10 = vector.broadcast %9 : vector<1x128xf32> to vector<128x128xf32>
    %11 = arith.addf %8, %10 : vector<128x128xf32>
    %cst = arith.constant 0.000000e+00 : f32
    %12 = vector.broadcast %cst : f32 to vector<128x128xf32>
    %13 = arith.maximumf %11, %12 : vector<128x128xf32>
    %14 = arith.truncf %13 : vector<128x128xf32> to vector<128x128xbf16>
    %c0_8 = arith.constant 0 : index
    %c0_9 = arith.constant 0 : index
    %c0_10 = arith.constant 0 : index
    %15 = vector.load %arg6[%c0_8, %c0_9, %c0_10] : memref<1x128x128xbf16, #tpu.memory_space<vmem>>, vector<1x128x128xbf16>
    %16 = vector.shape_cast %15 : vector<1x128x128xbf16> to vector<128x128xbf16>
    %17 = vector.shape_cast %14 : vector<128x128xbf16> to vector<1x128x128xbf16>
    tpu.vector_store %arg6[%c0_8, %c0_9, %c0_10], %17 {strides = array<i32>} : memref<1x128x128xbf16, #tpu.memory_space<vmem>>, vector<1x128x128xbf16>,
    return
  }
  func.func @transform_0(%arg0: i32, %arg1: i32) -> (i32, i32, i32) {
    %c0_i32 = arith.constant 0 : i32
    %c0_i32_0 = arith.constant 0 : i32
    return %arg0, %arg1, %c0_i32 : i32, i32, i32
  }
  func.func @transform_1(%arg0: i32, %arg1: i32) -> (i32, i32) {
    %c0_i32 = arith.constant 0 : i32
    %c0_i32_0 = arith.constant 0 : i32
    %c0_i32_1 = arith.constant 0 : i32
    return %c0_i32, %c0_i32_0 : i32, i32
  }
  func.func @transform_2(%arg0: i32, %arg1: i32) -> (i32, i32) {
    %c0_i32 = arith.constant 0 : i32
    %c0_i32_0 = arith.constant 0 : i32
    %c0_i32_1 = arith.constant 0 : i32
    return %c0_i32, %c0_i32_0 : i32, i32
  }
  func.func @transform_3(%arg0: i32, %arg1: i32) -> (i32, i32) {
    %c0_i32 = arith.constant 0 : i32
    %c0_i32_0 = arith.constant 0 : i32
    %c0_i32_1 = arith.constant 0 : i32
    return %c0_i32, %c0_i32_0 : i32, i32
  }
  func.func @transform_4(%arg0: i32, %arg1: i32) -> (i32, i32, i32) {
    %c0_i32 = arith.constant 0 : i32
    %c0_i32_0 = arith.constant 0 : i32
    return %arg0, %arg1, %c0_i32 : i32, i32, i32
  }
}

module attributes {stable_mosaic.version = 11 : i64} {
  func.func @mm_stats_kernel(%arg0: i32, %arg1: i32, %arg2: memref<1x512x512xbf16, #tpu.memory_space<vmem>>, %arg3: memref<1x512x128xbf16, #tpu.memory_space<vmem>>, %arg4: memref<1x512x128xbf16, #tpu.memory_space<vmem>>, %arg5: memref<1x8x128xf32, #tpu.memory_space<vmem>>, %arg6: memref<1x8x128xf32, #tpu.memory_space<vmem>>) attributes {dimension_semantics = [#tpu.dimension_semantics<parallel>, #tpu.dimension_semantics<parallel>], iteration_bounds = array<i64: 4, 1>, scalar_prefetch = 0 : i64, scratch_operands = 0 : i64, tpu.core_type = #tpu.core_type<tc>, window_params = [{transform_indices = @transform_0, window_bounds = array<i64: 1, 512, 512>}, {transform_indices = @transform_1, window_bounds = array<i64: 1, 512, 128>}, {transform_indices = @transform_2, window_bounds = array<i64: 1, 512, 128>}, {transform_indices = @transform_3, window_bounds = array<i64: 1, 8, 128>}, {transform_indices = @transform_4, window_bounds = array<i64: 1, 8, 128>}]} {
    %c0 = arith.constant 0 : index
    %c0_0 = arith.constant 0 : index
    %c0_1 = arith.constant 0 : index
    %0 = vector.load %arg2[%c0, %c0_0, %c0_1] : memref<1x512x512xbf16, #tpu.memory_space<vmem>>, vector<1x512x512xbf16>
    %1 = vector.shape_cast %0 : vector<1x512x512xbf16> to vector<512x512xbf16>
    %c0_2 = arith.constant 0 : index
    %c0_3 = arith.constant 0 : index
    %c0_4 = arith.constant 0 : index
    %2 = vector.load %arg3[%c0_2, %c0_3, %c0_4] : memref<1x512x128xbf16, #tpu.memory_space<vmem>>, vector<1x512x128xbf16>
    %3 = vector.shape_cast %2 : vector<1x512x128xbf16> to vector<512x128xbf16>
    %cst = arith.constant dense<0.000000e+00> : vector<512x128xf32>
    %4 = tpu.matmul %1, %3, %cst {dimension_numbers = #tpu.dot_dimension_numbers<[1], [0], [0], [1], [0, 0, 1, 1], [], []>} : vector<512x512xbf16>, vector<512x128xbf16>, vector<512x128xf32> -> vector<512x128xf32>
    %5 = arith.truncf %4 : vector<512x128xf32> to vector<512x128xbf16>
    %c0_5 = arith.constant 0 : index
    %c0_6 = arith.constant 0 : index
    %c0_7 = arith.constant 0 : index
    %6 = vector.load %arg4[%c0_5, %c0_6, %c0_7] : memref<1x512x128xbf16, #tpu.memory_space<vmem>>, vector<1x512x128xbf16>
    %7 = vector.shape_cast %6 : vector<1x512x128xbf16> to vector<512x128xbf16>
    %8 = vector.shape_cast %5 : vector<512x128xbf16> to vector<1x512x128xbf16>
    tpu.vector_store %arg4[%c0_5, %c0_6, %c0_7], %8 {strides = array<i32>} : memref<1x512x128xbf16, #tpu.memory_space<vmem>>, vector<1x512x128xbf16>,
    %cst_8 = arith.constant dense<0.000000e+00> : vector<128xf32>
    %9 = vector.multi_reduction <add>, %4, %cst_8 [0] : vector<512x128xf32> to vector<128xf32>
    %10 = vector.shape_cast %9 : vector<128xf32> to vector<1x128xf32>
    %11 = arith.mulf %4, %4 : vector<512x128xf32>
    %cst_9 = arith.constant dense<0.000000e+00> : vector<128xf32>
    %12 = vector.multi_reduction <add>, %11, %cst_9 [0] : vector<512x128xf32> to vector<128xf32>
    %13 = vector.shape_cast %12 : vector<128xf32> to vector<1x128xf32>
    %14 = vector.shape_cast %10 : vector<1x128xf32> to vector<1x128xf32>
    %15 = vector.broadcast %14 : vector<1x128xf32> to vector<8x128xf32>
    %c0_10 = arith.constant 0 : index
    %c0_11 = arith.constant 0 : index
    %c0_12 = arith.constant 0 : index
    %16 = vector.load %arg5[%c0_10, %c0_11, %c0_12] : memref<1x8x128xf32, #tpu.memory_space<vmem>>, vector<1x8x128xf32>
    %17 = vector.shape_cast %16 : vector<1x8x128xf32> to vector<8x128xf32>
    %18 = vector.shape_cast %15 : vector<8x128xf32> to vector<1x8x128xf32>
    tpu.vector_store %arg5[%c0_10, %c0_11, %c0_12], %18 {strides = array<i32>} : memref<1x8x128xf32, #tpu.memory_space<vmem>>, vector<1x8x128xf32>,
    %19 = vector.shape_cast %13 : vector<1x128xf32> to vector<1x128xf32>
    %20 = vector.broadcast %19 : vector<1x128xf32> to vector<8x128xf32>
    %c0_13 = arith.constant 0 : index
    %c0_14 = arith.constant 0 : index
    %c0_15 = arith.constant 0 : index
    %21 = vector.load %arg6[%c0_13, %c0_14, %c0_15] : memref<1x8x128xf32, #tpu.memory_space<vmem>>, vector<1x8x128xf32>
    %22 = vector.shape_cast %21 : vector<1x8x128xf32> to vector<8x128xf32>
    %23 = vector.shape_cast %20 : vector<8x128xf32> to vector<1x8x128xf32>
    tpu.vector_store %arg6[%c0_13, %c0_14, %c0_15], %23 {strides = array<i32>} : memref<1x8x128xf32, #tpu.memory_space<vmem>>, vector<1x8x128xf32>,
    return
  }
  func.func @transform_0(%arg0: i32, %arg1: i32) -> (i32, i32, i32) {
    %c0_i32 = arith.constant 0 : i32
    %c0_i32_0 = arith.constant 0 : i32
    return %arg0, %arg1, %c0_i32 : i32, i32, i32
  }
  func.func @transform_1(%arg0: i32, %arg1: i32) -> (i32, i32, i32) {
    %c0_i32 = arith.constant 0 : i32
    %c0_i32_0 = arith.constant 0 : i32
    %c0_i32_1 = arith.constant 0 : i32
    return %arg0, %c0_i32, %c0_i32_0 : i32, i32, i32
  }
  func.func @transform_2(%arg0: i32, %arg1: i32) -> (i32, i32, i32) {
    %c0_i32 = arith.constant 0 : i32
    %c0_i32_0 = arith.constant 0 : i32
    return %arg0, %arg1, %c0_i32 : i32, i32, i32
  }
  func.func @transform_3(%arg0: i32, %arg1: i32) -> (i32, i32, i32) {
    %c1_i32 = arith.constant 1 : i32
    %0 = arith.muli %arg0, %c1_i32 : i32
    %1 = arith.addi %0, %arg1 : i32
    %c0_i32 = arith.constant 0 : i32
    %c0_i32_0 = arith.constant 0 : i32
    %c0_i32_1 = arith.constant 0 : i32
    return %1, %c0_i32, %c0_i32_0 : i32, i32, i32
  }
  func.func @transform_4(%arg0: i32, %arg1: i32) -> (i32, i32, i32) {
    %c1_i32 = arith.constant 1 : i32
    %0 = arith.muli %arg0, %c1_i32 : i32
    %1 = arith.addi %0, %arg1 : i32
    %c0_i32 = arith.constant 0 : i32
    %c0_i32_0 = arith.constant 0 : i32
    %c0_i32_1 = arith.constant 0 : i32
    return %1, %c0_i32, %c0_i32_0 : i32, i32, i32
  }
}

module attributes {stable_mosaic.version = 11 : i64} {
  func.func @bn_act_kernel(%arg0: i32, %arg1: i32, %arg2: memref<1x512x128xbf16, #tpu.memory_space<vmem>>, %arg3: memref<1x128xf32, #tpu.memory_space<vmem>>, %arg4: memref<1x128xf32, #tpu.memory_space<vmem>>, %arg5: memref<1x128xf32, #tpu.memory_space<vmem>>, %arg6: memref<1x512x128xbf16, #tpu.memory_space<vmem>>) attributes {dimension_semantics = [#tpu.dimension_semantics<parallel>, #tpu.dimension_semantics<parallel>], iteration_bounds = array<i64: 4, 1>, scalar_prefetch = 0 : i64, scratch_operands = 0 : i64, tpu.core_type = #tpu.core_type<tc>, window_params = [{transform_indices = @transform_0, window_bounds = array<i64: 1, 512, 128>}, {pipeline_mode = #tpu.pipeline_mode<synchronous>, transform_indices = @transform_1, window_bounds = array<i64: 1, 128>}, {pipeline_mode = #tpu.pipeline_mode<synchronous>, transform_indices = @transform_2, window_bounds = array<i64: 1, 128>}, {pipeline_mode = #tpu.pipeline_mode<synchronous>, transform_indices = @transform_3, window_bounds = array<i64: 1, 128>}, {transform_indices = @transform_4, window_bounds = array<i64: 1, 512, 128>}]} {
    %c0 = arith.constant 0 : index
    %c0_0 = arith.constant 0 : index
    %c0_1 = arith.constant 0 : index
    %0 = vector.load %arg2[%c0, %c0_0, %c0_1] : memref<1x512x128xbf16, #tpu.memory_space<vmem>>, vector<1x512x128xbf16>
    %1 = vector.shape_cast %0 : vector<1x512x128xbf16> to vector<512x128xbf16>
    %2 = arith.extf %1 : vector<512x128xbf16> to vector<512x128xf32>
    %c0_2 = arith.constant 0 : index
    %c0_3 = arith.constant 0 : index
    %3 = vector.load %arg3[%c0_2, %c0_3] : memref<1x128xf32, #tpu.memory_space<vmem>>, vector<1x128xf32>
    %4 = vector.broadcast %3 : vector<1x128xf32> to vector<512x128xf32>
    %5 = arith.subf %2, %4 : vector<512x128xf32>
    %c0_4 = arith.constant 0 : index
    %c0_5 = arith.constant 0 : index
    %6 = vector.load %arg4[%c0_4, %c0_5] : memref<1x128xf32, #tpu.memory_space<vmem>>, vector<1x128xf32>
    %7 = vector.broadcast %6 : vector<1x128xf32> to vector<512x128xf32>
    %8 = arith.mulf %5, %7 : vector<512x128xf32>
    %c0_6 = arith.constant 0 : index
    %c0_7 = arith.constant 0 : index
    %9 = vector.load %arg5[%c0_6, %c0_7] : memref<1x128xf32, #tpu.memory_space<vmem>>, vector<1x128xf32>
    %10 = vector.broadcast %9 : vector<1x128xf32> to vector<512x128xf32>
    %11 = arith.addf %8, %10 : vector<512x128xf32>
    %cst = arith.constant 0.000000e+00 : f32
    %12 = vector.broadcast %cst : f32 to vector<512x128xf32>
    %13 = arith.maximumf %11, %12 : vector<512x128xf32>
    %14 = arith.truncf %13 : vector<512x128xf32> to vector<512x128xbf16>
    %c0_8 = arith.constant 0 : index
    %c0_9 = arith.constant 0 : index
    %c0_10 = arith.constant 0 : index
    %15 = vector.load %arg6[%c0_8, %c0_9, %c0_10] : memref<1x512x128xbf16, #tpu.memory_space<vmem>>, vector<1x512x128xbf16>
    %16 = vector.shape_cast %15 : vector<1x512x128xbf16> to vector<512x128xbf16>
    %17 = vector.shape_cast %14 : vector<512x128xbf16> to vector<1x512x128xbf16>
    tpu.vector_store %arg6[%c0_8, %c0_9, %c0_10], %17 {strides = array<i32>} : memref<1x512x128xbf16, #tpu.memory_space<vmem>>, vector<1x512x128xbf16>,
    return
  }
  func.func @transform_0(%arg0: i32, %arg1: i32) -> (i32, i32, i32) {
    %c0_i32 = arith.constant 0 : i32
    %c0_i32_0 = arith.constant 0 : i32
    return %arg0, %arg1, %c0_i32 : i32, i32, i32
  }
  func.func @transform_1(%arg0: i32, %arg1: i32) -> (i32, i32) {
    %c0_i32 = arith.constant 0 : i32
    %c0_i32_0 = arith.constant 0 : i32
    %c0_i32_1 = arith.constant 0 : i32
    return %c0_i32, %c0_i32_0 : i32, i32
  }
  func.func @transform_2(%arg0: i32, %arg1: i32) -> (i32, i32) {
    %c0_i32 = arith.constant 0 : i32
    %c0_i32_0 = arith.constant 0 : i32
    %c0_i32_1 = arith.constant 0 : i32
    return %c0_i32, %c0_i32_0 : i32, i32
  }
  func.func @transform_3(%arg0: i32, %arg1: i32) -> (i32, i32) {
    %c0_i32 = arith.constant 0 : i32
    %c0_i32_0 = arith.constant 0 : i32
    %c0_i32_1 = arith.constant 0 : i32
    return %c0_i32, %c0_i32_0 : i32, i32
  }
  func.func @transform_4(%arg0: i32, %arg1: i32) -> (i32, i32, i32) {
    %c0_i32 = arith.constant 0 : i32
    %c0_i32_0 = arith.constant 0 : i32
    return %arg0, %arg1, %c0_i32 : i32, i32, i32
  }
}

module attributes {stable_mosaic.version = 11 : i64} {
  func.func @mm_bias_act_kernel(%arg0: i32, %arg1: i32, %arg2: memref<1x2048x512xbf16, #tpu.memory_space<vmem>>, %arg3: memref<1x512x128xbf16, #tpu.memory_space<vmem>>, %arg4: memref<1x128xf32, #tpu.memory_space<vmem>>, %arg5: memref<1x2048x128xf32, #tpu.memory_space<vmem>>) attributes {dimension_semantics = [#tpu.dimension_semantics<parallel>, #tpu.dimension_semantics<parallel>], iteration_bounds = array<i64: 4, 1>, scalar_prefetch = 0 : i64, scratch_operands = 0 : i64, tpu.core_type = #tpu.core_type<tc>, window_params = [{transform_indices = @transform_0, window_bounds = array<i64: 1, 2048, 512>}, {transform_indices = @transform_1, window_bounds = array<i64: 1, 512, 128>}, {pipeline_mode = #tpu.pipeline_mode<synchronous>, transform_indices = @transform_2, window_bounds = array<i64: 1, 128>}, {transform_indices = @transform_3, window_bounds = array<i64: 1, 2048, 128>}]} {
    %c0 = arith.constant 0 : index
    %c0_0 = arith.constant 0 : index
    %c0_1 = arith.constant 0 : index
    %0 = vector.load %arg2[%c0, %c0_0, %c0_1] : memref<1x2048x512xbf16, #tpu.memory_space<vmem>>, vector<1x2048x512xbf16>
    %1 = vector.shape_cast %0 : vector<1x2048x512xbf16> to vector<2048x512xbf16>
    %c0_2 = arith.constant 0 : index
    %c0_3 = arith.constant 0 : index
    %c0_4 = arith.constant 0 : index
    %2 = vector.load %arg3[%c0_2, %c0_3, %c0_4] : memref<1x512x128xbf16, #tpu.memory_space<vmem>>, vector<1x512x128xbf16>
    %3 = vector.shape_cast %2 : vector<1x512x128xbf16> to vector<512x128xbf16>
    %cst = arith.constant dense<0.000000e+00> : vector<2048x128xf32>
    %4 = tpu.matmul %1, %3, %cst {dimension_numbers = #tpu.dot_dimension_numbers<[1], [0], [0], [1], [0, 0, 1, 1], [], []>} : vector<2048x512xbf16>, vector<512x128xbf16>, vector<2048x128xf32> -> vector<2048x128xf32>
    %c0_5 = arith.constant 0 : index
    %c0_6 = arith.constant 0 : index
    %5 = vector.load %arg4[%c0_5, %c0_6] : memref<1x128xf32, #tpu.memory_space<vmem>>, vector<1x128xf32>
    %6 = vector.broadcast %5 : vector<1x128xf32> to vector<2048x128xf32>
    %7 = arith.addf %4, %6 : vector<2048x128xf32>
    %8 = math.tanh %7 : vector<2048x128xf32>
    %c0_7 = arith.constant 0 : index
    %c0_8 = arith.constant 0 : index
    %c0_9 = arith.constant 0 : index
    %9 = vector.load %arg5[%c0_7, %c0_8, %c0_9] : memref<1x2048x128xf32, #tpu.memory_space<vmem>>, vector<1x2048x128xf32>
    %10 = vector.shape_cast %9 : vector<1x2048x128xf32> to vector<2048x128xf32>
    %11 = vector.shape_cast %8 : vector<2048x128xf32> to vector<1x2048x128xf32>
    tpu.vector_store %arg5[%c0_7, %c0_8, %c0_9], %11 {strides = array<i32>} : memref<1x2048x128xf32, #tpu.memory_space<vmem>>, vector<1x2048x128xf32>,
    return
  }
  func.func @transform_0(%arg0: i32, %arg1: i32) -> (i32, i32, i32) {
    %c0_i32 = arith.constant 0 : i32
    %c0_i32_0 = arith.constant 0 : i32
    return %arg0, %arg1, %c0_i32 : i32, i32, i32
  }
  func.func @transform_1(%arg0: i32, %arg1: i32) -> (i32, i32, i32) {
    %c0_i32 = arith.constant 0 : i32
    %c0_i32_0 = arith.constant 0 : i32
    %c0_i32_1 = arith.constant 0 : i32
    return %arg0, %c0_i32, %c0_i32_0 : i32, i32, i32
  }
  func.func @transform_2(%arg0: i32, %arg1: i32) -> (i32, i32) {
    %c0_i32 = arith.constant 0 : i32
    %c0_i32_0 = arith.constant 0 : i32
    %c0_i32_1 = arith.constant 0 : i32
    return %c0_i32, %c0_i32_0 : i32, i32
  }
  func.func @transform_3(%arg0: i32, %arg1: i32) -> (i32, i32, i32) {
    %c0_i32 = arith.constant 0 : i32
    %c0_i32_0 = arith.constant 0 : i32
    return %arg0, %arg1, %c0_i32 : i32, i32, i32
  }
}

</mosaic_0001>

<bundles_post_ra>
// kernel: generator_forward.10
= control target key start
LH: loop header
LB: loop body
LE: loop exit
PB: predicated region body
PF: predicated region fallthrough
CT: control target
= control target key end

     0   :  { %8 = vsyncpa [#allocation3], 0  ;;  %s296_s0 = inlined_call_operand.vmem [shape: bf16[1,8,128], index: 0, kind: input, shape index: {}]   ;;  %s297_s1 = inlined_call_operand.hbm [shape: bf16[1,128,128], index: 1, kind: input, shape index: {}]   ;;  %s298_s2 = inlined_call_operand.hbm [shape: f32[1,128], index: 2, kind: input, shape index: {}]   ;;  %s299_s3 = inlined_call_operand.vmem [shape: bf16[1,8,128], index: 3, kind: output, shape index: {}]  }
   0x1   :  { %9 = vsyncpa [#allocation5], 0  ;;  %s258_s12 = smov [#allocation2]  }
   0x2   :  { %s17_s13 = sshll.u32 %s258_s12, 4  ;;  %s18_s13 = int_to_ptr.vmem [resolvable:$true] %s17_s13 }
   0x3   :  { %s222_s14 = scalar_lea.vmem %s18_s13, 1024  ;;  %p227_p1 = scmp.lt.s32.totalorder %s18_s13, %s18_s13 }
   0x4   :  { %p223_p0 = scmp.ne.s32.totalorder %s18_s13, %s222_s14  ;;  %p228_p2 = scmp.lt.s32.totalorder %s222_s14, %s222_s14 }
   0x6   :  { %p229_p3 = por %p228_p2, %p227_p1 }
   0x8   :  { %p230_p4 = pnand %p229_p3, %p223_p0 }
   0xa   :  { %233 = shalt.err (!%p230_p4)
}
   0xb   :  { %s259_s15 = smov 64   ;;  %s260_s16 = smov 4  }
   0xc   :  { %23 = dma.hbm_to_vmem [thread:$0]  %s297_s1, 1024, %s18_s13, [#allocation3], %s259_s15, %s259_s15, %s260_s16  }
   0xd   :  { %s261_s19 = smov [#allocation4]  }
   0xe   :  { %s30_s20 = sshll.u32 %s261_s19, 4  ;;  %s31_s20 = int_to_ptr.vmem [resolvable:$true] %s30_s20 }
   0xf   :  { %s242_s21 = scalar_lea.vmem %s31_s20, 16  ;;  %s246_s22 = scalar_lea.vmem %s31_s20, 32 }
  0x10   :  { %p243_p5 = scmp.ne.s32.totalorder %s31_s20, %s242_s21  ;;  %p247_p6 = scmp.lt.s32.totalorder %s31_s20, %s31_s20 }
  0x11   :  { %p248_p7 = scmp.lt.s32.totalorder %s246_s22, %s242_s21 }
  0x13   :  { %p249_p8 = por %p248_p7, %p247_p6 }
  0x15   :  { %p250_p9 = pnand %p249_p8, %p243_p5 }
  0x17   :  { %253 = shalt.err (!%p250_p9)
}
  0x18   :  { %33 = dma.hbm_to_vmem [thread:$0]  %s298_s2, 16, %s31_s20, [#allocation5]  }
  0x19   :  { %254 = dma.done.wait [#allocation3], 1024  }
  0x1a   :  { %255 = vsyncadd [#allocation3], 4294966272 }
  0x1b   :  { %256 = dma.done.wait [#allocation5], 16  }
  0x1c   :  { %257 = vsyncadd [#allocation5], 4294967280  ;;  %v262_v0 = vmov 0.0   ;;  %vm263_vm0 = vmmov 0   ;;  %v206_v1 = vld [vmem:[#allocation2 + $0x38] sm:$0xff]   ;;  %v207_v2 = vld [vmem:[#allocation2 + $0x30] sm:$0xff]  }
  0x1d   :  { %180 = vmatprep.subr.bf16.mxu0 %v262_v0  ;;  %196 = vmatprep.mubr.msk.bf16.mxu0 %vm263_vm0, %v262_v0  ;;  %v208_v3 = vld [vmem:[#allocation2 + $0x28] sm:$0xff]   ;;  %v209_v4 = vld [vmem:[#allocation2 + $0x20] sm:$0xff]   ;;  %v210_v5 = vld [vmem:[#allocation2 + $0x18] sm:$0xff]  }
  0x1e   :  { %181 = vmatpush3.bf16.msra.mxu0 %v206_v1  ;;  %v211_v6 = vld [vmem:[#allocation2 + $0x10] sm:$0xff]   ;;  %v212_v7 = vld [vmem:[#allocation2 + $0x8] sm:$0xff]   ;;  %v213_v8 = vld [vmem:[#allocation2] sm:$0xff]  }
  0x1f   :  { %182 = vmatprep.subr.bf16.mxu0 %v262_v0  ;;  %v41_v9 = vld [vmem:[%s296_s0] sm:$0xf] }
  0x20   :  { %v162_v10 = vld [vmem:[#allocation4] ss:$0 sm:$0xff] }
  0x22   :  { %183 = vmatpush3.bf16.msra.mxu0 %v207_v2 }
  0x23   :  { %184 = vmatprep.subr.bf16.mxu0 %v262_v0 }
  0x26   :  { %185 = vmatpush3.bf16.msra.mxu0 %v208_v3 }
  0x27   :  { %186 = vmatprep.subr.bf16.mxu0 %v262_v0 }
  0x2a   :  { %187 = vmatpush3.bf16.msra.mxu0 %v209_v4 }
  0x2b   :  { %188 = vmatprep.subr.bf16.mxu0 %v262_v0 }
  0x2e   :  { %189 = vmatpush3.bf16.msra.mxu0 %v210_v5 }
  0x2f   :  { %190 = vmatprep.subr.bf16.mxu0 %v262_v0 }
  0x32   :  { %191 = vmatpush3.bf16.msra.mxu0 %v211_v6 }
  0x33   :  { %192 = vmatprep.subr.bf16.mxu0 %v262_v0 }
  0x36   :  { %193 = vmatpush3.bf16.msra.mxu0 %v212_v7 }
  0x37   :  { %194 = vmatprep.subr.bf16.mxu0 %v262_v0 }
  0x3a   :  { %195 = vmatpush3.bf16.msra.mxu0 %v213_v8 }
  0x3d   :  { %197 = vmatmul.mubr.bf16.vlgmr.msra.gmra.mxu0 %v41_v9 }
  0xfd   :  { %v147_v11 = vpop.f32.mrf.mxu0 }
  0xfe   :  { %v148_v12 = vadd.f32 %v162_v10, %v147_v11 }
  0xff   :  { %v198_v13 = vpop.f32.mrf.mxu0 }
 0x100   :  { %v153_v14 = vmax.f32 %v148_v12, 0.0 }
 0x101   :  { %v150_v15 = vpop.f32.mrf.mxu0 }
 0x102   :  { %v154_v16 = vpack.c.bf16 %v153_v14, %v153_v14 }
 0x103   :  { %v199_v17 = vpop.f32.mrf.mxu0 }
 0x104   :  { %155 = vst [vmem:[%s299_s3] sm:$0xf] %v154_v16 }
 0x105   :  { %160 = vsyncpa [#allocation3], 1 }
 0x106   :  { %161 = vsyncpa [#allocation5], 1 }

// kernel: squeeze.32
= control target key start
LH: loop header
LB: loop body
LE: loop exit
PB: predicated region body
PF: predicated region fallthrough
CT: control target
= control target key end

     0   :  { %v277_v9 = vmov 0.0   ;;  %s342_s0 = inlined_call_operand.vmem [shape: bf16[1,8,512], index: 0, kind: input, shape index: {}]   ;;  %s343_s1 = inlined_call_operand.vmem [shape: bf16[2,2,2,1,512], index: 1, kind: output, shape index: {}]  }
   0x1   :  { %v275_v0 = vld [vmem:[%s342_s0 + $0x8] sm:$0xff]   ;;  %v272_v1 = vld [vmem:[%s342_s0] sm:$0xff]  }
   0x2   :  { %v269_v2 = vunpack.c.l.bf16 %v275_v0  ;;  %v270_v3 = vunpack.c.h.bf16 %v275_v0  ;;  %v273_v4 = vunpack.c.l.bf16 %v272_v1  ;;  %v274_v5 = vunpack.c.h.bf16 %v272_v1 }
   0x4   :  { %67 = vst [vmem:[#allocation0] sm:$0x3] %v273_v4   ;;  %69 = vst [vmem:[#allocation0 + $0x1e] sm:$0xc] %v273_v4  }
   0x5   :  { %71 = vst [vmem:[#allocation0 + $0x3c] sm:$0x30] %v273_v4   ;;  %73 = vst [vmem:[#allocation0 + $0x5a] sm:$0xc0] %v273_v4  }
   0x6   :  { %77 = vst [vmem:[#allocation0 + $0x8] sm:$0x3] %v274_v5   ;;  %79 = vst [vmem:[#allocation0 + $0x26] sm:$0xc] %v274_v5  }
   0x7   :  { %81 = vst [vmem:[#allocation0 + $0x44] sm:$0x30] %v274_v5   ;;  %83 = vst [vmem:[#allocation0 + $0x62] sm:$0xc0] %v274_v5  }
   0x8   :  { %87 = vst [vmem:[#allocation0 + $0x10] sm:$0x3] %v269_v2   ;;  %89 = vst [vmem:[#allocation0 + $0x2e] sm:$0xc] %v269_v2  }
   0x9   :  { %91 = vst [vmem:[#allocation0 + $0x4c] sm:$0x30] %v269_v2   ;;  %93 = vst [vmem:[#allocation0 + $0x6a] sm:$0xc0] %v269_v2  }
   0xa   :  { %97 = vst [vmem:[#allocation0 + $0x18] sm:$0x3] %v270_v3   ;;  %99 = vst [vmem:[#allocation0 + $0x36] sm:$0xc] %v270_v3  }
   0xb   :  { %101 = vst [vmem:[#allocation0 + $0x54] sm:$0x30] %v270_v3   ;;  %103 = vst [vmem:[#allocation0 + $0x72] sm:$0xc0] %v270_v3   ;;  %v109_v6 = vld [vmem:[#allocation0] sm:$0x3] }
   0xc   :  { %v110_v10 = vpack.c.bf16 %v277_v9, %v109_v6  ;;  %v138_v14 = vld [vmem:[#allocation0 + $0x20] sm:$0x3] }
   0xd   :  { %v115_v7 = vld [vmem:[#allocation0 + $0x8] sm:$0x3]  ;;  %v139_v17 = vpack.c.bf16 %v277_v9, %v138_v14  ;;  %v170_v21 = vld [vmem:[#allocation0 + $0x40] sm:$0x3] }
   0xe   :  { %v116_v11 = vpack.c.bf16 %v277_v9, %v115_v7  ;;  %v146_v15 = vld [vmem:[#allocation0 + $0x28] sm:$0x3]  ;;  %113 = vst [vmem:[%s343_s1] sm:$0x1] %v110_v10  ;;  %v171_v24 = vpack.c.bf16 %v277_v9, %v170_v21  ;;  %v202_v31 = vld [vmem:[#allocation0 + $0x60] sm:$0x3] }
   0xf   :  { %v122_v8 = vld [vmem:[#allocation0 + $0x10] sm:$0x3]  ;;  %v147_v18 = vpack.c.bf16 %v277_v9, %v146_v15  ;;  %v178_v25 = vld [vmem:[#allocation0 + $0x48] sm:$0x3]  ;;  %255 = vst [vmem:[%s343_s1 + $0x4] sm:$0x1] %v139_v17  ;;  %v203_v34 = vpack.c.bf16 %v277_v9, %v202_v31 }
  0x10   :  { %v123_v12 = vpack.c.bf16 %v277_v9, %v122_v8  ;;  %v154_v19 = vld [vmem:[#allocation0 + $0x30] sm:$0x3]  ;;  %252 = vst [vmem:[%s343_s1 + $0x1] sm:$0x1] %v116_v11  ;;  %v179_v28 = vpack.c.bf16 %v277_v9, %v178_v25  ;;  %v210_v32 = vld [vmem:[#allocation0 + $0x68] sm:$0x3] }
  0x11   :  { %v130_v13 = vld [vmem:[#allocation0 + $0x18] sm:$0x3]  ;;  %v155_v22 = vpack.c.bf16 %v277_v9, %v154_v19  ;;  %v186_v26 = vld [vmem:[#allocation0 + $0x50] sm:$0x3]  ;;  %256 = vst [vmem:[%s343_s1 + $0x5] sm:$0x1] %v147_v18  ;;  %v211_v35 = vpack.c.bf16 %v277_v9, %v210_v32 }
  0x12   :  { %v131_v16 = vpack.c.bf16 %v277_v9, %v130_v13  ;;  %v162_v20 = vld [vmem:[#allocation0 + $0x38] sm:$0x3]  ;;  %253 = vst [vmem:[%s343_s1 + $0x2] sm:$0x1] %v123_v12  ;;  %v187_v29 = vpack.c.bf16 %v277_v9, %v186_v26  ;;  %v218_v33 = vld [vmem:[#allocation0 + $0x70] sm:$0x3] }
  0x13   :  { %v163_v23 = vpack.c.bf16 %v277_v9, %v162_v20  ;;  %v194_v27 = vld [vmem:[#allocation0 + $0x58] sm:$0x3]  ;;  %257 = vst [vmem:[%s343_s1 + $0x6] sm:$0x1] %v155_v22  ;;  %259 = vst [vmem:[%s343_s1 + $0x8] sm:$0x1] %v171_v24  ;;  %v219_v36 = vpack.c.bf16 %v277_v9, %v218_v33 }
  0x14   :  { %254 = vst [vmem:[%s343_s1 + $0x3] sm:$0x1] %v131_v16  ;;  %v195_v30 = vpack.c.bf16 %v277_v9, %v194_v27  ;;  %v226_v37 = vld [vmem:[#allocation0 + $0x78] sm:$0x3]  ;;  %260 = vst [vmem:[%s343_s1 + $0x9] sm:$0x1] %v179_v28 }
  0x15   :  { %258 = vst [vmem:[%s343_s1 + $0x7] sm:$0x1] %v163_v23  ;;  %261 = vst [vmem:[%s343_s1 + $0xa] sm:$0x1] %v187_v29  ;;  %v227_v38 = vpack.c.bf16 %v277_v9, %v226_v37 }
  0x16   :  { %262 = vst [vmem:[%s343_s1 + $0xb] sm:$0x1] %v195_v30  ;;  %263 = vst [vmem:[%s343_s1 + $0xc] sm:$0x1] %v203_v34 }
  0x17   :  { %264 = vst [vmem:[%s343_s1 + $0xd] sm:$0x1] %v211_v35  ;;  %265 = vst [vmem:[%s343_s1 + $0xe] sm:$0x1] %v219_v36 }
  0x18   :  { %266 = vst [vmem:[%s343_s1 + $0xf] sm:$0x1] %v227_v38 }

// kernel: generator_forward.12
= control target key start
LH: loop header
LB: loop body
LE: loop exit
PB: predicated region body
PF: predicated region fallthrough
CT: control target
= control target key end

     0   :  { %9 = vsyncpa [#allocation3], 0  ;;  %s592_s15 = smov 0   ;;  %s594_s16 = smov 0   ;;  %s664_s0 = inlined_call_operand.vmem [shape: bf16[4,8,512], index: 0, kind: input, shape index: {}]   ;;  %s665_s1 = inlined_call_operand.vmem [shape: f32[1,512], index: 1, kind: input, shape index: {}]   ;;  %s666_s2 = inlined_call_operand.vmem [shape: f32[1,512], index: 2, kind: input, shape index: {}]   ;;  %s667_s3 = inlined_call_operand.hbm [shape: f32[1,512], index: 3, kind: input, shape index: {}]   ;;  %s668_s4 = inlined_call_operand.vmem [shape: bf16[4,8,512], index: 4, kind: output, shape index: {}]  }
   0x1   :  { %s596_s17 = smov 0  }
   0x2 LB: > { %s458_s18 = sadd.s32 4294967295, %s564_s17   ;;  %s27_s19 = sadd.s32 1, %s560_s16  ;;  %s564_s17 = sphi %s596_s17, %s15_s17   ;;  %s560_s16 = sphi %s594_s16, %s672_s16   ;;  %s556_s15 = sphi %s592_s15, %s671_s15  }
   0x3   : > { %p29_p0 = scmp.ge.s32.totalorder %s27_s19, 4  ;;  %p460_p1 = scmp.ge.s32.totalorder %s564_s17, 1 }
   0x4   : > { %p151_p2 = scmp.lt.s32.totalorder %s564_s17, 5  ;;  %p617_p4 = scmp.eq.s32.totalorder %s458_s18, 0 }
   0x5   : > { %s674_s19 = smov (%p29_p0, %s27_s19), 0  ;;  %s566_s22 = smov [#allocation2]  }
   0x6   : > { %p613_p3 = pnand %p460_p1, %p151_p2  ;;  %s170_s23 = sshll.u32 %s566_s22, 4  ;;  %s171_s23 = int_to_ptr.vmem [resolvable:$true] %s170_s23 }
   0x7   : > { %s523_s24 = scalar_lea.vmem %s171_s23, 64  ;;  %p531_p11 = scmp.lt.s32.totalorder %s171_s23, %s171_s23 }
   0x8   : > { %p481_p5 = pneg %p613_p3  ;;  %p524_p8 = scmp.ne.s32.totalorder %s171_s23, %s523_s24 }
   0x9   : > { %p532_p12 = scmp.lt.s32.totalorder %s523_s24, %s523_s24 }
   0xa   : > { %p482_p6 = pnand %p617_p4, %p481_p5 }
   0xb   : > { %p533_p13 = por %p532_p12, %p531_p11 }
   0xc   : > { %p514_p7 = pneg %p482_p6 }
   0xe   : > { %p526_p9 = pnand %p524_p8, %p514_p7 }
  0x10   : > { %p527_p10 = pneg %p526_p9 }
  0x12   : > { %p534_p0 = pnand %p533_p13, %p527_p10 }
  0x14   : > { %537 = shalt.err (!%p534_p0)
}
  0x15   : > { %484 = dma.hbm_to_vmem [thread:$0]  (!%p482_p6), %s667_s3, 64, %s171_s23, [#allocation3]  }
  0x16   : > { %195 = sbr.rel (%p613_p3) target bundleno = 49 (0x31), region = 36 }
  0x1b   : > { %551 = dma.done.wait (%p617_p4), [#allocation3], 64  }
  0x1c   : > { %553 = vsyncadd (%p617_p4), [#allocation3], 4294967232  ;;  %p229_p1 = scmp.lt.s32.totalorder %s556_s15, 3  ;;  %v255_v0 = vlaneseq  ;;  %v253_v8 = vld [vmem:[%s665_s1] sm:$0xf] }
  0x1d   : > { %v279_v13 = vld [vmem:[%s666_s2] sm:$0xf] }
  0x1e   : > { %s676_s15 = smov (!%p229_p1, %s556_s15), 3  ;;  %v256_v1 = vshrl.u32 %v255_v0, 7  ;;  %v305_v14 = vld [vmem:[#allocation2] sm:$0xf] }
  0x1f   : > { %s473_s27 = sshll.u32 %s676_s15, 4 }
  0x20   : > { %s237_s30 = scalar_lea.vmem %s664_s0, %s473_s27  ;;  %v257_v2 = vsub.s32 0, %v256_v1  ;;  %v261_v3 = vsub.s32 1, %v256_v1  ;;  %v265_v4 = vsub.s32 2, %v256_v1  ;;  %v269_v5 = vsub.s32 3, %v256_v1  ;;  %s246_s11 = scalar_lea.vmem %s668_s4, %s473_s27 }
  0x21   : > { %v247_v6 = vld [vmem:[%s237_s30] sm:$0xff]  ;;  %v248_v7 = vld [vmem:[%s237_s30 + $0x8] sm:$0xff] }
  0x22   : > { %v249_v9 = vunpack.c.l.bf16 %v247_v6  ;;  %v250_v10 = vunpack.c.h.bf16 %v247_v6  ;;  %v251_v11 = vunpack.c.l.bf16 %v248_v7  ;;  %v252_v12 = vunpack.c.h.bf16 %v248_v7 }
  0x23   : > { %v258_v15 = vrot.slane %v253_v8, %v257_v2  ;;  %v262_v16 = vrot.slane %v253_v8, %v261_v3  ;;  %v266_v17 = vrot.slane %v253_v8, %v265_v4  ;;  %v270_v18 = vrot.slane %v253_v8, %v269_v5 }
  0x24   : > { %v284_v19 = vrot.slane %v279_v13, %v257_v2  ;;  %v288_v20 = vrot.slane %v279_v13, %v261_v3  ;;  %v310_v21 = vrot.slane %v305_v14, %v257_v2  ;;  %v314_v22 = vrot.slane %v305_v14, %v261_v3 }
  0x25   : > { %v275_v23 = vsub.f32 %v249_v9, %v258_v15  ;;  %v276_v24 = vsub.f32 %v250_v10, %v262_v16  ;;  %v277_v25 = vsub.f32 %v251_v11, %v266_v17  ;;  %v278_v26 = vsub.f32 %v252_v12, %v270_v18 }
  0x26   : > { %v292_v27 = vrot.slane %v279_v13, %v265_v4  ;;  %v296_v28 = vrot.slane %v279_v13, %v269_v5  ;;  %v318_v29 = vrot.slane %v305_v14, %v265_v4  ;;  %v322_v30 = vrot.slane %v305_v14, %v269_v5 }
  0x27   : > { %v301_v31 = vmul.f32 %v284_v19, %v275_v23  ;;  %v302_v32 = vmul.f32 %v288_v20, %v276_v24 }
  0x28   : > { %v303_v33 = vmul.f32 %v292_v27, %v277_v25  ;;  %v304_v34 = vmul.f32 %v296_v28, %v278_v26 }
  0x29   : > { %v327_v35 = vadd.f32 %v310_v21, %v301_v31  ;;  %v328_v36 = vadd.f32 %v314_v22, %v302_v32 }
  0x2a   : > { %v329_v37 = vadd.f32 %v318_v29, %v303_v33  ;;  %v330_v38 = vadd.f32 %v322_v30, %v304_v34 }
  0x2b   : > { %v331_v39 = vmax.f32 %v327_v35, 0.0  ;;  %v332_v40 = vmax.f32 %v328_v36, 0.0 }
  0x2c   : > { %v333_v41 = vmax.f32 %v329_v37, 0.0  ;;  %v334_v42 = vmax.f32 %v330_v38, 0.0 }
  0x2d   : > { %v475_v43 = vpack.c.bf16 %v332_v40, %v331_v39 }
  0x2e   : > { %v476_v44 = vpack.c.bf16 %v334_v42, %v333_v41 }
  0x2f   : > { %351 = vst [vmem:[%s246_s11] sm:$0xff] %v475_v43 }
  0x30   : > { %352 = vst [vmem:[%s246_s11 + $0x8] sm:$0xff] %v476_v44 }
  0x31 PF: > { %s15_s17 = sadd.s32 1, %s564_s17   ;;  %s671_s15 = smov %s560_s16 }
  0x32   : > { %p12_p2 = scmp.ge.s32.totalorder %s15_s17, 6   ;;  %s672_s16 = smov %s674_s19 }
  0x34   :  { %14 = sbr.rel (!%p12_p2) target bundleno = 2 (0x2), region = 71 }
  0x39   :  { %382 = vsyncpa [#allocation3], 1 }
  0x3a   :  { %384 = vsyncpa [#allocation3 + $0x1], 1 }

// kernel: generator_forward.11
= control target key start
LH: loop header
LB: loop body
LE: loop exit
PB: predicated region body
PF: predicated region fallthrough
CT: control target
= control target key end

     0   :  { %10 = vsyncpa [#allocation3], 0  ;;  %s1256_s0 = inlined_call_operand.vmem [shape: bf16[4,8,128], index: 0, kind: input, shape index: {}]   ;;  %s1257_s1 = inlined_call_operand.hbm [shape: bf16[4,128,512], index: 1, kind: input, shape index: {}]   ;;  %s1258_s2 = inlined_call_operand.vmem [shape: bf16[4,8,512], index: 2, kind: output, shape index: {0}]   ;;  %s1259_s3 = inlined_call_operand.vmem [shape: f32[4,8,512], index: 3, kind: output, shape index: {1}]   ;;  %s1260_s4 = inlined_call_operand.vmem [shape: f32[4,8,512], index: 4, kind: output, shape index: {2}]  }
   0x1   :  { %12 = vsyncpa [#allocation3 + $0x1], 0  ;;  %s1112_s15 = smov 0   ;;  %s1114_s16 = smov 0  }
   0x2   :  { %s1116_s17 = smov 0   ;;  %s1118_s18 = smov 0  }
   0x3   :  { %s1120_s19 = smov 0   ;;  %s1122_s20 = smov 0  }
   0x4 LB: > { %s839_s21 = sadd.s32 4294967295, %s1081_s20   ;;  %s30_s22 = sadd.s32 1, %s1077_s19  ;;  %s1081_s20 = sphi %s1122_s20, %s18_s20   ;;  %s1077_s19 = sphi %s1120_s19, %s1268_s19   ;;  %s1073_s18 = sphi %s1118_s18, %s1267_s18   ;;  %s1069_s17 = sphi %s1116_s17, %s1266_s17   ;;  %s1065_s16 = sphi %s1114_s16, %s1265_s16   ;;  %s1061_s15 = sphi %s1112_s15, %s1264_s15  }
   0x5   : > { %p32_p0 = scmp.ge.s32.totalorder %s30_s22, 4  ;;  %s65_s23 = sadd.s32 1, %s1069_s17 }
   0x6   : > { %p72_p1 = scmp.ne.s32.totalorder %s1069_s17, %s1065_s16  ;;  %p73_p2 = scmp.eq.s32.totalorder %s1081_s20, 0 }
   0x7   : > { %s1270_s22 = smov (%p32_p0, %s30_s22), 0  ;;  %p78_p4 = scmp.ne.s32.totalorder %s1065_s16, %s1061_s15 }
   0x8   : > { %p1148_p3 = por %p73_p2, %p72_p1  ;;  %s62_s25 = ssub.s32 %s1077_s19, %s1270_s22 }
   0x9   : > { %p79_p5 = scmp.eq.s32.totalorder %s839_s21, 0  ;;  %p63_p6 = scmp.eq.s32.totalorder %s62_s25, 0 }
   0xa   : > { %p903_p8 = scmp.lt.s32.totalorder %s1081_s20, 4  ;;  %s196_s28 = sand.u32 1, %s1069_s17  }
   0xb   : > { %p1155_p7 = por %p79_p5, %p78_p4  ;;  %s891_s29 = sshll.u32 %s1077_s19, 12 }
   0xc   : > { %s1161_s27 = scalar_select %p63_p6, %s1069_s17, %s65_s23  }
   0xd   : > { %s843_s30 = sshll.u32 %s196_s28, 8  ;;  %s206_s7 = scalar_lea.hbm %s1257_s1, %s891_s29 }
   0xe   : > { %s200_s8 = scalar_lea.vmem [#allocation2], %s843_s30  ;;  %p1170_p9 = pnand %p903_p8, %p1148_p3 }
   0xf   : > { %s207_s9 = sshll.u32 %s200_s8, 4  ;;  %s197_s11 = scalar_lea.sflag [#allocation3], %s196_s28  ;;  %s208_s9 = int_to_ptr.vmem [resolvable:$true] %s207_s9 }
  0x10   : > { %p1005_p10 = pneg %p1170_p9  ;;  %s1016_s12 = scalar_lea.vmem %s208_s9, 4096 }
  0x11   : > { %p1017_p11 = scmp.ne.s32.totalorder %s208_s9, %s1016_s12  ;;  %s1083_s13 = smov [#allocation2]  }
  0x12   : > { %s1021_s14 = sshll.u32 %s1083_s13, 4  ;;  %s1022_s14 = int_to_ptr.vmem [resolvable:$false] %s1021_s14 }
  0x13   : > { %p1019_p12 = pnand %p1017_p11, %p1005_p10  ;;  %s1023_s15 = scalar_lea.vmem %s1022_s14, 8192 }
  0x14   : > { %p1024_p0 = scmp.lt.s32.totalorder %s208_s9, %s1022_s14  ;;  %p1025_p1 = scmp.lt.s32.totalorder %s1023_s15, %s1016_s12 }
  0x15   : > { %p1020_p13 = pneg %p1019_p12 }
  0x16   : > { %p1026_p2 = por %p1025_p1, %p1024_p0 }
  0x18   : > { %p1027_p3 = pnand %p1026_p2, %p1020_p13 }
  0x1a   : > { %1030 = shalt.err (!%p1027_p3)
}
  0x1b   : > { %s1084_s21 = smov 256   ;;  %s1085_s23 = smov 16  }
  0x1c   : > { %902 = dma.hbm_to_vmem [thread:$0]  (!%p1170_p9), %s206_s7, 4096, %s208_s9, %s197_s11, %s1084_s21, %s1084_s21, %s1085_s23  }
  0x1d   : > { %p846_p4 = scmp.ge.s32.totalorder %s1081_s20, 1  ;;  %p215_p5 = scmp.lt.s32.totalorder %s1081_s20, 5 }
  0x1f   : > { %p216_p6 = pnand %p846_p4, %p215_p5 }
  0x20   : > { %s221_s24 = sand.u32 (!%p216_p6), 1, %s1065_s16  }
  0x21   : > { %219 = sbr.rel (%p216_p6) target bundleno = 286 (0x11e), region = 28  ;;  %s847_s25 = sshll.u32 (!%p216_p6), %s221_s24, 8 }
  0x22   : > { %s222_s28 = scalar_lea.sflag (!%p216_p6), [#allocation3], %s221_s24  ;;  %s1181_s29 = scalar_lea.vmem (!%p216_p6), [#allocation2], %s847_s25 }
  0x26   : > { %1056 = dma.done.wait (%p1155_p7), %s222_s28, 4096  }
  0x27   : > { %1058 = vsyncadd (%p1155_p7), %s222_s28, 4294963200  ;;  %v1086_v0 = vmov 0   ;;  %v955_v1 = vld [vmem:[%s1181_s29 + $0xe4] ss:$16 sps:$4 sm:$0xff]   ;;  %v957_v2 = vld [vmem:[%s1181_s29 + $0xec] ss:$16 sps:$4 sm:$0xff]  }
  0x28   : > { %529 = vmatprep.mubr.bf16.mxu0 %v1086_v0  ;;  %570 = vmatprep.mubr.bf16.mxu1 %v1086_v0  ;;  %v959_v3 = vld [vmem:[%s1181_s29 + $0xe0] ss:$16 sps:$4 sm:$0xff]   ;;  %v960_v4 = vld [vmem:[%s1181_s29 + $0xe8] ss:$16 sps:$4 sm:$0xff]   ;;  %v961_v5 = vld [vmem:[%s1181_s29 + $0xc4] ss:$16 sps:$4 sm:$0xff]  }
  0x29   : > { %497 = vmatprep.subr.bf16.mxu0 %v955_v1  ;;  %538 = vmatprep.subr.bf16.mxu1 %v957_v2  ;;  %v963_v6 = vld [vmem:[%s1181_s29 + $0xcc] ss:$16 sps:$4 sm:$0xff]   ;;  %v965_v7 = vld [vmem:[%s1181_s29 + $0xc0] ss:$16 sps:$4 sm:$0xff]   ;;  %v966_v8 = vld [vmem:[%s1181_s29 + $0xc8] ss:$16 sps:$4 sm:$0xff]  }
  0x2a   : > { %498 = vmatpush1.bf16.msra.mxu0 %v959_v3  ;;  %539 = vmatpush1.bf16.msra.mxu1 %v960_v4  ;;  %v967_v9 = vld [vmem:[%s1181_s29 + $0xa4] ss:$16 sps:$4 sm:$0xff]   ;;  %v969_v10 = vld [vmem:[%s1181_s29 + $0xac] ss:$16 sps:$4 sm:$0xff]   ;;  %v971_v11 = vld [vmem:[%s1181_s29 + $0xa0] ss:$16 sps:$4 sm:$0xff]  }
  0x2b   : > { %499 = vmatprep.subr.bf16.mxu0 %v961_v5  ;;  %540 = vmatprep.subr.bf16.mxu1 %v963_v6  ;;  %v972_v12 = vld [vmem:[%s1181_s29 + $0xa8] ss:$16 sps:$4 sm:$0xff]   ;;  %v973_v13 = vld [vmem:[%s1181_s29 + $0x84] ss:$16 sps:$4 sm:$0xff]   ;;  %v975_v14 = vld [vmem:[%s1181_s29 + $0x8c] ss:$16 sps:$4 sm:$0xff]  }
  0x2c   : > { %v977_v15 = vld [vmem:[%s1181_s29 + $0x80] ss:$16 sps:$4 sm:$0xff]   ;;  %v978_v16 = vld [vmem:[%s1181_s29 + $0x88] ss:$16 sps:$4 sm:$0xff]   ;;  %v979_v17 = vld [vmem:[%s1181_s29 + $0x64] ss:$16 sps:$4 sm:$0xff]  }
  0x2d   : > { %v981_v18 = vld [vmem:[%s1181_s29 + $0x6c] ss:$16 sps:$4 sm:$0xff]   ;;  %v983_v19 = vld [vmem:[%s1181_s29 + $0x60] ss:$16 sps:$4 sm:$0xff]   ;;  %v984_v20 = vld [vmem:[%s1181_s29 + $0x68] ss:$16 sps:$4 sm:$0xff]  }
  0x2e   : > { %500 = vmatpush1.bf16.msra.mxu0 %v965_v7  ;;  %541 = vmatpush1.bf16.msra.mxu1 %v966_v8  ;;  %v985_v21 = vld [vmem:[%s1181_s29 + $0x44] ss:$16 sps:$4 sm:$0xff]   ;;  %v987_v22 = vld [vmem:[%s1181_s29 + $0x4c] ss:$16 sps:$4 sm:$0xff]   ;;  %p273_p7 = scmp.lt.s32.totalorder %s1073_s18, 3 }
  0x2f   : > { %501 = vmatprep.subr.bf16.mxu0 %v967_v9  ;;  %542 = vmatprep.subr.bf16.mxu1 %v969_v10  ;;  %v989_v23 = vld [vmem:[%s1181_s29 + $0x40] ss:$16 sps:$4 sm:$0xff]   ;;  %v990_v24 = vld [vmem:[%s1181_s29 + $0x48] ss:$16 sps:$4 sm:$0xff]   ;;  %v991_v25 = vld [vmem:[%s1181_s29 + $0x24] ss:$16 sps:$4 sm:$0xff]  }
  0x30   : > { %v993_v26 = vld [vmem:[%s1181_s29 + $0x2c] ss:$16 sps:$4 sm:$0xff]   ;;  %s1272_s18 = smov (!%p273_p7, %s1073_s18), 3  ;;  %v995_v27 = vld [vmem:[%s1181_s29 + $0x20] ss:$16 sps:$4 sm:$0xff]  }
  0x31   : > { %v996_v28 = vld [vmem:[%s1181_s29 + $0x28] ss:$16 sps:$4 sm:$0xff]   ;;  %v997_v29 = vld [vmem:[%s1181_s29 + $0x4] ss:$16 sps:$4 sm:$0xff]   ;;  %v999_v30 = vld [vmem:[%s1181_s29 + $0xc] ss:$16 sps:$4 sm:$0xff]  }
  0x32   : > { %502 = vmatpush1.bf16.msra.mxu0 %v971_v11  ;;  %543 = vmatpush1.bf16.msra.mxu1 %v972_v12  ;;  %s848_s26 = sshll.u32 %s1272_s18, 2  ;;  %v1001_v31 = vld [vmem:[%s1181_s29] ss:$16 sps:$4 sm:$0xff]   ;;  %v1002_v32 = vld [vmem:[%s1181_s29 + $0x8] ss:$16 sps:$4 sm:$0xff]   ;;  %s892_s7 = sshll.u32 %s1272_s18, 4 }
  0x33   : > { %503 = vmatprep.subr.bf16.mxu0 %v973_v13  ;;  %544 = vmatprep.subr.bf16.mxu1 %v975_v14  ;;  %s279_s6 = scalar_lea.vmem %s1256_s0, %s848_s26  ;;  %s288_s10 = scalar_lea.vmem %s1258_s2, %s892_s7 }
  0x34   : > { %v304_v33 = vld [vmem:[%s279_s6] sm:$0xf]  ;;  %s893_s11 = sshll.u32 %s1272_s18, 5 }
  0x35   : > { %s294_s14 = scalar_lea.vmem %s1259_s3, %s893_s11  ;;  %s301_s21 = scalar_lea.vmem %s1260_s4, %s893_s11 }
  0x36   : > { %504 = vmatpush1.bf16.msra.mxu0 %v977_v15  ;;  %545 = vmatpush1.bf16.msra.mxu1 %v978_v16 }
  0x37   : > { %505 = vmatprep.subr.bf16.mxu0 %v979_v17  ;;  %546 = vmatprep.subr.bf16.mxu1 %v981_v18 }
  0x3a   : > { %506 = vmatpush1.bf16.msra.mxu0 %v983_v19  ;;  %547 = vmatpush1.bf16.msra.mxu1 %v984_v20 }
  0x3b   : > { %507 = vmatprep.subr.bf16.mxu0 %v985_v21  ;;  %548 = vmatprep.subr.bf16.mxu1 %v987_v22 }
  0x3e   : > { %508 = vmatpush1.bf16.msra.mxu0 %v989_v23  ;;  %549 = vmatpush1.bf16.msra.mxu1 %v990_v24 }
  0x3f   : > { %509 = vmatprep.subr.bf16.mxu0 %v991_v25  ;;  %550 = vmatprep.subr.bf16.mxu1 %v993_v26 }
  0x42   : > { %510 = vmatpush1.bf16.msra.mxu0 %v995_v27  ;;  %551 = vmatpush1.bf16.msra.mxu1 %v996_v28 }
  0x43   : > { %511 = vmatprep.subr.bf16.mxu0 %v997_v29  ;;  %552 = vmatprep.subr.bf16.mxu1 %v999_v30 }
  0x46   : > { %512 = vmatpush1.bf16.msra.mxu0 %v1001_v31  ;;  %553 = vmatpush1.bf16.msra.mxu1 %v1002_v32 }
  0x49   : > { %530 = vmatmul.mubr.bf16.vlgmr.msra.gmra.mxu0 %v304_v33  ;;  %571 = vmatmul.mubr.bf16.vlgmr.msra.gmra.mxu1 %v304_v33 }
 0x109   : > { %v531_v34 = vpop.f32.mrf.mxu0  ;;  %v572_v35 = vpop.f32.mrf.mxu1 }
 0x10a   : > { %v597_v36 = vrot.slane %v531_v34, 4  ;;  %v621_v37 = vmul.f32 %v531_v34, %v531_v34  ;;  %v609_v38 = vrot.slane %v572_v35, 4  ;;  %v623_v39 = vmul.f32 %v572_v35, %v572_v35 }
 0x10b   : > { %v533_v40 = vpop.f32.mrf.mxu0  ;;  %v574_v41 = vpop.f32.mrf.mxu1 }
 0x10c   : > { %v598_v42 = vadd.f32 %v597_v36, %v531_v34  ;;  %v625_v43 = vrot.slane %v621_v37, 4  ;;  %v610_v44 = vadd.f32 %v609_v38, %v572_v35  ;;  %v637_v45 = vrot.slane %v623_v39, 4 }
 0x10d   : > { %v895_v46 = vpack.c.bf16 %v533_v40, %v531_v34  ;;  %v603_v47 = vrot.slane %v533_v40, 4  ;;  %v622_v48 = vmul.f32 %v533_v40, %v533_v40  ;;  %v896_v49 = vpack.c.bf16 %v574_v41, %v572_v35  ;;  %v535_v50 = vpop.f32.mrf.mxu0  ;;  %v576_v51 = vpop.f32.mrf.mxu1 }
 0x10e   : > { %v599_v52 = vrot.slane %v598_v42, 2  ;;  %v626_v53 = vadd.f32 %v625_v43, %v621_v37  ;;  %v611_v54 = vrot.slane %v610_v44, 2  ;;  %v638_v55 = vadd.f32 %v637_v45, %v623_v39 }
 0x10f   : > { %595 = vst [vmem:[%s288_s10] sm:$0xff] %v895_v46  ;;  %v604_v56 = vadd.f32 %v603_v47, %v533_v40  ;;  %v631_v57 = vrot.slane %v622_v48, 4  ;;  %596 = vst [vmem:[%s288_s10 + $0x8] sm:$0xff] %v896_v49  ;;  %v615_v58 = vrot.slane %v574_v41, 4  ;;  %v624_v59 = vmul.f32 %v574_v41, %v574_v41  ;;  %v536_v60 = vpop.f32.mrf.mxu0  ;;  %v577_v61 = vpop.f32.mrf.mxu1 }
 0x110   : > { %v600_v62 = vadd.f32 %v599_v52, %v598_v42  ;;  %v627_v63 = vrot.slane %v626_v53, 2  ;;  %v612_v0 = vadd.f32 %v611_v54, %v610_v44  ;;  %v639_v1 = vrot.slane %v638_v55, 2 }
 0x111   : > { %v605_v2 = vrot.slane %v604_v56, 2  ;;  %v632_v3 = vadd.f32 %v631_v57, %v622_v48  ;;  %v616_v4 = vadd.f32 %v615_v58, %v574_v41  ;;  %v643_v5 = vrot.slane %v624_v59, 4 }
 0x112   : > { %v601_v6 = vrot.slane %v600_v62, 1  ;;  %v628_v7 = vadd.f32 %v627_v63, %v626_v53  ;;  %v613_v8 = vrot.slane %v612_v0, 1  ;;  %v640_v9 = vadd.f32 %v639_v1, %v638_v55 }
 0x113   : > { %v606_v10 = vadd.f32 %v605_v2, %v604_v56  ;;  %v633_v11 = vrot.slane %v632_v3, 2  ;;  %v617_v12 = vrot.slane %v616_v4, 2  ;;  %v644_v13 = vadd.f32 %v643_v5, %v624_v59 }
 0x114   : > { %v602_v14 = vadd.f32 %v601_v6, %v600_v62  ;;  %v629_v15 = vrot.slane %v628_v7, 1  ;;  %v614_v16 = vadd.f32 %v613_v8, %v612_v0  ;;  %v641_v17 = vrot.slane %v640_v9, 1 }
 0x115   : > { %v607_v18 = vrot.slane %v606_v10, 1  ;;  %v634_v19 = vadd.f32 %v633_v11, %v632_v3  ;;  %v618_v20 = vadd.f32 %v617_v12, %v616_v4  ;;  %v645_v21 = vrot.slane %v644_v13, 2 }
 0x116   : > { %v630_v22 = vadd.f32 %v629_v15, %v628_v7  ;;  %649 = vst [vmem:[%s294_s14] sm:$0xff] %v602_v14  ;;  %v642_v23 = vadd.f32 %v641_v17, %v640_v9  ;;  %651 = vst [vmem:[%s294_s14 + $0x10] sm:$0xff] %v614_v16 }
 0x117   : > { %v608_v24 = vadd.f32 %v607_v18, %v606_v10  ;;  %v635_v25 = vrot.slane %v634_v19, 1  ;;  %v619_v26 = vrot.slane %v618_v20, 1  ;;  %v646_v27 = vadd.f32 %v645_v21, %v644_v13 }
 0x118   : > { %653 = vst [vmem:[%s301_s21] sm:$0xff] %v630_v22  ;;  %655 = vst [vmem:[%s301_s21 + $0x10] sm:$0xff] %v642_v23 }
 0x119   : > { %v636_v28 = vadd.f32 %v635_v25, %v634_v19  ;;  %650 = vst [vmem:[%s294_s14 + $0x8] sm:$0xff] %v608_v24  ;;  %v620_v29 = vadd.f32 %v619_v26, %v618_v20  ;;  %v647_v30 = vrot.slane %v646_v27, 1 }
 0x11b   : > { %654 = vst [vmem:[%s301_s21 + $0x8] sm:$0xff] %v636_v28  ;;  %v648_v31 = vadd.f32 %v647_v30, %v646_v27  ;;  %652 = vst [vmem:[%s294_s14 + $0x18] sm:$0xff] %v620_v29 }
 0x11d   : > { %656 = vst [vmem:[%s301_s21 + $0x18] sm:$0xff] %v648_v31 }
 0x11e PF: > { %s18_s20 = sadd.s32 1, %s1081_s20   ;;  %s1264_s15 = smov %s1065_s16 }
 0x11f   : > { %p15_p8 = scmp.ge.s32.totalorder %s18_s20, 6   ;;  %s1265_s16 = smov %s1069_s17 }
 0x120   : > { %s1266_s17 = smov %s1161_s27  ;;  %s1267_s18 = smov %s1077_s19 }
 0x121   : > { %s1268_s19 = smov %s1270_s22  ;;  %17 = sbr.rel (!%p15_p8) target bundleno = 4 (0x4), region = 95 }
 0x126   :  { %724 = vsyncpa [#allocation3], 1 }
 0x127   :  { %726 = vsyncpa [#allocation3 + $0x1], 1 }

// kernel: generator_forward.14
= control target key start
LH: loop header
LB: loop body
LE: loop exit
PB: predicated region body
PF: predicated region fallthrough
CT: control target
= control target key end

     0   :  { %s540_s15 = smov 0   ;;  %s542_s16 = smov 0   ;;  %s589_s0 = inlined_call_operand.vmem [shape: bf16[4,32,256], index: 0, kind: input, shape index: {}]   ;;  %s590_s1 = inlined_call_operand.vmem [shape: f32[1,256], index: 1, kind: input, shape index: {}]   ;;  %s591_s2 = inlined_call_operand.vmem [shape: f32[1,256], index: 2, kind: input, shape index: {}]   ;;  %s592_s3 = inlined_call_operand.vmem [shape: f32[1,256], index: 3, kind: input, shape index: {}]   ;;  %s593_s4 = inlined_call_operand.vmem [shape: bf16[4,32,256], index: 4, kind: output, shape index: {}]  }
   0x1   :  { %s544_s17 = smov 0  }
   0x2 LB: > { %s26_s18 = sadd.s32 1, %s509_s16  ;;  %p450_p0 = scmp.ge.s32.totalorder %s513_s17, 1  ;;  %s513_s17 = sphi %s544_s17, %s14_s17   ;;  %s509_s16 = sphi %s542_s16, %s595_s16   ;;  %s505_s15 = sphi %s540_s15, %s594_s15  }
   0x3   : > { %p28_p1 = scmp.ge.s32.totalorder %s26_s18, 4  ;;  %p184_p2 = scmp.lt.s32.totalorder %s513_s17, 5 }
   0x5   : > { %s597_s18 = smov (%p28_p1, %s26_s18), 0  ;;  %p185_p3 = pnand %p450_p0, %p184_p2 }
   0x6   : > { %p221_p4 = scmp.lt.s32.totalorder (!%p185_p3), %s505_s15, 3 }
   0x7   : > { %188 = sbr.rel (%p185_p3) target bundleno = 32 (0x20), region = 36 }
   0xc   : > { %v256_v0 = vlaneseq  ;;  %s599_s15 = smov (!%p221_p4, %s505_s15), 3  ;;  %v254_v2 = vld [vmem:[%s590_s1] sm:$0x3] }
   0xd   : > { %v274_v3 = vld [vmem:[%s591_s2] sm:$0x3]  ;;  %s461_s23 = sshll.u32 %s599_s15, 5 }
   0xe   : > { %v257_v1 = vshrl.u32 %v256_v0, 7  ;;  %v294_v6 = vld [vmem:[%s592_s3] sm:$0x3]  ;;  %s229_s28 = scalar_lea.vmem %s589_s0, %s461_s23  ;;  %s240_s5 = scalar_lea.vmem %s593_s4, %s461_s23 }
   0xf   : > { %v242_v7 = vld [vmem:[%s229_s28] sm:$0xff]  ;;  %v243_v8 = vld [vmem:[%s229_s28 + $0x8] sm:$0xff]  ;;  %v244_v9 = vld [vmem:[%s229_s28 + $0x10] sm:$0xff] }
  0x10   : > { %v258_v4 = vsub.s32 0, %v257_v1  ;;  %v262_v5 = vsub.s32 1, %v257_v1  ;;  %v245_v14 = vld [vmem:[%s229_s28 + $0x18] sm:$0xff]  ;;  %v246_v15 = vunpack.c.l.bf16 %v242_v7  ;;  %v247_v16 = vunpack.c.h.bf16 %v242_v7 }
  0x11   : > { %v248_v19 = vunpack.c.l.bf16 %v243_v8  ;;  %v249_v20 = vunpack.c.h.bf16 %v243_v8  ;;  %v250_v21 = vunpack.c.l.bf16 %v244_v9  ;;  %v251_v22 = vunpack.c.h.bf16 %v244_v9 }
  0x12   : > { %v259_v10 = vrot.slane %v254_v2, %v258_v4  ;;  %v263_v11 = vrot.slane %v254_v2, %v262_v5  ;;  %v279_v12 = vrot.slane %v274_v3, %v258_v4  ;;  %v283_v13 = vrot.slane %v274_v3, %v262_v5 }
  0x13   : > { %v299_v17 = vrot.slane %v294_v6, %v258_v4  ;;  %v303_v18 = vrot.slane %v294_v6, %v262_v5  ;;  %v252_v25 = vunpack.c.l.bf16 %v245_v14  ;;  %v253_v26 = vunpack.c.h.bf16 %v245_v14 }
  0x14   : > { %v266_v23 = vsub.f32 %v246_v15, %v259_v10  ;;  %v267_v24 = vsub.f32 %v247_v16, %v263_v11  ;;  %v268_v27 = vsub.f32 %v248_v19, %v259_v10  ;;  %v269_v28 = vsub.f32 %v249_v20, %v263_v11 }
  0x15   : > { %v270_v29 = vsub.f32 %v250_v21, %v259_v10  ;;  %v271_v30 = vsub.f32 %v251_v22, %v263_v11  ;;  %v272_v33 = vsub.f32 %v252_v25, %v259_v10  ;;  %v273_v34 = vsub.f32 %v253_v26, %v263_v11 }
  0x16   : > { %v286_v31 = vmul.f32 %v279_v12, %v266_v23  ;;  %v287_v32 = vmul.f32 %v283_v13, %v267_v24  ;;  %v288_v35 = vmul.f32 %v279_v12, %v268_v27  ;;  %v289_v36 = vmul.f32 %v283_v13, %v269_v28 }
  0x17   : > { %v290_v37 = vmul.f32 %v279_v12, %v270_v29  ;;  %v291_v38 = vmul.f32 %v283_v13, %v271_v30  ;;  %v292_v41 = vmul.f32 %v279_v12, %v272_v33  ;;  %v293_v42 = vmul.f32 %v283_v13, %v273_v34 }
  0x18   : > { %v306_v39 = vadd.f32 %v299_v17, %v286_v31  ;;  %v307_v40 = vadd.f32 %v303_v18, %v287_v32  ;;  %v308_v43 = vadd.f32 %v299_v17, %v288_v35  ;;  %v309_v44 = vadd.f32 %v303_v18, %v289_v36 }
  0x19   : > { %v310_v45 = vadd.f32 %v299_v17, %v290_v37  ;;  %v311_v46 = vadd.f32 %v303_v18, %v291_v38  ;;  %v312_v49 = vadd.f32 %v299_v17, %v292_v41  ;;  %v313_v50 = vadd.f32 %v303_v18, %v293_v42 }
  0x1a   : > { %v314_v47 = vmax.f32 %v306_v39, 0.0  ;;  %v315_v48 = vmax.f32 %v307_v40, 0.0  ;;  %v316_v51 = vmax.f32 %v308_v43, 0.0  ;;  %v317_v52 = vmax.f32 %v309_v44, 0.0 }
  0x1b   : > { %v318_v53 = vmax.f32 %v310_v45, 0.0  ;;  %v319_v54 = vmax.f32 %v311_v46, 0.0  ;;  %v320_v56 = vmax.f32 %v312_v49, 0.0  ;;  %v321_v57 = vmax.f32 %v313_v50, 0.0 }
  0x1c   : > { %v463_v55 = vpack.c.bf16 %v315_v48, %v314_v47  ;;  %v464_v58 = vpack.c.bf16 %v317_v52, %v316_v51 }
  0x1d   : > { %v465_v59 = vpack.c.bf16 %v319_v54, %v318_v53  ;;  %v466_v60 = vpack.c.bf16 %v321_v57, %v320_v56 }
  0x1e   : > { %346 = vst [vmem:[%s240_s5] sm:$0xff] %v463_v55  ;;  %347 = vst [vmem:[%s240_s5 + $0x8] sm:$0xff] %v464_v58 }
  0x1f   : > { %348 = vst [vmem:[%s240_s5 + $0x10] sm:$0xff] %v465_v59  ;;  %349 = vst [vmem:[%s240_s5 + $0x18] sm:$0xff] %v466_v60 }
  0x20 PF: > { %s14_s17 = sadd.s32 1, %s513_s17   ;;  %s594_s15 = smov %s509_s16 }
  0x21   : > { %p11_p5 = scmp.ge.s32.totalorder %s14_s17, 6   ;;  %s595_s16 = smov %s597_s18 }
  0x23   :  { %13 = sbr.rel (!%p11_p5) target bundleno = 2 (0x2), region = 66 }

// kernel: squeeze.41
= control target key start
LH: loop header
LB: loop body
LE: loop exit
PB: predicated region body
PF: predicated region fallthrough
CT: control target
= control target key end

     0   :  { %v367_v18 = vmov 0.0   ;;  %s438_s0 = inlined_call_operand.vmem [shape: bf16[1,32,256], index: 0, kind: input, shape index: {}]   ;;  %s439_s1 = inlined_call_operand.vmem [shape: bf16[2,4,4,1,256], index: 1, kind: output, shape index: {}]  }
   0x1   :  { %v363_v0 = vld [vmem:[%s438_s0 + $0x18] sm:$0xff]   ;;  %v364_v1 = vld [vmem:[%s438_s0 + $0x10] sm:$0xff]   ;;  %v365_v2 = vld [vmem:[%s438_s0 + $0x8] sm:$0xff]  }
   0x2   :  { %v349_v3 = vunpack.c.l.bf16 %v363_v0  ;;  %v350_v4 = vunpack.c.h.bf16 %v363_v0  ;;  %v353_v5 = vunpack.c.l.bf16 %v364_v1  ;;  %v354_v6 = vunpack.c.h.bf16 %v364_v1  ;;  %v360_v7 = vld [vmem:[%s438_s0] sm:$0xff]  }
   0x3   :  { %v357_v8 = vunpack.c.l.bf16 %v365_v2  ;;  %v358_v9 = vunpack.c.h.bf16 %v365_v2  ;;  %v361_v10 = vunpack.c.l.bf16 %v360_v7  ;;  %v362_v11 = vunpack.c.h.bf16 %v360_v7 }
   0x4   :  { %155 = vst [vmem:[#allocation0 + $0x40] ss:$16 sps:$4 sm:$0xff] %v353_v5   ;;  %161 = vst [vmem:[#allocation0 + $0x48] ss:$16 sps:$4 sm:$0xff] %v354_v6  }
   0x5   :  { %167 = vst [vmem:[#allocation0 + $0x60] ss:$16 sps:$4 sm:$0xff] %v349_v3   ;;  %173 = vst [vmem:[#allocation0 + $0x68] ss:$16 sps:$4 sm:$0xff] %v350_v4  }
   0x6   :  { %131 = vst [vmem:[#allocation0] ss:$16 sps:$4 sm:$0xff] %v361_v10   ;;  %137 = vst [vmem:[#allocation0 + $0x8] ss:$16 sps:$4 sm:$0xff] %v362_v11  }
   0x7   :  { %143 = vst [vmem:[#allocation0 + $0x20] ss:$16 sps:$4 sm:$0xff] %v357_v8   ;;  %149 = vst [vmem:[#allocation0 + $0x28] ss:$16 sps:$4 sm:$0xff] %v358_v9  }
   0xb   :  { %v242_v12 = vld [vmem:[#allocation0 + $0x40] sm:$0xf]  ;;  %v250_v13 = vld [vmem:[#allocation0 + $0x48] sm:$0xf]  ;;  %v258_v14 = vld [vmem:[#allocation0 + $0x50] sm:$0xf] }
   0xc   :  { %v243_v19 = vpack.c.bf16 %v367_v18, %v242_v12  ;;  %v251_v20 = vpack.c.bf16 %v367_v18, %v250_v13  ;;  %v259_v21 = vpack.c.bf16 %v367_v18, %v258_v14  ;;  %v266_v33 = vld [vmem:[#allocation0 + $0x58] sm:$0xf]  ;;  %v274_v37 = vld [vmem:[#allocation0 + $0x60] sm:$0xf]  ;;  %v282_v38 = vld [vmem:[#allocation0 + $0x68] sm:$0xf] }
   0xd   :  { %v181_v15 = vld [vmem:[#allocation0] sm:$0xf]  ;;  %v187_v16 = vld [vmem:[#allocation0 + $0x8] sm:$0xf]  ;;  %v194_v17 = vld [vmem:[#allocation0 + $0x10] sm:$0xf]  ;;  %v267_v36 = vpack.c.bf16 %v367_v18, %v266_v33  ;;  %v275_v40 = vpack.c.bf16 %v367_v18, %v274_v37  ;;  %v283_v41 = vpack.c.bf16 %v367_v18, %v282_v38 }
   0xe   :  { %v182_v22 = vpack.c.bf16 %v367_v18, %v181_v15  ;;  %v188_v23 = vpack.c.bf16 %v367_v18, %v187_v16  ;;  %v195_v24 = vpack.c.bf16 %v367_v18, %v194_v17  ;;  %v202_v25 = vld [vmem:[#allocation0 + $0x18] sm:$0xf]  ;;  %v210_v26 = vld [vmem:[#allocation0 + $0x20] sm:$0xf]  ;;  %v218_v27 = vld [vmem:[#allocation0 + $0x28] sm:$0xf] }
   0xf   :  { %v203_v28 = vpack.c.bf16 %v367_v18, %v202_v25  ;;  %v211_v29 = vpack.c.bf16 %v367_v18, %v210_v26  ;;  %v219_v30 = vpack.c.bf16 %v367_v18, %v218_v27  ;;  %v226_v31 = vld [vmem:[#allocation0 + $0x30] sm:$0xf]  ;;  %v234_v32 = vld [vmem:[#allocation0 + $0x38] sm:$0xf]  ;;  %339 = vst [vmem:[%s439_s1 + $0x10] sm:$0x3] %v243_v19 }
  0x10   :  { %340 = vst [vmem:[%s439_s1 + $0x12] sm:$0x3] %v251_v20  ;;  %341 = vst [vmem:[%s439_s1 + $0x14] sm:$0x3] %v259_v21  ;;  %v227_v34 = vpack.c.bf16 %v367_v18, %v226_v31  ;;  %v235_v35 = vpack.c.bf16 %v367_v18, %v234_v32  ;;  %v290_v39 = vld [vmem:[#allocation0 + $0x70] sm:$0xf] }
  0x11   :  { %185 = vst [vmem:[%s439_s1] sm:$0x3] %v182_v22  ;;  %332 = vst [vmem:[%s439_s1 + $0x2] sm:$0x3] %v188_v23  ;;  %v291_v42 = vpack.c.bf16 %v367_v18, %v290_v39  ;;  %v298_v43 = vld [vmem:[#allocation0 + $0x78] sm:$0xf] }
  0x12   :  { %333 = vst [vmem:[%s439_s1 + $0x4] sm:$0x3] %v195_v24  ;;  %334 = vst [vmem:[%s439_s1 + $0x6] sm:$0x3] %v203_v28  ;;  %v299_v44 = vpack.c.bf16 %v367_v18, %v298_v43 }
  0x13   :  { %335 = vst [vmem:[%s439_s1 + $0x8] sm:$0x3] %v211_v29  ;;  %336 = vst [vmem:[%s439_s1 + $0xa] sm:$0x3] %v219_v30 }
  0x14   :  { %337 = vst [vmem:[%s439_s1 + $0xc] sm:$0x3] %v227_v34  ;;  %338 = vst [vmem:[%s439_s1 + $0xe] sm:$0x3] %v235_v35 }
  0x15   :  { %342 = vst [vmem:[%s439_s1 + $0x16] sm:$0x3] %v267_v36  ;;  %343 = vst [vmem:[%s439_s1 + $0x18] sm:$0x3] %v275_v40 }
  0x16   :  { %344 = vst [vmem:[%s439_s1 + $0x1a] sm:$0x3] %v283_v41  ;;  %345 = vst [vmem:[%s439_s1 + $0x1c] sm:$0x3] %v291_v42 }
  0x17   :  { %346 = vst [vmem:[%s439_s1 + $0x1e] sm:$0x3] %v299_v44 }

// kernel: generator_forward.13
= control target key start
LH: loop header
LB: loop body
LE: loop exit
PB: predicated region body
PF: predicated region fallthrough
CT: control target
= control target key end

     0   :  { %s3480_s15 = smov 0   ;;  %s3482_s16 = smov 0   ;;  %s3874_s0 = inlined_call_operand.vmem [shape: bf16[4,32,2048], index: 0, kind: input, shape index: {}]   ;;  %s3875_s1 = inlined_call_operand.vmem [shape: bf16[4,2048,256], index: 1, kind: input, shape index: {}]   ;;  %s3876_s2 = inlined_call_operand.vmem [shape: bf16[4,32,256], index: 2, kind: output, shape index: {0}]   ;;  %s3877_s3 = inlined_call_operand.vmem [shape: f32[4,8,256], index: 3, kind: output, shape index: {1}]   ;;  %s3878_s4 = inlined_call_operand.vmem [shape: f32[4,8,256], index: 4, kind: output, shape index: {2}]  }
   0x1   :  { %s3484_s17 = smov 0  }
   0x2 LB: > { %s27_s18 = sadd.s32 1, %s3449_s16  ;;  %p2709_p0 = scmp.ge.s32.totalorder %s3453_s17, 1  ;;  %s3453_s17 = sphi %s3484_s17, %s15_s17   ;;  %s3449_s16 = sphi %s3482_s16, %s3880_s16   ;;  %s3445_s15 = sphi %s3480_s15, %s3879_s15  }
   0x3   : > { %p29_p1 = scmp.ge.s32.totalorder %s27_s18, 4  ;;  %p203_p2 = scmp.lt.s32.totalorder %s3453_s17, 5 }
   0x5   : > { %s3882_s18 = smov (%p29_p1, %s27_s18), 0  ;;  %p204_p3 = pnand %p2709_p0, %p203_p2 }
   0x6   : > { %p257_p4 = scmp.lt.s32.totalorder (!%p204_p3), %s3445_s15, 3 }
   0x7   : > { %207 = sbr.rel (%p204_p3) target bundleno = 501 (0x1f5), region = 28 }
   0xc   : > { %s3884_s15 = smov (!%p257_p4, %s3445_s15), 3 }
   0xd   : > { %s3015_s19 = sshll.u32 %s3884_s15, 11  ;;  %s3014_s23 = sshll.u32 %s3884_s15, 8 }
   0xe   : > { %s3504_s22 = scalar_lea.vmem %s3875_s1, %s3015_s19  ;;  %s3554_s26 = scalar_lea.vmem %s3874_s0, %s3014_s23 }
   0xf   : > { %v3047_v0 = vld [vmem:[%s3504_s22 + $0x74] ss:$8 sps:$4 sm:$0xff]   ;;  %v3051_v2 = vld [vmem:[%s3504_s22 + $0x70] ss:$8 sps:$4 sm:$0xff]   ;;  %v3053_v4 = vld [vmem:[%s3504_s22 + $0x64] ss:$8 sps:$4 sm:$0xff]  }
  0x10   : > { %v3049_v1 = vld [vmem:[%s3504_s22 + $0x174] ss:$8 sps:$4 sm:$0xff]   ;;  %2025 = vmatprep.subr.bf16.mxu0 %v3047_v0  ;;  %v3052_v3 = vld [vmem:[%s3504_s22 + $0x170] ss:$8 sps:$4 sm:$0xff]   ;;  %v3055_v5 = vld [vmem:[%s3504_s22 + $0x164] ss:$8 sps:$4 sm:$0xff]  }
  0x11   : > { %2078 = vmatprep.subr.bf16.mxu1 %v3049_v1  ;;  %2026 = vmatpush1.bf16.msra.mxu0 %v3051_v2  ;;  %v3057_v6 = vld [vmem:[%s3504_s22 + $0x60] ss:$8 sps:$4 sm:$0xff]   ;;  %v3059_v8 = vld [vmem:[%s3504_s22 + $0x54] ss:$8 sps:$4 sm:$0xff]   ;;  %v3063_v10 = vld [vmem:[%s3504_s22 + $0x50] ss:$8 sps:$4 sm:$0xff]  }
  0x12   : > { %2079 = vmatpush1.bf16.msra.mxu1 %v3052_v3  ;;  %2027 = vmatprep.subr.bf16.mxu0 %v3053_v4  ;;  %v3058_v7 = vld [vmem:[%s3504_s22 + $0x160] ss:$8 sps:$4 sm:$0xff]   ;;  %v3061_v9 = vld [vmem:[%s3504_s22 + $0x154] ss:$8 sps:$4 sm:$0xff]   ;;  %v3064_v11 = vld [vmem:[%s3504_s22 + $0x150] ss:$8 sps:$4 sm:$0xff]  }
  0x13   : > { %2080 = vmatprep.subr.bf16.mxu1 %v3055_v5  ;;  %v3065_v12 = vld [vmem:[%s3504_s22 + $0x44] ss:$8 sps:$4 sm:$0xff]   ;;  %v3069_v14 = vld [vmem:[%s3504_s22 + $0x40] ss:$8 sps:$4 sm:$0xff]   ;;  %v3071_v16 = vld [vmem:[%s3504_s22 + $0x34] ss:$8 sps:$4 sm:$0xff]  }
  0x14   : > { %v3067_v13 = vld [vmem:[%s3504_s22 + $0x144] ss:$8 sps:$4 sm:$0xff]   ;;  %v3070_v15 = vld [vmem:[%s3504_s22 + $0x140] ss:$8 sps:$4 sm:$0xff]   ;;  %v3073_v17 = vld [vmem:[%s3504_s22 + $0x134] ss:$8 sps:$4 sm:$0xff]  }
  0x15   : > { %2028 = vmatpush1.bf16.msra.mxu0 %v3057_v6  ;;  %v3075_v18 = vld [vmem:[%s3504_s22 + $0x30] ss:$8 sps:$4 sm:$0xff]   ;;  %v3077_v20 = vld [vmem:[%s3504_s22 + $0x24] ss:$8 sps:$4 sm:$0xff]   ;;  %v3081_v22 = vld [vmem:[%s3504_s22 + $0x20] ss:$8 sps:$4 sm:$0xff]  }
  0x16   : > { %2081 = vmatpush1.bf16.msra.mxu1 %v3058_v7  ;;  %2029 = vmatprep.subr.bf16.mxu0 %v3059_v8  ;;  %v3076_v19 = vld [vmem:[%s3504_s22 + $0x130] ss:$8 sps:$4 sm:$0xff]   ;;  %v3079_v21 = vld [vmem:[%s3504_s22 + $0x124] ss:$8 sps:$4 sm:$0xff]   ;;  %v3082_v23 = vld [vmem:[%s3504_s22 + $0x120] ss:$8 sps:$4 sm:$0xff]  }
  0x17   : > { %2082 = vmatprep.subr.bf16.mxu1 %v3061_v9  ;;  %v3083_v24 = vld [vmem:[%s3504_s22 + $0x14] ss:$8 sps:$4 sm:$0xff]   ;;  %v3087_v26 = vld [vmem:[%s3504_s22 + $0x10] ss:$8 sps:$4 sm:$0xff]   ;;  %v3089_v28 = vld [vmem:[%s3504_s22 + $0x4] ss:$8 sps:$4 sm:$0xff]  }
  0x18   : > { %v3085_v25 = vld [vmem:[%s3504_s22 + $0x114] ss:$8 sps:$4 sm:$0xff]   ;;  %v3088_v27 = vld [vmem:[%s3504_s22 + $0x110] ss:$8 sps:$4 sm:$0xff]   ;;  %v3091_v29 = vld [vmem:[%s3504_s22 + $0x104] ss:$8 sps:$4 sm:$0xff]  }
  0x19   : > { %2030 = vmatpush1.bf16.msra.mxu0 %v3063_v10  ;;  %v3093_v30 = vld [vmem:[%s3504_s22] ss:$8 sps:$4 sm:$0xff]   ;;  %v3095_v32 = vld [vmem:[%s3504_s22 + $0xf4] ss:$8 sps:$4 sm:$0xff]   ;;  %v3099_v34 = vld [vmem:[%s3504_s22 + $0xf0] ss:$8 sps:$4 sm:$0xff]  }
  0x1a   : > { %2083 = vmatpush1.bf16.msra.mxu1 %v3064_v11  ;;  %2031 = vmatprep.subr.bf16.mxu0 %v3065_v12  ;;  %v3094_v31 = vld [vmem:[%s3504_s22 + $0x100] ss:$8 sps:$4 sm:$0xff]   ;;  %v3097_v33 = vld [vmem:[%s3504_s22 + $0x1f4] ss:$8 sps:$4 sm:$0xff]   ;;  %v3100_v35 = vld [vmem:[%s3504_s22 + $0x1f0] ss:$8 sps:$4 sm:$0xff]  }
  0x1b   : > { %2084 = vmatprep.subr.bf16.mxu1 %v3067_v13  ;;  %v3101_v36 = vld [vmem:[%s3504_s22 + $0xe4] ss:$8 sps:$4 sm:$0xff]   ;;  %v3105_v38 = vld [vmem:[%s3504_s22 + $0xe0] ss:$8 sps:$4 sm:$0xff]   ;;  %v3107_v40 = vld [vmem:[%s3504_s22 + $0xd4] ss:$8 sps:$4 sm:$0xff]  }
  0x1c   : > { %v3103_v37 = vld [vmem:[%s3504_s22 + $0x1e4] ss:$8 sps:$4 sm:$0xff]   ;;  %v3106_v39 = vld [vmem:[%s3504_s22 + $0x1e0] ss:$8 sps:$4 sm:$0xff]   ;;  %v3109_v41 = vld [vmem:[%s3504_s22 + $0x1d4] ss:$8 sps:$4 sm:$0xff]  }
  0x1d   : > { %2032 = vmatpush1.bf16.msra.mxu0 %v3069_v14  ;;  %v3111_v42 = vld [vmem:[%s3504_s22 + $0xd0] ss:$8 sps:$4 sm:$0xff]   ;;  %v3113_v44 = vld [vmem:[%s3504_s22 + $0xc4] ss:$8 sps:$4 sm:$0xff]   ;;  %v3117_v46 = vld [vmem:[%s3504_s22 + $0xc0] ss:$8 sps:$4 sm:$0xff]  }
  0x1e   : > { %2085 = vmatpush1.bf16.msra.mxu1 %v3070_v15  ;;  %2033 = vmatprep.subr.bf16.mxu0 %v3071_v16  ;;  %v3112_v43 = vld [vmem:[%s3504_s22 + $0x1d0] ss:$8 sps:$4 sm:$0xff]   ;;  %v3115_v45 = vld [vmem:[%s3504_s22 + $0x1c4] ss:$8 sps:$4 sm:$0xff]   ;;  %v3118_v47 = vld [vmem:[%s3504_s22 + $0x1c0] ss:$8 sps:$4 sm:$0xff]  }
  0x1f   : > { %2086 = vmatprep.subr.bf16.mxu1 %v3073_v17  ;;  %v297_v48 = vld [vmem:[%s3554_s26] sm:$0xff]  ;;  %v298_v50 = vld [vmem:[%s3554_s26 + $0x8] sm:$0xff]  ;;  %v3119_v52 = vld [vmem:[%s3504_s22 + $0xb4] ss:$8 sps:$4 sm:$0xff]   ;;  %s3016_s27 = sshll.u32 %s3884_s15, 5  ;;  %s3017_s5 = sshll.u32 %s3884_s15, 4 }
  0x20   : > { %v305_v49 = vld [vmem:[%s3554_s26 + $0x40] sm:$0xff]  ;;  %v306_v51 = vld [vmem:[%s3554_s26 + $0x48] sm:$0xff]  ;;  %v3121_v54 = vld [vmem:[%s3504_s22 + $0x1b4] ss:$8 sps:$4 sm:$0xff]   ;;  %s3852_s30 = scalar_lea.vmem %s3876_s2, %s3016_s27  ;;  %s288_s8 = scalar_lea.vmem %s3877_s3, %s3017_s5 }
  0x21   : > { %2034 = vmatpush1.bf16.msra.mxu0 %v3075_v18  ;;  %v2721_v53 = vcombine.high %v297_v48, %v305_v49  ;;  %v2723_v55 = vcombine.high %v298_v50, %v306_v51  ;;  %v3123_v56 = vld [vmem:[%s3504_s22 + $0xb0] ss:$8 sps:$4 sm:$0xff]   ;;  %v3125_v58 = vld [vmem:[%s3504_s22 + $0xa4] ss:$8 sps:$4 sm:$0xff]   ;;  %v3129_v60 = vld [vmem:[%s3504_s22 + $0xa0] ss:$8 sps:$4 sm:$0xff]   ;;  %v2720_v8 = vcombine.low %v297_v48, %v305_v49  ;;  %v2722_v9 = vcombine.low %v298_v50, %v306_v51  ;;  %s295_s11 = scalar_lea.vmem %s3878_s4, %s3017_s5 }
  0x22   : > { %2087 = vmatpush1.bf16.msra.mxu1 %v3076_v19  ;;  %2035 = vmatprep.subr.bf16.mxu0 %v3077_v20  ;;  %v3124_v57 = vld [vmem:[%s3504_s22 + $0x1b0] ss:$8 sps:$4 sm:$0xff]   ;;  %v3127_v59 = vld [vmem:[%s3504_s22 + $0x1a4] ss:$8 sps:$4 sm:$0xff]   ;;  %v3130_v61 = vld [vmem:[%s3504_s22 + $0x1a0] ss:$8 sps:$4 sm:$0xff]  }
  0x23   : > { %2088 = vmatprep.subr.bf16.mxu1 %v3079_v21  ;;  %2057 = vmatprep.mubr.bf16.mxu0 %v2721_v53  ;;  %v3131_v62 = vld [vmem:[%s3504_s22 + $0x94] ss:$8 sps:$4 sm:$0xff]   ;;  %v3135_v0 = vld [vmem:[%s3504_s22 + $0x90] ss:$8 sps:$4 sm:$0xff]   ;;  %v3137_v2 = vld [vmem:[%s3504_s22 + $0x84] ss:$8 sps:$4 sm:$0xff]  }
  0x24   : > { %2110 = vmatprep.mubr.bf16.mxu1 %v2723_v55  ;;  %v3133_v63 = vld [vmem:[%s3504_s22 + $0x194] ss:$8 sps:$4 sm:$0xff]   ;;  %v3136_v1 = vld [vmem:[%s3504_s22 + $0x190] ss:$8 sps:$4 sm:$0xff]   ;;  %v3139_v3 = vld [vmem:[%s3504_s22 + $0x184] ss:$8 sps:$4 sm:$0xff]  }
  0x25   : > { %2036 = vmatpush1.bf16.msra.mxu0 %v3081_v22  ;;  %v3141_v4 = vld [vmem:[%s3504_s22 + $0x80] ss:$8 sps:$4 sm:$0xff]   ;;  %v3145_v6 = vld [vmem:[%s3504_s22 + $0x274] ss:$8 sps:$4 sm:$0xff]   ;;  %v3143_v10 = vld [vmem:[%s3504_s22 + $0x270] ss:$8 sps:$4 sm:$0xff]  }
  0x26   : > { %2089 = vmatpush1.bf16.msra.mxu1 %v3082_v23  ;;  %2037 = vmatprep.subr.bf16.mxu0 %v3083_v24  ;;  %v3142_v5 = vld [vmem:[%s3504_s22 + $0x180] ss:$8 sps:$4 sm:$0xff]   ;;  %v3148_v7 = vld [vmem:[%s3504_s22 + $0x374] ss:$8 sps:$4 sm:$0xff]   ;;  %v3146_v11 = vld [vmem:[%s3504_s22 + $0x370] ss:$8 sps:$4 sm:$0xff]  }
  0x27   : > { %2090 = vmatprep.subr.bf16.mxu1 %v3085_v25  ;;  %v3151_v12 = vld [vmem:[%s3504_s22 + $0x264] ss:$8 sps:$4 sm:$0xff]   ;;  %v3149_v14 = vld [vmem:[%s3504_s22 + $0x260] ss:$8 sps:$4 sm:$0xff]   ;;  %v3157_v16 = vld [vmem:[%s3504_s22 + $0x254] ss:$8 sps:$4 sm:$0xff]  }
  0x28   : > { %v3154_v13 = vld [vmem:[%s3504_s22 + $0x364] ss:$8 sps:$4 sm:$0xff]   ;;  %v3152_v15 = vld [vmem:[%s3504_s22 + $0x360] ss:$8 sps:$4 sm:$0xff]   ;;  %v3160_v17 = vld [vmem:[%s3504_s22 + $0x354] ss:$8 sps:$4 sm:$0xff]  }
  0x29   : > { %2038 = vmatpush1.bf16.msra.mxu0 %v3087_v26  ;;  %v3155_v18 = vld [vmem:[%s3504_s22 + $0x250] ss:$8 sps:$4 sm:$0xff]   ;;  %v3163_v20 = vld [vmem:[%s3504_s22 + $0x244] ss:$8 sps:$4 sm:$0xff]   ;;  %v3161_v22 = vld [vmem:[%s3504_s22 + $0x240] ss:$8 sps:$4 sm:$0xff]  }
  0x2a   : > { %2091 = vmatpush1.bf16.msra.mxu1 %v3088_v27  ;;  %2039 = vmatprep.subr.bf16.mxu0 %v3089_v28  ;;  %v3158_v19 = vld [vmem:[%s3504_s22 + $0x350] ss:$8 sps:$4 sm:$0xff]   ;;  %v3166_v21 = vld [vmem:[%s3504_s22 + $0x344] ss:$8 sps:$4 sm:$0xff]   ;;  %v3164_v23 = vld [vmem:[%s3504_s22 + $0x340] ss:$8 sps:$4 sm:$0xff]  }
  0x2b   : > { %2092 = vmatprep.subr.bf16.mxu1 %v3091_v29  ;;  %v3169_v24 = vld [vmem:[%s3504_s22 + $0x234] ss:$8 sps:$4 sm:$0xff]   ;;  %v3167_v26 = vld [vmem:[%s3504_s22 + $0x230] ss:$8 sps:$4 sm:$0xff]   ;;  %v313_v28 = vld [vmem:[%s3554_s26 + $0x80] sm:$0xff] }
  0x2c   : > { %v3172_v25 = vld [vmem:[%s3504_s22 + $0x334] ss:$8 sps:$4 sm:$0xff]   ;;  %v3170_v27 = vld [vmem:[%s3504_s22 + $0x330] ss:$8 sps:$4 sm:$0xff]   ;;  %v321_v29 = vld [vmem:[%s3554_s26 + $0xc0] sm:$0xff] }
  0x2d   : > { %2040 = vmatpush1.bf16.msra.mxu0 %v3093_v30  ;;  %v314_v30 = vld [vmem:[%s3554_s26 + $0x88] sm:$0xff]  ;;  %v3621_v48 = vld [vmem:[%s3554_s26 + $0x18] sm:$0xff] }
  0x2e   : > { %2093 = vmatpush1.bf16.msra.mxu1 %v3094_v31  ;;  %2041 = vmatprep.subr.bf16.mxu0 %v3095_v32  ;;  %v322_v31 = vld [vmem:[%s3554_s26 + $0xc8] sm:$0xff]  ;;  %v3626_v50 = vld [vmem:[%s3554_s26 + $0x58] sm:$0xff] }
  0x2f   : > { %2094 = vmatprep.subr.bf16.mxu1 %v3097_v33  ;;  %v3175_v32 = vld [vmem:[%s3504_s22 + $0x224] ss:$8 sps:$4 sm:$0xff]   ;;  %v2737_v33 = vcombine.high %v313_v28, %v321_v29  ;;  %v2727_v51 = vcombine.high %v3621_v48, %v3626_v50  ;;  %v3188_v53 = vld [vmem:[%s3504_s22 + $0x300] ss:$8 sps:$4 sm:$0xff]   ;;  %v3196_v55 = vld [vmem:[%s3504_s22 + $0x3f4] ss:$8 sps:$4 sm:$0xff]  }
  0x31   : > { %2042 = vmatpush2.bf16.msra.mxu0 %v3099_v34  ;;  %v2739_v34 = vcombine.high %v314_v30, %v322_v31 }
  0x32   : > { %2095 = vmatpush2.bf16.msra.mxu1 %v3100_v35  ;;  %2043 = vmatprep.subr.bf16.mxu0 %v3101_v36  ;;  %v2736_v35 = vcombine.low %v313_v28, %v321_v29  ;;  %v3178_v36 = vld [vmem:[%s3504_s22 + $0x324] ss:$8 sps:$4 sm:$0xff]   ;;  %v2726_v29 = vcombine.low %v3621_v48, %v3626_v50 }
  0x33   : > { %2096 = vmatprep.subr.bf16.mxu1 %v3103_v37  ;;  %v2738_v37 = vcombine.low %v314_v30, %v322_v31  ;;  %v316_v30 = vld [vmem:[%s3554_s26 + $0x98] sm:$0xff]  ;;  %v3259_v48 = vld [vmem:[%s3504_s22 + $0x444] ss:$8 sps:$4 sm:$0xff]  }
  0x34   : > { %v324_v31 = vld [vmem:[%s3554_s26 + $0xd8] sm:$0xff] }
  0x35   : > { %2044 = vmatpush2.bf16.msra.mxu0 %v3105_v38  ;;  %v3173_v38 = vld [vmem:[%s3504_s22 + $0x220] ss:$8 sps:$4 sm:$0xff]  }
  0x36   : > { %2097 = vmatpush2.bf16.msra.mxu1 %v3106_v39  ;;  %2045 = vmatprep.subr.bf16.mxu0 %v3107_v40  ;;  %v3176_v39 = vld [vmem:[%s3504_s22 + $0x320] ss:$8 sps:$4 sm:$0xff]   ;;  %v3181_v40 = vld [vmem:[%s3504_s22 + $0x214] ss:$8 sps:$4 sm:$0xff]  }
  0x37   : > { %2098 = vmatprep.subr.bf16.mxu1 %v3109_v41  ;;  %v3184_v41 = vld [vmem:[%s3504_s22 + $0x314] ss:$8 sps:$4 sm:$0xff]  }
  0x39   : > { %2046 = vmatpush2.bf16.msra.mxu0 %v3111_v42  ;;  %v3179_v42 = vld [vmem:[%s3504_s22 + $0x210] ss:$8 sps:$4 sm:$0xff]  }
  0x3a   : > { %2099 = vmatpush2.bf16.msra.mxu1 %v3112_v43  ;;  %2047 = vmatprep.subr.bf16.mxu0 %v3113_v44  ;;  %v3182_v43 = vld [vmem:[%s3504_s22 + $0x310] ss:$8 sps:$4 sm:$0xff]   ;;  %v3187_v44 = vld [vmem:[%s3504_s22 + $0x204] ss:$8 sps:$4 sm:$0xff]  }
  0x3b   : > { %2100 = vmatprep.subr.bf16.mxu1 %v3115_v45  ;;  %v3190_v45 = vld [vmem:[%s3504_s22 + $0x304] ss:$8 sps:$4 sm:$0xff]  }
  0x3d   : > { %2048 = vmatpush2.bf16.msra.mxu0 %v3117_v46  ;;  %v3615_v46 = vld [vmem:[%s3554_s26 + $0x10] sm:$0xff] }
  0x3e   : > { %2101 = vmatpush2.bf16.msra.mxu1 %v3118_v47  ;;  %2049 = vmatprep.subr.bf16.mxu0 %v3119_v52  ;;  %v3618_v47 = vld [vmem:[%s3554_s26 + $0x50] sm:$0xff]  ;;  %v3185_v52 = vld [vmem:[%s3504_s22 + $0x200] ss:$8 sps:$4 sm:$0xff]  }
  0x3f   : > { %2102 = vmatprep.subr.bf16.mxu1 %v3121_v54  ;;  %v2725_v49 = vcombine.high %v3615_v46, %v3618_v47  ;;  %v3193_v54 = vld [vmem:[%s3504_s22 + $0x2f4] ss:$8 sps:$4 sm:$0xff]   ;;  %v2724_v28 = vcombine.low %v3615_v46, %v3618_v47  ;;  %v3691_v46 = vld [vmem:[%s3554_s26 + $0x28] sm:$0xff] }
  0x40   : > { %v3694_v47 = vld [vmem:[%s3554_s26 + $0x68] sm:$0xff] }
  0x41   : > { %2050 = vmatpush2.bf16.msra.mxu0 %v3123_v56  ;;  %v3191_v56 = vld [vmem:[%s3504_s22 + $0x2f0] ss:$8 sps:$4 sm:$0xff]  }
  0x42   : > { %2103 = vmatpush2.bf16.msra.mxu1 %v3124_v57  ;;  %2051 = vmatprep.subr.bf16.mxu0 %v3125_v58  ;;  %v3194_v57 = vld [vmem:[%s3504_s22 + $0x3f0] ss:$8 sps:$4 sm:$0xff]   ;;  %v3199_v58 = vld [vmem:[%s3504_s22 + $0x2e4] ss:$8 sps:$4 sm:$0xff]  }
  0x43   : > { %2104 = vmatprep.subr.bf16.mxu1 %v3127_v59  ;;  %v3202_v59 = vld [vmem:[%s3504_s22 + $0x3e4] ss:$8 sps:$4 sm:$0xff]  }
  0x45   : > { %2052 = vmatpush2.bf16.msra.mxu0 %v3129_v60  ;;  %v3197_v60 = vld [vmem:[%s3504_s22 + $0x2e0] ss:$8 sps:$4 sm:$0xff]  }
  0x46   : > { %2105 = vmatpush2.bf16.msra.mxu1 %v3130_v61  ;;  %2053 = vmatprep.subr.bf16.mxu0 %v3131_v62  ;;  %v3200_v61 = vld [vmem:[%s3504_s22 + $0x3e0] ss:$8 sps:$4 sm:$0xff]   ;;  %v3205_v62 = vld [vmem:[%s3504_s22 + $0x2d4] ss:$8 sps:$4 sm:$0xff]  }
  0x47   : > { %2106 = vmatprep.subr.bf16.mxu1 %v3133_v63  ;;  %v3208_v63 = vld [vmem:[%s3504_s22 + $0x3d4] ss:$8 sps:$4 sm:$0xff]  }
  0x49   : > { %2054 = vmatpush2.bf16.msra.mxu0 %v3135_v0  ;;  %v3203_v0 = vld [vmem:[%s3504_s22 + $0x2d0] ss:$8 sps:$4 sm:$0xff]  }
  0x4a   : > { %2107 = vmatpush2.bf16.msra.mxu1 %v3136_v1  ;;  %2055 = vmatprep.subr.bf16.mxu0 %v3137_v2  ;;  %v3206_v1 = vld [vmem:[%s3504_s22 + $0x3d0] ss:$8 sps:$4 sm:$0xff]   ;;  %v3211_v2 = vld [vmem:[%s3504_s22 + $0x2c4] ss:$8 sps:$4 sm:$0xff]  }
  0x4b   : > { %2108 = vmatprep.subr.bf16.mxu1 %v3139_v3  ;;  %v3214_v3 = vld [vmem:[%s3504_s22 + $0x3c4] ss:$8 sps:$4 sm:$0xff]  }
  0x4d   : > { %2056 = vmatpush2.bf16.msra.mxu0 %v3141_v4  ;;  %v3209_v4 = vld [vmem:[%s3504_s22 + $0x2c0] ss:$8 sps:$4 sm:$0xff]  }
  0x4e   : > { %2109 = vmatpush2.bf16.msra.mxu1 %v3142_v5  ;;  %2131 = vmatprep.subr.bf16.mxu0 %v3145_v6  ;;  %v3212_v5 = vld [vmem:[%s3504_s22 + $0x3c0] ss:$8 sps:$4 sm:$0xff]   ;;  %v3217_v6 = vld [vmem:[%s3504_s22 + $0x2b4] ss:$8 sps:$4 sm:$0xff]  }
  0x4f   : > { %2184 = vmatprep.subr.bf16.mxu1 %v3148_v7  ;;  %v3220_v7 = vld [vmem:[%s3504_s22 + $0x3b4] ss:$8 sps:$4 sm:$0xff]  }
  0x50   : > { %2058 = vmatmul.mubr.bf16.vlgmr.msra.gmra.mxu0 %v2720_v8  ;;  %v3215_v8 = vld [vmem:[%s3504_s22 + $0x2b0] ss:$8 sps:$4 sm:$0xff]  }
  0x51   : > { %2111 = vmatmul.mubr.bf16.vlgmr.msra.gmra.mxu1 %v2722_v9  ;;  %2132 = vmatpush1.bf16.msra.mxu0 %v3143_v10  ;;  %v3218_v9 = vld [vmem:[%s3504_s22 + $0x3b0] ss:$8 sps:$4 sm:$0xff]   ;;  %v3223_v10 = vld [vmem:[%s3504_s22 + $0x2a4] ss:$8 sps:$4 sm:$0xff]  }
  0x52   : > { %2185 = vmatpush1.bf16.msra.mxu1 %v3146_v11  ;;  %2133 = vmatprep.subr.bf16.mxu0 %v3151_v12  ;;  %v3226_v11 = vld [vmem:[%s3504_s22 + $0x3a4] ss:$8 sps:$4 sm:$0xff]   ;;  %v3221_v12 = vld [vmem:[%s3504_s22 + $0x2a0] ss:$8 sps:$4 sm:$0xff]  }
  0x53   : > { %2186 = vmatprep.subr.bf16.mxu1 %v3154_v13  ;;  %2067 = vmatprep.mubr.bf16.mxu0 %v2737_v33  ;;  %v3224_v13 = vld [vmem:[%s3504_s22 + $0x3a0] ss:$8 sps:$4 sm:$0xff]   ;;  %v3250_v33 = vld [vmem:[%s3504_s22 + $0x564] ss:$8 sps:$4 sm:$0xff]  }
  0x54   : > { %2120 = vmatprep.mubr.bf16.mxu1 %v2739_v34 }
  0x55   : > { %2134 = vmatpush1.bf16.msra.mxu0 %v3149_v14  ;;  %v3229_v14 = vld [vmem:[%s3504_s22 + $0x294] ss:$8 sps:$4 sm:$0xff]  }
  0x56   : > { %2187 = vmatpush1.bf16.msra.mxu1 %v3152_v15  ;;  %2135 = vmatprep.subr.bf16.mxu0 %v3157_v16  ;;  %v3232_v15 = vld [vmem:[%s3504_s22 + $0x394] ss:$8 sps:$4 sm:$0xff]   ;;  %v3227_v16 = vld [vmem:[%s3504_s22 + $0x290] ss:$8 sps:$4 sm:$0xff]  }
  0x57   : > { %2188 = vmatprep.subr.bf16.mxu1 %v3160_v17  ;;  %v3230_v17 = vld [vmem:[%s3504_s22 + $0x390] ss:$8 sps:$4 sm:$0xff]  }
  0x58   : > { %2068 = vmatmul.mubr.bf16.gmra.mxu0 %v2736_v35  ;;  %v2743_v35 = vcombine.high %v316_v30, %v324_v31 }
  0x59   : > { %2136 = vmatpush1.bf16.msra.mxu0 %v3155_v18  ;;  %2121 = vmatmul.mubr.bf16.gmra.mxu1 %v2738_v37  ;;  %v3235_v18 = vld [vmem:[%s3504_s22 + $0x284] ss:$8 sps:$4 sm:$0xff]   ;;  %v3248_v37 = vld [vmem:[%s3504_s22 + $0x560] ss:$8 sps:$4 sm:$0xff]  }
  0x5a   : > { %2189 = vmatpush1.bf16.msra.mxu1 %v3158_v19  ;;  %2137 = vmatprep.subr.bf16.mxu0 %v3163_v20  ;;  %v3238_v19 = vld [vmem:[%s3504_s22 + $0x384] ss:$8 sps:$4 sm:$0xff]   ;;  %v3233_v20 = vld [vmem:[%s3504_s22 + $0x280] ss:$8 sps:$4 sm:$0xff]  }
  0x5b   : > { %2190 = vmatprep.subr.bf16.mxu1 %v3166_v21  ;;  %2163 = vmatprep.mubr.bf16.mxu0 %v2725_v49  ;;  %v3236_v21 = vld [vmem:[%s3504_s22 + $0x380] ss:$8 sps:$4 sm:$0xff]   ;;  %v3262_v49 = vld [vmem:[%s3504_s22 + $0x544] ss:$8 sps:$4 sm:$0xff]  }
  0x5c   : > { %2216 = vmatprep.mubr.bf16.mxu1 %v2727_v51  ;;  %v2731_v51 = vcombine.high %v3691_v46, %v3694_v47 }
  0x5d   : > { %2138 = vmatpush1.bf16.msra.mxu0 %v3161_v22  ;;  %v3241_v22 = vld [vmem:[%s3504_s22 + $0x474] ss:$8 sps:$4 sm:$0xff]  }
  0x5e   : > { %2191 = vmatpush1.bf16.msra.mxu1 %v3164_v23  ;;  %2139 = vmatprep.subr.bf16.mxu0 %v3169_v24  ;;  %v3244_v23 = vld [vmem:[%s3504_s22 + $0x574] ss:$8 sps:$4 sm:$0xff]   ;;  %v3239_v24 = vld [vmem:[%s3504_s22 + $0x470] ss:$8 sps:$4 sm:$0xff]  }
  0x5f   : > { %2192 = vmatprep.subr.bf16.mxu1 %v3172_v25  ;;  %v3242_v25 = vld [vmem:[%s3504_s22 + $0x570] ss:$8 sps:$4 sm:$0xff]  }
  0x61   : > { %2140 = vmatpush1.bf16.msra.mxu0 %v3167_v26  ;;  %v315_v26 = vld [vmem:[%s3554_s26 + $0x90] sm:$0xff] }
  0x62   : > { %2193 = vmatpush1.bf16.msra.mxu1 %v3170_v27  ;;  %2141 = vmatprep.subr.bf16.mxu0 %v3175_v32  ;;  %v323_v27 = vld [vmem:[%s3554_s26 + $0xd0] sm:$0xff]  ;;  %v3247_v32 = vld [vmem:[%s3504_s22 + $0x464] ss:$8 sps:$4 sm:$0xff]  }
  0x63   : > { %2194 = vmatprep.subr.bf16.mxu1 %v3178_v36  ;;  %v2741_v34 = vcombine.high %v315_v26, %v323_v27  ;;  %v3245_v36 = vld [vmem:[%s3504_s22 + $0x460] ss:$8 sps:$4 sm:$0xff]  }
  0x65   : > { %2142 = vmatpush1.bf16.msra.mxu0 %v3173_v38  ;;  %v3253_v38 = vld [vmem:[%s3504_s22 + $0x454] ss:$8 sps:$4 sm:$0xff]  }
  0x66   : > { %2195 = vmatpush1.bf16.msra.mxu1 %v3176_v39  ;;  %2143 = vmatprep.subr.bf16.mxu0 %v3181_v40  ;;  %v3256_v39 = vld [vmem:[%s3504_s22 + $0x554] ss:$8 sps:$4 sm:$0xff]   ;;  %v3251_v40 = vld [vmem:[%s3504_s22 + $0x450] ss:$8 sps:$4 sm:$0xff]  }
  0x67   : > { %2196 = vmatprep.subr.bf16.mxu1 %v3184_v41  ;;  %v3254_v41 = vld [vmem:[%s3504_s22 + $0x550] ss:$8 sps:$4 sm:$0xff]  }
  0x69   : > { %2144 = vmatpush1.bf16.msra.mxu0 %v3179_v42  ;;  %v3685_v42 = vld [vmem:[%s3554_s26 + $0x20] sm:$0xff] }
  0x6a   : > { %2197 = vmatpush1.bf16.msra.mxu1 %v3182_v43  ;;  %2145 = vmatprep.subr.bf16.mxu0 %v3187_v44  ;;  %v3688_v43 = vld [vmem:[%s3554_s26 + $0x60] sm:$0xff]  ;;  %v2740_v44 = vcombine.low %v315_v26, %v323_v27 }
  0x6b   : > { %2198 = vmatprep.subr.bf16.mxu1 %v3190_v45  ;;  %v2742_v45 = vcombine.low %v316_v30, %v324_v31  ;;  %v2729_v50 = vcombine.high %v3685_v42, %v3688_v43  ;;  %v3319_v26 = vld [vmem:[%s3504_s22 + $0x4a4] ss:$8 sps:$4 sm:$0xff]   ;;  %v3325_v30 = vld [vmem:[%s3504_s22 + $0x494] ss:$8 sps:$4 sm:$0xff]  }
  0x6c   : > { %v3322_v27 = vld [vmem:[%s3504_s22 + $0x5a4] ss:$8 sps:$4 sm:$0xff]   ;;  %v3328_v31 = vld [vmem:[%s3504_s22 + $0x594] ss:$8 sps:$4 sm:$0xff]  }
  0x6d   : > { %2146 = vmatpush1.bf16.msra.mxu0 %v3185_v52  ;;  %v3257_v52 = vld [vmem:[%s3504_s22 + $0x440] ss:$8 sps:$4 sm:$0xff]  }
  0x6e   : > { %2199 = vmatpush1.bf16.msra.mxu1 %v3188_v53  ;;  %2147 = vmatprep.subr.bf16.mxu0 %v3193_v54  ;;  %v3260_v53 = vld [vmem:[%s3504_s22 + $0x540] ss:$8 sps:$4 sm:$0xff]   ;;  %v3265_v54 = vld [vmem:[%s3504_s22 + $0x434] ss:$8 sps:$4 sm:$0xff]  }
  0x6f   : > { %2200 = vmatprep.subr.bf16.mxu1 %v3196_v55  ;;  %v3268_v55 = vld [vmem:[%s3504_s22 + $0x534] ss:$8 sps:$4 sm:$0xff]  }
  0x71   : > { %2148 = vmatpush2.bf16.msra.mxu0 %v3191_v56  ;;  %v3263_v56 = vld [vmem:[%s3504_s22 + $0x430] ss:$8 sps:$4 sm:$0xff]  }
  0x72   : > { %2201 = vmatpush2.bf16.msra.mxu1 %v3194_v57  ;;  %2149 = vmatprep.subr.bf16.mxu0 %v3199_v58  ;;  %v3266_v57 = vld [vmem:[%s3504_s22 + $0x530] ss:$8 sps:$4 sm:$0xff]   ;;  %v3271_v58 = vld [vmem:[%s3504_s22 + $0x424] ss:$8 sps:$4 sm:$0xff]  }
  0x73   : > { %2202 = vmatprep.subr.bf16.mxu1 %v3202_v59  ;;  %v3274_v59 = vld [vmem:[%s3504_s22 + $0x524] ss:$8 sps:$4 sm:$0xff]  }
  0x75   : > { %2150 = vmatpush2.bf16.msra.mxu0 %v3197_v60  ;;  %v3269_v60 = vld [vmem:[%s3504_s22 + $0x420] ss:$8 sps:$4 sm:$0xff]  }
  0x76   : > { %2203 = vmatpush2.bf16.msra.mxu1 %v3200_v61  ;;  %2151 = vmatprep.subr.bf16.mxu0 %v3205_v62  ;;  %v3272_v61 = vld [vmem:[%s3504_s22 + $0x520] ss:$8 sps:$4 sm:$0xff]   ;;  %v3277_v62 = vld [vmem:[%s3504_s22 + $0x414] ss:$8 sps:$4 sm:$0xff]  }
  0x77   : > { %2204 = vmatprep.subr.bf16.mxu1 %v3208_v63  ;;  %v3280_v63 = vld [vmem:[%s3504_s22 + $0x514] ss:$8 sps:$4 sm:$0xff]  }
  0x79   : > { %2152 = vmatpush2.bf16.msra.mxu0 %v3203_v0  ;;  %v3275_v0 = vld [vmem:[%s3504_s22 + $0x410] ss:$8 sps:$4 sm:$0xff]  }
  0x7a   : > { %2205 = vmatpush2.bf16.msra.mxu1 %v3206_v1  ;;  %2153 = vmatprep.subr.bf16.mxu0 %v3211_v2  ;;  %v3278_v1 = vld [vmem:[%s3504_s22 + $0x510] ss:$8 sps:$4 sm:$0xff]   ;;  %v3283_v2 = vld [vmem:[%s3504_s22 + $0x404] ss:$8 sps:$4 sm:$0xff]  }
  0x7b   : > { %2206 = vmatprep.subr.bf16.mxu1 %v3214_v3  ;;  %v3286_v3 = vld [vmem:[%s3504_s22 + $0x504] ss:$8 sps:$4 sm:$0xff]  }
  0x7d   : > { %2154 = vmatpush2.bf16.msra.mxu0 %v3209_v4  ;;  %v3281_v4 = vld [vmem:[%s3504_s22 + $0x400] ss:$8 sps:$4 sm:$0xff]  }
  0x7e   : > { %2207 = vmatpush2.bf16.msra.mxu1 %v3212_v5  ;;  %2155 = vmatprep.subr.bf16.mxu0 %v3217_v6  ;;  %v3284_v5 = vld [vmem:[%s3504_s22 + $0x500] ss:$8 sps:$4 sm:$0xff]   ;;  %v3289_v6 = vld [vmem:[%s3504_s22 + $0x4f4] ss:$8 sps:$4 sm:$0xff]  }
  0x7f   : > { %2208 = vmatprep.subr.bf16.mxu1 %v3220_v7  ;;  %v3292_v7 = vld [vmem:[%s3504_s22 + $0x5f4] ss:$8 sps:$4 sm:$0xff]  }
  0x81   : > { %2156 = vmatpush2.bf16.msra.mxu0 %v3215_v8  ;;  %v3287_v8 = vld [vmem:[%s3504_s22 + $0x4f0] ss:$8 sps:$4 sm:$0xff]  }
  0x82   : > { %2209 = vmatpush2.bf16.msra.mxu1 %v3218_v9  ;;  %2157 = vmatprep.subr.bf16.mxu0 %v3223_v10  ;;  %v3290_v9 = vld [vmem:[%s3504_s22 + $0x5f0] ss:$8 sps:$4 sm:$0xff]   ;;  %v3295_v10 = vld [vmem:[%s3504_s22 + $0x4e4] ss:$8 sps:$4 sm:$0xff]  }
  0x83   : > { %2210 = vmatprep.subr.bf16.mxu1 %v3226_v11  ;;  %v3298_v11 = vld [vmem:[%s3504_s22 + $0x5e4] ss:$8 sps:$4 sm:$0xff]  }
  0x85   : > { %2158 = vmatpush2.bf16.msra.mxu0 %v3221_v12  ;;  %v3293_v12 = vld [vmem:[%s3504_s22 + $0x4e0] ss:$8 sps:$4 sm:$0xff]  }
  0x86   : > { %2211 = vmatpush2.bf16.msra.mxu1 %v3224_v13  ;;  %2159 = vmatprep.subr.bf16.mxu0 %v3229_v14  ;;  %v3296_v13 = vld [vmem:[%s3504_s22 + $0x5e0] ss:$8 sps:$4 sm:$0xff]   ;;  %v3301_v14 = vld [vmem:[%s3504_s22 + $0x4d4] ss:$8 sps:$4 sm:$0xff]  }
  0x87   : > { %2212 = vmatprep.subr.bf16.mxu1 %v3232_v15  ;;  %v3304_v15 = vld [vmem:[%s3504_s22 + $0x5d4] ss:$8 sps:$4 sm:$0xff]  }
  0x89   : > { %2160 = vmatpush2.bf16.msra.mxu0 %v3227_v16  ;;  %v3299_v16 = vld [vmem:[%s3504_s22 + $0x4d0] ss:$8 sps:$4 sm:$0xff]  }
  0x8a   : > { %2213 = vmatpush2.bf16.msra.mxu1 %v3230_v17  ;;  %2161 = vmatprep.subr.bf16.mxu0 %v3235_v18  ;;  %v3302_v17 = vld [vmem:[%s3504_s22 + $0x5d0] ss:$8 sps:$4 sm:$0xff]   ;;  %v3307_v18 = vld [vmem:[%s3504_s22 + $0x4c4] ss:$8 sps:$4 sm:$0xff]  }
  0x8b   : > { %2214 = vmatprep.subr.bf16.mxu1 %v3238_v19  ;;  %v3310_v19 = vld [vmem:[%s3504_s22 + $0x5c4] ss:$8 sps:$4 sm:$0xff]  }
  0x8d   : > { %2162 = vmatpush2.bf16.msra.mxu0 %v3233_v20  ;;  %v3305_v20 = vld [vmem:[%s3504_s22 + $0x4c0] ss:$8 sps:$4 sm:$0xff]  }
  0x8e   : > { %2215 = vmatpush2.bf16.msra.mxu1 %v3236_v21  ;;  %2237 = vmatprep.subr.bf16.mxu0 %v3241_v22  ;;  %v3308_v21 = vld [vmem:[%s3504_s22 + $0x5c0] ss:$8 sps:$4 sm:$0xff]   ;;  %v3313_v22 = vld [vmem:[%s3504_s22 + $0x4b4] ss:$8 sps:$4 sm:$0xff]  }
  0x8f   : > { %2290 = vmatprep.subr.bf16.mxu1 %v3244_v23  ;;  %v3316_v23 = vld [vmem:[%s3504_s22 + $0x5b4] ss:$8 sps:$4 sm:$0xff]  }
  0x90   : > { %2164 = vmatmul.mubr.bf16.vlgmr.msra.gmra.mxu0 %v2724_v28  ;;  %v3317_v28 = vld [vmem:[%s3504_s22 + $0x4a0] ss:$8 sps:$4 sm:$0xff]  }
  0x91   : > { %2217 = vmatmul.mubr.bf16.vlgmr.msra.gmra.mxu1 %v2726_v29  ;;  %2238 = vmatpush1.bf16.msra.mxu0 %v3239_v24  ;;  %v3311_v24 = vld [vmem:[%s3504_s22 + $0x4b0] ss:$8 sps:$4 sm:$0xff]   ;;  %v3320_v29 = vld [vmem:[%s3504_s22 + $0x5a0] ss:$8 sps:$4 sm:$0xff]  }
  0x92   : > { %2291 = vmatpush1.bf16.msra.mxu1 %v3242_v25  ;;  %2239 = vmatprep.subr.bf16.mxu0 %v3247_v32  ;;  %v3314_v25 = vld [vmem:[%s3504_s22 + $0x5b0] ss:$8 sps:$4 sm:$0xff]  }
  0x93   : > { %2292 = vmatprep.subr.bf16.mxu1 %v3250_v33  ;;  %2173 = vmatprep.mubr.bf16.mxu0 %v2741_v34  ;;  %v3323_v32 = vld [vmem:[%s3504_s22 + $0x490] ss:$8 sps:$4 sm:$0xff]   ;;  %v3331_v34 = vld [vmem:[%s3504_s22 + $0x484] ss:$8 sps:$4 sm:$0xff]  }
  0x94   : > { %2226 = vmatprep.mubr.bf16.mxu1 %v2743_v35  ;;  %v3326_v33 = vld [vmem:[%s3504_s22 + $0x590] ss:$8 sps:$4 sm:$0xff]   ;;  %v3334_v35 = vld [vmem:[%s3504_s22 + $0x584] ss:$8 sps:$4 sm:$0xff]  }
  0x95   : > { %2240 = vmatpush1.bf16.msra.mxu0 %v3245_v36  ;;  %v3329_v36 = vld [vmem:[%s3504_s22 + $0x480] ss:$8 sps:$4 sm:$0xff]  }
  0x96   : > { %2293 = vmatpush1.bf16.msra.mxu1 %v3248_v37  ;;  %2241 = vmatprep.subr.bf16.mxu0 %v3253_v38  ;;  %v3332_v37 = vld [vmem:[%s3504_s22 + $0x580] ss:$8 sps:$4 sm:$0xff]   ;;  %v3337_v38 = vld [vmem:[%s3504_s22 + $0x674] ss:$8 sps:$4 sm:$0xff]  }
  0x97   : > { %2294 = vmatprep.subr.bf16.mxu1 %v3256_v39  ;;  %v3340_v39 = vld [vmem:[%s3504_s22 + $0x774] ss:$8 sps:$4 sm:$0xff]  }
  0x98   : > { %2174 = vmatmul.mubr.bf16.gmra.mxu0 %v2740_v44  ;;  %v2730_v44 = vcombine.low %v3691_v46, %v3694_v47  ;;  %v3341_v46 = vld [vmem:[%s3504_s22 + $0x660] ss:$8 sps:$4 sm:$0xff]  }
  0x99   : > { %2227 = vmatmul.mubr.bf16.gmra.mxu1 %v2742_v45  ;;  %2242 = vmatpush1.bf16.msra.mxu0 %v3251_v40  ;;  %v317_v40 = vld [vmem:[%s3554_s26 + $0xa0] sm:$0xff] }
  0x9a   : > { %2295 = vmatpush1.bf16.msra.mxu1 %v3254_v41  ;;  %2243 = vmatprep.subr.bf16.mxu0 %v3259_v48  ;;  %v2728_v41 = vcombine.low %v3685_v42, %v3688_v43  ;;  %v325_v45 = vld [vmem:[%s3554_s26 + $0xe0] sm:$0xff]  ;;  %v318_v48 = vld [vmem:[%s3554_s26 + $0xa8] sm:$0xff] }
  0x9b   : > { %2296 = vmatprep.subr.bf16.mxu1 %v3262_v49  ;;  %2269 = vmatprep.mubr.bf16.mxu0 %v2729_v50  ;;  %v326_v49 = vld [vmem:[%s3554_s26 + $0xe8] sm:$0xff]  ;;  %v3335_v50 = vld [vmem:[%s3504_s22 + $0x670] ss:$8 sps:$4 sm:$0xff]   ;;  %v2745_v42 = vcombine.high %v317_v40, %v325_v45 }
  0x9c   : > { %2322 = vmatprep.mubr.bf16.mxu1 %v2731_v51  ;;  %v3338_v51 = vld [vmem:[%s3504_s22 + $0x770] ss:$8 sps:$4 sm:$0xff]   ;;  %v2747_v43 = vcombine.high %v318_v48, %v326_v49  ;;  %v3344_v47 = vld [vmem:[%s3504_s22 + $0x760] ss:$8 sps:$4 sm:$0xff]  }
  0x9d   : > { %2244 = vmatpush1.bf16.msra.mxu0 %v3257_v52  ;;  %v3343_v52 = vld [vmem:[%s3504_s22 + $0x664] ss:$8 sps:$4 sm:$0xff]  }
  0x9e   : > { %2297 = vmatpush1.bf16.msra.mxu1 %v3260_v53  ;;  %2245 = vmatprep.subr.bf16.mxu0 %v3265_v54  ;;  %v3346_v53 = vld [vmem:[%s3504_s22 + $0x764] ss:$8 sps:$4 sm:$0xff]   ;;  %v3349_v54 = vld [vmem:[%s3504_s22 + $0x654] ss:$8 sps:$4 sm:$0xff]  }
  0x9f   : > { %2298 = vmatprep.subr.bf16.mxu1 %v3268_v55  ;;  %v3352_v55 = vld [vmem:[%s3504_s22 + $0x754] ss:$8 sps:$4 sm:$0xff]  }
  0xa1   : > { %2246 = vmatpush1.bf16.msra.mxu0 %v3263_v56  ;;  %v3771_v56 = vld [vmem:[%s3554_s26 + $0x30] sm:$0xff] }
  0xa2   : > { %2299 = vmatpush1.bf16.msra.mxu1 %v3266_v57  ;;  %2247 = vmatprep.subr.bf16.mxu0 %v3271_v58  ;;  %v2744_v57 = vcombine.low %v317_v40, %v325_v45  ;;  %v2746_v58 = vcombine.low %v318_v48, %v326_v49  ;;  %v3407_v40 = vld [vmem:[%s3504_s22 + $0x6b0] ss:$8 sps:$4 sm:$0xff]   ;;  %v3418_v45 = vld [vmem:[%s3504_s22 + $0x7a4] ss:$8 sps:$4 sm:$0xff]   ;;  %v3413_v48 = vld [vmem:[%s3504_s22 + $0x6a0] ss:$8 sps:$4 sm:$0xff]  }
  0xa3   : > { %2300 = vmatprep.subr.bf16.mxu1 %v3274_v59  ;;  %v3774_v59 = vld [vmem:[%s3554_s26 + $0x70] sm:$0xff]  ;;  %v3416_v49 = vld [vmem:[%s3504_s22 + $0x7a0] ss:$8 sps:$4 sm:$0xff]  }
  0xa5   : > { %2248 = vmatpush1.bf16.msra.mxu0 %v3269_v60  ;;  %v3777_v60 = vld [vmem:[%s3554_s26 + $0x38] sm:$0xff] }
  0xa6   : > { %2301 = vmatpush1.bf16.msra.mxu1 %v3272_v61  ;;  %2249 = vmatprep.subr.bf16.mxu0 %v3277_v62  ;;  %v3780_v61 = vld [vmem:[%s3554_s26 + $0x78] sm:$0xff] }
  0xa7   : > { %2302 = vmatprep.subr.bf16.mxu1 %v3280_v63  ;;  %v3347_v62 = vld [vmem:[%s3504_s22 + $0x650] ss:$8 sps:$4 sm:$0xff]  }
  0xa8   : > { %v3350_v63 = vld [vmem:[%s3504_s22 + $0x750] ss:$8 sps:$4 sm:$0xff]  }
  0xa9   : > { %2250 = vmatpush1.bf16.msra.mxu0 %v3275_v0  ;;  %v3355_v0 = vld [vmem:[%s3504_s22 + $0x644] ss:$8 sps:$4 sm:$0xff]  }
  0xaa   : > { %2303 = vmatpush1.bf16.msra.mxu1 %v3278_v1  ;;  %2251 = vmatprep.subr.bf16.mxu0 %v3283_v2  ;;  %v3358_v1 = vld [vmem:[%s3504_s22 + $0x744] ss:$8 sps:$4 sm:$0xff]   ;;  %v2733_v2 = vcombine.high %v3771_v56, %v3774_v59 }
  0xab   : > { %2304 = vmatprep.subr.bf16.mxu1 %v3286_v3  ;;  %v2735_v3 = vcombine.high %v3777_v60, %v3780_v61 }
  0xad   : > { %2252 = vmatpush1.bf16.msra.mxu0 %v3281_v4  ;;  %v3353_v4 = vld [vmem:[%s3504_s22 + $0x640] ss:$8 sps:$4 sm:$0xff]  }
  0xae   : > { %2305 = vmatpush1.bf16.msra.mxu1 %v3284_v5  ;;  %2253 = vmatprep.subr.bf16.mxu0 %v3289_v6  ;;  %v3356_v5 = vld [vmem:[%s3504_s22 + $0x740] ss:$8 sps:$4 sm:$0xff]   ;;  %v3361_v6 = vld [vmem:[%s3504_s22 + $0x634] ss:$8 sps:$4 sm:$0xff]  }
  0xaf   : > { %2306 = vmatprep.subr.bf16.mxu1 %v3292_v7  ;;  %v3364_v7 = vld [vmem:[%s3504_s22 + $0x734] ss:$8 sps:$4 sm:$0xff]  }
  0xb1   : > { %2254 = vmatpush2.bf16.msra.mxu0 %v3287_v8  ;;  %v3359_v8 = vld [vmem:[%s3504_s22 + $0x630] ss:$8 sps:$4 sm:$0xff]  }
  0xb2   : > { %2307 = vmatpush2.bf16.msra.mxu1 %v3290_v9  ;;  %2255 = vmatprep.subr.bf16.mxu0 %v3295_v10  ;;  %v3362_v9 = vld [vmem:[%s3504_s22 + $0x730] ss:$8 sps:$4 sm:$0xff]   ;;  %v3367_v10 = vld [vmem:[%s3504_s22 + $0x624] ss:$8 sps:$4 sm:$0xff]  }
  0xb3   : > { %2308 = vmatprep.subr.bf16.mxu1 %v3298_v11  ;;  %v3370_v11 = vld [vmem:[%s3504_s22 + $0x724] ss:$8 sps:$4 sm:$0xff]  }
  0xb5   : > { %2256 = vmatpush2.bf16.msra.mxu0 %v3293_v12  ;;  %v3365_v12 = vld [vmem:[%s3504_s22 + $0x620] ss:$8 sps:$4 sm:$0xff]  }
  0xb6   : > { %2309 = vmatpush2.bf16.msra.mxu1 %v3296_v13  ;;  %2257 = vmatprep.subr.bf16.mxu0 %v3301_v14  ;;  %v3368_v13 = vld [vmem:[%s3504_s22 + $0x720] ss:$8 sps:$4 sm:$0xff]   ;;  %v3373_v14 = vld [vmem:[%s3504_s22 + $0x614] ss:$8 sps:$4 sm:$0xff]  }
  0xb7   : > { %2310 = vmatprep.subr.bf16.mxu1 %v3304_v15  ;;  %v3376_v15 = vld [vmem:[%s3504_s22 + $0x714] ss:$8 sps:$4 sm:$0xff]  }
  0xb9   : > { %2258 = vmatpush2.bf16.msra.mxu0 %v3299_v16  ;;  %v3371_v16 = vld [vmem:[%s3504_s22 + $0x610] ss:$8 sps:$4 sm:$0xff]  }
  0xba   : > { %2311 = vmatpush2.bf16.msra.mxu1 %v3302_v17  ;;  %2259 = vmatprep.subr.bf16.mxu0 %v3307_v18  ;;  %v3374_v17 = vld [vmem:[%s3504_s22 + $0x710] ss:$8 sps:$4 sm:$0xff]   ;;  %v3379_v18 = vld [vmem:[%s3504_s22 + $0x604] ss:$8 sps:$4 sm:$0xff]  }
  0xbb   : > { %2312 = vmatprep.subr.bf16.mxu1 %v3310_v19  ;;  %v3382_v19 = vld [vmem:[%s3504_s22 + $0x704] ss:$8 sps:$4 sm:$0xff]  }
  0xbd   : > { %2260 = vmatpush2.bf16.msra.mxu0 %v3305_v20  ;;  %v3377_v20 = vld [vmem:[%s3504_s22 + $0x600] ss:$8 sps:$4 sm:$0xff]  }
  0xbe   : > { %2313 = vmatpush2.bf16.msra.mxu1 %v3308_v21  ;;  %2261 = vmatprep.subr.bf16.mxu0 %v3313_v22  ;;  %v3380_v21 = vld [vmem:[%s3504_s22 + $0x700] ss:$8 sps:$4 sm:$0xff]   ;;  %v3385_v22 = vld [vmem:[%s3504_s22 + $0x6f4] ss:$8 sps:$4 sm:$0xff]  }
  0xbf   : > { %2314 = vmatprep.subr.bf16.mxu1 %v3316_v23  ;;  %v3388_v23 = vld [vmem:[%s3504_s22 + $0x7f4] ss:$8 sps:$4 sm:$0xff]  }
  0xc1   : > { %2262 = vmatpush2.bf16.msra.mxu0 %v3311_v24  ;;  %v3383_v24 = vld [vmem:[%s3504_s22 + $0x6f0] ss:$8 sps:$4 sm:$0xff]  }
  0xc2   : > { %2315 = vmatpush2.bf16.msra.mxu1 %v3314_v25  ;;  %2263 = vmatprep.subr.bf16.mxu0 %v3319_v26  ;;  %v3386_v25 = vld [vmem:[%s3504_s22 + $0x7f0] ss:$8 sps:$4 sm:$0xff]   ;;  %v3391_v26 = vld [vmem:[%s3504_s22 + $0x6e4] ss:$8 sps:$4 sm:$0xff]  }
  0xc3   : > { %2316 = vmatprep.subr.bf16.mxu1 %v3322_v27  ;;  %v3394_v27 = vld [vmem:[%s3504_s22 + $0x7e4] ss:$8 sps:$4 sm:$0xff]  }
  0xc5   : > { %2264 = vmatpush2.bf16.msra.mxu0 %v3317_v28  ;;  %v3389_v28 = vld [vmem:[%s3504_s22 + $0x6e0] ss:$8 sps:$4 sm:$0xff]  }
  0xc6   : > { %2317 = vmatpush2.bf16.msra.mxu1 %v3320_v29  ;;  %2265 = vmatprep.subr.bf16.mxu0 %v3325_v30  ;;  %v3392_v29 = vld [vmem:[%s3504_s22 + $0x7e0] ss:$8 sps:$4 sm:$0xff]   ;;  %v3397_v30 = vld [vmem:[%s3504_s22 + $0x6d4] ss:$8 sps:$4 sm:$0xff]  }
  0xc7   : > { %2318 = vmatprep.subr.bf16.mxu1 %v3328_v31  ;;  %v3400_v31 = vld [vmem:[%s3504_s22 + $0x7d4] ss:$8 sps:$4 sm:$0xff]  }
  0xc9   : > { %2266 = vmatpush2.bf16.msra.mxu0 %v3323_v32  ;;  %v3395_v32 = vld [vmem:[%s3504_s22 + $0x6d0] ss:$8 sps:$4 sm:$0xff]  }
  0xca   : > { %2319 = vmatpush2.bf16.msra.mxu1 %v3326_v33  ;;  %2267 = vmatprep.subr.bf16.mxu0 %v3331_v34  ;;  %v3398_v33 = vld [vmem:[%s3504_s22 + $0x7d0] ss:$8 sps:$4 sm:$0xff]   ;;  %v3403_v34 = vld [vmem:[%s3504_s22 + $0x6c4] ss:$8 sps:$4 sm:$0xff]  }
  0xcb   : > { %2320 = vmatprep.subr.bf16.mxu1 %v3334_v35  ;;  %v3406_v35 = vld [vmem:[%s3504_s22 + $0x7c4] ss:$8 sps:$4 sm:$0xff]  }
  0xcd   : > { %2268 = vmatpush2.bf16.msra.mxu0 %v3329_v36  ;;  %v3401_v36 = vld [vmem:[%s3504_s22 + $0x6c0] ss:$8 sps:$4 sm:$0xff]  }
  0xce   : > { %2321 = vmatpush2.bf16.msra.mxu1 %v3332_v37  ;;  %2343 = vmatprep.subr.bf16.mxu0 %v3337_v38  ;;  %v3404_v37 = vld [vmem:[%s3504_s22 + $0x7c0] ss:$8 sps:$4 sm:$0xff]   ;;  %v3409_v38 = vld [vmem:[%s3504_s22 + $0x6b4] ss:$8 sps:$4 sm:$0xff]  }
  0xcf   : > { %2396 = vmatprep.subr.bf16.mxu1 %v3340_v39  ;;  %v3412_v39 = vld [vmem:[%s3504_s22 + $0x7b4] ss:$8 sps:$4 sm:$0xff]  }
  0xd0   : > { %2270 = vmatmul.mubr.bf16.vlgmr.msra.gmra.mxu0 %v2728_v41  ;;  %v3410_v41 = vld [vmem:[%s3504_s22 + $0x7b0] ss:$8 sps:$4 sm:$0xff]  }
  0xd1   : > { %2323 = vmatmul.mubr.bf16.vlgmr.msra.gmra.mxu1 %v2730_v44  ;;  %2344 = vmatpush1.bf16.msra.mxu0 %v3335_v50  ;;  %v3415_v44 = vld [vmem:[%s3504_s22 + $0x6a4] ss:$8 sps:$4 sm:$0xff]   ;;  %v3421_v50 = vld [vmem:[%s3504_s22 + $0x694] ss:$8 sps:$4 sm:$0xff]  }
  0xd2   : > { %2397 = vmatpush1.bf16.msra.mxu1 %v3338_v51  ;;  %2345 = vmatprep.subr.bf16.mxu0 %v3343_v52  ;;  %v3424_v51 = vld [vmem:[%s3504_s22 + $0x794] ss:$8 sps:$4 sm:$0xff]   ;;  %v3419_v52 = vld [vmem:[%s3504_s22 + $0x690] ss:$8 sps:$4 sm:$0xff]  }
  0xd3   : > { %2398 = vmatprep.subr.bf16.mxu1 %v3346_v53  ;;  %2279 = vmatprep.mubr.bf16.mxu0 %v2745_v42  ;;  %v3422_v53 = vld [vmem:[%s3504_s22 + $0x790] ss:$8 sps:$4 sm:$0xff]   ;;  %v3427_v42 = vld [vmem:[%s3504_s22 + $0x684] ss:$8 sps:$4 sm:$0xff]  }
  0xd4   : > { %2332 = vmatprep.mubr.bf16.mxu1 %v2747_v43  ;;  %v3430_v43 = vld [vmem:[%s3504_s22 + $0x784] ss:$8 sps:$4 sm:$0xff]  }
  0xd5   : > { %2346 = vmatpush1.bf16.msra.mxu0 %v3341_v46  ;;  %v3425_v46 = vld [vmem:[%s3504_s22 + $0x680] ss:$8 sps:$4 sm:$0xff]  }
  0xd6   : > { %2399 = vmatpush1.bf16.msra.mxu1 %v3344_v47  ;;  %2347 = vmatprep.subr.bf16.mxu0 %v3349_v54  ;;  %v3428_v47 = vld [vmem:[%s3504_s22 + $0x780] ss:$8 sps:$4 sm:$0xff]   ;;  %v319_v54 = vld [vmem:[%s3554_s26 + $0xb0] sm:$0xff] }
  0xd7   : > { %2400 = vmatprep.subr.bf16.mxu1 %v3352_v55  ;;  %v327_v55 = vld [vmem:[%s3554_s26 + $0xf0] sm:$0xff] }
  0xd8   : > { %2280 = vmatmul.mubr.bf16.gmra.mxu0 %v2744_v57  ;;  %v320_v57 = vld [vmem:[%s3554_s26 + $0xb8] sm:$0xff] }
  0xd9   : > { %2333 = vmatmul.mubr.bf16.gmra.mxu1 %v2746_v58  ;;  %2348 = vmatpush1.bf16.msra.mxu0 %v3347_v62  ;;  %v328_v58 = vld [vmem:[%s3554_s26 + $0xf8] sm:$0xff]  ;;  %v2732_v62 = vcombine.low %v3771_v56, %v3774_v59 }
  0xda   : > { %2401 = vmatpush1.bf16.msra.mxu1 %v3350_v63  ;;  %2349 = vmatprep.subr.bf16.mxu0 %v3355_v0  ;;  %v2734_v63 = vcombine.low %v3777_v60, %v3780_v61  ;;  %v2749_v0 = vcombine.high %v319_v54, %v327_v55 }
  0xdb   : > { %2402 = vmatprep.subr.bf16.mxu1 %v3358_v1  ;;  %2375 = vmatprep.mubr.bf16.mxu0 %v2733_v2  ;;  %v2751_v1 = vcombine.high %v320_v57, %v328_v58  ;;  %v2748_v2 = vcombine.low %v319_v54, %v327_v55 }
  0xdc   : > { %2428 = vmatprep.mubr.bf16.mxu1 %v2735_v3  ;;  %v2750_v3 = vcombine.low %v320_v57, %v328_v58 }
  0xdd   : > { %2350 = vmatpush1.bf16.msra.mxu0 %v3353_v4 }
  0xde   : > { %2403 = vmatpush1.bf16.msra.mxu1 %v3356_v5  ;;  %2351 = vmatprep.subr.bf16.mxu0 %v3361_v6 }
  0xdf   : > { %2404 = vmatprep.subr.bf16.mxu1 %v3364_v7 }
  0xe1   : > { %2352 = vmatpush1.bf16.msra.mxu0 %v3359_v8 }
  0xe2   : > { %2405 = vmatpush1.bf16.msra.mxu1 %v3362_v9  ;;  %2353 = vmatprep.subr.bf16.mxu0 %v3367_v10 }
  0xe3   : > { %2406 = vmatprep.subr.bf16.mxu1 %v3370_v11 }
  0xe5   : > { %2354 = vmatpush1.bf16.msra.mxu0 %v3365_v12 }
  0xe6   : > { %2407 = vmatpush1.bf16.msra.mxu1 %v3368_v13  ;;  %2355 = vmatprep.subr.bf16.mxu0 %v3373_v14 }
  0xe7   : > { %2408 = vmatprep.subr.bf16.mxu1 %v3376_v15 }
  0xe9   : > { %2356 = vmatpush1.bf16.msra.mxu0 %v3371_v16 }
  0xea   : > { %2409 = vmatpush1.bf16.msra.mxu1 %v3374_v17  ;;  %2357 = vmatprep.subr.bf16.mxu0 %v3379_v18 }
  0xeb   : > { %2410 = vmatprep.subr.bf16.mxu1 %v3382_v19 }
  0xed   : > { %2358 = vmatpush1.bf16.msra.mxu0 %v3377_v20 }
  0xee   : > { %2411 = vmatpush1.bf16.msra.mxu1 %v3380_v21  ;;  %2359 = vmatprep.subr.bf16.mxu0 %v3385_v22 }
  0xef   : > { %2412 = vmatprep.subr.bf16.mxu1 %v3388_v23 }
  0xf1   : > { %2360 = vmatpush2.bf16.msra.mxu0 %v3383_v24 }
  0xf2   : > { %2413 = vmatpush2.bf16.msra.mxu1 %v3386_v25  ;;  %2361 = vmatprep.subr.bf16.mxu0 %v3391_v26 }
  0xf3   : > { %2414 = vmatprep.subr.bf16.mxu1 %v3394_v27 }
  0xf5   : > { %2362 = vmatpush2.bf16.msra.mxu0 %v3389_v28 }
  0xf6   : > { %2415 = vmatpush2.bf16.msra.mxu1 %v3392_v29  ;;  %2363 = vmatprep.subr.bf16.mxu0 %v3397_v30 }
  0xf7   : > { %2416 = vmatprep.subr.bf16.mxu1 %v3400_v31 }
  0xf9   : > { %2364 = vmatpush2.bf16.msra.mxu0 %v3395_v32 }
  0xfa   : > { %2417 = vmatpush2.bf16.msra.mxu1 %v3398_v33  ;;  %2365 = vmatprep.subr.bf16.mxu0 %v3403_v34 }
  0xfb   : > { %2418 = vmatprep.subr.bf16.mxu1 %v3406_v35 }
  0xfd   : > { %2366 = vmatpush2.bf16.msra.mxu0 %v3401_v36 }
  0xfe   : > { %2419 = vmatpush2.bf16.msra.mxu1 %v3404_v37  ;;  %2367 = vmatprep.subr.bf16.mxu0 %v3409_v38 }
  0xff   : > { %2420 = vmatprep.subr.bf16.mxu1 %v3412_v39 }
 0x101   : > { %2368 = vmatpush2.bf16.msra.mxu0 %v3407_v40 }
 0x102   : > { %2421 = vmatpush2.bf16.msra.mxu1 %v3410_v41  ;;  %2369 = vmatprep.subr.bf16.mxu0 %v3415_v44 }
 0x103   : > { %2422 = vmatprep.subr.bf16.mxu1 %v3418_v45 }
 0x105   : > { %2370 = vmatpush2.bf16.msra.mxu0 %v3413_v48 }
 0x106   : > { %2423 = vmatpush2.bf16.msra.mxu1 %v3416_v49  ;;  %2371 = vmatprep.subr.bf16.mxu0 %v3421_v50 }
 0x107   : > { %2424 = vmatprep.subr.bf16.mxu1 %v3424_v51 }
 0x109   : > { %2372 = vmatpush2.bf16.msra.mxu0 %v3419_v52 }
 0x10a   : > { %2425 = vmatpush2.bf16.msra.mxu1 %v3422_v53  ;;  %2373 = vmatprep.subr.bf16.mxu0 %v3427_v42 }
 0x10b   : > { %2426 = vmatprep.subr.bf16.mxu1 %v3430_v43 }
 0x10d   : > { %2374 = vmatpush2.bf16.msra.mxu0 %v3425_v46 }
 0x10e   : > { %2427 = vmatpush2.bf16.msra.mxu1 %v3428_v47 }
 0x110   : > { %2376 = vmatmul.mubr.bf16.vlgmr.msra.gmra.mxu0 %v2732_v62  ;;  %v2059_v4 = vpop.f32.mrf.mxu0 }
 0x111   : > { %2429 = vmatmul.mubr.bf16.vlgmr.msra.gmra.mxu1 %v2734_v63  ;;  %2385 = vmatprep.mubr.bf16.mxu0 %v2749_v0  ;;  %v2112_v5 = vpop.f32.mrf.mxu1 }
 0x112   : > { %2438 = vmatprep.mubr.bf16.mxu1 %v2751_v1  ;;  %v2061_v6 = vpop.f32.mrf.mxu0  ;;  %v2113_v44 = vadd.f32 %v2112_v5, %v2059_v4 }
 0x113   : > { %v2114_v7 = vpop.f32.mrf.mxu1 }
 0x114   : > { %v2063_v56 = vpop.f32.mrf.mxu0  ;;  %v2115_v45 = vadd.f32 %v2114_v7, %v2061_v6 }
 0x115   : > { %v2116_v59 = vpop.f32.mrf.mxu1 }
 0x116   : > { %v2065_v8 = vpop.f32.mrf.mxu0  ;;  %v2117_v51 = vadd.f32 %v2116_v59, %v2063_v56 }
 0x117   : > { %v2118_v61 = vpop.f32.mrf.mxu1 }
 0x118   : > { %2386 = vmatmul.mubr.bf16.gmra.mxu0 %v2748_v2  ;;  %v2069_v60 = vpop.f32.mrf.mxu0  ;;  %v2119_v53 = vadd.f32 %v2118_v61, %v2065_v8 }
 0x119   : > { %2439 = vmatmul.mubr.bf16.gmra.mxu1 %v2750_v3  ;;  %v2122_v9 = vpop.f32.mrf.mxu1 }
 0x11a   : > { %v2071_v10 = vpop.f32.mrf.mxu0  ;;  %v2123_v46 = vadd.f32 %v2122_v9, %v2069_v60 }
 0x11b   : > { %v2124_v11 = vpop.f32.mrf.mxu1 }
 0x11c   : > { %v2073_v12 = vpop.f32.mrf.mxu0  ;;  %v2125_v1 = vadd.f32 %v2124_v11, %v2071_v10 }
 0x11d   : > { %v2126_v13 = vpop.f32.mrf.mxu1 }
 0x11e   : > { %v2075_v14 = vpop.f32.mrf.mxu0  ;;  %v2127_v2 = vadd.f32 %v2126_v13, %v2073_v12 }
 0x11f   : > { %v2128_v16 = vpop.f32.mrf.mxu1 }
 0x120   : > { %v2129_v56 = vadd.f32 %v2128_v16, %v2075_v14 }
 0x150   : > { %v2165_v15 = vpop.f32.mrf.mxu0 }
 0x151   : > { %v2218_v17 = vpop.f32.mrf.mxu1  ;;  %v2166_v48 = vadd.f32 %v2165_v15, %v2113_v44 }
 0x152   : > { %v2167_v18 = vpop.f32.mrf.mxu0 }
 0x153   : > { %v2220_v19 = vpop.f32.mrf.mxu1  ;;  %v2168_v52 = vadd.f32 %v2167_v18, %v2115_v45  ;;  %v2219_v42 = vadd.f32 %v2218_v17, %v2166_v48 }
 0x154   : > { %v2169_v20 = vpop.f32.mrf.mxu0 }
 0x155   : > { %v2222_v21 = vpop.f32.mrf.mxu1  ;;  %v2170_v43 = vadd.f32 %v2169_v20, %v2117_v51  ;;  %v2221_v55 = vadd.f32 %v2220_v19, %v2168_v52 }
 0x156   : > { %v2171_v22 = vpop.f32.mrf.mxu0 }
 0x157   : > { %v2224_v23 = vpop.f32.mrf.mxu1  ;;  %v2172_v57 = vadd.f32 %v2171_v22, %v2119_v53  ;;  %v2223_v63 = vadd.f32 %v2222_v21, %v2170_v43 }
 0x158   : > { %v2175_v24 = vpop.f32.mrf.mxu0 }
 0x159   : > { %v2228_v25 = vpop.f32.mrf.mxu1  ;;  %v2176_v62 = vadd.f32 %v2175_v24, %v2123_v46  ;;  %v2225_v5 = vadd.f32 %v2224_v23, %v2172_v57 }
 0x15a   : > { %v2177_v26 = vpop.f32.mrf.mxu0 }
 0x15b   : > { %v2230_v27 = vpop.f32.mrf.mxu1  ;;  %v2178_v59 = vadd.f32 %v2177_v26, %v2125_v1  ;;  %v2229_v8 = vadd.f32 %v2228_v25, %v2176_v62 }
 0x15c   : > { %v2179_v28 = vpop.f32.mrf.mxu0 }
 0x15d   : > { %v2232_v29 = vpop.f32.mrf.mxu1  ;;  %v2180_v60 = vadd.f32 %v2179_v28, %v2127_v2  ;;  %v2231_v13 = vadd.f32 %v2230_v27, %v2178_v59 }
 0x15e   : > { %v2181_v30 = vpop.f32.mrf.mxu0 }
 0x15f   : > { %v2234_v31 = vpop.f32.mrf.mxu1  ;;  %v2182_v19 = vadd.f32 %v2181_v30, %v2129_v56  ;;  %v2233_v22 = vadd.f32 %v2232_v29, %v2180_v60 }
 0x161   : > { %v2235_v28 = vadd.f32 %v2234_v31, %v2182_v19 }
 0x190   : > { %v2271_v32 = vpop.f32.mrf.mxu0 }
 0x191   : > { %v2324_v33 = vpop.f32.mrf.mxu1  ;;  %v2272_v58 = vadd.f32 %v2271_v32, %v2219_v42 }
 0x192   : > { %v2273_v34 = vpop.f32.mrf.mxu0 }
 0x193   : > { %v2326_v35 = vpop.f32.mrf.mxu1  ;;  %v2274_v0 = vadd.f32 %v2273_v34, %v2221_v55  ;;  %v2325_v6 = vadd.f32 %v2324_v33, %v2272_v58 }
 0x194   : > { %v2275_v36 = vpop.f32.mrf.mxu0 }
 0x195   : > { %v2328_v37 = vpop.f32.mrf.mxu1  ;;  %v2276_v7 = vadd.f32 %v2275_v36, %v2223_v63  ;;  %v2327_v15 = vadd.f32 %v2326_v35, %v2274_v0 }
 0x196   : > { %v2277_v38 = vpop.f32.mrf.mxu0 }
 0x197   : > { %v2330_v39 = vpop.f32.mrf.mxu1  ;;  %v2278_v17 = vadd.f32 %v2277_v38, %v2225_v5  ;;  %v2329_v11 = vadd.f32 %v2328_v37, %v2276_v7 }
 0x198   : > { %v2281_v40 = vpop.f32.mrf.mxu0 }
 0x199   : > { %v2334_v41 = vpop.f32.mrf.mxu1  ;;  %v2282_v20 = vadd.f32 %v2281_v40, %v2229_v8  ;;  %v2331_v14 = vadd.f32 %v2330_v39, %v2278_v17 }
 0x19a   : > { %v2283_v49 = vpop.f32.mrf.mxu0 }
 0x19b   : > { %v2336_v50 = vpop.f32.mrf.mxu1  ;;  %v2284_v32 = vadd.f32 %v2283_v49, %v2231_v13  ;;  %v2335_v33 = vadd.f32 %v2334_v41, %v2282_v20 }
 0x19c   : > { %v2285_v47 = vpop.f32.mrf.mxu0 }
 0x19d   : > { %v2338_v54 = vpop.f32.mrf.mxu1  ;;  %v2286_v35 = vadd.f32 %v2285_v47, %v2233_v22  ;;  %v2337_v41 = vadd.f32 %v2336_v50, %v2284_v32 }
 0x19e   : > { %v2287_v3 = vpop.f32.mrf.mxu0 }
 0x19f   : > { %v2340_v4 = vpop.f32.mrf.mxu1  ;;  %v2288_v39 = vadd.f32 %v2287_v3, %v2235_v28  ;;  %v2339_v49 = vadd.f32 %v2338_v54, %v2286_v35 }
 0x1a1   : > { %v2341_v47 = vadd.f32 %v2340_v4, %v2288_v39 }
 0x1d0   : > { %v2377_v61 = vpop.f32.mrf.mxu0 }
 0x1d1   : > { %v2430_v9 = vpop.f32.mrf.mxu1  ;;  %v2378_v18 = vadd.f32 %v2377_v61, %v2325_v6 }
 0x1d2   : > { %v2379_v21 = vpop.f32.mrf.mxu0 }
 0x1d3   : > { %v2432_v10 = vpop.f32.mrf.mxu1  ;;  %v2380_v12 = vadd.f32 %v2379_v21, %v2327_v15  ;;  %v2431_v16 = vadd.f32 %v2430_v9, %v2378_v18 }
 0x1d4   : > { %v2381_v23 = vpop.f32.mrf.mxu0 }
 0x1d5   : > { %v2434_v24 = vpop.f32.mrf.mxu1  ;;  %v2433_v25 = vadd.f32 %v2432_v10, %v2380_v12  ;;  %v2382_v26 = vadd.f32 %v2381_v23, %v2329_v11  ;;  %v2495_v52 = vmul.f32 %v2431_v16, %v2431_v16 }
 0x1d6   : > { %v2383_v30 = vpop.f32.mrf.mxu0 }
 0x1d7   : > { %v2436_v34 = vpop.f32.mrf.mxu1  ;;  %v3019_v27 = vpack.c.bf16 %v2433_v25, %v2431_v16  ;;  %v2435_v29 = vadd.f32 %v2434_v24, %v2382_v26  ;;  %v2384_v36 = vadd.f32 %v2383_v30, %v2331_v14  ;;  %v2496_v5 = vmul.f32 %v2433_v25, %v2433_v25 }
 0x1d8   : > { %v2387_v37 = vpop.f32.mrf.mxu0 }
 0x1d9   : > { %v2440_v38 = vpop.f32.mrf.mxu1  ;;  %2473 = vst [vmem:[%s3852_s30] sm:$0xff] %v3019_v27  ;;  %v2437_v31 = vadd.f32 %v2436_v34, %v2384_v36  ;;  %v2388_v40 = vadd.f32 %v2387_v37, %v2335_v33  ;;  %v2497_v44 = vmul.f32 %v2435_v29, %v2435_v29  ;;  %v2477_v55 = vadd.f32 %v2435_v29, %v2431_v16 }
 0x1da   : > { %v2389_v45 = vpop.f32.mrf.mxu0 }
 0x1db   : > { %v2442_v48 = vpop.f32.mrf.mxu1  ;;  %v3020_v51 = vpack.c.bf16 %v2437_v31, %v2435_v29  ;;  %v2441_v53 = vadd.f32 %v2440_v38, %v2388_v40  ;;  %v2390_v42 = vadd.f32 %v2389_v45, %v2337_v41  ;;  %v2503_v58 = vadd.f32 %v2497_v44, %v2495_v52 }
 0x1dc   : > { %v2391_v43 = vpop.f32.mrf.mxu0  ;;  %v2498_v62 = vmul.f32 %v2437_v31, %v2437_v31  ;;  %v2486_v1 = vadd.f32 %v2437_v31, %v2433_v25 }
 0x1dd   : > { %v2444_v46 = vpop.f32.mrf.mxu1  ;;  %2474 = vst [vmem:[%s3852_s30 + $0x8] sm:$0xff] %v3020_v51  ;;  %v2392_v57 = vadd.f32 %v2391_v43, %v2339_v49  ;;  %v2499_v63 = vmul.f32 %v2441_v53, %v2441_v53  ;;  %v2443_v0 = vadd.f32 %v2442_v48, %v2390_v42  ;;  %v2478_v2 = vadd.f32 %v2477_v55, %v2441_v53 }
 0x1de   : > { %v2393_v50 = vpop.f32.mrf.mxu0  ;;  %v2512_v9 = vadd.f32 %v2498_v62, %v2496_v5 }
 0x1df   : > { %v2445_v3 = vadd.f32 %v2444_v46, %v2392_v57  ;;  %v2394_v54 = vadd.f32 %v2393_v50, %v2341_v47  ;;  %v2504_v6 = vadd.f32 %v2503_v58, %v2499_v63  ;;  %v3021_v7 = vpack.c.bf16 %v2443_v0, %v2441_v53  ;;  %v2446_v59 = vpop.f32.mrf.mxu1 }
 0x1e0   : > { %v2500_v56 = vmul.f32 %v2443_v0, %v2443_v0  ;;  %v2487_v4 = vadd.f32 %v2486_v1, %v2443_v0 }
 0x1e1   : > { %v2479_v8 = vadd.f32 %v2478_v2, %v2445_v3  ;;  %v2501_v60 = vmul.f32 %v2445_v3, %v2445_v3  ;;  %v2447_v61 = vadd.f32 %v2446_v59, %v2394_v54  ;;  %2475 = vst [vmem:[%s3852_s30 + $0x10] sm:$0xff] %v3021_v7 }
 0x1e2   : > { %v2513_v20 = vadd.f32 %v2512_v9, %v2500_v56 }
 0x1e3   : > { %v2480_v15 = vrot.slane %v2479_v8, 4  ;;  %v2505_v17 = vadd.f32 %v2504_v6, %v2501_v60  ;;  %v3022_v18 = vpack.c.bf16 %v2447_v61, %v2445_v3  ;;  %v2488_v19 = vadd.f32 %v2487_v4, %v2447_v61 }
 0x1e4   : > { %v2502_v21 = vmul.f32 %v2447_v61, %v2447_v61 }
 0x1e5   : > { %v2481_v10 = vadd.f32 %v2480_v15, %v2479_v8  ;;  %v2506_v11 = vrot.slane %v2505_v17, 4  ;;  %2476 = vst [vmem:[%s3852_s30 + $0x18] sm:$0xff] %v3022_v18  ;;  %v2489_v12 = vrot.slane %v2488_v19, 4 }
 0x1e6   : > { %v2514_v13 = vadd.f32 %v2513_v20, %v2502_v21 }
 0x1e7   : > { %v2482_v22 = vrot.slane %v2481_v10, 2  ;;  %v2507_v23 = vadd.f32 %v2506_v11, %v2505_v17  ;;  %v2490_v24 = vadd.f32 %v2489_v12, %v2488_v19 }
 0x1e8   : > { %v2515_v14 = vrot.slane %v2514_v13, 4 }
 0x1e9   : > { %v2483_v16 = vadd.f32 %v2482_v22, %v2481_v10  ;;  %v2508_v25 = vrot.slane %v2507_v23, 2  ;;  %v2491_v26 = vrot.slane %v2490_v24, 2 }
 0x1ea   : > { %v2516_v28 = vadd.f32 %v2515_v14, %v2514_v13 }
 0x1eb   : > { %v2484_v32 = vrot.slane %v2483_v16, 1  ;;  %v2509_v33 = vadd.f32 %v2508_v25, %v2507_v23  ;;  %v2492_v30 = vadd.f32 %v2491_v26, %v2490_v24 }
 0x1ec   : > { %v2517_v34 = vrot.slane %v2516_v28, 2 }
 0x1ed   : > { %v2485_v35 = vadd.f32 %v2484_v32, %v2483_v16  ;;  %v2510_v27 = vrot.slane %v2509_v33, 1  ;;  %v2493_v29 = vrot.slane %v2492_v30, 1 }
 0x1ee   : > { %v2518_v36 = vadd.f32 %v2517_v34, %v2516_v28 }
 0x1ef   : > { %v2511_v37 = vadd.f32 %v2510_v27, %v2509_v33  ;;  %2521 = vst [vmem:[%s288_s8] sm:$0xff] %v2485_v35  ;;  %v2494_v38 = vadd.f32 %v2493_v29, %v2492_v30 }
 0x1f0   : > { %v2519_v39 = vrot.slane %v2518_v36, 1 }
 0x1f1   : > { %2523 = vst [vmem:[%s295_s11] sm:$0xff] %v2511_v37  ;;  %2522 = vst [vmem:[%s288_s8 + $0x8] sm:$0xff] %v2494_v38 }
 0x1f2   : > { %v2520_v31 = vadd.f32 %v2519_v39, %v2518_v36 }
 0x1f4   : > { %2524 = vst [vmem:[%s295_s11 + $0x8] sm:$0xff] %v2520_v31 }
 0x1f5 PF: > { %s15_s17 = sadd.s32 1, %s3453_s17   ;;  %s3879_s15 = smov %s3449_s16 }
 0x1f6   : > { %p12_p5 = scmp.ge.s32.totalorder %s15_s17, 6   ;;  %s3880_s16 = smov %s3882_s18 }
 0x1f8   :  { %14 = sbr.rel (!%p12_p5) target bundleno = 2 (0x2), region = 85 }

// kernel: generator_forward.16
= control target key start
LH: loop header
LB: loop body
LE: loop exit
PB: predicated region body
PF: predicated region fallthrough
CT: control target
= control target key end

     0   :  { %s728_s15 = smov 0   ;;  %s730_s16 = smov 0   ;;  %s851_s0 = inlined_call_operand.vmem [shape: bf16[4,128,128], index: 0, kind: input, shape index: {}]   ;;  %s852_s1 = inlined_call_operand.vmem [shape: f32[1,128], index: 1, kind: input, shape index: {}]   ;;  %s853_s2 = inlined_call_operand.vmem [shape: f32[1,128], index: 2, kind: input, shape index: {}]   ;;  %s854_s3 = inlined_call_operand.vmem [shape: f32[1,128], index: 3, kind: input, shape index: {}]   ;;  %s855_s4 = inlined_call_operand.vmem [shape: bf16[4,128,128], index: 4, kind: output, shape index: {}]  }
   0x1   :  { %s732_s17 = smov 0  }
   0x2 LB: > { %s26_s18 = sadd.s32 1, %s697_s16  ;;  %p525_p0 = scmp.ge.s32.totalorder %s701_s17, 1  ;;  %s701_s17 = sphi %s732_s17, %s14_s17   ;;  %s697_s16 = sphi %s730_s16, %s857_s16   ;;  %s693_s15 = sphi %s728_s15, %s856_s15  }
   0x3   : > { %p28_p1 = scmp.ge.s32.totalorder %s26_s18, 4  ;;  %p183_p2 = scmp.lt.s32.totalorder %s701_s17, 5 }
   0x5   : > { %s859_s18 = smov (%p28_p1, %s26_s18), 0  ;;  %p184_p3 = pnand %p525_p0, %p183_p2 }
   0x6   : > { %p218_p4 = scmp.lt.s32.totalorder (!%p184_p3), %s693_s15, 3 }
   0x7   : > { %187 = sbr.rel (%p184_p3) target bundleno = 42 (0x2a), region = 36 }
   0xc   : > { %s861_s15 = smov (!%p218_p4, %s693_s15), 3  ;;  %v759_v0 = vld [vmem:[%s852_s1] ss:$0 sm:$0xff] }
   0xd   : > { %s551_s19 = sshll.u32 %s861_s15, 6  ;;  %v768_v9 = vld [vmem:[%s853_s2] ss:$0 sm:$0xff] }
   0xe   : > { %s754_s22 = scalar_lea.vmem %s851_s0, %s551_s19  ;;  %v777_v18 = vld [vmem:[%s854_s3] ss:$0 sm:$0xff]  ;;  %s806_s5 = scalar_lea.vmem %s855_s4, %s551_s19 }
   0xf   : > { %v570_v1 = vld [vmem:[%s754_s22] sm:$0xff]   ;;  %v641_v2 = vld [vmem:[%s754_s22 + $0x8] sm:$0xff]   ;;  %v642_v3 = vld [vmem:[%s754_s22 + $0x10] sm:$0xff]  }
  0x10   : > { %v571_v4 = vunpack.c.l.bf16 %v570_v1  ;;  %v572_v5 = vunpack.c.h.bf16 %v570_v1  ;;  %v575_v6 = vunpack.c.l.bf16 %v641_v2  ;;  %v576_v7 = vunpack.c.h.bf16 %v641_v2  ;;  %v643_v8 = vld [vmem:[%s754_s22 + $0x18] sm:$0xff]   ;;  %v644_v39 = vld [vmem:[%s754_s22 + $0x20] sm:$0xff]   ;;  %v645_v44 = vld [vmem:[%s754_s22 + $0x28] sm:$0xff]  }
  0x11   : > { %v579_v10 = vunpack.c.l.bf16 %v642_v3  ;;  %v580_v11 = vunpack.c.h.bf16 %v642_v3  ;;  %v583_v12 = vunpack.c.l.bf16 %v643_v8  ;;  %v584_v13 = vunpack.c.h.bf16 %v643_v8  ;;  %v646_v49 = vld [vmem:[%s754_s22 + $0x30] sm:$0xff]   ;;  %v647_v54 = vld [vmem:[%s754_s22 + $0x38] sm:$0xff]  }
  0x12   : > { %v276_v14 = vsub.f32 %v571_v4, %v759_v0  ;;  %v277_v15 = vsub.f32 %v572_v5, %v759_v0  ;;  %v278_v16 = vsub.f32 %v575_v6, %v759_v0  ;;  %v279_v17 = vsub.f32 %v576_v7, %v759_v0 }
  0x13   : > { %v280_v19 = vsub.f32 %v579_v10, %v759_v0  ;;  %v281_v20 = vsub.f32 %v580_v11, %v759_v0  ;;  %v282_v21 = vsub.f32 %v583_v12, %v759_v0  ;;  %v283_v22 = vsub.f32 %v584_v13, %v759_v0 }
  0x14   : > { %v299_v23 = vmul.f32 %v768_v9, %v276_v14  ;;  %v300_v24 = vmul.f32 %v768_v9, %v277_v15  ;;  %v301_v25 = vmul.f32 %v768_v9, %v278_v16  ;;  %v302_v26 = vmul.f32 %v768_v9, %v279_v17 }
  0x15   : > { %v303_v27 = vmul.f32 %v768_v9, %v280_v19  ;;  %v304_v28 = vmul.f32 %v768_v9, %v281_v20  ;;  %v305_v29 = vmul.f32 %v768_v9, %v282_v21  ;;  %v306_v30 = vmul.f32 %v768_v9, %v283_v22 }
  0x16   : > { %v322_v31 = vadd.f32 %v777_v18, %v299_v23  ;;  %v323_v32 = vadd.f32 %v777_v18, %v300_v24  ;;  %v324_v33 = vadd.f32 %v777_v18, %v301_v25  ;;  %v325_v34 = vadd.f32 %v777_v18, %v302_v26 }
  0x17   : > { %v326_v35 = vadd.f32 %v777_v18, %v303_v27  ;;  %v327_v36 = vadd.f32 %v777_v18, %v304_v28  ;;  %v328_v37 = vadd.f32 %v777_v18, %v305_v29  ;;  %v329_v38 = vadd.f32 %v777_v18, %v306_v30 }
  0x18   : > { %v338_v40 = vmax.f32 %v322_v31, 0.0  ;;  %v339_v41 = vmax.f32 %v323_v32, 0.0  ;;  %v340_v42 = vmax.f32 %v324_v33, 0.0  ;;  %v341_v43 = vmax.f32 %v325_v34, 0.0 }
  0x19   : > { %v342_v45 = vmax.f32 %v326_v35, 0.0  ;;  %v343_v46 = vmax.f32 %v327_v36, 0.0  ;;  %v344_v47 = vmax.f32 %v328_v37, 0.0  ;;  %v345_v48 = vmax.f32 %v329_v38, 0.0 }
  0x1a   : > { %v604_v50 = vpack.c.bf16 %v339_v41, %v338_v40  ;;  %v609_v51 = vpack.c.bf16 %v341_v43, %v340_v42  ;;  %v587_v52 = vunpack.c.l.bf16 %v644_v39  ;;  %v588_v53 = vunpack.c.h.bf16 %v644_v39 }
  0x1b   : > { %v614_v55 = vpack.c.bf16 %v343_v46, %v342_v45  ;;  %v619_v56 = vpack.c.bf16 %v345_v48, %v344_v47  ;;  %v591_v57 = vunpack.c.l.bf16 %v645_v44  ;;  %v592_v58 = vunpack.c.h.bf16 %v645_v44 }
  0x1c   : > { %605 = vst [vmem:[%s806_s5] sm:$0xff] %v604_v50   ;;  %648 = vst [vmem:[%s806_s5 + $0x8] sm:$0xff] %v609_v51   ;;  %v284_v59 = vsub.f32 %v587_v52, %v759_v0  ;;  %v285_v60 = vsub.f32 %v588_v53, %v759_v0  ;;  %v595_v61 = vunpack.c.l.bf16 %v646_v49  ;;  %v596_v62 = vunpack.c.h.bf16 %v646_v49 }
  0x1d   : > { %649 = vst [vmem:[%s806_s5 + $0x10] sm:$0xff] %v614_v55   ;;  %650 = vst [vmem:[%s806_s5 + $0x18] sm:$0xff] %v619_v56   ;;  %v286_v63 = vsub.f32 %v591_v57, %v759_v0  ;;  %v287_v1 = vsub.f32 %v592_v58, %v759_v0  ;;  %v599_v2 = vunpack.c.l.bf16 %v647_v54  ;;  %v600_v3 = vunpack.c.h.bf16 %v647_v54 }
  0x1e   : > { %v307_v4 = vmul.f32 %v768_v9, %v284_v59  ;;  %v308_v5 = vmul.f32 %v768_v9, %v285_v60  ;;  %v288_v6 = vsub.f32 %v595_v61, %v759_v0  ;;  %v289_v7 = vsub.f32 %v596_v62, %v759_v0 }
  0x1f   : > { %v309_v8 = vmul.f32 %v768_v9, %v286_v63  ;;  %v310_v10 = vmul.f32 %v768_v9, %v287_v1  ;;  %v290_v11 = vsub.f32 %v599_v2, %v759_v0  ;;  %v291_v12 = vsub.f32 %v600_v3, %v759_v0 }
  0x20   : > { %v330_v13 = vadd.f32 %v777_v18, %v307_v4  ;;  %v331_v14 = vadd.f32 %v777_v18, %v308_v5  ;;  %v311_v15 = vmul.f32 %v768_v9, %v288_v6  ;;  %v312_v16 = vmul.f32 %v768_v9, %v289_v7 }
  0x21   : > { %v332_v17 = vadd.f32 %v777_v18, %v309_v8  ;;  %v333_v19 = vadd.f32 %v777_v18, %v310_v10  ;;  %v313_v20 = vmul.f32 %v768_v9, %v290_v11  ;;  %v314_v21 = vmul.f32 %v768_v9, %v291_v12 }
  0x22   : > { %v346_v22 = vmax.f32 %v330_v13, 0.0  ;;  %v347_v0 = vmax.f32 %v331_v14, 0.0  ;;  %v334_v23 = vadd.f32 %v777_v18, %v311_v15  ;;  %v335_v24 = vadd.f32 %v777_v18, %v312_v16 }
  0x23   : > { %v348_v25 = vmax.f32 %v332_v17, 0.0  ;;  %v349_v26 = vmax.f32 %v333_v19, 0.0  ;;  %v336_v27 = vadd.f32 %v777_v18, %v313_v20  ;;  %v337_v28 = vadd.f32 %v777_v18, %v314_v21 }
  0x24   : > { %v624_v29 = vpack.c.bf16 %v347_v0, %v346_v22  ;;  %v350_v30 = vmax.f32 %v334_v23, 0.0  ;;  %v351_v31 = vmax.f32 %v335_v24, 0.0 }
  0x25   : > { %v629_v32 = vpack.c.bf16 %v349_v26, %v348_v25  ;;  %v352_v9 = vmax.f32 %v336_v27, 0.0  ;;  %v353_v33 = vmax.f32 %v337_v28, 0.0 }
  0x26   : > { %651 = vst [vmem:[%s806_s5 + $0x20] sm:$0xff] %v624_v29   ;;  %v634_v34 = vpack.c.bf16 %v351_v31, %v350_v30 }
  0x27   : > { %652 = vst [vmem:[%s806_s5 + $0x28] sm:$0xff] %v629_v32   ;;  %v639_v35 = vpack.c.bf16 %v353_v33, %v352_v9 }
  0x28   : > { %653 = vst [vmem:[%s806_s5 + $0x30] sm:$0xff] %v634_v34  }
  0x29   : > { %654 = vst [vmem:[%s806_s5 + $0x38] sm:$0xff] %v639_v35  }
  0x2a PF: > { %s14_s17 = sadd.s32 1, %s701_s17   ;;  %s856_s15 = smov %s697_s16 }
  0x2b   : > { %p11_p5 = scmp.ge.s32.totalorder %s14_s17, 6   ;;  %s857_s16 = smov %s859_s18 }
  0x2d   :  { %13 = sbr.rel (!%p11_p5) target bundleno = 2 (0x2), region = 66 }

// kernel: generator_forward.15
= control target key start
LH: loop header
LB: loop body
LE: loop exit
PB: predicated region body
PF: predicated region fallthrough
CT: control target
= control target key end

     0   :  { %s2504_s15 = smov 0   ;;  %s2506_s16 = smov 0   ;;  %s2817_s0 = inlined_call_operand.vmem [shape: bf16[4,128,1024], index: 0, kind: input, shape index: {}]   ;;  %s2818_s1 = inlined_call_operand.vmem [shape: bf16[4,1024,128], index: 1, kind: input, shape index: {}]   ;;  %s2819_s2 = inlined_call_operand.vmem [shape: bf16[4,128,128], index: 2, kind: output, shape index: {0}]   ;;  %s2820_s3 = inlined_call_operand.vmem [shape: f32[4,8,128], index: 3, kind: output, shape index: {1}]   ;;  %s2821_s4 = inlined_call_operand.vmem [shape: f32[4,8,128], index: 4, kind: output, shape index: {2}]  }
   0x1   :  { %s2508_s17 = smov 0  }
   0x2 LB: > { %s27_s18 = sadd.s32 1, %s2473_s16  ;;  %p1890_p0 = scmp.ge.s32.totalorder %s2477_s17, 1  ;;  %s2477_s17 = sphi %s2508_s17, %s15_s17   ;;  %s2473_s16 = sphi %s2506_s16, %s2823_s16   ;;  %s2469_s15 = sphi %s2504_s15, %s2822_s15  }
   0x3   : > { %p29_p1 = scmp.ge.s32.totalorder %s27_s18, 4  ;;  %p203_p2 = scmp.lt.s32.totalorder %s2477_s17, 5 }
   0x5   : > { %s2825_s18 = smov (%p29_p1, %s27_s18), 0  ;;  %p204_p3 = pnand %p1890_p0, %p203_p2 }
   0x6   : > { %p254_p4 = scmp.lt.s32.totalorder (!%p204_p3), %s2469_s15, 3 }
   0x7   : > { %207 = sbr.rel (%p204_p3) target bundleno = 391 (0x187), region = 28 }
   0xc   : > { %s2827_s15 = smov (!%p254_p4, %s2469_s15), 3 }
   0xd   : > { %s2045_s19 = sshll.u32 %s2827_s15, 9  ;;  %s2047_s26 = sshll.u32 %s2827_s15, 6 }
   0xe   : > { %s2530_s22 = scalar_lea.vmem %s2818_s1, %s2045_s19  ;;  %s2567_s25 = scalar_lea.vmem %s2817_s0, %s2045_s19 }
   0xf   : > { %v2391_v0 = vld [vmem:[%s2530_s22 + $0x78] sm:$0xff]   ;;  %v2395_v4 = vld [vmem:[%s2530_s22 + $0x70] sm:$0xff]   ;;  %v2399_v8 = vld [vmem:[%s2530_s22 + $0x68] sm:$0xff]   ;;  %s2760_s29 = scalar_lea.vmem %s2819_s2, %s2047_s26  ;;  %s1897_s30 = sshll.u32 %s2827_s15, 3 }
  0x10   : > { %v2392_v1 = vld [vmem:[%s2530_s22 + $0xf8] sm:$0xff]   ;;  %2111 = vmatprep.subr.bf16.mxu0 %v2391_v0  ;;  %v2396_v5 = vld [vmem:[%s2530_s22 + $0xf0] sm:$0xff]   ;;  %v2400_v9 = vld [vmem:[%s2530_s22 + $0xe8] sm:$0xff]   ;;  %s283_s7 = scalar_lea.vmem %s2820_s3, %s1897_s30  ;;  %s289_s10 = scalar_lea.vmem %s2821_s4, %s1897_s30 }
  0x11   : > { %v2393_v2 = vld [vmem:[%s2530_s22 + $0x38] sm:$0xff]   ;;  %2175 = vmatprep.subr.bf16.mxu1 %v2392_v1  ;;  %v2397_v6 = vld [vmem:[%s2530_s22 + $0x30] sm:$0xff]   ;;  %v2401_v10 = vld [vmem:[%s2530_s22 + $0x28] sm:$0xff]  }
  0x12   : > { %v2394_v3 = vld [vmem:[%s2530_s22 + $0xb8] sm:$0xff]   ;;  %2112 = vmatpush3.bf16.msra.mxu0 %v2393_v2  ;;  %v2398_v7 = vld [vmem:[%s2530_s22 + $0xb0] sm:$0xff]   ;;  %v2402_v11 = vld [vmem:[%s2530_s22 + $0xa8] sm:$0xff]  }
  0x13   : > { %2176 = vmatpush3.bf16.msra.mxu1 %v2394_v3  ;;  %2113 = vmatprep.subr.bf16.mxu0 %v2395_v4  ;;  %v2403_v12 = vld [vmem:[%s2530_s22 + $0x60] sm:$0xff]   ;;  %v2407_v16 = vld [vmem:[%s2530_s22 + $0x58] sm:$0xff]   ;;  %v2411_v20 = vld [vmem:[%s2530_s22 + $0x50] sm:$0xff]  }
  0x14   : > { %2177 = vmatprep.subr.bf16.mxu1 %v2396_v5  ;;  %v2404_v13 = vld [vmem:[%s2530_s22 + $0xe0] sm:$0xff]   ;;  %v2408_v17 = vld [vmem:[%s2530_s22 + $0xd8] sm:$0xff]   ;;  %v2412_v21 = vld [vmem:[%s2530_s22 + $0xd0] sm:$0xff]  }
  0x15   : > { %v2405_v14 = vld [vmem:[%s2530_s22 + $0x20] sm:$0xff]   ;;  %v2409_v18 = vld [vmem:[%s2530_s22 + $0x18] sm:$0xff]   ;;  %v2413_v22 = vld [vmem:[%s2530_s22 + $0x10] sm:$0xff]  }
  0x16   : > { %2114 = vmatpush3.bf16.msra.mxu0 %v2397_v6  ;;  %v2406_v15 = vld [vmem:[%s2530_s22 + $0xa0] sm:$0xff]   ;;  %v2410_v19 = vld [vmem:[%s2530_s22 + $0x98] sm:$0xff]   ;;  %v2414_v23 = vld [vmem:[%s2530_s22 + $0x90] sm:$0xff]  }
  0x17   : > { %2178 = vmatpush3.bf16.msra.mxu1 %v2398_v7  ;;  %2115 = vmatprep.subr.bf16.mxu0 %v2399_v8  ;;  %v2415_v24 = vld [vmem:[%s2530_s22 + $0x48] sm:$0xff]   ;;  %v2419_v28 = vld [vmem:[%s2530_s22 + $0x40] sm:$0xff]   ;;  %v2423_v40 = vld [vmem:[%s2530_s22 + $0x178] sm:$0xff]  }
  0x18   : > { %2179 = vmatprep.subr.bf16.mxu1 %v2400_v9  ;;  %v2416_v25 = vld [vmem:[%s2530_s22 + $0xc8] sm:$0xff]   ;;  %v2420_v29 = vld [vmem:[%s2530_s22 + $0xc0] sm:$0xff]   ;;  %v2424_v41 = vld [vmem:[%s2530_s22 + $0x138] sm:$0xff]  }
  0x19   : > { %v2417_v26 = vld [vmem:[%s2530_s22 + $0x8] sm:$0xff]   ;;  %v2421_v30 = vld [vmem:[%s2530_s22] sm:$0xff]   ;;  %v2425_v42 = vld [vmem:[%s2530_s22 + $0x1f8] sm:$0xff]  }
  0x1a   : > { %2116 = vmatpush3.bf16.msra.mxu0 %v2401_v10  ;;  %v2418_v27 = vld [vmem:[%s2530_s22 + $0x88] sm:$0xff]   ;;  %v2422_v31 = vld [vmem:[%s2530_s22 + $0x80] sm:$0xff]   ;;  %v2426_v43 = vld [vmem:[%s2530_s22 + $0x1b8] sm:$0xff]  }
  0x1b   : > { %2180 = vmatpush3.bf16.msra.mxu1 %v2402_v11  ;;  %2117 = vmatprep.subr.bf16.mxu0 %v2403_v12  ;;  %v292_v32 = vld [vmem:[%s2567_s25] sm:$0xff]  ;;  %v293_v34 = vld [vmem:[%s2567_s25 + $0x8] sm:$0xff]  ;;  %v2427_v50 = vld [vmem:[%s2530_s22 + $0x170] sm:$0xff]  }
  0x1c   : > { %2181 = vmatprep.subr.bf16.mxu1 %v2404_v13  ;;  %v296_v33 = vld [vmem:[%s2567_s25 + $0x20] sm:$0xff]  ;;  %v297_v37 = vld [vmem:[%s2567_s25 + $0x28] sm:$0xff]  ;;  %v2428_v52 = vld [vmem:[%s2530_s22 + $0x130] sm:$0xff]  }
  0x1d   : > { %v1899_v35 = vcombine.low %v292_v32, %v296_v33  ;;  %v1900_v36 = vcombine.high %v292_v32, %v296_v33  ;;  %v1901_v38 = vcombine.low %v293_v34, %v297_v37  ;;  %v1902_v39 = vcombine.high %v293_v34, %v297_v37  ;;  %v300_v44 = vld [vmem:[%s2567_s25 + $0x40] sm:$0xff]  ;;  %v301_v47 = vld [vmem:[%s2567_s25 + $0x48] sm:$0xff]  ;;  %v2429_v54 = vld [vmem:[%s2530_s22 + $0x1f0] sm:$0xff]  }
  0x1e   : > { %2118 = vmatpush3.bf16.msra.mxu0 %v2405_v14  ;;  %v304_v45 = vld [vmem:[%s2567_s25 + $0x60] sm:$0xff]  ;;  %v305_v48 = vld [vmem:[%s2567_s25 + $0x68] sm:$0xff]  ;;  %v2430_v55 = vld [vmem:[%s2530_s22 + $0x1b0] sm:$0xff]  }
  0x1f   : > { %2182 = vmatpush3.bf16.msra.mxu1 %v2406_v15  ;;  %2119 = vmatprep.subr.bf16.mxu0 %v2407_v16  ;;  %v1908_v46 = vcombine.high %v300_v44, %v304_v45  ;;  %v1910_v49 = vcombine.high %v301_v47, %v305_v48  ;;  %v1907_v51 = vcombine.low %v300_v44, %v304_v45  ;;  %v308_v56 = vld [vmem:[%s2567_s25 + $0x80] sm:$0xff]  ;;  %v309_v58 = vld [vmem:[%s2567_s25 + $0x88] sm:$0xff]  ;;  %v2445_v32 = vld [vmem:[%s2530_s22 + $0x1d0] sm:$0xff]  }
  0x20   : > { %2183 = vmatprep.subr.bf16.mxu1 %v2408_v17  ;;  %1220 = vmatprep.mubr.bf16.mxu0 %v1900_v36  ;;  %v1909_v53 = vcombine.low %v301_v47, %v305_v48  ;;  %v312_v57 = vld [vmem:[%s2567_s25 + $0xa0] sm:$0xff]  ;;  %v313_v59 = vld [vmem:[%s2567_s25 + $0xa8] sm:$0xff]  ;;  %v2446_v33 = vld [vmem:[%s2530_s22 + $0x190] sm:$0xff]  }
  0x21   : > { %1317 = vmatprep.mubr.bf16.mxu1 %v1902_v39  ;;  %v1916_v60 = vcombine.high %v308_v56, %v312_v57  ;;  %v1918_v61 = vcombine.high %v309_v58, %v313_v59  ;;  %v2431_v62 = vld [vmem:[%s2530_s22 + $0x168] sm:$0xff]   ;;  %v1915_v2 = vcombine.low %v308_v56, %v312_v57  ;;  %v316_v3 = vld [vmem:[%s2567_s25 + $0xc0] sm:$0xff]  ;;  %v1917_v6 = vcombine.low %v309_v58, %v313_v59 }
  0x22   : > { %2120 = vmatpush3.bf16.msra.mxu0 %v2409_v18  ;;  %v2432_v63 = vld [vmem:[%s2530_s22 + $0x128] sm:$0xff]   ;;  %v320_v4 = vld [vmem:[%s2567_s25 + $0xe0] sm:$0xff]  ;;  %v2439_v18 = vld [vmem:[%s2530_s22 + $0x158] sm:$0xff]  }
  0x23   : > { %2184 = vmatpush3.bf16.msra.mxu1 %v2410_v19  ;;  %2121 = vmatprep.subr.bf16.mxu0 %v2411_v20  ;;  %v2433_v0 = vld [vmem:[%s2530_s22 + $0x1e8] sm:$0xff]   ;;  %v1924_v7 = vcombine.high %v316_v3, %v320_v4  ;;  %v2435_v10 = vld [vmem:[%s2530_s22 + $0x160] sm:$0xff]   ;;  %v1923_v19 = vcombine.low %v316_v3, %v320_v4  ;;  %v2440_v20 = vld [vmem:[%s2530_s22 + $0x118] sm:$0xff]  }
  0x24   : > { %2185 = vmatprep.subr.bf16.mxu1 %v2412_v21  ;;  %v2434_v1 = vld [vmem:[%s2530_s22 + $0x1a8] sm:$0xff]   ;;  %v2436_v11 = vld [vmem:[%s2530_s22 + $0x120] sm:$0xff]  }
  0x25   : > { %v317_v5 = vld [vmem:[%s2567_s25 + $0xc8] sm:$0xff]  ;;  %v2437_v12 = vld [vmem:[%s2530_s22 + $0x1e0] sm:$0xff]  }
  0x26   : > { %2122 = vmatpush3.bf16.msra.mxu0 %v2413_v22  ;;  %v321_v8 = vld [vmem:[%s2567_s25 + $0xe8] sm:$0xff]  ;;  %v2438_v13 = vld [vmem:[%s2530_s22 + $0x1a0] sm:$0xff]  }
  0x27   : > { %2186 = vmatpush3.bf16.msra.mxu1 %v2414_v23  ;;  %2123 = vmatprep.subr.bf16.mxu0 %v2415_v24  ;;  %v1926_v9 = vcombine.high %v317_v5, %v321_v8  ;;  %v324_v14 = vld [vmem:[%s2567_s25 + $0x100] sm:$0xff]  ;;  %v325_v16 = vld [vmem:[%s2567_s25 + $0x108] sm:$0xff]  ;;  %v1925_v21 = vcombine.low %v317_v5, %v321_v8  ;;  %v2441_v23 = vld [vmem:[%s2530_s22 + $0x1d8] sm:$0xff]  }
  0x28   : > { %2187 = vmatprep.subr.bf16.mxu1 %v2416_v25  ;;  %v328_v15 = vld [vmem:[%s2567_s25 + $0x120] sm:$0xff]  ;;  %v329_v17 = vld [vmem:[%s2567_s25 + $0x128] sm:$0xff]  ;;  %v2442_v25 = vld [vmem:[%s2530_s22 + $0x198] sm:$0xff]  }
  0x29   : > { %v1932_v22 = vcombine.high %v324_v14, %v328_v15  ;;  %v1934_v24 = vcombine.high %v325_v16, %v329_v17  ;;  %v1931_v34 = vcombine.low %v324_v14, %v328_v15  ;;  %v2448_v39 = vld [vmem:[%s2530_s22 + $0x108] sm:$0xff]   ;;  %v2452_v48 = vld [vmem:[%s2530_s22 + $0x100] sm:$0xff]   ;;  %v303_v8 = vld [vmem:[%s2567_s25 + $0x58] sm:$0xff] }
  0x2a   : > { %2124 = vmatpush3.bf16.msra.mxu0 %v2417_v26  ;;  %v332_v26 = vld [vmem:[%s2567_s25 + $0x140] sm:$0xff]  ;;  %v341_v44 = vld [vmem:[%s2567_s25 + $0x188] sm:$0xff]  ;;  %v310_v14 = vld [vmem:[%s2567_s25 + $0x90] sm:$0xff] }
  0x2b   : > { %2188 = vmatpush3.bf16.msra.mxu1 %v2418_v27  ;;  %2125 = vmatprep.subr.bf16.mxu0 %v2419_v28  ;;  %v336_v27 = vld [vmem:[%s2567_s25 + $0x160] sm:$0xff]  ;;  %v2443_v28 = vld [vmem:[%s2530_s22 + $0x150] sm:$0xff]   ;;  %v345_v45 = vld [vmem:[%s2567_s25 + $0x1a8] sm:$0xff] }
  0x2c   : > { %2189 = vmatprep.subr.bf16.mxu1 %v2420_v29  ;;  %v333_v29 = vld [vmem:[%s2567_s25 + $0x148] sm:$0xff]  ;;  %v1940_v36 = vcombine.high %v332_v26, %v336_v27  ;;  %v1939_v47 = vcombine.low %v332_v26, %v336_v27  ;;  %v1949_v59 = vcombine.low %v341_v44, %v345_v45  ;;  %v314_v15 = vld [vmem:[%s2567_s25 + $0xb0] sm:$0xff] }
  0x2d   : > { %v349_v56 = vld [vmem:[%s2567_s25 + $0x1c8] sm:$0xff]  ;;  %v1919_v26 = vcombine.low %v310_v14, %v314_v15 }
  0x2e   : > { %2126 = vmatpush3.bf16.msra.mxu0 %v2421_v30  ;;  %v337_v30 = vld [vmem:[%s2567_s25 + $0x168] sm:$0xff] }
  0x2f   : > { %2190 = vmatpush3.bf16.msra.mxu1 %v2422_v31  ;;  %2239 = vmatprep.subr.bf16.mxu0 %v2423_v40  ;;  %v2444_v31 = vld [vmem:[%s2530_s22 + $0x110] sm:$0xff]   ;;  %v1942_v37 = vcombine.high %v333_v29, %v337_v30  ;;  %v2449_v40 = vld [vmem:[%s2530_s22 + $0x1c8] sm:$0xff]  }
  0x30   : > { %2303 = vmatprep.subr.bf16.mxu1 %v2425_v42  ;;  %v344_v42 = vld [vmem:[%s2567_s25 + $0x1a0] sm:$0xff]  ;;  %v353_v57 = vld [vmem:[%s2567_s25 + $0x1e8] sm:$0xff] }
  0x31   : > { %1221 = vmatmul.mubr.bf16.vlgmr.msra.gmra.mxu0 %v1899_v35  ;;  %v1933_v35 = vcombine.low %v325_v16, %v329_v17  ;;  %v1957_v3 = vcombine.low %v349_v56, %v353_v57  ;;  %v311_v16 = vld [vmem:[%s2567_s25 + $0x98] sm:$0xff] }
  0x32   : > { %1318 = vmatmul.mubr.bf16.vlgmr.msra.gmra.mxu1 %v1901_v38  ;;  %2240 = vmatpush3.bf16.msra.mxu0 %v2424_v41  ;;  %v2447_v38 = vld [vmem:[%s2530_s22 + $0x148] sm:$0xff]   ;;  %v340_v41 = vld [vmem:[%s2567_s25 + $0x180] sm:$0xff]  ;;  %v315_v17 = vld [vmem:[%s2567_s25 + $0xb8] sm:$0xff] }
  0x33   : > { %2304 = vmatpush3.bf16.msra.mxu1 %v2426_v43  ;;  %1228 = vmatprep.mubr.bf16.mxu0 %v1908_v46  ;;  %v2450_v43 = vld [vmem:[%s2530_s22 + $0x188] sm:$0xff]   ;;  %v2451_v46 = vld [vmem:[%s2530_s22 + $0x140] sm:$0xff]   ;;  %v1947_v58 = vcombine.low %v340_v41, %v344_v42  ;;  %v1921_v27 = vcombine.low %v311_v16, %v315_v17 }
  0x34   : > { %1325 = vmatprep.mubr.bf16.mxu1 %v1910_v49  ;;  %2241 = vmatprep.subr.bf16.mxu0 %v2427_v50  ;;  %v1941_v49 = vcombine.low %v333_v29, %v337_v30  ;;  %v1948_v50 = vcombine.high %v340_v41, %v344_v42  ;;  %v326_v30 = vld [vmem:[%s2567_s25 + $0x110] sm:$0xff]  ;;  %v339_v41 = vld [vmem:[%s2567_s25 + $0x178] sm:$0xff] }
  0x35   : > { %2305 = vmatprep.subr.bf16.mxu1 %v2429_v54  ;;  %v348_v54 = vld [vmem:[%s2567_s25 + $0x1c0] sm:$0xff] }
  0x36   : > { %2242 = vmatpush3.bf16.msra.mxu0 %v2428_v52  ;;  %v1950_v52 = vcombine.high %v341_v44, %v345_v45 }
  0x37   : > { %2306 = vmatpush3.bf16.msra.mxu1 %v2430_v55  ;;  %2243 = vmatprep.subr.bf16.mxu0 %v2431_v62  ;;  %v352_v55 = vld [vmem:[%s2567_s25 + $0x1e0] sm:$0xff]  ;;  %v294_v62 = vld [vmem:[%s2567_s25 + $0x10] sm:$0xff] }
  0x38   : > { %2307 = vmatprep.subr.bf16.mxu1 %v2433_v0  ;;  %v295_v0 = vld [vmem:[%s2567_s25 + $0x18] sm:$0xff] }
  0x39   : > { %1229 = vmatmul.mubr.bf16.gmra.mxu0 %v1907_v51  ;;  %v2453_v51 = vld [vmem:[%s2530_s22 + $0x1c0] sm:$0xff]  }
  0x3a   : > { %1326 = vmatmul.mubr.bf16.gmra.mxu1 %v1909_v53  ;;  %1236 = vmatprep.mubr.bf16.mxu0 %v1916_v60  ;;  %v2454_v53 = vld [vmem:[%s2530_s22 + $0x180] sm:$0xff]   ;;  %v1956_v60 = vcombine.high %v348_v54, %v352_v55 }
  0x3b   : > { %1333 = vmatprep.mubr.bf16.mxu1 %v1918_v61  ;;  %2244 = vmatpush3.bf16.msra.mxu0 %v2432_v63  ;;  %v1958_v61 = vcombine.high %v349_v56, %v353_v57  ;;  %v298_v63 = vld [vmem:[%s2567_s25 + $0x30] sm:$0xff]  ;;  %v351_v56 = vld [vmem:[%s2567_s25 + $0x1d8] sm:$0xff] }
  0x3c   : > { %2308 = vmatpush3.bf16.msra.mxu1 %v2434_v1  ;;  %2245 = vmatprep.subr.bf16.mxu0 %v2435_v10  ;;  %v299_v1 = vld [vmem:[%s2567_s25 + $0x38] sm:$0xff]  ;;  %v1904_v4 = vcombine.high %v294_v62, %v298_v63  ;;  %v1903_v10 = vcombine.low %v294_v62, %v298_v63 }
  0x3d   : > { %2309 = vmatprep.subr.bf16.mxu1 %v2437_v12  ;;  %v1906_v5 = vcombine.high %v295_v0, %v299_v1  ;;  %v355_v57 = vld [vmem:[%s2567_s25 + $0x1f8] sm:$0xff] }
  0x3e   : > { %v1961_v63 = vcombine.low %v351_v56, %v355_v57 }
  0x3f   : > { %2246 = vmatpush3.bf16.msra.mxu0 %v2436_v11  ;;  %v1905_v11 = vcombine.low %v295_v0, %v299_v1 }
  0x40   : > { %2310 = vmatpush3.bf16.msra.mxu1 %v2438_v13  ;;  %2247 = vmatprep.subr.bf16.mxu0 %v2439_v18 }
  0x41   : > { %1237 = vmatmul.mubr.bf16.gmra.mxu0 %v1915_v2  ;;  %2311 = vmatprep.subr.bf16.mxu1 %v2441_v23  ;;  %v1955_v2 = vcombine.low %v348_v54, %v352_v55  ;;  %v322_v23 = vld [vmem:[%s2567_s25 + $0xf0] sm:$0xff] }
  0x42   : > { %1334 = vmatmul.mubr.bf16.gmra.mxu1 %v1917_v6  ;;  %1244 = vmatprep.mubr.bf16.mxu0 %v1924_v7  ;;  %v302_v6 = vld [vmem:[%s2567_s25 + $0x50] sm:$0xff] }
  0x43   : > { %1341 = vmatprep.mubr.bf16.mxu1 %v1926_v9  ;;  %2248 = vmatpush3.bf16.msra.mxu0 %v2440_v20  ;;  %v306_v7 = vld [vmem:[%s2567_s25 + $0x70] sm:$0xff]  ;;  %v307_v9 = vld [vmem:[%s2567_s25 + $0x78] sm:$0xff]  ;;  %v1920_v20 = vcombine.high %v310_v14, %v314_v15 }
  0x44   : > { %2312 = vmatpush3.bf16.msra.mxu1 %v2442_v25  ;;  %2249 = vmatprep.subr.bf16.mxu0 %v2443_v28  ;;  %v1912_v12 = vcombine.high %v302_v6, %v306_v7  ;;  %v1914_v13 = vcombine.high %v303_v8, %v307_v9  ;;  %v1911_v18 = vcombine.low %v302_v6, %v306_v7  ;;  %v323_v25 = vld [vmem:[%s2567_s25 + $0xf8] sm:$0xff]  ;;  %v350_v54 = vld [vmem:[%s2567_s25 + $0x1d0] sm:$0xff] }
  0x45   : > { %2313 = vmatprep.subr.bf16.mxu1 %v2445_v32  ;;  %v327_v32 = vld [vmem:[%s2567_s25 + $0x118] sm:$0xff]  ;;  %v354_v55 = vld [vmem:[%s2567_s25 + $0x1f0] sm:$0xff] }
  0x46   : > { %v1959_v62 = vcombine.low %v350_v54, %v354_v55 }
  0x47   : > { %2250 = vmatpush3.bf16.msra.mxu0 %v2444_v31  ;;  %v330_v31 = vld [vmem:[%s2567_s25 + $0x130] sm:$0xff] }
  0x48   : > { %2314 = vmatpush3.bf16.msra.mxu1 %v2446_v33  ;;  %2251 = vmatprep.subr.bf16.mxu0 %v2447_v38  ;;  %v331_v33 = vld [vmem:[%s2567_s25 + $0x138] sm:$0xff]  ;;  %v334_v38 = vld [vmem:[%s2567_s25 + $0x150] sm:$0xff]  ;;  %v1935_v42 = vcombine.low %v326_v30, %v330_v31 }
  0x49   : > { %1245 = vmatmul.mubr.bf16.gmra.mxu0 %v1923_v19  ;;  %2315 = vmatprep.subr.bf16.mxu1 %v2449_v40  ;;  %v1913_v19 = vcombine.low %v303_v8, %v307_v9  ;;  %v335_v40 = vld [vmem:[%s2567_s25 + $0x158] sm:$0xff] }
  0x4a   : > { %1342 = vmatmul.mubr.bf16.gmra.mxu1 %v1925_v21  ;;  %1252 = vmatprep.mubr.bf16.mxu0 %v1932_v22  ;;  %v1922_v21 = vcombine.high %v311_v16, %v315_v17  ;;  %v318_v22 = vld [vmem:[%s2567_s25 + $0xd0] sm:$0xff]  ;;  %v1946_v45 = vcombine.high %v335_v40, %v339_v41 }
  0x4b   : > { %1349 = vmatprep.mubr.bf16.mxu1 %v1934_v24  ;;  %2252 = vmatpush3.bf16.msra.mxu0 %v2448_v39  ;;  %v319_v24 = vld [vmem:[%s2567_s25 + $0xd8] sm:$0xff]  ;;  %v1928_v28 = vcombine.high %v318_v22, %v322_v23  ;;  %v338_v39 = vld [vmem:[%s2567_s25 + $0x170] sm:$0xff] }
  0x4c   : > { %2316 = vmatpush3.bf16.msra.mxu1 %v2450_v43  ;;  %2253 = vmatprep.subr.bf16.mxu0 %v2451_v46  ;;  %v1930_v29 = vcombine.high %v319_v24, %v323_v25  ;;  %v1937_v43 = vcombine.low %v327_v32, %v331_v33  ;;  %v1944_v44 = vcombine.high %v334_v38, %v338_v39  ;;  %v342_v46 = vld [vmem:[%s2567_s25 + $0x190] sm:$0xff] }
  0x4d   : > { %2317 = vmatprep.subr.bf16.mxu1 %v2453_v51  ;;  %v1945_v51 = vcombine.low %v335_v40, %v339_v41 }
  0x4f   : > { %2254 = vmatpush3.bf16.msra.mxu0 %v2452_v48  ;;  %v343_v48 = vld [vmem:[%s2567_s25 + $0x198] sm:$0xff] }
  0x50   : > { %2318 = vmatpush3.bf16.msra.mxu1 %v2454_v53 }
  0x51   : > { %1253 = vmatmul.mubr.bf16.gmra.mxu0 %v1931_v34  ;;  %v1927_v34 = vcombine.low %v318_v22, %v322_v23 }
  0x52   : > { %1350 = vmatmul.mubr.bf16.gmra.mxu1 %v1933_v35  ;;  %1260 = vmatprep.mubr.bf16.mxu0 %v1940_v36  ;;  %v1929_v35 = vcombine.low %v319_v24, %v323_v25  ;;  %v1936_v36 = vcombine.high %v326_v30, %v330_v31 }
  0x53   : > { %1357 = vmatprep.mubr.bf16.mxu1 %v1942_v37  ;;  %v1938_v37 = vcombine.high %v327_v32, %v331_v33 }
  0x59   : > { %1261 = vmatmul.mubr.bf16.gmra.mxu0 %v1939_v47  ;;  %v346_v47 = vld [vmem:[%s2567_s25 + $0x1b0] sm:$0xff] }
  0x5a   : > { %1358 = vmatmul.mubr.bf16.gmra.mxu1 %v1941_v49  ;;  %1268 = vmatprep.mubr.bf16.mxu0 %v1948_v50  ;;  %v347_v49 = vld [vmem:[%s2567_s25 + $0x1b8] sm:$0xff]  ;;  %v1943_v50 = vcombine.low %v334_v38, %v338_v39 }
  0x5b   : > { %1365 = vmatprep.mubr.bf16.mxu1 %v1950_v52  ;;  %v1952_v52 = vcombine.high %v342_v46, %v346_v47  ;;  %v1954_v53 = vcombine.high %v343_v48, %v347_v49 }
  0x61   : > { %1269 = vmatmul.mubr.bf16.gmra.mxu0 %v1947_v58  ;;  %v1951_v58 = vcombine.low %v342_v46, %v346_v47 }
  0x62   : > { %1366 = vmatmul.mubr.bf16.gmra.mxu1 %v1949_v59  ;;  %1276 = vmatprep.mubr.bf16.mxu0 %v1956_v60  ;;  %v1953_v59 = vcombine.low %v343_v48, %v347_v49  ;;  %v1960_v60 = vcombine.high %v350_v54, %v354_v55 }
  0x63   : > { %1373 = vmatprep.mubr.bf16.mxu1 %v1958_v61  ;;  %v1962_v61 = vcombine.high %v351_v56, %v355_v57 }
  0x69   : > { %1277 = vmatmul.mubr.bf16.gmra.mxu0 %v1955_v2 }
  0x6a   : > { %1374 = vmatmul.mubr.bf16.gmra.mxu1 %v1957_v3  ;;  %1414 = vmatprep.mubr.bf16.mxu0 %v1904_v4 }
  0x6b   : > { %1511 = vmatprep.mubr.bf16.mxu1 %v1906_v5 }
  0x71   : > { %1415 = vmatmul.mubr.bf16.vlgmr.msra.gmra.mxu0 %v1903_v10 }
  0x72   : > { %1512 = vmatmul.mubr.bf16.vlgmr.msra.gmra.mxu1 %v1905_v11  ;;  %1422 = vmatprep.mubr.bf16.mxu0 %v1912_v12 }
  0x73   : > { %1519 = vmatprep.mubr.bf16.mxu1 %v1914_v13 }
  0x79   : > { %1423 = vmatmul.mubr.bf16.gmra.mxu0 %v1911_v18 }
  0x7a   : > { %1520 = vmatmul.mubr.bf16.gmra.mxu1 %v1913_v19  ;;  %1430 = vmatprep.mubr.bf16.mxu0 %v1920_v20 }
  0x7b   : > { %1527 = vmatprep.mubr.bf16.mxu1 %v1922_v21 }
  0x81   : > { %1431 = vmatmul.mubr.bf16.gmra.mxu0 %v1919_v26 }
  0x82   : > { %1528 = vmatmul.mubr.bf16.gmra.mxu1 %v1921_v27  ;;  %1438 = vmatprep.mubr.bf16.mxu0 %v1928_v28 }
  0x83   : > { %1535 = vmatprep.mubr.bf16.mxu1 %v1930_v29 }
  0x89   : > { %1439 = vmatmul.mubr.bf16.gmra.mxu0 %v1927_v34 }
  0x8a   : > { %1536 = vmatmul.mubr.bf16.gmra.mxu1 %v1929_v35  ;;  %1446 = vmatprep.mubr.bf16.mxu0 %v1936_v36 }
  0x8b   : > { %1543 = vmatprep.mubr.bf16.mxu1 %v1938_v37 }
  0x91   : > { %1447 = vmatmul.mubr.bf16.gmra.mxu0 %v1935_v42 }
  0x92   : > { %1544 = vmatmul.mubr.bf16.gmra.mxu1 %v1937_v43  ;;  %1454 = vmatprep.mubr.bf16.mxu0 %v1944_v44 }
  0x93   : > { %1551 = vmatprep.mubr.bf16.mxu1 %v1946_v45 }
  0x99   : > { %1455 = vmatmul.mubr.bf16.gmra.mxu0 %v1943_v50 }
  0x9a   : > { %1552 = vmatmul.mubr.bf16.gmra.mxu1 %v1945_v51  ;;  %1462 = vmatprep.mubr.bf16.mxu0 %v1952_v52 }
  0x9b   : > { %1559 = vmatprep.mubr.bf16.mxu1 %v1954_v53 }
  0xa1   : > { %1463 = vmatmul.mubr.bf16.gmra.mxu0 %v1951_v58 }
  0xa2   : > { %1560 = vmatmul.mubr.bf16.gmra.mxu1 %v1953_v59  ;;  %1470 = vmatprep.mubr.bf16.mxu0 %v1960_v60 }
  0xa3   : > { %1567 = vmatprep.mubr.bf16.mxu1 %v1962_v61 }
  0xa9   : > { %1471 = vmatmul.mubr.bf16.gmra.mxu0 %v1959_v62 }
  0xaa   : > { %1568 = vmatmul.mubr.bf16.gmra.mxu1 %v1961_v63 }
  0xf1   : > { %v2127_v0 = vpop.f32.mrf.mxu0 }
  0xf2   : > { %v2191_v1 = vpop.f32.mrf.mxu1 }
  0xf3   : > { %v2128_v2 = vpop.f32.mrf.mxu0 }
  0xf4   : > { %v2129_v3 = vadd.f32 %v2128_v2, %v2127_v0  ;;  %v2192_v4 = vpop.f32.mrf.mxu1 }
  0xf5   : > { %v2193_v5 = vadd.f32 %v2192_v4, %v2191_v1  ;;  %v2667_v6 = vpop.f32.mrf.mxu0 }
  0xf6   : > { %v2669_v7 = vpop.f32.mrf.mxu1 }
  0xf7   : > { %v2671_v8 = vadd.f32 %v2193_v5, %v2129_v3  ;;  %v2673_v9 = vpop.f32.mrf.mxu0 }
  0xf8   : > { %v2675_v10 = vpop.f32.mrf.mxu1 }
  0xf9   : > { %v2133_v11 = vpop.f32.mrf.mxu0 }
  0xfa   : > { %v2197_v12 = vpop.f32.mrf.mxu1 }
  0xfb   : > { %v2134_v13 = vpop.f32.mrf.mxu0 }
  0xfc   : > { %v2135_v14 = vadd.f32 %v2134_v13, %v2133_v11  ;;  %v2198_v15 = vpop.f32.mrf.mxu1 }
  0xfd   : > { %v2199_v16 = vadd.f32 %v2198_v15, %v2197_v12  ;;  %v2677_v17 = vpop.f32.mrf.mxu0 }
  0xfe   : > { %v2679_v18 = vpop.f32.mrf.mxu1 }
  0xff   : > { %v2681_v19 = vadd.f32 %v2199_v16, %v2135_v14  ;;  %v2683_v20 = vpop.f32.mrf.mxu0 }
 0x100   : > { %v2685_v21 = vpop.f32.mrf.mxu1 }
 0x101   : > { %v2139_v22 = vpop.f32.mrf.mxu0 }
 0x102   : > { %v2203_v23 = vpop.f32.mrf.mxu1 }
 0x103   : > { %v2140_v24 = vpop.f32.mrf.mxu0 }
 0x104   : > { %v2141_v25 = vadd.f32 %v2140_v24, %v2139_v22  ;;  %v2204_v26 = vpop.f32.mrf.mxu1 }
 0x105   : > { %v2205_v27 = vadd.f32 %v2204_v26, %v2203_v23  ;;  %v2687_v28 = vpop.f32.mrf.mxu0 }
 0x106   : > { %v2689_v29 = vpop.f32.mrf.mxu1 }
 0x107   : > { %v2691_v30 = vadd.f32 %v2205_v27, %v2141_v25  ;;  %v2693_v31 = vpop.f32.mrf.mxu0 }
 0x108   : > { %v2695_v32 = vpop.f32.mrf.mxu1 }
 0x109   : > { %v2145_v33 = vpop.f32.mrf.mxu0 }
 0x10a   : > { %v2209_v34 = vpop.f32.mrf.mxu1 }
 0x10b   : > { %v2146_v35 = vpop.f32.mrf.mxu0 }
 0x10c   : > { %v2147_v36 = vadd.f32 %v2146_v35, %v2145_v33  ;;  %v2210_v37 = vpop.f32.mrf.mxu1 }
 0x10d   : > { %v2211_v38 = vadd.f32 %v2210_v37, %v2209_v34  ;;  %v2697_v39 = vpop.f32.mrf.mxu0 }
 0x10e   : > { %v2699_v40 = vpop.f32.mrf.mxu1 }
 0x10f   : > { %v2701_v41 = vadd.f32 %v2211_v38, %v2147_v36  ;;  %v2703_v42 = vpop.f32.mrf.mxu0 }
 0x110   : > { %v2705_v43 = vpop.f32.mrf.mxu1 }
 0x111   : > { %v2151_v44 = vpop.f32.mrf.mxu0 }
 0x112   : > { %v2215_v45 = vpop.f32.mrf.mxu1 }
 0x113   : > { %v2152_v46 = vpop.f32.mrf.mxu0 }
 0x114   : > { %v2153_v47 = vadd.f32 %v2152_v46, %v2151_v44  ;;  %v2216_v48 = vpop.f32.mrf.mxu1 }
 0x115   : > { %v2217_v49 = vadd.f32 %v2216_v48, %v2215_v45  ;;  %v2707_v50 = vpop.f32.mrf.mxu0  ;;  %v2196_v48 = vadd.f32 %v2675_v10, %v2669_v7  ;;  %v2138_v7 = vadd.f32 %v2683_v20, %v2677_v17  ;;  %v2202_v10 = vadd.f32 %v2685_v21, %v2679_v18 }
 0x116   : > { %v2709_v51 = vpop.f32.mrf.mxu1 }
 0x117   : > { %v2711_v52 = vadd.f32 %v2217_v49, %v2153_v47  ;;  %v2713_v53 = vpop.f32.mrf.mxu0  ;;  %v2132_v47 = vadd.f32 %v2673_v9, %v2667_v6  ;;  %v1331_v18 = vadd.f32 %v2202_v10, %v2138_v7 }
 0x118   : > { %v2715_v54 = vpop.f32.mrf.mxu1 }
 0x119   : > { %v2157_v55 = vpop.f32.mrf.mxu0 }
 0x11a   : > { %v2221_v56 = vpop.f32.mrf.mxu1 }
 0x11b   : > { %v2158_v57 = vpop.f32.mrf.mxu0 }
 0x11c   : > { %v2159_v58 = vadd.f32 %v2158_v57, %v2157_v55  ;;  %v2222_v59 = vpop.f32.mrf.mxu1 }
 0x11d   : > { %v2223_v60 = vadd.f32 %v2222_v59, %v2221_v56  ;;  %v2717_v61 = vpop.f32.mrf.mxu0 }
 0x11e   : > { %v2719_v62 = vpop.f32.mrf.mxu1 }
 0x11f   : > { %v2721_v63 = vadd.f32 %v2223_v60, %v2159_v58  ;;  %v2723_v0 = vpop.f32.mrf.mxu0 }
 0x120   : > { %v2725_v1 = vpop.f32.mrf.mxu1 }
 0x121   : > { %v2163_v2 = vpop.f32.mrf.mxu0 }
 0x122   : > { %v2227_v3 = vpop.f32.mrf.mxu1 }
 0x123   : > { %v2164_v4 = vpop.f32.mrf.mxu0 }
 0x124   : > { %v2165_v5 = vadd.f32 %v2164_v4, %v2163_v2  ;;  %v2228_v11 = vpop.f32.mrf.mxu1  ;;  %v1323_v2 = vadd.f32 %v2196_v48, %v2132_v47 }
 0x125   : > { %v2229_v12 = vadd.f32 %v2228_v11, %v2227_v3  ;;  %v2727_v13 = vpop.f32.mrf.mxu0 }
 0x126   : > { %v2729_v14 = vpop.f32.mrf.mxu1 }
 0x127   : > { %v2731_v15 = vadd.f32 %v2229_v12, %v2165_v5  ;;  %v2733_v16 = vpop.f32.mrf.mxu0 }
 0x128   : > { %v2735_v22 = vpop.f32.mrf.mxu1 }
 0x129   : > { %v2169_v23 = vpop.f32.mrf.mxu0 }
 0x12a   : > { %v2233_v24 = vpop.f32.mrf.mxu1 }
 0x12b   : > { %v2170_v25 = vpop.f32.mrf.mxu0 }
 0x12c   : > { %v2171_v26 = vadd.f32 %v2170_v25, %v2169_v23  ;;  %v2234_v27 = vpop.f32.mrf.mxu1 }
 0x12d   : > { %v2235_v33 = vadd.f32 %v2234_v27, %v2233_v24  ;;  %v2737_v34 = vpop.f32.mrf.mxu0 }
 0x12e   : > { %v2739_v35 = vpop.f32.mrf.mxu1 }
 0x12f   : > { %v2741_v36 = vadd.f32 %v2235_v33, %v2171_v26  ;;  %v2743_v37 = vpop.f32.mrf.mxu0 }
 0x130   : > { %v2745_v38 = vpop.f32.mrf.mxu1 }
 0x131   : > { %v2255_v44 = vpop.f32.mrf.mxu0 }
 0x132   : > { %v2319_v45 = vpop.f32.mrf.mxu1 }
 0x133   : > { %v2256_v46 = vpop.f32.mrf.mxu0 }
 0x134   : > { %v2257_v49 = vadd.f32 %v2256_v46, %v2255_v44  ;;  %v2320_v55 = vpop.f32.mrf.mxu1 }
 0x135   : > { %v2258_v56 = vpop.f32.mrf.mxu0  ;;  %v2321_v59 = vadd.f32 %v2320_v55, %v2319_v45 }
 0x136   : > { %v1417_v57 = vadd.f32 %v2257_v49, %v2671_v8  ;;  %v2322_v58 = vpop.f32.mrf.mxu1 }
 0x137   : > { %v2259_v60 = vpop.f32.mrf.mxu0 }
 0x138   : > { %v2260_v3 = vadd.f32 %v2259_v60, %v2258_v56  ;;  %v2323_v4 = vpop.f32.mrf.mxu1  ;;  %v1514_v5 = vadd.f32 %v2321_v59, %v1417_v57 }
 0x139   : > { %v2261_v11 = vpop.f32.mrf.mxu0  ;;  %v2324_v23 = vadd.f32 %v2323_v4, %v2322_v58 }
 0x13a   : > { %v1420_v12 = vadd.f32 %v2260_v3, %v1323_v2  ;;  %v2325_v6 = vpop.f32.mrf.mxu1  ;;  %v1677_v26 = vmul.f32 %v1514_v5, %v1514_v5  ;;  %v2144_v3 = vadd.f32 %v2693_v31, %v2687_v28 }
 0x13b   : > { %v2262_v9 = vpop.f32.mrf.mxu0 }
 0x13c   : > { %v1517_v8 = vadd.f32 %v2324_v23, %v1420_v12  ;;  %v2263_v24 = vadd.f32 %v2262_v9, %v2261_v11  ;;  %v2326_v25 = vpop.f32.mrf.mxu1 }
 0x13d   : > { %v2327_v27 = vadd.f32 %v2326_v25, %v2325_v6  ;;  %v2264_v33 = vpop.f32.mrf.mxu0 }
 0x13e   : > { %v2067_v44 = vpack.c.bf16 %v1517_v8, %v1514_v5  ;;  %v1656_v45 = vadd.f32 %v1517_v8, %v1514_v5  ;;  %v1678_v46 = vmul.f32 %v1517_v8, %v1517_v8  ;;  %v1425_v17 = vadd.f32 %v2263_v24, %v2681_v19  ;;  %v2328_v20 = vpop.f32.mrf.mxu1 }
 0x13f   : > { %v2265_v47 = vpop.f32.mrf.mxu0  ;;  %v2208_v19 = vadd.f32 %v2695_v32, %v2689_v29 }
 0x140   : > { %2068 = vst [vmem:[%s2760_s29] sm:$0xff] %v2067_v44   ;;  %v1693_v21 = vadd.f32 %v1678_v46, %v1677_v26  ;;  %v1522_v48 = vadd.f32 %v2327_v27, %v1425_v17  ;;  %v2266_v49 = vadd.f32 %v2265_v47, %v2264_v33  ;;  %v2329_v55 = vpop.f32.mrf.mxu1  ;;  %v2150_v47 = vadd.f32 %v2703_v42, %v2697_v39 }
 0x141   : > { %v2267_v56 = vpop.f32.mrf.mxu0  ;;  %v2330_v60 = vadd.f32 %v2329_v55, %v2328_v20  ;;  %v1339_v27 = vadd.f32 %v2208_v19, %v2144_v3 }
 0x142   : > { %v1657_v57 = vadd.f32 %v1656_v45, %v1522_v48  ;;  %v1679_v58 = vmul.f32 %v1522_v48, %v1522_v48  ;;  %v1428_v59 = vadd.f32 %v2266_v49, %v1331_v18  ;;  %v2331_v2 = vpop.f32.mrf.mxu1 }
 0x143   : > { %v2268_v4 = vpop.f32.mrf.mxu0 }
 0x144   : > { %v1694_v5 = vadd.f32 %v1693_v21, %v1679_v58  ;;  %v1525_v11 = vadd.f32 %v2330_v60, %v1428_v59  ;;  %v2269_v12 = vadd.f32 %v2268_v4, %v2267_v56  ;;  %v2332_v23 = vpop.f32.mrf.mxu1 }
 0x145   : > { %v2333_v6 = vadd.f32 %v2332_v23, %v2331_v2  ;;  %v2270_v9 = vpop.f32.mrf.mxu0 }
 0x146   : > { %v2072_v7 = vpack.c.bf16 %v1525_v11, %v1522_v48  ;;  %v1658_v10 = vadd.f32 %v1657_v57, %v1525_v11  ;;  %v1680_v8 = vmul.f32 %v1525_v11, %v1525_v11  ;;  %v1433_v24 = vadd.f32 %v2269_v12, %v2691_v30  ;;  %v2334_v25 = vpop.f32.mrf.mxu1 }
 0x147   : > { %v2271_v26 = vpop.f32.mrf.mxu0  ;;  %v2214_v30 = vadd.f32 %v2705_v43, %v2699_v40 }
 0x148   : > { %2104 = vst [vmem:[%s2760_s29 + $0x8] sm:$0xff] %v2072_v7   ;;  %v1695_v28 = vadd.f32 %v1694_v5, %v1680_v8  ;;  %v1530_v31 = vadd.f32 %v2333_v6, %v1433_v24  ;;  %v2272_v33 = vadd.f32 %v2271_v26, %v2270_v9  ;;  %v2335_v44 = vpop.f32.mrf.mxu1  ;;  %v2156_v7 = vadd.f32 %v2713_v53, %v2707_v50 }
 0x149   : > { %v2273_v29 = vpop.f32.mrf.mxu0  ;;  %v2336_v17 = vadd.f32 %v2335_v44, %v2334_v25  ;;  %v1347_v19 = vadd.f32 %v2214_v30, %v2150_v47 }
 0x14a   : > { %v1659_v32 = vadd.f32 %v1658_v10, %v1530_v31  ;;  %v1681_v45 = vmul.f32 %v1530_v31, %v1530_v31  ;;  %v1436_v46 = vadd.f32 %v2272_v33, %v1339_v27  ;;  %v2337_v20 = vpop.f32.mrf.mxu1 }
 0x14b   : > { %v2274_v18 = vpop.f32.mrf.mxu0 }
 0x14c   : > { %v1696_v21 = vadd.f32 %v1695_v28, %v1681_v45  ;;  %v1533_v48 = vadd.f32 %v2336_v17, %v1436_v46  ;;  %v2275_v49 = vadd.f32 %v2274_v18, %v2273_v29  ;;  %v2338_v55 = vpop.f32.mrf.mxu1 }
 0x14d   : > { %v2339_v56 = vadd.f32 %v2338_v55, %v2337_v20  ;;  %v2276_v57 = vpop.f32.mrf.mxu0 }
 0x14e   : > { %v2077_v58 = vpack.c.bf16 %v1533_v48, %v1530_v31  ;;  %v1660_v59 = vadd.f32 %v1659_v32, %v1533_v48  ;;  %v1682_v60 = vmul.f32 %v1533_v48, %v1533_v48  ;;  %v1441_v2 = vadd.f32 %v2275_v49, %v2701_v41  ;;  %v2340_v3 = vpop.f32.mrf.mxu1 }
 0x14f   : > { %v2277_v4 = vpop.f32.mrf.mxu0  ;;  %v2220_v41 = vadd.f32 %v2715_v54, %v2709_v51  ;;  %v2162_v48 = vadd.f32 %v2723_v0, %v2717_v61 }
 0x150   : > { %2105 = vst [vmem:[%s2760_s29 + $0x10] sm:$0xff] %v2077_v58   ;;  %v1697_v39 = vadd.f32 %v1696_v21, %v1682_v60  ;;  %v1538_v42 = vadd.f32 %v2339_v56, %v1441_v2  ;;  %v2278_v5 = vadd.f32 %v2277_v4, %v2276_v57  ;;  %v2341_v11 = vpop.f32.mrf.mxu1 }
 0x151   : > { %v2279_v40 = vpop.f32.mrf.mxu0  ;;  %v2342_v6 = vadd.f32 %v2341_v11, %v2340_v3  ;;  %v1355_v46 = vadd.f32 %v2220_v41, %v2156_v7 }
 0x152   : > { %v1661_v43 = vadd.f32 %v1660_v59, %v1538_v42  ;;  %v1683_v12 = vmul.f32 %v1538_v42, %v1538_v42  ;;  %v1444_v23 = vadd.f32 %v2278_v5, %v1347_v19  ;;  %v2343_v9 = vpop.f32.mrf.mxu1 }
 0x153   : > { %v2280_v10 = vpop.f32.mrf.mxu0 }
 0x154   : > { %v1698_v8 = vadd.f32 %v1697_v39, %v1683_v12  ;;  %v1541_v24 = vadd.f32 %v2342_v6, %v1444_v23  ;;  %v2281_v25 = vadd.f32 %v2280_v10, %v2279_v40  ;;  %v2344_v26 = vpop.f32.mrf.mxu1 }
 0x155   : > { %v2345_v27 = vadd.f32 %v2344_v26, %v2343_v9  ;;  %v2282_v28 = vpop.f32.mrf.mxu0  ;;  %v2168_v9 = vadd.f32 %v2733_v16, %v2727_v13 }
 0x156   : > { %v2082_v31 = vpack.c.bf16 %v1541_v24, %v1538_v42  ;;  %v1662_v33 = vadd.f32 %v1661_v43, %v1541_v24  ;;  %v1684_v44 = vmul.f32 %v1541_v24, %v1541_v24  ;;  %v1449_v29 = vadd.f32 %v2281_v25, %v2711_v52  ;;  %v2346_v32 = vpop.f32.mrf.mxu1 }
 0x157   : > { %v2283_v45 = vpop.f32.mrf.mxu0  ;;  %v2226_v52 = vadd.f32 %v2725_v1, %v2719_v62 }
 0x158   : > { %2106 = vst [vmem:[%s2760_s29 + $0x18] sm:$0xff] %v2082_v31   ;;  %v1699_v50 = vadd.f32 %v1698_v8, %v1684_v44  ;;  %v1546_v53 = vadd.f32 %v2345_v27, %v1449_v29  ;;  %v2284_v17 = vadd.f32 %v2283_v45, %v2282_v28  ;;  %v2347_v20 = vpop.f32.mrf.mxu1 }
 0x159   : > { %v2285_v51 = vpop.f32.mrf.mxu0  ;;  %v2348_v30 = vadd.f32 %v2347_v20, %v2346_v32  ;;  %v1363_v5 = vadd.f32 %v2226_v52, %v2162_v48 }
 0x15a   : > { %v1663_v54 = vadd.f32 %v1662_v33, %v1546_v53  ;;  %v1685_v47 = vmul.f32 %v1546_v53, %v1546_v53  ;;  %v1452_v18 = vadd.f32 %v2284_v17, %v1355_v46  ;;  %v2349_v21 = vpop.f32.mrf.mxu1 }
 0x15b   : > { %v2286_v49 = vpop.f32.mrf.mxu0 }
 0x15c   : > { %v1700_v55 = vadd.f32 %v1699_v50, %v1685_v47  ;;  %v1549_v56 = vadd.f32 %v2348_v30, %v1452_v18  ;;  %v2287_v57 = vadd.f32 %v2286_v49, %v2285_v51  ;;  %v2350_v58 = vpop.f32.mrf.mxu1  ;;  %v2174_v51 = vadd.f32 %v2743_v37, %v2737_v34 }
 0x15d   : > { %v2351_v59 = vadd.f32 %v2350_v58, %v2349_v21  ;;  %v2288_v60 = vpop.f32.mrf.mxu0 }
 0x15e   : > { %v2087_v2 = vpack.c.bf16 %v1549_v56, %v1546_v53  ;;  %v1664_v3 = vadd.f32 %v1663_v54, %v1549_v56  ;;  %v1686_v4 = vmul.f32 %v1549_v56, %v1549_v56  ;;  %v1457_v19 = vadd.f32 %v2287_v57, %v2721_v63  ;;  %v2352_v39 = vpop.f32.mrf.mxu1 }
 0x15f   : > { %v2289_v42 = vpop.f32.mrf.mxu0  ;;  %v2232_v63 = vadd.f32 %v2735_v22, %v2729_v14 }
 0x160   : > { %2107 = vst [vmem:[%s2760_s29 + $0x20] sm:$0xff] %v2087_v2   ;;  %v1701_v61 = vadd.f32 %v1700_v55, %v1686_v4  ;;  %v1554_v0 = vadd.f32 %v2351_v59, %v1457_v19  ;;  %v2290_v11 = vadd.f32 %v2289_v42, %v2288_v60  ;;  %v2353_v40 = vpop.f32.mrf.mxu1 }
 0x161   : > { %v2291_v62 = vpop.f32.mrf.mxu0  ;;  %v2354_v23 = vadd.f32 %v2353_v40, %v2352_v39  ;;  %v1371_v32 = vadd.f32 %v2232_v63, %v2168_v9 }
 0x162   : > { %v1665_v1 = vadd.f32 %v1664_v3, %v1554_v0  ;;  %v1687_v43 = vmul.f32 %v1554_v0, %v1554_v0  ;;  %v1460_v12 = vadd.f32 %v2290_v11, %v1363_v5  ;;  %v2355_v6 = vpop.f32.mrf.mxu1 }
 0x163   : > { %v2292_v7 = vpop.f32.mrf.mxu0 }
 0x164   : > { %v1702_v10 = vadd.f32 %v1701_v61, %v1687_v43  ;;  %v1557_v41 = vadd.f32 %v2354_v23, %v1460_v12  ;;  %v2293_v8 = vadd.f32 %v2292_v7, %v2291_v62  ;;  %v2356_v24 = vpop.f32.mrf.mxu1 }
 0x165   : > { %v2357_v25 = vadd.f32 %v2356_v24, %v2355_v6  ;;  %v2294_v26 = vpop.f32.mrf.mxu0 }
 0x166   : > { %v2092_v27 = vpack.c.bf16 %v1557_v41, %v1554_v0  ;;  %v1666_v28 = vadd.f32 %v1665_v1, %v1557_v41  ;;  %v1688_v31 = vmul.f32 %v1557_v41, %v1557_v41  ;;  %v1465_v33 = vadd.f32 %v2293_v8, %v2731_v15  ;;  %v2358_v44 = vpop.f32.mrf.mxu1 }
 0x167   : > { %v2295_v29 = vpop.f32.mrf.mxu0  ;;  %v2238_v15 = vadd.f32 %v2745_v38, %v2739_v35 }
 0x168   : > { %2108 = vst [vmem:[%s2760_s29 + $0x28] sm:$0xff] %v2092_v27   ;;  %v1703_v13 = vadd.f32 %v1702_v10, %v1688_v31  ;;  %v1562_v16 = vadd.f32 %v2357_v25, %v1465_v33  ;;  %v2296_v45 = vadd.f32 %v2295_v29, %v2294_v26  ;;  %v2359_v46 = vpop.f32.mrf.mxu1 }
 0x169   : > { %v2297_v14 = vpop.f32.mrf.mxu0  ;;  %v2360_v17 = vadd.f32 %v2359_v46, %v2358_v44  ;;  %v1379_v34 = vadd.f32 %v2238_v15, %v2174_v51 }
 0x16a   : > { %v1667_v22 = vadd.f32 %v1666_v28, %v1562_v16  ;;  %v1689_v50 = vmul.f32 %v1562_v16, %v1562_v16  ;;  %v1468_v53 = vadd.f32 %v2296_v45, %v1371_v32  ;;  %v2361_v20 = vpop.f32.mrf.mxu1 }
 0x16b   : > { %v2298_v54 = vpop.f32.mrf.mxu0 }
 0x16c   : > { %v1704_v47 = vadd.f32 %v1703_v13, %v1689_v50  ;;  %v1565_v18 = vadd.f32 %v2360_v17, %v1468_v53  ;;  %v2299_v30 = vadd.f32 %v2298_v54, %v2297_v14  ;;  %v2362_v21 = vpop.f32.mrf.mxu1 }
 0x16d   : > { %v2363_v48 = vadd.f32 %v2362_v21, %v2361_v20  ;;  %v2300_v49 = vpop.f32.mrf.mxu0 }
 0x16e   : > { %v2097_v52 = vpack.c.bf16 %v1565_v18, %v1562_v16  ;;  %v1668_v55 = vadd.f32 %v1667_v22, %v1565_v18  ;;  %v1690_v56 = vmul.f32 %v1565_v18, %v1565_v18  ;;  %v1473_v57 = vadd.f32 %v2299_v30, %v2741_v36  ;;  %v2364_v58 = vpop.f32.mrf.mxu1 }
 0x16f   : > { %v2301_v59 = vpop.f32.mrf.mxu0 }
 0x170   : > { %2109 = vst [vmem:[%s2760_s29 + $0x30] sm:$0xff] %v2097_v52   ;;  %v1705_v37 = vadd.f32 %v1704_v47, %v1690_v56  ;;  %v1570_v60 = vadd.f32 %v2363_v48, %v1473_v57  ;;  %v2302_v2 = vadd.f32 %v2301_v59, %v2300_v49  ;;  %v2365_v35 = vpop.f32.mrf.mxu1 }
 0x171   : > { %v2366_v19 = vadd.f32 %v2365_v35, %v2364_v58 }
 0x172   : > { %v1669_v38 = vadd.f32 %v1668_v55, %v1570_v60  ;;  %v1691_v3 = vmul.f32 %v1570_v60, %v1570_v60  ;;  %v1476_v4 = vadd.f32 %v2302_v2, %v1379_v34 }
 0x174   : > { %v1706_v39 = vadd.f32 %v1705_v37, %v1691_v3  ;;  %v1573_v42 = vadd.f32 %v2366_v19, %v1476_v4 }
 0x176   : > { %v2102_v5 = vpack.c.bf16 %v1573_v42, %v1570_v60  ;;  %v1670_v61 = vadd.f32 %v1669_v38, %v1573_v42  ;;  %v1692_v0 = vmul.f32 %v1573_v42, %v1573_v42 }
 0x178   : > { %2110 = vst [vmem:[%s2760_s29 + $0x38] sm:$0xff] %v2102_v5   ;;  %v1671_v36 = vrot.slane %v1670_v61, 4  ;;  %v1707_v11 = vadd.f32 %v1706_v39, %v1692_v0 }
 0x17a   : > { %v1672_v40 = vadd.f32 %v1671_v36, %v1670_v61  ;;  %v1708_v62 = vrot.slane %v1707_v11, 4 }
 0x17c   : > { %v1673_v1 = vrot.slane %v1672_v40, 2  ;;  %v1709_v43 = vadd.f32 %v1708_v62, %v1707_v11 }
 0x17e   : > { %v1674_v12 = vadd.f32 %v1673_v1, %v1672_v40  ;;  %v1710_v23 = vrot.slane %v1709_v43, 2 }
 0x180   : > { %v1675_v6 = vrot.slane %v1674_v12, 1  ;;  %v1711_v9 = vadd.f32 %v1710_v23, %v1709_v43 }
 0x182   : > { %v1676_v7 = vadd.f32 %v1675_v6, %v1674_v12  ;;  %v1712_v63 = vrot.slane %v1711_v9, 1 }
 0x184   : > { %v1713_v10 = vadd.f32 %v1712_v63, %v1711_v9  ;;  %1714 = vst [vmem:[%s283_s7] sm:$0xff] %v1676_v7 }
 0x186   : > { %1715 = vst [vmem:[%s289_s10] sm:$0xff] %v1713_v10 }
 0x187 PF: > { %s15_s17 = sadd.s32 1, %s2477_s17   ;;  %s2822_s15 = smov %s2473_s16 }
 0x188   : > { %p12_p5 = scmp.ge.s32.totalorder %s15_s17, 6   ;;  %s2823_s16 = smov %s2825_s18 }
 0x18a   :  { %14 = sbr.rel (!%p12_p5) target bundleno = 2 (0x2), region = 85 }

// kernel: generator_forward.18
= control target key start
LH: loop header
LB: loop body
LE: loop exit
PB: predicated region body
PF: predicated region fallthrough
CT: control target
= control target key end

     0   :  { %s1616_s15 = smov 0   ;;  %s1618_s16 = smov 0   ;;  %s1931_s0 = inlined_call_operand.vmem [shape: bf16[4,512,128], index: 0, kind: input, shape index: {}]   ;;  %s1932_s1 = inlined_call_operand.vmem [shape: f32[1,128], index: 1, kind: input, shape index: {}]   ;;  %s1933_s2 = inlined_call_operand.vmem [shape: f32[1,128], index: 2, kind: input, shape index: {}]   ;;  %s1934_s3 = inlined_call_operand.vmem [shape: f32[1,128], index: 3, kind: input, shape index: {}]   ;;  %s1935_s4 = inlined_call_operand.vmem [shape: bf16[4,512,128], index: 4, kind: output, shape index: {}]  }
   0x1   :  { %s1620_s17 = smov 0  }
   0x2 LB: > { %s26_s18 = sadd.s32 1, %s1585_s16  ;;  %p1053_p0 = scmp.ge.s32.totalorder %s1589_s17, 1  ;;  %s1589_s17 = sphi %s1620_s17, %s14_s17   ;;  %s1585_s16 = sphi %s1618_s16, %s1937_s16   ;;  %s1581_s15 = sphi %s1616_s15, %s1936_s15  }
   0x3   : > { %p28_p1 = scmp.ge.s32.totalorder %s26_s18, 4  ;;  %p183_p2 = scmp.lt.s32.totalorder %s1589_s17, 5 }
   0x5   : > { %s1939_s18 = smov (%p28_p1, %s26_s18), 0  ;;  %p184_p3 = pnand %p1053_p0, %p183_p2 }
   0x6   : > { %p218_p4 = scmp.lt.s32.totalorder (!%p184_p3), %s1581_s15, 3 }
   0x7   : > { %187 = sbr.rel (%p184_p3) target bundleno = 111 (0x6f), region = 36 }
   0xc   : > { %s1941_s15 = smov (!%p218_p4, %s1581_s15), 3  ;;  %v1647_v0 = vld [vmem:[%s1932_s1] ss:$0 sm:$0xff] }
   0xd   : > { %s1127_s19 = sshll.u32 %s1941_s15, 8  ;;  %v1656_v9 = vld [vmem:[%s1933_s2] ss:$0 sm:$0xff] }
   0xe   : > { %s1642_s22 = scalar_lea.vmem %s1931_s0, %s1127_s19  ;;  %v1665_v18 = vld [vmem:[%s1934_s3] ss:$0 sm:$0xff]  ;;  %s1694_s5 = scalar_lea.vmem %s1935_s4, %s1127_s19 }
   0xf   : > { %v1194_v1 = vld [vmem:[%s1642_s22] sm:$0xff]   ;;  %v1481_v2 = vld [vmem:[%s1642_s22 + $0x8] sm:$0xff]   ;;  %v1482_v3 = vld [vmem:[%s1642_s22 + $0x10] sm:$0xff]  }
  0x10   : > { %v1195_v4 = vunpack.c.l.bf16 %v1194_v1  ;;  %v1196_v5 = vunpack.c.h.bf16 %v1194_v1  ;;  %v1199_v6 = vunpack.c.l.bf16 %v1481_v2  ;;  %v1200_v7 = vunpack.c.h.bf16 %v1481_v2  ;;  %v1483_v8 = vld [vmem:[%s1642_s22 + $0x18] sm:$0xff]   ;;  %v1484_v39 = vld [vmem:[%s1642_s22 + $0x20] sm:$0xff]   ;;  %v1485_v44 = vld [vmem:[%s1642_s22 + $0x28] sm:$0xff]  }
  0x11   : > { %v1203_v10 = vunpack.c.l.bf16 %v1482_v3  ;;  %v1204_v11 = vunpack.c.h.bf16 %v1482_v3  ;;  %v1207_v12 = vunpack.c.l.bf16 %v1483_v8  ;;  %v1208_v13 = vunpack.c.h.bf16 %v1483_v8  ;;  %v1486_v49 = vld [vmem:[%s1642_s22 + $0x30] sm:$0xff]   ;;  %v1487_v54 = vld [vmem:[%s1642_s22 + $0x38] sm:$0xff]  }
  0x12   : > { %v372_v14 = vsub.f32 %v1195_v4, %v1647_v0  ;;  %v373_v15 = vsub.f32 %v1196_v5, %v1647_v0  ;;  %v374_v16 = vsub.f32 %v1199_v6, %v1647_v0  ;;  %v375_v17 = vsub.f32 %v1200_v7, %v1647_v0 }
  0x13   : > { %v376_v19 = vsub.f32 %v1203_v10, %v1647_v0  ;;  %v377_v20 = vsub.f32 %v1204_v11, %v1647_v0  ;;  %v378_v21 = vsub.f32 %v1207_v12, %v1647_v0  ;;  %v379_v22 = vsub.f32 %v1208_v13, %v1647_v0 }
  0x14   : > { %v443_v23 = vmul.f32 %v1656_v9, %v372_v14  ;;  %v444_v24 = vmul.f32 %v1656_v9, %v373_v15  ;;  %v445_v25 = vmul.f32 %v1656_v9, %v374_v16  ;;  %v446_v26 = vmul.f32 %v1656_v9, %v375_v17 }
  0x15   : > { %v447_v27 = vmul.f32 %v1656_v9, %v376_v19  ;;  %v448_v28 = vmul.f32 %v1656_v9, %v377_v20  ;;  %v449_v29 = vmul.f32 %v1656_v9, %v378_v21  ;;  %v450_v30 = vmul.f32 %v1656_v9, %v379_v22  ;;  %v1488_v22 = vld [vmem:[%s1642_s22 + $0x40] sm:$0xff]  }
  0x16   : > { %v514_v31 = vadd.f32 %v1665_v18, %v443_v23  ;;  %v515_v32 = vadd.f32 %v1665_v18, %v444_v24  ;;  %v516_v33 = vadd.f32 %v1665_v18, %v445_v25  ;;  %v517_v34 = vadd.f32 %v1665_v18, %v446_v26 }
  0x17   : > { %v518_v35 = vadd.f32 %v1665_v18, %v447_v27  ;;  %v519_v36 = vadd.f32 %v1665_v18, %v448_v28  ;;  %v520_v37 = vadd.f32 %v1665_v18, %v449_v29  ;;  %v521_v38 = vadd.f32 %v1665_v18, %v450_v30 }
  0x18   : > { %v578_v40 = vmax.f32 %v514_v31, 0.0  ;;  %v579_v41 = vmax.f32 %v515_v32, 0.0  ;;  %v580_v42 = vmax.f32 %v516_v33, 0.0  ;;  %v581_v43 = vmax.f32 %v517_v34, 0.0  ;;  %v1489_v31 = vld [vmem:[%s1642_s22 + $0x48] sm:$0xff]  }
  0x19   : > { %v582_v45 = vmax.f32 %v518_v35, 0.0  ;;  %v583_v46 = vmax.f32 %v519_v36, 0.0  ;;  %v584_v47 = vmax.f32 %v520_v37, 0.0  ;;  %v585_v48 = vmax.f32 %v521_v38, 0.0  ;;  %v1490_v36 = vld [vmem:[%s1642_s22 + $0x50] sm:$0xff]  }
  0x1a   : > { %v1324_v50 = vpack.c.bf16 %v579_v41, %v578_v40  ;;  %v1329_v51 = vpack.c.bf16 %v581_v43, %v580_v42  ;;  %v1211_v52 = vunpack.c.l.bf16 %v1484_v39  ;;  %v1212_v53 = vunpack.c.h.bf16 %v1484_v39  ;;  %v1491_v41 = vld [vmem:[%s1642_s22 + $0x58] sm:$0xff]  }
  0x1b   : > { %v1334_v55 = vpack.c.bf16 %v583_v46, %v582_v45  ;;  %v1339_v56 = vpack.c.bf16 %v585_v48, %v584_v47  ;;  %v1215_v57 = vunpack.c.l.bf16 %v1485_v44  ;;  %v1216_v58 = vunpack.c.h.bf16 %v1485_v44 }
  0x1c   : > { %1325 = vst [vmem:[%s1694_s5] sm:$0xff] %v1324_v50   ;;  %1512 = vst [vmem:[%s1694_s5 + $0x8] sm:$0xff] %v1329_v51   ;;  %v380_v59 = vsub.f32 %v1211_v52, %v1647_v0  ;;  %v381_v60 = vsub.f32 %v1212_v53, %v1647_v0  ;;  %v1219_v61 = vunpack.c.l.bf16 %v1486_v49  ;;  %v1220_v62 = vunpack.c.h.bf16 %v1486_v49 }
  0x1d   : > { %1513 = vst [vmem:[%s1694_s5 + $0x10] sm:$0xff] %v1334_v55   ;;  %1514 = vst [vmem:[%s1694_s5 + $0x18] sm:$0xff] %v1339_v56   ;;  %v382_v63 = vsub.f32 %v1215_v57, %v1647_v0  ;;  %v383_v1 = vsub.f32 %v1216_v58, %v1647_v0  ;;  %v1223_v2 = vunpack.c.l.bf16 %v1487_v54  ;;  %v1224_v3 = vunpack.c.h.bf16 %v1487_v54 }
  0x1e   : > { %v451_v4 = vmul.f32 %v1656_v9, %v380_v59  ;;  %v452_v5 = vmul.f32 %v1656_v9, %v381_v60  ;;  %v384_v6 = vsub.f32 %v1219_v61, %v1647_v0  ;;  %v385_v7 = vsub.f32 %v1220_v62, %v1647_v0 }
  0x1f   : > { %v453_v8 = vmul.f32 %v1656_v9, %v382_v63  ;;  %v454_v10 = vmul.f32 %v1656_v9, %v383_v1  ;;  %v386_v11 = vsub.f32 %v1223_v2, %v1647_v0  ;;  %v387_v12 = vsub.f32 %v1224_v3, %v1647_v0  ;;  %v1492_v3 = vld [vmem:[%s1642_s22 + $0x60] sm:$0xff]  }
  0x20   : > { %v522_v13 = vadd.f32 %v1665_v18, %v451_v4  ;;  %v523_v14 = vadd.f32 %v1665_v18, %v452_v5  ;;  %v455_v15 = vmul.f32 %v1656_v9, %v384_v6  ;;  %v456_v16 = vmul.f32 %v1656_v9, %v385_v7 }
  0x21   : > { %v524_v17 = vadd.f32 %v1665_v18, %v453_v8  ;;  %v525_v19 = vadd.f32 %v1665_v18, %v454_v10  ;;  %v457_v20 = vmul.f32 %v1656_v9, %v386_v11  ;;  %v458_v21 = vmul.f32 %v1656_v9, %v387_v12 }
  0x22   : > { %v586_v23 = vmax.f32 %v522_v13, 0.0  ;;  %v587_v24 = vmax.f32 %v523_v14, 0.0  ;;  %v526_v25 = vadd.f32 %v1665_v18, %v455_v15  ;;  %v527_v26 = vadd.f32 %v1665_v18, %v456_v16 }
  0x23   : > { %v588_v27 = vmax.f32 %v524_v17, 0.0  ;;  %v589_v28 = vmax.f32 %v525_v19, 0.0  ;;  %v528_v29 = vadd.f32 %v1665_v18, %v457_v20  ;;  %v529_v30 = vadd.f32 %v1665_v18, %v458_v21  ;;  %v1493_v17 = vld [vmem:[%s1642_s22 + $0x68] sm:$0xff]  }
  0x24   : > { %v1344_v32 = vpack.c.bf16 %v587_v24, %v586_v23  ;;  %v590_v33 = vmax.f32 %v526_v25, 0.0  ;;  %v591_v34 = vmax.f32 %v527_v26, 0.0  ;;  %v1227_v35 = vunpack.c.l.bf16 %v1488_v22  ;;  %v1494_v23 = vld [vmem:[%s1642_s22 + $0x70] sm:$0xff]  }
  0x25   : > { %v1349_v37 = vpack.c.bf16 %v589_v28, %v588_v27  ;;  %v592_v38 = vmax.f32 %v528_v29, 0.0  ;;  %v593_v39 = vmax.f32 %v529_v30, 0.0  ;;  %v1228_v40 = vunpack.c.h.bf16 %v1488_v22  ;;  %v1495_v28 = vld [vmem:[%s1642_s22 + $0x78] sm:$0xff]  }
  0x26   : > { %1515 = vst [vmem:[%s1694_s5 + $0x20] sm:$0xff] %v1344_v32   ;;  %v1354_v42 = vpack.c.bf16 %v591_v34, %v590_v33  ;;  %v388_v43 = vsub.f32 %v1227_v35, %v1647_v0  ;;  %v1231_v44 = vunpack.c.l.bf16 %v1489_v31  ;;  %v1232_v45 = vunpack.c.h.bf16 %v1489_v31 }
  0x27   : > { %1516 = vst [vmem:[%s1694_s5 + $0x28] sm:$0xff] %v1349_v37   ;;  %v1359_v46 = vpack.c.bf16 %v593_v39, %v592_v38  ;;  %v389_v47 = vsub.f32 %v1228_v40, %v1647_v0  ;;  %v1235_v48 = vunpack.c.l.bf16 %v1490_v36  ;;  %v1236_v49 = vunpack.c.h.bf16 %v1490_v36 }
  0x28   : > { %1517 = vst [vmem:[%s1694_s5 + $0x30] sm:$0xff] %v1354_v42   ;;  %v459_v50 = vmul.f32 %v1656_v9, %v388_v43  ;;  %v390_v51 = vsub.f32 %v1231_v44, %v1647_v0  ;;  %v391_v52 = vsub.f32 %v1232_v45, %v1647_v0  ;;  %v1239_v53 = vunpack.c.l.bf16 %v1491_v41 }
  0x29   : > { %1518 = vst [vmem:[%s1694_s5 + $0x38] sm:$0xff] %v1359_v46   ;;  %v460_v54 = vmul.f32 %v1656_v9, %v389_v47  ;;  %v392_v55 = vsub.f32 %v1235_v48, %v1647_v0  ;;  %v393_v56 = vsub.f32 %v1236_v49, %v1647_v0  ;;  %v1240_v57 = vunpack.c.h.bf16 %v1491_v41  ;;  %v1496_v49 = vld [vmem:[%s1642_s22 + $0x80] sm:$0xff]  }
  0x2a   : > { %v530_v58 = vadd.f32 %v1665_v18, %v459_v50  ;;  %v461_v59 = vmul.f32 %v1656_v9, %v390_v51  ;;  %v462_v60 = vmul.f32 %v1656_v9, %v391_v52  ;;  %v394_v61 = vsub.f32 %v1239_v53, %v1647_v0 }
  0x2b   : > { %v531_v62 = vadd.f32 %v1665_v18, %v460_v54  ;;  %v463_v63 = vmul.f32 %v1656_v9, %v392_v55  ;;  %v464_v1 = vmul.f32 %v1656_v9, %v393_v56  ;;  %v395_v2 = vsub.f32 %v1240_v57, %v1647_v0 }
  0x2c   : > { %v594_v4 = vmax.f32 %v530_v58, 0.0  ;;  %v532_v5 = vadd.f32 %v1665_v18, %v461_v59  ;;  %v533_v6 = vadd.f32 %v1665_v18, %v462_v60  ;;  %v465_v7 = vmul.f32 %v1656_v9, %v394_v61 }
  0x2d   : > { %v595_v8 = vmax.f32 %v531_v62, 0.0  ;;  %v534_v10 = vadd.f32 %v1665_v18, %v463_v63  ;;  %v535_v11 = vadd.f32 %v1665_v18, %v464_v1  ;;  %v466_v12 = vmul.f32 %v1656_v9, %v395_v2 }
  0x2e   : > { %v596_v13 = vmax.f32 %v532_v5, 0.0  ;;  %v597_v14 = vmax.f32 %v533_v6, 0.0  ;;  %v536_v15 = vadd.f32 %v1665_v18, %v465_v7  ;;  %v1243_v16 = vunpack.c.l.bf16 %v1492_v3 }
  0x2f   : > { %v1364_v19 = vpack.c.bf16 %v595_v8, %v594_v4  ;;  %v598_v20 = vmax.f32 %v534_v10, 0.0  ;;  %v599_v21 = vmax.f32 %v535_v11, 0.0  ;;  %v537_v22 = vadd.f32 %v1665_v18, %v466_v12  ;;  %v1498_v8 = vld [vmem:[%s1642_s22 + $0x90] sm:$0xff]  }
  0x30   : > { %v1369_v24 = vpack.c.bf16 %v597_v14, %v596_v13  ;;  %v600_v25 = vmax.f32 %v536_v15, 0.0  ;;  %v1244_v26 = vunpack.c.h.bf16 %v1492_v3  ;;  %v396_v27 = vsub.f32 %v1243_v16, %v1647_v0  ;;  %v1497_v3 = vld [vmem:[%s1642_s22 + $0x88] sm:$0xff]   ;;  %v1499_v14 = vld [vmem:[%s1642_s22 + $0x98] sm:$0xff]  }
  0x31   : > { %1519 = vst [vmem:[%s1694_s5 + $0x40] sm:$0xff] %v1364_v19   ;;  %v1374_v29 = vpack.c.bf16 %v599_v21, %v598_v20  ;;  %v601_v30 = vmax.f32 %v537_v22, 0.0  ;;  %v1247_v31 = vunpack.c.l.bf16 %v1493_v17  ;;  %v1248_v32 = vunpack.c.h.bf16 %v1493_v17 }
  0x32   : > { %1520 = vst [vmem:[%s1694_s5 + $0x48] sm:$0xff] %v1369_v24   ;;  %v397_v33 = vsub.f32 %v1244_v26, %v1647_v0  ;;  %v467_v34 = vmul.f32 %v1656_v9, %v396_v27  ;;  %v1251_v35 = vunpack.c.l.bf16 %v1494_v23  ;;  %v1252_v36 = vunpack.c.h.bf16 %v1494_v23 }
  0x33   : > { %1521 = vst [vmem:[%s1694_s5 + $0x50] sm:$0xff] %v1374_v29   ;;  %v1379_v37 = vpack.c.bf16 %v601_v30, %v600_v25  ;;  %v398_v38 = vsub.f32 %v1247_v31, %v1647_v0  ;;  %v399_v39 = vsub.f32 %v1248_v32, %v1647_v0  ;;  %v1255_v40 = vunpack.c.l.bf16 %v1495_v28 }
  0x34   : > { %v468_v41 = vmul.f32 %v1656_v9, %v397_v33  ;;  %v538_v42 = vadd.f32 %v1665_v18, %v467_v34  ;;  %v400_v43 = vsub.f32 %v1251_v35, %v1647_v0  ;;  %v401_v44 = vsub.f32 %v1252_v36, %v1647_v0  ;;  %v1500_v36 = vld [vmem:[%s1642_s22 + $0xa0] sm:$0xff]  }
  0x35   : > { %1522 = vst [vmem:[%s1694_s5 + $0x58] sm:$0xff] %v1379_v37   ;;  %v469_v45 = vmul.f32 %v1656_v9, %v398_v38  ;;  %v470_v46 = vmul.f32 %v1656_v9, %v399_v39  ;;  %v1256_v47 = vunpack.c.h.bf16 %v1495_v28  ;;  %v402_v48 = vsub.f32 %v1255_v40, %v1647_v0 }
  0x36   : > { %v539_v50 = vadd.f32 %v1665_v18, %v468_v41  ;;  %v602_v51 = vmax.f32 %v538_v42, 0.0  ;;  %v471_v52 = vmul.f32 %v1656_v9, %v400_v43  ;;  %v472_v53 = vmul.f32 %v1656_v9, %v401_v44 }
  0x37   : > { %v540_v54 = vadd.f32 %v1665_v18, %v469_v45  ;;  %v541_v55 = vadd.f32 %v1665_v18, %v470_v46  ;;  %v403_v56 = vsub.f32 %v1256_v47, %v1647_v0  ;;  %v473_v57 = vmul.f32 %v1656_v9, %v402_v48 }
  0x38   : > { %v603_v58 = vmax.f32 %v539_v50, 0.0  ;;  %v542_v59 = vadd.f32 %v1665_v18, %v471_v52  ;;  %v543_v60 = vadd.f32 %v1665_v18, %v472_v53  ;;  %v1259_v61 = vunpack.c.l.bf16 %v1496_v49 }
  0x39   : > { %v604_v62 = vmax.f32 %v540_v54, 0.0  ;;  %v605_v63 = vmax.f32 %v541_v55, 0.0  ;;  %v474_v1 = vmul.f32 %v1656_v9, %v403_v56  ;;  %v544_v2 = vadd.f32 %v1665_v18, %v473_v57 }
  0x3a   : > { %v1384_v4 = vpack.c.bf16 %v603_v58, %v602_v51  ;;  %v606_v5 = vmax.f32 %v542_v59, 0.0  ;;  %v607_v6 = vmax.f32 %v543_v60, 0.0  ;;  %v1260_v7 = vunpack.c.h.bf16 %v1496_v49  ;;  %v1501_v49 = vld [vmem:[%s1642_s22 + $0xa8] sm:$0xff]   ;;  %v1502_v58 = vld [vmem:[%s1642_s22 + $0xb0] sm:$0xff]  }
  0x3b   : > { %v1389_v10 = vpack.c.bf16 %v605_v63, %v604_v62  ;;  %v545_v11 = vadd.f32 %v1665_v18, %v474_v1  ;;  %v608_v12 = vmax.f32 %v544_v2, 0.0  ;;  %v404_v13 = vsub.f32 %v1259_v61, %v1647_v0  ;;  %v1503_v63 = vld [vmem:[%s1642_s22 + $0xb8] sm:$0xff]  }
  0x3c   : > { %1523 = vst [vmem:[%s1694_s5 + $0x60] sm:$0xff] %v1384_v4   ;;  %v1394_v15 = vpack.c.bf16 %v607_v6, %v606_v5  ;;  %v405_v16 = vsub.f32 %v1260_v7, %v1647_v0  ;;  %v1263_v17 = vunpack.c.l.bf16 %v1497_v3  ;;  %v1264_v19 = vunpack.c.h.bf16 %v1497_v3 }
  0x3d   : > { %1524 = vst [vmem:[%s1694_s5 + $0x68] sm:$0xff] %v1389_v10   ;;  %v609_v20 = vmax.f32 %v545_v11, 0.0  ;;  %v475_v21 = vmul.f32 %v1656_v9, %v404_v13  ;;  %v1267_v22 = vunpack.c.l.bf16 %v1498_v8  ;;  %v1268_v23 = vunpack.c.h.bf16 %v1498_v8 }
  0x3e   : > { %1525 = vst [vmem:[%s1694_s5 + $0x70] sm:$0xff] %v1394_v15   ;;  %v476_v24 = vmul.f32 %v1656_v9, %v405_v16  ;;  %v406_v25 = vsub.f32 %v1263_v17, %v1647_v0  ;;  %v407_v26 = vsub.f32 %v1264_v19, %v1647_v0  ;;  %v1271_v27 = vunpack.c.l.bf16 %v1499_v14 }
  0x3f   : > { %v1399_v28 = vpack.c.bf16 %v609_v20, %v608_v12  ;;  %v546_v29 = vadd.f32 %v1665_v18, %v475_v21  ;;  %v408_v30 = vsub.f32 %v1267_v22, %v1647_v0  ;;  %v409_v31 = vsub.f32 %v1268_v23, %v1647_v0  ;;  %v1504_v23 = vld [vmem:[%s1642_s22 + $0xc0] sm:$0xff]  }
  0x40   : > { %v547_v32 = vadd.f32 %v1665_v18, %v476_v24  ;;  %v477_v33 = vmul.f32 %v1656_v9, %v406_v25  ;;  %v478_v34 = vmul.f32 %v1656_v9, %v407_v26  ;;  %v1272_v35 = vunpack.c.h.bf16 %v1499_v14 }
  0x41   : > { %1526 = vst [vmem:[%s1694_s5 + $0x78] sm:$0xff] %v1399_v28   ;;  %v610_v37 = vmax.f32 %v546_v29, 0.0  ;;  %v479_v38 = vmul.f32 %v1656_v9, %v408_v30  ;;  %v480_v39 = vmul.f32 %v1656_v9, %v409_v31  ;;  %v410_v40 = vsub.f32 %v1271_v27, %v1647_v0 }
  0x42   : > { %v611_v41 = vmax.f32 %v547_v32, 0.0  ;;  %v548_v42 = vadd.f32 %v1665_v18, %v477_v33  ;;  %v549_v43 = vadd.f32 %v1665_v18, %v478_v34  ;;  %v411_v44 = vsub.f32 %v1272_v35, %v1647_v0 }
  0x43   : > { %v550_v45 = vadd.f32 %v1665_v18, %v479_v38  ;;  %v551_v46 = vadd.f32 %v1665_v18, %v480_v39  ;;  %v481_v47 = vmul.f32 %v1656_v9, %v410_v40  ;;  %v1275_v48 = vunpack.c.l.bf16 %v1500_v36 }
  0x44   : > { %v1404_v50 = vpack.c.bf16 %v611_v41, %v610_v37  ;;  %v612_v51 = vmax.f32 %v548_v42, 0.0  ;;  %v613_v52 = vmax.f32 %v549_v43, 0.0  ;;  %v482_v53 = vmul.f32 %v1656_v9, %v411_v44 }
  0x45   : > { %v614_v54 = vmax.f32 %v550_v45, 0.0  ;;  %v615_v55 = vmax.f32 %v551_v46, 0.0  ;;  %v552_v56 = vadd.f32 %v1665_v18, %v481_v47  ;;  %v1276_v57 = vunpack.c.h.bf16 %v1500_v36  ;;  %v1505_v36 = vld [vmem:[%s1642_s22 + $0xc8] sm:$0xff]   ;;  %v1506_v45 = vld [vmem:[%s1642_s22 + $0xd0] sm:$0xff]  }
  0x46   : > { %1527 = vst [vmem:[%s1694_s5 + $0x80] sm:$0xff] %v1404_v50   ;;  %v1409_v59 = vpack.c.bf16 %v613_v52, %v612_v51  ;;  %v553_v60 = vadd.f32 %v1665_v18, %v482_v53  ;;  %v412_v61 = vsub.f32 %v1275_v48, %v1647_v0  ;;  %v1279_v62 = vunpack.c.l.bf16 %v1501_v49 }
  0x47   : > { %v1414_v1 = vpack.c.bf16 %v615_v55, %v614_v54  ;;  %v616_v2 = vmax.f32 %v552_v56, 0.0  ;;  %v413_v3 = vsub.f32 %v1276_v57, %v1647_v0  ;;  %v1280_v4 = vunpack.c.h.bf16 %v1501_v49  ;;  %v1507_v54 = vld [vmem:[%s1642_s22 + $0xd8] sm:$0xff]  }
  0x48   : > { %1528 = vst [vmem:[%s1694_s5 + $0x88] sm:$0xff] %v1409_v59   ;;  %v617_v5 = vmax.f32 %v553_v60, 0.0  ;;  %v483_v6 = vmul.f32 %v1656_v9, %v412_v61  ;;  %v414_v7 = vsub.f32 %v1279_v62, %v1647_v0  ;;  %v1283_v8 = vunpack.c.l.bf16 %v1502_v58 }
  0x49   : > { %1529 = vst [vmem:[%s1694_s5 + $0x90] sm:$0xff] %v1414_v1   ;;  %v484_v10 = vmul.f32 %v1656_v9, %v413_v3  ;;  %v415_v11 = vsub.f32 %v1280_v4, %v1647_v0  ;;  %v1284_v12 = vunpack.c.h.bf16 %v1502_v58  ;;  %v1287_v13 = vunpack.c.l.bf16 %v1503_v63  ;;  %v1508_v4 = vld [vmem:[%s1642_s22 + $0xe0] sm:$0xff]  }
  0x4a   : > { %v1419_v14 = vpack.c.bf16 %v617_v5, %v616_v2  ;;  %v554_v15 = vadd.f32 %v1665_v18, %v483_v6  ;;  %v485_v16 = vmul.f32 %v1656_v9, %v414_v7  ;;  %v416_v17 = vsub.f32 %v1283_v8, %v1647_v0 }
  0x4b   : > { %v555_v19 = vadd.f32 %v1665_v18, %v484_v10  ;;  %v486_v20 = vmul.f32 %v1656_v9, %v415_v11  ;;  %v417_v21 = vsub.f32 %v1284_v12, %v1647_v0  ;;  %v1288_v22 = vunpack.c.h.bf16 %v1503_v63 }
  0x4c   : > { %1530 = vst [vmem:[%s1694_s5 + $0x98] sm:$0xff] %v1419_v14   ;;  %v618_v24 = vmax.f32 %v554_v15, 0.0  ;;  %v556_v25 = vadd.f32 %v1665_v18, %v485_v16  ;;  %v487_v26 = vmul.f32 %v1656_v9, %v416_v17  ;;  %v418_v27 = vsub.f32 %v1287_v13, %v1647_v0 }
  0x4d   : > { %v619_v28 = vmax.f32 %v555_v19, 0.0  ;;  %v557_v29 = vadd.f32 %v1665_v18, %v486_v20  ;;  %v488_v30 = vmul.f32 %v1656_v9, %v417_v21  ;;  %v419_v31 = vsub.f32 %v1288_v22, %v1647_v0 }
  0x4e   : > { %v620_v32 = vmax.f32 %v556_v25, 0.0  ;;  %v558_v33 = vadd.f32 %v1665_v18, %v487_v26  ;;  %v489_v34 = vmul.f32 %v1656_v9, %v418_v27  ;;  %v1291_v35 = vunpack.c.l.bf16 %v1504_v23 }
  0x4f   : > { %v1424_v37 = vpack.c.bf16 %v619_v28, %v618_v24  ;;  %v621_v38 = vmax.f32 %v557_v29, 0.0  ;;  %v559_v39 = vadd.f32 %v1665_v18, %v488_v30  ;;  %v490_v40 = vmul.f32 %v1656_v9, %v419_v31 }
  0x50   : > { %v622_v41 = vmax.f32 %v558_v33, 0.0  ;;  %v560_v42 = vadd.f32 %v1665_v18, %v489_v34  ;;  %v1292_v43 = vunpack.c.h.bf16 %v1504_v23  ;;  %v420_v44 = vsub.f32 %v1291_v35, %v1647_v0  ;;  %v1509_v23 = vld [vmem:[%s1642_s22 + $0xe8] sm:$0xff]  }
  0x51   : > { %1531 = vst [vmem:[%s1694_s5 + $0xa0] sm:$0xff] %v1424_v37   ;;  %v1429_v46 = vpack.c.bf16 %v621_v38, %v620_v32  ;;  %v623_v47 = vmax.f32 %v559_v39, 0.0  ;;  %v561_v48 = vadd.f32 %v1665_v18, %v490_v40  ;;  %v1295_v49 = vunpack.c.l.bf16 %v1505_v36  ;;  %v1510_v32 = vld [vmem:[%s1642_s22 + $0xf0] sm:$0xff]  }
  0x52   : > { %v624_v50 = vmax.f32 %v560_v42, 0.0  ;;  %v421_v51 = vsub.f32 %v1292_v43, %v1647_v0  ;;  %v491_v52 = vmul.f32 %v1656_v9, %v420_v44  ;;  %v1296_v53 = vunpack.c.h.bf16 %v1505_v36 }
  0x53   : > { %1532 = vst [vmem:[%s1694_s5 + $0xa8] sm:$0xff] %v1429_v46   ;;  %v1434_v55 = vpack.c.bf16 %v623_v47, %v622_v41  ;;  %v625_v56 = vmax.f32 %v561_v48, 0.0  ;;  %v422_v57 = vsub.f32 %v1295_v49, %v1647_v0  ;;  %v1299_v58 = vunpack.c.l.bf16 %v1506_v45  ;;  %v1511_v41 = vld [vmem:[%s1642_s22 + $0xf8] sm:$0xff]  }
  0x54   : > { %v492_v59 = vmul.f32 %v1656_v9, %v421_v51  ;;  %v562_v60 = vadd.f32 %v1665_v18, %v491_v52  ;;  %v423_v61 = vsub.f32 %v1296_v53, %v1647_v0  ;;  %v1300_v62 = vunpack.c.h.bf16 %v1506_v45 }
  0x55   : > { %1533 = vst [vmem:[%s1694_s5 + $0xb0] sm:$0xff] %v1434_v55   ;;  %v1439_v63 = vpack.c.bf16 %v625_v56, %v624_v50  ;;  %v493_v1 = vmul.f32 %v1656_v9, %v422_v57  ;;  %v424_v2 = vsub.f32 %v1299_v58, %v1647_v0  ;;  %v1303_v3 = vunpack.c.l.bf16 %v1507_v54 }
  0x56   : > { %v563_v5 = vadd.f32 %v1665_v18, %v492_v59  ;;  %v626_v6 = vmax.f32 %v562_v60, 0.0  ;;  %v494_v7 = vmul.f32 %v1656_v9, %v423_v61  ;;  %v425_v8 = vsub.f32 %v1300_v62, %v1647_v0 }
  0x57   : > { %1534 = vst [vmem:[%s1694_s5 + $0xb8] sm:$0xff] %v1439_v63   ;;  %v564_v10 = vadd.f32 %v1665_v18, %v493_v1  ;;  %v495_v11 = vmul.f32 %v1656_v9, %v424_v2  ;;  %v1304_v12 = vunpack.c.h.bf16 %v1507_v54  ;;  %v426_v13 = vsub.f32 %v1303_v3, %v1647_v0 }
  0x58   : > { %v627_v14 = vmax.f32 %v563_v5, 0.0  ;;  %v565_v15 = vadd.f32 %v1665_v18, %v494_v7  ;;  %v496_v16 = vmul.f32 %v1656_v9, %v425_v8  ;;  %v1307_v17 = vunpack.c.l.bf16 %v1508_v4 }
  0x59   : > { %v628_v19 = vmax.f32 %v564_v10, 0.0  ;;  %v566_v20 = vadd.f32 %v1665_v18, %v495_v11  ;;  %v427_v21 = vsub.f32 %v1304_v12, %v1647_v0  ;;  %v497_v22 = vmul.f32 %v1656_v9, %v426_v13 }
  0x5a   : > { %v1444_v24 = vpack.c.bf16 %v627_v14, %v626_v6  ;;  %v629_v25 = vmax.f32 %v565_v15, 0.0  ;;  %v567_v26 = vadd.f32 %v1665_v18, %v496_v16  ;;  %v1308_v27 = vunpack.c.h.bf16 %v1508_v4 }
  0x5b   : > { %v630_v28 = vmax.f32 %v566_v20, 0.0  ;;  %v498_v29 = vmul.f32 %v1656_v9, %v427_v21  ;;  %v568_v30 = vadd.f32 %v1665_v18, %v497_v22  ;;  %v428_v31 = vsub.f32 %v1307_v17, %v1647_v0 }
  0x5c   : > { %1535 = vst [vmem:[%s1694_s5 + $0xc0] sm:$0xff] %v1444_v24   ;;  %v1449_v33 = vpack.c.bf16 %v629_v25, %v628_v19  ;;  %v631_v34 = vmax.f32 %v567_v26, 0.0  ;;  %v429_v35 = vsub.f32 %v1308_v27, %v1647_v0  ;;  %v1311_v36 = vunpack.c.l.bf16 %v1509_v23 }
  0x5d   : > { %v569_v37 = vadd.f32 %v1665_v18, %v498_v29  ;;  %v632_v38 = vmax.f32 %v568_v30, 0.0  ;;  %v499_v39 = vmul.f32 %v1656_v9, %v428_v31  ;;  %v1312_v40 = vunpack.c.h.bf16 %v1509_v23 }
  0x5e   : > { %1536 = vst [vmem:[%s1694_s5 + $0xc8] sm:$0xff] %v1449_v33   ;;  %v1454_v42 = vpack.c.bf16 %v631_v34, %v630_v28  ;;  %v500_v43 = vmul.f32 %v1656_v9, %v429_v35  ;;  %v430_v44 = vsub.f32 %v1311_v36, %v1647_v0  ;;  %v1315_v45 = vunpack.c.l.bf16 %v1510_v32 }
  0x5f   : > { %v633_v46 = vmax.f32 %v569_v37, 0.0  ;;  %v570_v47 = vadd.f32 %v1665_v18, %v499_v39  ;;  %v431_v48 = vsub.f32 %v1312_v40, %v1647_v0  ;;  %v1316_v49 = vunpack.c.h.bf16 %v1510_v32 }
  0x60   : > { %1537 = vst [vmem:[%s1694_s5 + $0xd0] sm:$0xff] %v1454_v42   ;;  %v571_v50 = vadd.f32 %v1665_v18, %v500_v43  ;;  %v501_v51 = vmul.f32 %v1656_v9, %v430_v44  ;;  %v432_v52 = vsub.f32 %v1315_v45, %v1647_v0  ;;  %v1319_v53 = vunpack.c.l.bf16 %v1511_v41 }
  0x61   : > { %v1459_v54 = vpack.c.bf16 %v633_v46, %v632_v38  ;;  %v634_v55 = vmax.f32 %v570_v47, 0.0  ;;  %v502_v56 = vmul.f32 %v1656_v9, %v431_v48  ;;  %v433_v57 = vsub.f32 %v1316_v49, %v1647_v0 }
  0x62   : > { %v635_v58 = vmax.f32 %v571_v50, 0.0  ;;  %v572_v59 = vadd.f32 %v1665_v18, %v501_v51  ;;  %v503_v60 = vmul.f32 %v1656_v9, %v432_v52  ;;  %v1320_v61 = vunpack.c.h.bf16 %v1511_v41 }
  0x63   : > { %1538 = vst [vmem:[%s1694_s5 + $0xd8] sm:$0xff] %v1459_v54   ;;  %v573_v62 = vadd.f32 %v1665_v18, %v502_v56  ;;  %v504_v63 = vmul.f32 %v1656_v9, %v433_v57  ;;  %v434_v1 = vsub.f32 %v1319_v53, %v1647_v0 }
  0x64   : > { %v1464_v2 = vpack.c.bf16 %v635_v58, %v634_v55  ;;  %v636_v3 = vmax.f32 %v572_v59, 0.0  ;;  %v574_v4 = vadd.f32 %v1665_v18, %v503_v60  ;;  %v435_v5 = vsub.f32 %v1320_v61, %v1647_v0 }
  0x65   : > { %v637_v6 = vmax.f32 %v573_v62, 0.0  ;;  %v575_v7 = vadd.f32 %v1665_v18, %v504_v63  ;;  %v505_v8 = vmul.f32 %v1656_v9, %v434_v1 }
  0x66   : > { %1539 = vst [vmem:[%s1694_s5 + $0xe0] sm:$0xff] %v1464_v2   ;;  %v638_v10 = vmax.f32 %v574_v4, 0.0  ;;  %v506_v11 = vmul.f32 %v1656_v9, %v435_v5 }
  0x67   : > { %v1469_v12 = vpack.c.bf16 %v637_v6, %v636_v3  ;;  %v639_v13 = vmax.f32 %v575_v7, 0.0  ;;  %v576_v14 = vadd.f32 %v1665_v18, %v505_v8 }
  0x68   : > { %v577_v15 = vadd.f32 %v1665_v18, %v506_v11 }
  0x69   : > { %1540 = vst [vmem:[%s1694_s5 + $0xe8] sm:$0xff] %v1469_v12   ;;  %v1474_v16 = vpack.c.bf16 %v639_v13, %v638_v10  ;;  %v640_v17 = vmax.f32 %v576_v14, 0.0 }
  0x6a   : > { %v641_v0 = vmax.f32 %v577_v15, 0.0 }
  0x6b   : > { %1541 = vst [vmem:[%s1694_s5 + $0xf0] sm:$0xff] %v1474_v16  }
  0x6c   : > { %v1479_v19 = vpack.c.bf16 %v641_v0, %v640_v17 }
  0x6e   : > { %1542 = vst [vmem:[%s1694_s5 + $0xf8] sm:$0xff] %v1479_v19  }
  0x6f PF: > { %s14_s17 = sadd.s32 1, %s1589_s17   ;;  %s1936_s15 = smov %s1585_s16 }
  0x70   : > { %p11_p5 = scmp.ge.s32.totalorder %s14_s17, 6   ;;  %s1937_s16 = smov %s1939_s18 }
  0x72   :  { %13 = sbr.rel (!%p11_p5) target bundleno = 2 (0x2), region = 66 }

// kernel: generator_forward.17
= control target key start
LH: loop header
LB: loop body
LE: loop exit
PB: predicated region body
PF: predicated region fallthrough
CT: control target
= control target key end

     0   :  { %s3384_s15 = smov 0   ;;  %s3386_s16 = smov 0   ;;  %s3797_s0 = inlined_call_operand.vmem [shape: bf16[4,512,512], index: 0, kind: input, shape index: {}]   ;;  %s3798_s1 = inlined_call_operand.vmem [shape: bf16[4,512,128], index: 1, kind: input, shape index: {}]   ;;  %s3799_s2 = inlined_call_operand.vmem [shape: bf16[4,512,128], index: 2, kind: output, shape index: {0}]   ;;  %s3800_s3 = inlined_call_operand.vmem [shape: f32[4,8,128], index: 3, kind: output, shape index: {1}]   ;;  %s3801_s4 = inlined_call_operand.vmem [shape: f32[4,8,128], index: 4, kind: output, shape index: {2}]  }
   0x1   :  { %s3388_s17 = smov 0  }
   0x2 LB: > { %s27_s18 = sadd.s32 1, %s3352_s16  ;;  %p2592_p0 = scmp.ge.s32.totalorder %s3356_s17, 1  ;;  %s3356_s17 = sphi %s3388_s17, %s15_s17   ;;  %s3352_s16 = sphi %s3386_s16, %s3803_s16   ;;  %s3348_s15 = sphi %s3384_s15, %s3802_s15  }
   0x3   : > { %p29_p1 = scmp.ge.s32.totalorder %s27_s18, 4  ;;  %p203_p2 = scmp.lt.s32.totalorder %s3356_s17, 5 }
   0x5   : > { %s3805_s18 = smov (%p29_p1, %s27_s18), 0  ;;  %p204_p3 = pnand %p2592_p0, %p203_p2 }
   0x6   : > { %p254_p4 = scmp.lt.s32.totalorder (!%p204_p3), %s3348_s15, 3 }
   0x7   : > { %207 = sbr.rel (%p204_p3) target bundleno = 544 (0x220), region = 28 }
   0xc   : > { %v3358_v0 = vmov 0   ;;  %s3807_s15 = smov (!%p254_p4, %s3348_s15), 3 }
   0xd   : > { %1316 = vmatprep.subr.bf16.mxu0 %v3358_v0  ;;  %1605 = vmatprep.subr.bf16.mxu1 %v3358_v0  ;;  %s2828_s19 = sshll.u32 %s3807_s15, 8  ;;  %s2827_s23 = sshll.u32 %s3807_s15, 10 }
   0xe   : > { %s3412_s22 = scalar_lea.vmem %s3798_s1, %s2828_s19  ;;  %s3448_s26 = scalar_lea.vmem %s3797_s0, %s2827_s23 }
   0xf   : > { %v3110_v1 = vld [vmem:[%s3412_s22 + $0x38] sm:$0xff]   ;;  %v3112_v3 = vld [vmem:[%s3412_s22 + $0x30] sm:$0xff]   ;;  %v3114_v5 = vld [vmem:[%s3412_s22 + $0x28] sm:$0xff]   ;;  %s3593_s29 = scalar_lea.vmem %s3799_s2, %s2828_s19  ;;  %s2599_s30 = sshll.u32 %s3807_s15, 3 }
  0x10   : > { %v3111_v2 = vld [vmem:[%s3412_s22 + $0xb8] sm:$0xff]   ;;  %1317 = vmatpush1.bf16.msra.mxu0 %v3110_v1  ;;  %v3113_v4 = vld [vmem:[%s3412_s22 + $0xb0] sm:$0xff]   ;;  %v3115_v6 = vld [vmem:[%s3412_s22 + $0xa8] sm:$0xff]   ;;  %s283_s7 = scalar_lea.vmem %s3800_s3, %s2599_s30  ;;  %s289_s10 = scalar_lea.vmem %s3801_s4, %s2599_s30 }
  0x11   : > { %1606 = vmatpush1.bf16.msra.mxu1 %v3111_v2  ;;  %1318 = vmatprep.subr.bf16.mxu0 %v3358_v0  ;;  %v3116_v7 = vld [vmem:[%s3412_s22 + $0x20] sm:$0xff]   ;;  %v3118_v9 = vld [vmem:[%s3412_s22 + $0x18] sm:$0xff]   ;;  %v3120_v11 = vld [vmem:[%s3412_s22 + $0x10] sm:$0xff]  }
  0x12   : > { %1607 = vmatprep.subr.bf16.mxu1 %v3358_v0  ;;  %v3117_v8 = vld [vmem:[%s3412_s22 + $0xa0] sm:$0xff]   ;;  %v3119_v10 = vld [vmem:[%s3412_s22 + $0x98] sm:$0xff]   ;;  %v3121_v12 = vld [vmem:[%s3412_s22 + $0x90] sm:$0xff]  }
  0x13   : > { %v3122_v13 = vld [vmem:[%s3412_s22 + $0x8] sm:$0xff]   ;;  %v3124_v15 = vld [vmem:[%s3412_s22] sm:$0xff]   ;;  %v3126_v17 = vld [vmem:[%s3412_s22 + $0x78] sm:$0xff]  }
  0x14   : > { %1319 = vmatpush1.bf16.msra.mxu0 %v3112_v3  ;;  %v3123_v14 = vld [vmem:[%s3412_s22 + $0x88] sm:$0xff]   ;;  %v3125_v16 = vld [vmem:[%s3412_s22 + $0x80] sm:$0xff]   ;;  %v3127_v18 = vld [vmem:[%s3412_s22 + $0xf8] sm:$0xff]  }
  0x15   : > { %1608 = vmatpush1.bf16.msra.mxu1 %v3113_v4  ;;  %1320 = vmatprep.subr.bf16.mxu0 %v3358_v0  ;;  %v3144_v19 = vld [vmem:[%s3448_s26 + $0x4] ss:$16 sps:$4 sm:$0xff]   ;;  %v3147_v21 = vld [vmem:[%s3448_s26 + $0xc] ss:$16 sps:$4 sm:$0xff]   ;;  %v3142_v35 = vld [vmem:[%s3448_s26] ss:$16 sps:$4 sm:$0xff]  }
  0x16   : > { %1609 = vmatprep.subr.bf16.mxu1 %v3358_v0  ;;  %v3128_v20 = vld [vmem:[%s3412_s22 + $0x70] sm:$0xff]   ;;  %1348 = vmatprep.mubr.bf16.mxu0 %v3144_v19  ;;  %v3130_v23 = vld [vmem:[%s3412_s22 + $0x68] sm:$0xff]   ;;  %v3132_v25 = vld [vmem:[%s3412_s22 + $0x60] sm:$0xff]  }
  0x17   : > { %v3129_v22 = vld [vmem:[%s3412_s22 + $0xf0] sm:$0xff]   ;;  %1637 = vmatprep.mubr.bf16.mxu1 %v3147_v21  ;;  %v3131_v24 = vld [vmem:[%s3412_s22 + $0xe8] sm:$0xff]   ;;  %v3133_v26 = vld [vmem:[%s3412_s22 + $0xe0] sm:$0xff]  }
  0x18   : > { %1321 = vmatpush1.bf16.msra.mxu0 %v3114_v5  ;;  %v3134_v27 = vld [vmem:[%s3412_s22 + $0x58] sm:$0xff]   ;;  %v3136_v29 = vld [vmem:[%s3412_s22 + $0x50] sm:$0xff]   ;;  %v3138_v31 = vld [vmem:[%s3412_s22 + $0x48] sm:$0xff]  }
  0x19   : > { %1610 = vmatpush1.bf16.msra.mxu1 %v3115_v6  ;;  %1322 = vmatprep.subr.bf16.mxu0 %v3358_v0  ;;  %v3135_v28 = vld [vmem:[%s3412_s22 + $0xd8] sm:$0xff]   ;;  %v3137_v30 = vld [vmem:[%s3412_s22 + $0xd0] sm:$0xff]   ;;  %v3139_v32 = vld [vmem:[%s3412_s22 + $0xc8] sm:$0xff]  }
  0x1a   : > { %1611 = vmatprep.subr.bf16.mxu1 %v3358_v0  ;;  %v3140_v33 = vld [vmem:[%s3412_s22 + $0x40] sm:$0xff]   ;;  %v3145_v36 = vld [vmem:[%s3448_s26 + $0x8] ss:$16 sps:$4 sm:$0xff]   ;;  %v3150_v38 = vld [vmem:[%s3448_s26 + $0x2c] ss:$16 sps:$4 sm:$0xff]  }
  0x1b   : > { %v3141_v34 = vld [vmem:[%s3412_s22 + $0xc0] sm:$0xff]   ;;  %v3153_v40 = vld [vmem:[%s3448_s26 + $0x28] ss:$16 sps:$4 sm:$0xff]   ;;  %v3156_v42 = vld [vmem:[%s3448_s26 + $0x4c] ss:$16 sps:$4 sm:$0xff]  }
  0x1c   : > { %1323 = vmatpush1.bf16.msra.mxu0 %v3116_v7  ;;  %v3148_v37 = vld [vmem:[%s3448_s26 + $0x24] ss:$16 sps:$4 sm:$0xff]   ;;  %v3152_v39 = vld [vmem:[%s3448_s26 + $0x20] ss:$16 sps:$4 sm:$0xff]   ;;  %v3159_v44 = vld [vmem:[%s3448_s26 + $0x48] ss:$16 sps:$4 sm:$0xff]  }
  0x1d   : > { %1612 = vmatpush1.bf16.msra.mxu1 %v3117_v8  ;;  %1324 = vmatprep.subr.bf16.mxu0 %v3358_v0  ;;  %v3154_v41 = vld [vmem:[%s3448_s26 + $0x44] ss:$16 sps:$4 sm:$0xff]   ;;  %v3158_v43 = vld [vmem:[%s3448_s26 + $0x40] ss:$16 sps:$4 sm:$0xff]   ;;  %v3162_v46 = vld [vmem:[%s3448_s26 + $0x6c] ss:$16 sps:$4 sm:$0xff]  }
  0x1e   : > { %1613 = vmatprep.subr.bf16.mxu1 %v3358_v0  ;;  %v3160_v45 = vld [vmem:[%s3448_s26 + $0x64] ss:$16 sps:$4 sm:$0xff]   ;;  %v3164_v47 = vld [vmem:[%s3448_s26 + $0x60] ss:$16 sps:$4 sm:$0xff]   ;;  %v3165_v48 = vld [vmem:[%s3448_s26 + $0x68] ss:$16 sps:$4 sm:$0xff]  }
  0x1f   : > { %v3166_v49 = vld [vmem:[%s3448_s26 + $0x84] ss:$16 sps:$4 sm:$0xff]   ;;  %v3168_v50 = vld [vmem:[%s3448_s26 + $0x8c] ss:$16 sps:$4 sm:$0xff]   ;;  %v3170_v51 = vld [vmem:[%s3448_s26 + $0x80] ss:$16 sps:$4 sm:$0xff]  }
  0x20   : > { %1325 = vmatpush1.bf16.msra.mxu0 %v3118_v9  ;;  %v3171_v52 = vld [vmem:[%s3448_s26 + $0x88] ss:$16 sps:$4 sm:$0xff]   ;;  %v3172_v53 = vld [vmem:[%s3448_s26 + $0xa4] ss:$16 sps:$4 sm:$0xff]   ;;  %v3174_v54 = vld [vmem:[%s3448_s26 + $0xac] ss:$16 sps:$4 sm:$0xff]  }
  0x21   : > { %1614 = vmatpush1.bf16.msra.mxu1 %v3119_v10  ;;  %1326 = vmatprep.subr.bf16.mxu0 %v3358_v0  ;;  %v3176_v55 = vld [vmem:[%s3448_s26 + $0xa0] ss:$16 sps:$4 sm:$0xff]   ;;  %v3177_v56 = vld [vmem:[%s3448_s26 + $0xa8] ss:$16 sps:$4 sm:$0xff]   ;;  %v3178_v57 = vld [vmem:[%s3448_s26 + $0xc4] ss:$16 sps:$4 sm:$0xff]  }
  0x22   : > { %1615 = vmatprep.subr.bf16.mxu1 %v3358_v0  ;;  %v3180_v58 = vld [vmem:[%s3448_s26 + $0xcc] ss:$16 sps:$4 sm:$0xff]   ;;  %v3182_v59 = vld [vmem:[%s3448_s26 + $0xc0] ss:$16 sps:$4 sm:$0xff]   ;;  %v3183_v60 = vld [vmem:[%s3448_s26 + $0xc8] ss:$16 sps:$4 sm:$0xff]  }
  0x23   : > { %v3184_v61 = vld [vmem:[%s3448_s26 + $0xe4] ss:$16 sps:$4 sm:$0xff]   ;;  %v3186_v62 = vld [vmem:[%s3448_s26 + $0xec] ss:$16 sps:$4 sm:$0xff]   ;;  %v3188_v63 = vld [vmem:[%s3448_s26 + $0xe0] ss:$16 sps:$4 sm:$0xff]  }
  0x24   : > { %1327 = vmatpush1.bf16.msra.mxu0 %v3120_v11  ;;  %v3190_v1 = vld [vmem:[%s3448_s26 + $0x104] ss:$16 sps:$4 sm:$0xff]   ;;  %v3192_v2 = vld [vmem:[%s3448_s26 + $0x10c] ss:$16 sps:$4 sm:$0xff]   ;;  %v3194_v3 = vld [vmem:[%s3448_s26 + $0x100] ss:$16 sps:$4 sm:$0xff]  }
  0x25   : > { %1616 = vmatpush1.bf16.msra.mxu1 %v3121_v12  ;;  %1328 = vmatprep.subr.bf16.mxu0 %v3358_v0  ;;  %v3195_v4 = vld [vmem:[%s3448_s26 + $0x108] ss:$16 sps:$4 sm:$0xff]   ;;  %v3196_v5 = vld [vmem:[%s3448_s26 + $0x124] ss:$16 sps:$4 sm:$0xff]   ;;  %v3198_v6 = vld [vmem:[%s3448_s26 + $0x12c] ss:$16 sps:$4 sm:$0xff]  }
  0x26   : > { %1617 = vmatprep.subr.bf16.mxu1 %v3358_v0  ;;  %v3200_v7 = vld [vmem:[%s3448_s26 + $0x120] ss:$16 sps:$4 sm:$0xff]   ;;  %v3201_v8 = vld [vmem:[%s3448_s26 + $0x128] ss:$16 sps:$4 sm:$0xff]   ;;  %v3202_v9 = vld [vmem:[%s3448_s26 + $0x144] ss:$16 sps:$4 sm:$0xff]  }
  0x27   : > { %v3204_v10 = vld [vmem:[%s3448_s26 + $0x14c] ss:$16 sps:$4 sm:$0xff]   ;;  %v3206_v11 = vld [vmem:[%s3448_s26 + $0x140] ss:$16 sps:$4 sm:$0xff]   ;;  %v3207_v12 = vld [vmem:[%s3448_s26 + $0x148] ss:$16 sps:$4 sm:$0xff]  }
  0x28   : > { %1329 = vmatpush1.bf16.msra.mxu0 %v3122_v13  ;;  %v3208_v13 = vld [vmem:[%s3448_s26 + $0x164] ss:$16 sps:$4 sm:$0xff]   ;;  %v3218_v19 = vld [vmem:[%s3448_s26 + $0x180] ss:$16 sps:$4 sm:$0xff]  }
  0x29   : > { %1618 = vmatpush1.bf16.msra.mxu1 %v3123_v14  ;;  %1330 = vmatprep.subr.bf16.mxu0 %v3358_v0  ;;  %v3210_v14 = vld [vmem:[%s3448_s26 + $0x16c] ss:$16 sps:$4 sm:$0xff]   ;;  %v3220_v21 = vld [vmem:[%s3448_s26 + $0x1a4] ss:$16 sps:$4 sm:$0xff]  }
  0x2a   : > { %1619 = vmatprep.subr.bf16.mxu1 %v3358_v0 }
  0x2c   : > { %1331 = vmatpush1.bf16.msra.mxu0 %v3124_v15  ;;  %v3212_v15 = vld [vmem:[%s3448_s26 + $0x160] ss:$16 sps:$4 sm:$0xff]  }
  0x2d   : > { %1620 = vmatpush1.bf16.msra.mxu1 %v3125_v16  ;;  %1332 = vmatprep.subr.bf16.mxu0 %v3358_v0  ;;  %v3213_v16 = vld [vmem:[%s3448_s26 + $0x168] ss:$16 sps:$4 sm:$0xff]  }
  0x2e   : > { %1621 = vmatprep.subr.bf16.mxu1 %v3358_v0 }
  0x30   : > { %1333 = vmatpush2.bf16.msra.mxu0 %v3126_v17  ;;  %v3214_v17 = vld [vmem:[%s3448_s26 + $0x184] ss:$16 sps:$4 sm:$0xff]  }
  0x31   : > { %1622 = vmatpush2.bf16.msra.mxu1 %v3127_v18  ;;  %1334 = vmatprep.subr.bf16.mxu0 %v3358_v0  ;;  %v3216_v18 = vld [vmem:[%s3448_s26 + $0x18c] ss:$16 sps:$4 sm:$0xff]  }
  0x32   : > { %1623 = vmatprep.subr.bf16.mxu1 %v3358_v0 }
  0x34   : > { %1335 = vmatpush2.bf16.msra.mxu0 %v3128_v20  ;;  %v3219_v20 = vld [vmem:[%s3448_s26 + $0x188] ss:$16 sps:$4 sm:$0xff]  }
  0x35   : > { %1624 = vmatpush2.bf16.msra.mxu1 %v3129_v22  ;;  %1336 = vmatprep.subr.bf16.mxu0 %v3358_v0  ;;  %v3222_v22 = vld [vmem:[%s3448_s26 + $0x1ac] ss:$16 sps:$4 sm:$0xff]  }
  0x36   : > { %1625 = vmatprep.subr.bf16.mxu1 %v3358_v0 }
  0x38   : > { %1337 = vmatpush2.bf16.msra.mxu0 %v3130_v23  ;;  %v3224_v23 = vld [vmem:[%s3448_s26 + $0x1a0] ss:$16 sps:$4 sm:$0xff]  }
  0x39   : > { %1626 = vmatpush2.bf16.msra.mxu1 %v3131_v24  ;;  %1338 = vmatprep.subr.bf16.mxu0 %v3358_v0  ;;  %v3225_v24 = vld [vmem:[%s3448_s26 + $0x1a8] ss:$16 sps:$4 sm:$0xff]  }
  0x3a   : > { %1627 = vmatprep.subr.bf16.mxu1 %v3358_v0 }
  0x3c   : > { %1339 = vmatpush2.bf16.msra.mxu0 %v3132_v25  ;;  %v3226_v25 = vld [vmem:[%s3448_s26 + $0x1c4] ss:$16 sps:$4 sm:$0xff]  }
  0x3d   : > { %1628 = vmatpush2.bf16.msra.mxu1 %v3133_v26  ;;  %1340 = vmatprep.subr.bf16.mxu0 %v3358_v0  ;;  %v3228_v26 = vld [vmem:[%s3448_s26 + $0x1cc] ss:$16 sps:$4 sm:$0xff]  }
  0x3e   : > { %1629 = vmatprep.subr.bf16.mxu1 %v3358_v0 }
  0x40   : > { %1341 = vmatpush2.bf16.msra.mxu0 %v3134_v27  ;;  %v3230_v27 = vld [vmem:[%s3448_s26 + $0x1c0] ss:$16 sps:$4 sm:$0xff]  }
  0x41   : > { %1630 = vmatpush2.bf16.msra.mxu1 %v3135_v28  ;;  %1342 = vmatprep.subr.bf16.mxu0 %v3358_v0  ;;  %v3231_v28 = vld [vmem:[%s3448_s26 + $0x1c8] ss:$16 sps:$4 sm:$0xff]  }
  0x42   : > { %1631 = vmatprep.subr.bf16.mxu1 %v3358_v0 }
  0x44   : > { %1343 = vmatpush2.bf16.msra.mxu0 %v3136_v29  ;;  %v3232_v29 = vld [vmem:[%s3448_s26 + $0x1e4] ss:$16 sps:$4 sm:$0xff]  }
  0x45   : > { %1632 = vmatpush2.bf16.msra.mxu1 %v3137_v30  ;;  %1344 = vmatprep.subr.bf16.mxu0 %v3358_v0  ;;  %v3234_v30 = vld [vmem:[%s3448_s26 + $0x1ec] ss:$16 sps:$4 sm:$0xff]  }
  0x46   : > { %1633 = vmatprep.subr.bf16.mxu1 %v3358_v0 }
  0x48   : > { %1345 = vmatpush2.bf16.msra.mxu0 %v3138_v31  ;;  %v3236_v31 = vld [vmem:[%s3448_s26 + $0x1e0] ss:$16 sps:$4 sm:$0xff]  }
  0x49   : > { %1634 = vmatpush2.bf16.msra.mxu1 %v3139_v32  ;;  %1346 = vmatprep.subr.bf16.mxu0 %v3358_v0  ;;  %v3237_v32 = vld [vmem:[%s3448_s26 + $0x1e8] ss:$16 sps:$4 sm:$0xff]  }
  0x4a   : > { %1635 = vmatprep.subr.bf16.mxu1 %v3358_v0  ;;  %v3189_v0 = vld [vmem:[%s3448_s26 + $0xe8] ss:$16 sps:$4 sm:$0xff]  }
  0x4c   : > { %1347 = vmatpush2.bf16.msra.mxu0 %v3140_v33  ;;  %v3238_v33 = vld [vmem:[%s3448_s26 + $0x204] ss:$16 sps:$4 sm:$0xff]  }
  0x4d   : > { %1636 = vmatpush2.bf16.msra.mxu1 %v3141_v34  ;;  %v3240_v34 = vld [vmem:[%s3448_s26 + $0x20c] ss:$16 sps:$4 sm:$0xff]  }
  0x4f   : > { %1349 = vmatmul.mubr.bf16.vlgmr.msra.gmra.mxu0 %v3142_v35  ;;  %v3242_v35 = vld [vmem:[%s3448_s26 + $0x200] ss:$16 sps:$4 sm:$0xff]  }
  0x50   : > { %1638 = vmatmul.mubr.bf16.vlgmr.msra.gmra.mxu1 %v3145_v36  ;;  %1356 = vmatprep.mubr.bf16.mxu0 %v3148_v37  ;;  %v3243_v36 = vld [vmem:[%s3448_s26 + $0x208] ss:$16 sps:$4 sm:$0xff]   ;;  %v3244_v37 = vld [vmem:[%s3448_s26 + $0x224] ss:$16 sps:$4 sm:$0xff]  }
  0x51   : > { %1645 = vmatprep.mubr.bf16.mxu1 %v3150_v38  ;;  %v3246_v38 = vld [vmem:[%s3448_s26 + $0x22c] ss:$16 sps:$4 sm:$0xff]  }
  0x57   : > { %1357 = vmatmul.mubr.bf16.gmra.mxu0 %v3152_v39  ;;  %v3248_v39 = vld [vmem:[%s3448_s26 + $0x220] ss:$16 sps:$4 sm:$0xff]  }
  0x58   : > { %1646 = vmatmul.mubr.bf16.gmra.mxu1 %v3153_v40  ;;  %1364 = vmatprep.mubr.bf16.mxu0 %v3154_v41  ;;  %v3249_v40 = vld [vmem:[%s3448_s26 + $0x228] ss:$16 sps:$4 sm:$0xff]   ;;  %v3250_v41 = vld [vmem:[%s3448_s26 + $0x244] ss:$16 sps:$4 sm:$0xff]  }
  0x59   : > { %1653 = vmatprep.mubr.bf16.mxu1 %v3156_v42  ;;  %v3252_v42 = vld [vmem:[%s3448_s26 + $0x24c] ss:$16 sps:$4 sm:$0xff]  }
  0x5f   : > { %1365 = vmatmul.mubr.bf16.gmra.mxu0 %v3158_v43  ;;  %v3254_v43 = vld [vmem:[%s3448_s26 + $0x240] ss:$16 sps:$4 sm:$0xff]  }
  0x60   : > { %1654 = vmatmul.mubr.bf16.gmra.mxu1 %v3159_v44  ;;  %1372 = vmatprep.mubr.bf16.mxu0 %v3160_v45  ;;  %v3255_v44 = vld [vmem:[%s3448_s26 + $0x248] ss:$16 sps:$4 sm:$0xff]   ;;  %v3256_v45 = vld [vmem:[%s3448_s26 + $0x264] ss:$16 sps:$4 sm:$0xff]  }
  0x61   : > { %1661 = vmatprep.mubr.bf16.mxu1 %v3162_v46  ;;  %v3258_v46 = vld [vmem:[%s3448_s26 + $0x26c] ss:$16 sps:$4 sm:$0xff]  }
  0x67   : > { %1373 = vmatmul.mubr.bf16.gmra.mxu0 %v3164_v47  ;;  %v3260_v47 = vld [vmem:[%s3448_s26 + $0x260] ss:$16 sps:$4 sm:$0xff]  }
  0x68   : > { %1662 = vmatmul.mubr.bf16.gmra.mxu1 %v3165_v48  ;;  %1380 = vmatprep.mubr.bf16.mxu0 %v3166_v49  ;;  %v3261_v48 = vld [vmem:[%s3448_s26 + $0x268] ss:$16 sps:$4 sm:$0xff]   ;;  %v3262_v49 = vld [vmem:[%s3448_s26 + $0x284] ss:$16 sps:$4 sm:$0xff]  }
  0x69   : > { %1669 = vmatprep.mubr.bf16.mxu1 %v3168_v50  ;;  %v3264_v50 = vld [vmem:[%s3448_s26 + $0x28c] ss:$16 sps:$4 sm:$0xff]  }
  0x6f   : > { %1381 = vmatmul.mubr.bf16.gmra.mxu0 %v3170_v51  ;;  %v3266_v51 = vld [vmem:[%s3448_s26 + $0x280] ss:$16 sps:$4 sm:$0xff]  }
  0x70   : > { %1670 = vmatmul.mubr.bf16.gmra.mxu1 %v3171_v52  ;;  %1388 = vmatprep.mubr.bf16.mxu0 %v3172_v53  ;;  %v3267_v52 = vld [vmem:[%s3448_s26 + $0x288] ss:$16 sps:$4 sm:$0xff]   ;;  %v3268_v53 = vld [vmem:[%s3448_s26 + $0x2a4] ss:$16 sps:$4 sm:$0xff]  }
  0x71   : > { %1677 = vmatprep.mubr.bf16.mxu1 %v3174_v54  ;;  %v3270_v54 = vld [vmem:[%s3448_s26 + $0x2ac] ss:$16 sps:$4 sm:$0xff]  }
  0x77   : > { %1389 = vmatmul.mubr.bf16.gmra.mxu0 %v3176_v55  ;;  %v3272_v55 = vld [vmem:[%s3448_s26 + $0x2a0] ss:$16 sps:$4 sm:$0xff]  }
  0x78   : > { %1678 = vmatmul.mubr.bf16.gmra.mxu1 %v3177_v56  ;;  %1396 = vmatprep.mubr.bf16.mxu0 %v3178_v57  ;;  %v3273_v56 = vld [vmem:[%s3448_s26 + $0x2a8] ss:$16 sps:$4 sm:$0xff]   ;;  %v3274_v57 = vld [vmem:[%s3448_s26 + $0x2c4] ss:$16 sps:$4 sm:$0xff]  }
  0x79   : > { %1685 = vmatprep.mubr.bf16.mxu1 %v3180_v58  ;;  %v3276_v58 = vld [vmem:[%s3448_s26 + $0x2cc] ss:$16 sps:$4 sm:$0xff]  }
  0x7f   : > { %1397 = vmatmul.mubr.bf16.gmra.mxu0 %v3182_v59  ;;  %v3278_v59 = vld [vmem:[%s3448_s26 + $0x2c0] ss:$16 sps:$4 sm:$0xff]  }
  0x80   : > { %1686 = vmatmul.mubr.bf16.gmra.mxu1 %v3183_v60  ;;  %1404 = vmatprep.mubr.bf16.mxu0 %v3184_v61  ;;  %v3279_v60 = vld [vmem:[%s3448_s26 + $0x2c8] ss:$16 sps:$4 sm:$0xff]   ;;  %v3280_v61 = vld [vmem:[%s3448_s26 + $0x2e4] ss:$16 sps:$4 sm:$0xff]  }
  0x81   : > { %1693 = vmatprep.mubr.bf16.mxu1 %v3186_v62  ;;  %v3282_v62 = vld [vmem:[%s3448_s26 + $0x2ec] ss:$16 sps:$4 sm:$0xff]  }
  0x87   : > { %1405 = vmatmul.mubr.bf16.gmra.mxu0 %v3188_v63  ;;  %v3284_v63 = vld [vmem:[%s3448_s26 + $0x2e0] ss:$16 sps:$4 sm:$0xff]  }
  0x88   : > { %1694 = vmatmul.mubr.bf16.gmra.mxu1 %v3189_v0  ;;  %1412 = vmatprep.mubr.bf16.mxu0 %v3190_v1  ;;  %v3285_v0 = vld [vmem:[%s3448_s26 + $0x2e8] ss:$16 sps:$4 sm:$0xff]   ;;  %v3286_v1 = vld [vmem:[%s3448_s26 + $0x304] ss:$16 sps:$4 sm:$0xff]  }
  0x89   : > { %1701 = vmatprep.mubr.bf16.mxu1 %v3192_v2  ;;  %v3288_v2 = vld [vmem:[%s3448_s26 + $0x30c] ss:$16 sps:$4 sm:$0xff]  }
  0x8f   : > { %1413 = vmatmul.mubr.bf16.gmra.mxu0 %v3194_v3  ;;  %v3290_v3 = vld [vmem:[%s3448_s26 + $0x300] ss:$16 sps:$4 sm:$0xff]  }
  0x90   : > { %1702 = vmatmul.mubr.bf16.gmra.mxu1 %v3195_v4  ;;  %1420 = vmatprep.mubr.bf16.mxu0 %v3196_v5  ;;  %v3291_v4 = vld [vmem:[%s3448_s26 + $0x308] ss:$16 sps:$4 sm:$0xff]   ;;  %v3292_v5 = vld [vmem:[%s3448_s26 + $0x324] ss:$16 sps:$4 sm:$0xff]  }
  0x91   : > { %1709 = vmatprep.mubr.bf16.mxu1 %v3198_v6  ;;  %v3294_v6 = vld [vmem:[%s3448_s26 + $0x32c] ss:$16 sps:$4 sm:$0xff]  }
  0x97   : > { %1421 = vmatmul.mubr.bf16.gmra.mxu0 %v3200_v7 }
  0x98   : > { %1710 = vmatmul.mubr.bf16.gmra.mxu1 %v3201_v8  ;;  %1428 = vmatprep.mubr.bf16.mxu0 %v3202_v9 }
  0x99   : > { %1717 = vmatprep.mubr.bf16.mxu1 %v3204_v10 }
  0x9f   : > { %1429 = vmatmul.mubr.bf16.gmra.mxu0 %v3206_v11 }
  0xa0   : > { %1718 = vmatmul.mubr.bf16.gmra.mxu1 %v3207_v12  ;;  %1436 = vmatprep.mubr.bf16.mxu0 %v3208_v13  ;;  %v3296_v13 = vld [vmem:[%s3448_s26 + $0x320] ss:$16 sps:$4 sm:$0xff]  }
  0xa1   : > { %1725 = vmatprep.mubr.bf16.mxu1 %v3210_v14 }
  0xa7   : > { %1437 = vmatmul.mubr.bf16.gmra.mxu0 %v3212_v15  ;;  %v3297_v15 = vld [vmem:[%s3448_s26 + $0x328] ss:$16 sps:$4 sm:$0xff]  }
  0xa8   : > { %1726 = vmatmul.mubr.bf16.gmra.mxu1 %v3213_v16  ;;  %1444 = vmatprep.mubr.bf16.mxu0 %v3214_v17  ;;  %v3298_v16 = vld [vmem:[%s3448_s26 + $0x344] ss:$16 sps:$4 sm:$0xff]  }
  0xa9   : > { %1733 = vmatprep.mubr.bf16.mxu1 %v3216_v18 }
  0xaf   : > { %1445 = vmatmul.mubr.bf16.gmra.mxu0 %v3218_v19  ;;  %v3300_v19 = vld [vmem:[%s3448_s26 + $0x34c] ss:$16 sps:$4 sm:$0xff]  }
  0xb0   : > { %1734 = vmatmul.mubr.bf16.gmra.mxu1 %v3219_v20  ;;  %1452 = vmatprep.mubr.bf16.mxu0 %v3220_v21 }
  0xb1   : > { %1741 = vmatprep.mubr.bf16.mxu1 %v3222_v22 }
  0xb7   : > { %1453 = vmatmul.mubr.bf16.gmra.mxu0 %v3224_v23 }
  0xb8   : > { %1742 = vmatmul.mubr.bf16.gmra.mxu1 %v3225_v24  ;;  %1460 = vmatprep.mubr.bf16.mxu0 %v3226_v25 }
  0xb9   : > { %1749 = vmatprep.mubr.bf16.mxu1 %v3228_v26 }
  0xbf   : > { %1461 = vmatmul.mubr.bf16.gmra.mxu0 %v3230_v27 }
  0xc0   : > { %1750 = vmatmul.mubr.bf16.gmra.mxu1 %v3231_v28  ;;  %1468 = vmatprep.mubr.bf16.mxu0 %v3232_v29 }
  0xc1   : > { %1757 = vmatprep.mubr.bf16.mxu1 %v3234_v30 }
  0xc7   : > { %1469 = vmatmul.mubr.bf16.gmra.mxu0 %v3236_v31 }
  0xc8   : > { %1758 = vmatmul.mubr.bf16.gmra.mxu1 %v3237_v32  ;;  %1476 = vmatprep.mubr.bf16.mxu0 %v3238_v33 }
  0xc9   : > { %1765 = vmatprep.mubr.bf16.mxu1 %v3240_v34  ;;  %v3302_v34 = vld [vmem:[%s3448_s26 + $0x340] ss:$16 sps:$4 sm:$0xff]  }
  0xcf   : > { %1477 = vmatmul.mubr.bf16.gmra.mxu0 %v3242_v35 }
  0xd0   : > { %1766 = vmatmul.mubr.bf16.gmra.mxu1 %v3243_v36  ;;  %1484 = vmatprep.mubr.bf16.mxu0 %v3244_v37  ;;  %v3303_v36 = vld [vmem:[%s3448_s26 + $0x348] ss:$16 sps:$4 sm:$0xff]   ;;  %v3304_v37 = vld [vmem:[%s3448_s26 + $0x364] ss:$16 sps:$4 sm:$0xff]  }
  0xd1   : > { %1773 = vmatprep.mubr.bf16.mxu1 %v3246_v38 }
  0xd7   : > { %1485 = vmatmul.mubr.bf16.gmra.mxu0 %v3248_v39 }
  0xd8   : > { %1774 = vmatmul.mubr.bf16.gmra.mxu1 %v3249_v40  ;;  %1492 = vmatprep.mubr.bf16.mxu0 %v3250_v41  ;;  %v3306_v41 = vld [vmem:[%s3448_s26 + $0x36c] ss:$16 sps:$4 sm:$0xff]  }
  0xd9   : > { %1781 = vmatprep.mubr.bf16.mxu1 %v3252_v42 }
  0xdf   : > { %1493 = vmatmul.mubr.bf16.gmra.mxu0 %v3254_v43 }
  0xe0   : > { %1782 = vmatmul.mubr.bf16.gmra.mxu1 %v3255_v44  ;;  %1500 = vmatprep.mubr.bf16.mxu0 %v3256_v45 }
  0xe1   : > { %1789 = vmatprep.mubr.bf16.mxu1 %v3258_v46 }
  0xe7   : > { %1501 = vmatmul.mubr.bf16.gmra.mxu0 %v3260_v47 }
  0xe8   : > { %1790 = vmatmul.mubr.bf16.gmra.mxu1 %v3261_v48  ;;  %1508 = vmatprep.mubr.bf16.mxu0 %v3262_v49 }
  0xe9   : > { %1797 = vmatprep.mubr.bf16.mxu1 %v3264_v50 }
  0xef   : > { %1509 = vmatmul.mubr.bf16.gmra.mxu0 %v3266_v51 }
  0xf0   : > { %1798 = vmatmul.mubr.bf16.gmra.mxu1 %v3267_v52  ;;  %1516 = vmatprep.mubr.bf16.mxu0 %v3268_v53 }
  0xf1   : > { %1805 = vmatprep.mubr.bf16.mxu1 %v3270_v54 }
  0xf7   : > { %1517 = vmatmul.mubr.bf16.gmra.mxu0 %v3272_v55  ;;  %v3308_v55 = vld [vmem:[%s3448_s26 + $0x360] ss:$16 sps:$4 sm:$0xff]  }
  0xf8   : > { %1806 = vmatmul.mubr.bf16.gmra.mxu1 %v3273_v56  ;;  %1524 = vmatprep.mubr.bf16.mxu0 %v3274_v57  ;;  %v3309_v57 = vld [vmem:[%s3448_s26 + $0x368] ss:$16 sps:$4 sm:$0xff]  }
  0xf9   : > { %1813 = vmatprep.mubr.bf16.mxu1 %v3276_v58  ;;  %v3312_v58 = vld [vmem:[%s3448_s26 + $0x384] ss:$16 sps:$4 sm:$0xff]  }
  0xff   : > { %1525 = vmatmul.mubr.bf16.gmra.mxu0 %v3278_v59 }
 0x100   : > { %1814 = vmatmul.mubr.bf16.gmra.mxu1 %v3279_v60  ;;  %1532 = vmatprep.mubr.bf16.mxu0 %v3280_v61 }
 0x101   : > { %1821 = vmatprep.mubr.bf16.mxu1 %v3282_v62  ;;  %v3315_v62 = vld [vmem:[%s3448_s26 + $0x38c] ss:$16 sps:$4 sm:$0xff]  }
 0x107   : > { %1533 = vmatmul.mubr.bf16.gmra.mxu0 %v3284_v63 }
 0x108   : > { %1822 = vmatmul.mubr.bf16.gmra.mxu1 %v3285_v0  ;;  %1540 = vmatprep.mubr.bf16.mxu0 %v3286_v1 }
 0x109   : > { %1829 = vmatprep.mubr.bf16.mxu1 %v3288_v2 }
 0x10f   : > { %v1350_v7 = vpop.f32.mrf.mxu0  ;;  %1541 = vmatmul.mubr.bf16.gmra.mxu0 %v3290_v3 }
 0x110   : > { %v1639_v8 = vpop.f32.mrf.mxu1  ;;  %1830 = vmatmul.mubr.bf16.gmra.mxu1 %v3291_v4  ;;  %1548 = vmatprep.mubr.bf16.mxu0 %v3292_v5 }
 0x111   : > { %v1352_v9 = vpop.f32.mrf.mxu0  ;;  %1837 = vmatprep.mubr.bf16.mxu1 %v3294_v6  ;;  %v1640_v11 = vadd.f32 %v1639_v8, %v1350_v7 }
 0x112   : > { %v1641_v10 = vpop.f32.mrf.mxu1 }
 0x113   : > { %v1353_v12 = vpop.f32.mrf.mxu0  ;;  %v2283_v21 = vmul.f32 %v1640_v11, %v1640_v11 }
 0x114   : > { %v1642_v14 = vpop.f32.mrf.mxu1 }
 0x115   : > { %v1643_v17 = vadd.f32 %v1642_v14, %v1353_v12  ;;  %v1355_v18 = vpop.f32.mrf.mxu0  ;;  %v3310_v12 = vld [vmem:[%s3448_s26 + $0x380] ss:$16 sps:$4 sm:$0xff]   ;;  %v3313_v14 = vld [vmem:[%s3448_s26 + $0x388] ss:$16 sps:$4 sm:$0xff]  }
 0x116   : > { %v1644_v20 = vpop.f32.mrf.mxu1 }
 0x117   : > { %v2897_v22 = vpack.c.bf16 %v1643_v17, %v1640_v11  ;;  %v2214_v23 = vadd.f32 %v1643_v17, %v1640_v11  ;;  %v2284_v24 = vmul.f32 %v1643_v17, %v1643_v17  ;;  %v1358_v25 = vpop.f32.mrf.mxu0  ;;  %1549 = vmatmul.mubr.bf16.gmra.mxu0 %v3296_v13 }
 0x118   : > { %v1647_v26 = vpop.f32.mrf.mxu1  ;;  %1838 = vmatmul.mubr.bf16.gmra.mxu1 %v3297_v15  ;;  %1556 = vmatprep.mubr.bf16.mxu0 %v3298_v16  ;;  %v3318_v15 = vld [vmem:[%s3448_s26 + $0x3a4] ss:$16 sps:$4 sm:$0xff]  }
 0x119   : > { %2898 = vst [vmem:[%s3593_s29] sm:$0xff] %v2897_v22   ;;  %v2347_v27 = vadd.f32 %v2284_v24, %v2283_v21  ;;  %v1648_v28 = vadd.f32 %v1647_v26, %v1358_v25  ;;  %v1360_v29 = vpop.f32.mrf.mxu0  ;;  %1845 = vmatprep.mubr.bf16.mxu1 %v3300_v19  ;;  %v3321_v19 = vld [vmem:[%s3448_s26 + $0x3ac] ss:$16 sps:$4 sm:$0xff]  }
 0x11a   : > { %v1649_v30 = vpop.f32.mrf.mxu1 }
 0x11b   : > { %v2215_v31 = vadd.f32 %v2214_v23, %v1648_v28  ;;  %v2285_v32 = vmul.f32 %v1648_v28, %v1648_v28  ;;  %v1361_v33 = vpop.f32.mrf.mxu0 }
 0x11c   : > { %v1650_v35 = vpop.f32.mrf.mxu1 }
 0x11d   : > { %v2348_v38 = vadd.f32 %v2347_v27, %v2285_v32  ;;  %v1651_v39 = vadd.f32 %v1650_v35, %v1361_v33  ;;  %v1363_v40 = vpop.f32.mrf.mxu0  ;;  %v3316_v33 = vld [vmem:[%s3448_s26 + $0x3a0] ss:$16 sps:$4 sm:$0xff]   ;;  %v3319_v35 = vld [vmem:[%s3448_s26 + $0x3a8] ss:$16 sps:$4 sm:$0xff]  }
 0x11e   : > { %v1652_v42 = vpop.f32.mrf.mxu1  ;;  %v3327_v40 = vld [vmem:[%s3448_s26 + $0x3cc] ss:$16 sps:$4 sm:$0xff]  }
 0x11f   : > { %v2902_v43 = vpack.c.bf16 %v1651_v39, %v1648_v28  ;;  %v2216_v44 = vadd.f32 %v2215_v31, %v1651_v39  ;;  %v2286_v45 = vmul.f32 %v1651_v39, %v1651_v39  ;;  %v1366_v46 = vpop.f32.mrf.mxu0  ;;  %1557 = vmatmul.mubr.bf16.gmra.mxu0 %v3302_v34 }
 0x120   : > { %v1655_v47 = vpop.f32.mrf.mxu1  ;;  %1846 = vmatmul.mubr.bf16.gmra.mxu1 %v3303_v36  ;;  %1564 = vmatprep.mubr.bf16.mxu0 %v3304_v37  ;;  %v3324_v36 = vld [vmem:[%s3448_s26 + $0x3c4] ss:$16 sps:$4 sm:$0xff]  }
 0x121   : > { %3054 = vst [vmem:[%s3593_s29 + $0x8] sm:$0xff] %v2902_v43   ;;  %v2349_v48 = vadd.f32 %v2348_v38, %v2286_v45  ;;  %v1656_v49 = vadd.f32 %v1655_v47, %v1366_v46  ;;  %v1368_v50 = vpop.f32.mrf.mxu0  ;;  %1853 = vmatprep.mubr.bf16.mxu1 %v3306_v41 }
 0x122   : > { %v1657_v51 = vpop.f32.mrf.mxu1 }
 0x123   : > { %v2217_v52 = vadd.f32 %v2216_v44, %v1656_v49  ;;  %v2287_v53 = vmul.f32 %v1656_v49, %v1656_v49  ;;  %v1369_v54 = vpop.f32.mrf.mxu0 }
 0x124   : > { %v1658_v56 = vpop.f32.mrf.mxu1 }
 0x125   : > { %v2350_v59 = vadd.f32 %v2349_v48, %v2287_v53  ;;  %v1659_v60 = vadd.f32 %v1658_v56, %v1369_v54  ;;  %v1371_v61 = vpop.f32.mrf.mxu0  ;;  %v3322_v54 = vld [vmem:[%s3448_s26 + $0x3c0] ss:$16 sps:$4 sm:$0xff]   ;;  %v3325_v56 = vld [vmem:[%s3448_s26 + $0x3c8] ss:$16 sps:$4 sm:$0xff]  }
 0x126   : > { %v1660_v63 = vpop.f32.mrf.mxu1  ;;  %v3333_v61 = vld [vmem:[%s3448_s26 + $0x3ec] ss:$16 sps:$4 sm:$0xff]  }
 0x127   : > { %v2907_v0 = vpack.c.bf16 %v1659_v60, %v1656_v49  ;;  %v2218_v1 = vadd.f32 %v2217_v52, %v1659_v60  ;;  %v2288_v2 = vmul.f32 %v1659_v60, %v1659_v60  ;;  %v1374_v3 = vpop.f32.mrf.mxu0  ;;  %1565 = vmatmul.mubr.bf16.gmra.mxu0 %v3308_v55 }
 0x128   : > { %v1663_v4 = vpop.f32.mrf.mxu1  ;;  %1854 = vmatmul.mubr.bf16.gmra.mxu1 %v3309_v57  ;;  %1572 = vmatprep.mubr.bf16.mxu0 %v3312_v58  ;;  %v3330_v57 = vld [vmem:[%s3448_s26 + $0x3e4] ss:$16 sps:$4 sm:$0xff]  }
 0x129   : > { %3055 = vst [vmem:[%s3593_s29 + $0x10] sm:$0xff] %v2907_v0   ;;  %v2351_v5 = vadd.f32 %v2350_v59, %v2288_v2  ;;  %v1664_v6 = vadd.f32 %v1663_v4, %v1374_v3  ;;  %v1376_v7 = vpop.f32.mrf.mxu0  ;;  %1861 = vmatprep.mubr.bf16.mxu1 %v3315_v62 }
 0x12a   : > { %v1665_v8 = vpop.f32.mrf.mxu1 }
 0x12b   : > { %v2219_v9 = vadd.f32 %v2218_v1, %v1664_v6  ;;  %v2289_v10 = vmul.f32 %v1664_v6, %v1664_v6  ;;  %v1377_v11 = vpop.f32.mrf.mxu0 }
 0x12c   : > { %v1666_v13 = vpop.f32.mrf.mxu1 }
 0x12d   : > { %v2352_v16 = vadd.f32 %v2351_v5, %v2289_v10  ;;  %v1667_v17 = vadd.f32 %v1666_v13, %v1377_v11  ;;  %v1379_v18 = vpop.f32.mrf.mxu0  ;;  %v3328_v11 = vld [vmem:[%s3448_s26 + $0x3e0] ss:$16 sps:$4 sm:$0xff]   ;;  %v3331_v13 = vld [vmem:[%s3448_s26 + $0x3e8] ss:$16 sps:$4 sm:$0xff]  }
 0x12e   : > { %v1668_v20 = vpop.f32.mrf.mxu1 }
 0x12f   : > { %v2912_v21 = vpack.c.bf16 %v1667_v17, %v1664_v6  ;;  %v2220_v22 = vadd.f32 %v2219_v9, %v1667_v17  ;;  %v2290_v23 = vmul.f32 %v1667_v17, %v1667_v17  ;;  %v1382_v24 = vpop.f32.mrf.mxu0  ;;  %1573 = vmatmul.mubr.bf16.gmra.mxu0 %v3310_v12 }
 0x130   : > { %v1671_v25 = vpop.f32.mrf.mxu1  ;;  %1862 = vmatmul.mubr.bf16.gmra.mxu1 %v3313_v14  ;;  %1580 = vmatprep.mubr.bf16.mxu0 %v3318_v15 }
 0x131   : > { %3056 = vst [vmem:[%s3593_s29 + $0x18] sm:$0xff] %v2912_v21   ;;  %v2353_v26 = vadd.f32 %v2352_v16, %v2290_v23  ;;  %v1672_v27 = vadd.f32 %v1671_v25, %v1382_v24  ;;  %v1384_v28 = vpop.f32.mrf.mxu0  ;;  %1869 = vmatprep.mubr.bf16.mxu1 %v3321_v19 }
 0x132   : > { %v1673_v29 = vpop.f32.mrf.mxu1 }
 0x133   : > { %v2221_v30 = vadd.f32 %v2220_v22, %v1672_v27  ;;  %v2291_v31 = vmul.f32 %v1672_v27, %v1672_v27  ;;  %v1385_v32 = vpop.f32.mrf.mxu0 }
 0x134   : > { %v1674_v34 = vpop.f32.mrf.mxu1 }
 0x135   : > { %v2354_v37 = vadd.f32 %v2353_v26, %v2291_v31  ;;  %v1675_v38 = vadd.f32 %v1674_v34, %v1385_v32  ;;  %v1387_v39 = vpop.f32.mrf.mxu0 }
 0x136   : > { %v1676_v41 = vpop.f32.mrf.mxu1 }
 0x137   : > { %v2917_v42 = vpack.c.bf16 %v1675_v38, %v1672_v27  ;;  %v2222_v43 = vadd.f32 %v2221_v30, %v1675_v38  ;;  %v2292_v44 = vmul.f32 %v1675_v38, %v1675_v38  ;;  %v1390_v45 = vpop.f32.mrf.mxu0  ;;  %1581 = vmatmul.mubr.bf16.gmra.mxu0 %v3316_v33 }
 0x138   : > { %v1679_v46 = vpop.f32.mrf.mxu1  ;;  %1870 = vmatmul.mubr.bf16.gmra.mxu1 %v3319_v35  ;;  %1588 = vmatprep.mubr.bf16.mxu0 %v3324_v36 }
 0x139   : > { %3057 = vst [vmem:[%s3593_s29 + $0x20] sm:$0xff] %v2917_v42   ;;  %v2355_v47 = vadd.f32 %v2354_v37, %v2292_v44  ;;  %v1680_v48 = vadd.f32 %v1679_v46, %v1390_v45  ;;  %v1392_v49 = vpop.f32.mrf.mxu0  ;;  %1877 = vmatprep.mubr.bf16.mxu1 %v3327_v40 }
 0x13a   : > { %v1681_v50 = vpop.f32.mrf.mxu1 }
 0x13b   : > { %v2223_v51 = vadd.f32 %v2222_v43, %v1680_v48  ;;  %v2293_v52 = vmul.f32 %v1680_v48, %v1680_v48  ;;  %v1393_v53 = vpop.f32.mrf.mxu0 }
 0x13c   : > { %v1682_v55 = vpop.f32.mrf.mxu1 }
 0x13d   : > { %v2356_v58 = vadd.f32 %v2355_v47, %v2293_v52  ;;  %v1683_v59 = vadd.f32 %v1682_v55, %v1393_v53  ;;  %v1395_v60 = vpop.f32.mrf.mxu0 }
 0x13e   : > { %v1684_v62 = vpop.f32.mrf.mxu1 }
 0x13f   : > { %v2922_v63 = vpack.c.bf16 %v1683_v59, %v1680_v48  ;;  %v2224_v0 = vadd.f32 %v2223_v51, %v1683_v59  ;;  %v2294_v1 = vmul.f32 %v1683_v59, %v1683_v59  ;;  %v1398_v2 = vpop.f32.mrf.mxu0  ;;  %1589 = vmatmul.mubr.bf16.gmra.mxu0 %v3322_v54 }
 0x140   : > { %v1687_v3 = vpop.f32.mrf.mxu1  ;;  %1878 = vmatmul.mubr.bf16.gmra.mxu1 %v3325_v56  ;;  %1596 = vmatprep.mubr.bf16.mxu0 %v3330_v57 }
 0x141   : > { %3058 = vst [vmem:[%s3593_s29 + $0x28] sm:$0xff] %v2922_v63   ;;  %v2357_v4 = vadd.f32 %v2356_v58, %v2294_v1  ;;  %v1688_v5 = vadd.f32 %v1687_v3, %v1398_v2  ;;  %v1400_v6 = vpop.f32.mrf.mxu0  ;;  %1885 = vmatprep.mubr.bf16.mxu1 %v3333_v61 }
 0x142   : > { %v1689_v7 = vpop.f32.mrf.mxu1 }
 0x143   : > { %v2225_v8 = vadd.f32 %v2224_v0, %v1688_v5  ;;  %v2295_v9 = vmul.f32 %v1688_v5, %v1688_v5  ;;  %v1401_v10 = vpop.f32.mrf.mxu0 }
 0x144   : > { %v1690_v12 = vpop.f32.mrf.mxu1 }
 0x145   : > { %v2358_v14 = vadd.f32 %v2357_v4, %v2295_v9  ;;  %v1691_v15 = vadd.f32 %v1690_v12, %v1401_v10  ;;  %v1403_v16 = vpop.f32.mrf.mxu0 }
 0x146   : > { %v1692_v17 = vpop.f32.mrf.mxu1 }
 0x147   : > { %v2927_v18 = vpack.c.bf16 %v1691_v15, %v1688_v5  ;;  %v2226_v19 = vadd.f32 %v2225_v8, %v1691_v15  ;;  %v2296_v20 = vmul.f32 %v1691_v15, %v1691_v15  ;;  %v1406_v21 = vpop.f32.mrf.mxu0  ;;  %1597 = vmatmul.mubr.bf16.gmra.mxu0 %v3328_v11 }
 0x148   : > { %v1695_v22 = vpop.f32.mrf.mxu1  ;;  %1886 = vmatmul.mubr.bf16.gmra.mxu1 %v3331_v13 }
 0x149   : > { %3059 = vst [vmem:[%s3593_s29 + $0x30] sm:$0xff] %v2927_v18   ;;  %v2359_v23 = vadd.f32 %v2358_v14, %v2296_v20  ;;  %v1696_v24 = vadd.f32 %v1695_v22, %v1406_v21  ;;  %v1408_v25 = vpop.f32.mrf.mxu0 }
 0x14a   : > { %v1697_v26 = vpop.f32.mrf.mxu1 }
 0x14b   : > { %v2227_v27 = vadd.f32 %v2226_v19, %v1696_v24  ;;  %v2297_v28 = vmul.f32 %v1696_v24, %v1696_v24  ;;  %v1409_v29 = vpop.f32.mrf.mxu0 }
 0x14c   : > { %v1698_v30 = vpop.f32.mrf.mxu1 }
 0x14d   : > { %v2360_v31 = vadd.f32 %v2359_v23, %v2297_v28  ;;  %v1699_v32 = vadd.f32 %v1698_v30, %v1409_v29  ;;  %v1411_v33 = vpop.f32.mrf.mxu0 }
 0x14e   : > { %v1700_v34 = vpop.f32.mrf.mxu1 }
 0x14f   : > { %v2932_v35 = vpack.c.bf16 %v1699_v32, %v1696_v24  ;;  %v2228_v36 = vadd.f32 %v2227_v27, %v1699_v32  ;;  %v2298_v37 = vmul.f32 %v1699_v32, %v1699_v32  ;;  %v1414_v38 = vpop.f32.mrf.mxu0 }
 0x150   : > { %v1703_v39 = vpop.f32.mrf.mxu1 }
 0x151   : > { %3060 = vst [vmem:[%s3593_s29 + $0x38] sm:$0xff] %v2932_v35   ;;  %v2361_v40 = vadd.f32 %v2360_v31, %v2298_v37  ;;  %v1704_v41 = vadd.f32 %v1703_v39, %v1414_v38  ;;  %v1416_v42 = vpop.f32.mrf.mxu0 }
 0x152   : > { %v1705_v43 = vpop.f32.mrf.mxu1 }
 0x153   : > { %v2229_v44 = vadd.f32 %v2228_v36, %v1704_v41  ;;  %v2299_v45 = vmul.f32 %v1704_v41, %v1704_v41  ;;  %v1417_v46 = vpop.f32.mrf.mxu0 }
 0x154   : > { %v1706_v47 = vpop.f32.mrf.mxu1 }
 0x155   : > { %v2362_v48 = vadd.f32 %v2361_v40, %v2299_v45  ;;  %v1707_v49 = vadd.f32 %v1706_v47, %v1417_v46  ;;  %v1419_v50 = vpop.f32.mrf.mxu0 }
 0x156   : > { %v1708_v51 = vpop.f32.mrf.mxu1 }
 0x157   : > { %v2937_v52 = vpack.c.bf16 %v1707_v49, %v1704_v41  ;;  %v2230_v53 = vadd.f32 %v2229_v44, %v1707_v49  ;;  %v2300_v54 = vmul.f32 %v1707_v49, %v1707_v49  ;;  %v1422_v55 = vpop.f32.mrf.mxu0 }
 0x158   : > { %v1711_v56 = vpop.f32.mrf.mxu1 }
 0x159   : > { %3061 = vst [vmem:[%s3593_s29 + $0x40] sm:$0xff] %v2937_v52   ;;  %v2363_v57 = vadd.f32 %v2362_v48, %v2300_v54  ;;  %v1712_v58 = vadd.f32 %v1711_v56, %v1422_v55  ;;  %v1424_v59 = vpop.f32.mrf.mxu0 }
 0x15a   : > { %v1713_v60 = vpop.f32.mrf.mxu1 }
 0x15b   : > { %v2231_v61 = vadd.f32 %v2230_v53, %v1712_v58  ;;  %v2301_v62 = vmul.f32 %v1712_v58, %v1712_v58  ;;  %v1425_v63 = vpop.f32.mrf.mxu0 }
 0x15c   : > { %v1714_v0 = vpop.f32.mrf.mxu1 }
 0x15d   : > { %v2364_v1 = vadd.f32 %v2363_v57, %v2301_v62  ;;  %v1715_v2 = vadd.f32 %v1714_v0, %v1425_v63  ;;  %v1427_v3 = vpop.f32.mrf.mxu0 }
 0x15e   : > { %v1716_v4 = vpop.f32.mrf.mxu1 }
 0x15f   : > { %v2942_v5 = vpack.c.bf16 %v1715_v2, %v1712_v58  ;;  %v2232_v6 = vadd.f32 %v2231_v61, %v1715_v2  ;;  %v2302_v7 = vmul.f32 %v1715_v2, %v1715_v2  ;;  %v1430_v8 = vpop.f32.mrf.mxu0 }
 0x160   : > { %v1719_v9 = vpop.f32.mrf.mxu1 }
 0x161   : > { %3062 = vst [vmem:[%s3593_s29 + $0x48] sm:$0xff] %v2942_v5   ;;  %v2365_v10 = vadd.f32 %v2364_v1, %v2302_v7  ;;  %v1720_v11 = vadd.f32 %v1719_v9, %v1430_v8  ;;  %v1432_v12 = vpop.f32.mrf.mxu0 }
 0x162   : > { %v1721_v13 = vpop.f32.mrf.mxu1 }
 0x163   : > { %v2233_v14 = vadd.f32 %v2232_v6, %v1720_v11  ;;  %v2303_v15 = vmul.f32 %v1720_v11, %v1720_v11  ;;  %v1433_v16 = vpop.f32.mrf.mxu0 }
 0x164   : > { %v1722_v17 = vpop.f32.mrf.mxu1 }
 0x165   : > { %v2366_v18 = vadd.f32 %v2365_v10, %v2303_v15  ;;  %v1723_v19 = vadd.f32 %v1722_v17, %v1433_v16  ;;  %v1435_v20 = vpop.f32.mrf.mxu0 }
 0x166   : > { %v1724_v21 = vpop.f32.mrf.mxu1 }
 0x167   : > { %v2947_v22 = vpack.c.bf16 %v1723_v19, %v1720_v11  ;;  %v2234_v23 = vadd.f32 %v2233_v14, %v1723_v19  ;;  %v2304_v24 = vmul.f32 %v1723_v19, %v1723_v19  ;;  %v1438_v25 = vpop.f32.mrf.mxu0 }
 0x168   : > { %v1727_v26 = vpop.f32.mrf.mxu1 }
 0x169   : > { %3063 = vst [vmem:[%s3593_s29 + $0x50] sm:$0xff] %v2947_v22   ;;  %v2367_v27 = vadd.f32 %v2366_v18, %v2304_v24  ;;  %v1728_v28 = vadd.f32 %v1727_v26, %v1438_v25  ;;  %v1440_v29 = vpop.f32.mrf.mxu0 }
 0x16a   : > { %v1729_v30 = vpop.f32.mrf.mxu1 }
 0x16b   : > { %v2235_v31 = vadd.f32 %v2234_v23, %v1728_v28  ;;  %v2305_v32 = vmul.f32 %v1728_v28, %v1728_v28  ;;  %v1441_v33 = vpop.f32.mrf.mxu0 }
 0x16c   : > { %v1730_v34 = vpop.f32.mrf.mxu1 }
 0x16d   : > { %v2368_v35 = vadd.f32 %v2367_v27, %v2305_v32  ;;  %v1731_v36 = vadd.f32 %v1730_v34, %v1441_v33  ;;  %v1443_v37 = vpop.f32.mrf.mxu0 }
 0x16e   : > { %v1732_v38 = vpop.f32.mrf.mxu1 }
 0x16f   : > { %v2952_v39 = vpack.c.bf16 %v1731_v36, %v1728_v28  ;;  %v2236_v40 = vadd.f32 %v2235_v31, %v1731_v36  ;;  %v2306_v41 = vmul.f32 %v1731_v36, %v1731_v36  ;;  %v1446_v42 = vpop.f32.mrf.mxu0 }
 0x170   : > { %v1735_v43 = vpop.f32.mrf.mxu1 }
 0x171   : > { %3064 = vst [vmem:[%s3593_s29 + $0x58] sm:$0xff] %v2952_v39   ;;  %v2369_v44 = vadd.f32 %v2368_v35, %v2306_v41  ;;  %v1736_v45 = vadd.f32 %v1735_v43, %v1446_v42  ;;  %v1448_v46 = vpop.f32.mrf.mxu0 }
 0x172   : > { %v1737_v47 = vpop.f32.mrf.mxu1 }
 0x173   : > { %v2237_v48 = vadd.f32 %v2236_v40, %v1736_v45  ;;  %v2307_v49 = vmul.f32 %v1736_v45, %v1736_v45  ;;  %v1449_v50 = vpop.f32.mrf.mxu0 }
 0x174   : > { %v1738_v51 = vpop.f32.mrf.mxu1 }
 0x175   : > { %v2370_v52 = vadd.f32 %v2369_v44, %v2307_v49  ;;  %v1739_v53 = vadd.f32 %v1738_v51, %v1449_v50  ;;  %v1451_v54 = vpop.f32.mrf.mxu0 }
 0x176   : > { %v1740_v55 = vpop.f32.mrf.mxu1 }
 0x177   : > { %v2957_v56 = vpack.c.bf16 %v1739_v53, %v1736_v45  ;;  %v2238_v57 = vadd.f32 %v2237_v48, %v1739_v53  ;;  %v2308_v58 = vmul.f32 %v1739_v53, %v1739_v53  ;;  %v1454_v59 = vpop.f32.mrf.mxu0 }
 0x178   : > { %v1743_v60 = vpop.f32.mrf.mxu1 }
 0x179   : > { %3065 = vst [vmem:[%s3593_s29 + $0x60] sm:$0xff] %v2957_v56   ;;  %v2371_v61 = vadd.f32 %v2370_v52, %v2308_v58  ;;  %v1744_v62 = vadd.f32 %v1743_v60, %v1454_v59  ;;  %v1456_v63 = vpop.f32.mrf.mxu0 }
 0x17a   : > { %v1745_v0 = vpop.f32.mrf.mxu1 }
 0x17b   : > { %v2239_v1 = vadd.f32 %v2238_v57, %v1744_v62  ;;  %v2309_v2 = vmul.f32 %v1744_v62, %v1744_v62  ;;  %v1457_v3 = vpop.f32.mrf.mxu0 }
 0x17c   : > { %v1746_v4 = vpop.f32.mrf.mxu1 }
 0x17d   : > { %v2372_v5 = vadd.f32 %v2371_v61, %v2309_v2  ;;  %v1747_v6 = vadd.f32 %v1746_v4, %v1457_v3  ;;  %v1459_v7 = vpop.f32.mrf.mxu0 }
 0x17e   : > { %v1748_v8 = vpop.f32.mrf.mxu1 }
 0x17f   : > { %v2962_v9 = vpack.c.bf16 %v1747_v6, %v1744_v62  ;;  %v2240_v10 = vadd.f32 %v2239_v1, %v1747_v6  ;;  %v2310_v11 = vmul.f32 %v1747_v6, %v1747_v6  ;;  %v1462_v12 = vpop.f32.mrf.mxu0 }
 0x180   : > { %v1751_v13 = vpop.f32.mrf.mxu1 }
 0x181   : > { %3066 = vst [vmem:[%s3593_s29 + $0x68] sm:$0xff] %v2962_v9   ;;  %v2373_v14 = vadd.f32 %v2372_v5, %v2310_v11  ;;  %v1752_v15 = vadd.f32 %v1751_v13, %v1462_v12  ;;  %v1464_v16 = vpop.f32.mrf.mxu0 }
 0x182   : > { %v1753_v17 = vpop.f32.mrf.mxu1 }
 0x183   : > { %v2241_v18 = vadd.f32 %v2240_v10, %v1752_v15  ;;  %v2311_v19 = vmul.f32 %v1752_v15, %v1752_v15  ;;  %v1465_v20 = vpop.f32.mrf.mxu0 }
 0x184   : > { %v1754_v21 = vpop.f32.mrf.mxu1 }
 0x185   : > { %v2374_v22 = vadd.f32 %v2373_v14, %v2311_v19  ;;  %v1755_v23 = vadd.f32 %v1754_v21, %v1465_v20  ;;  %v1467_v24 = vpop.f32.mrf.mxu0 }
 0x186   : > { %v1756_v25 = vpop.f32.mrf.mxu1 }
 0x187   : > { %v2967_v26 = vpack.c.bf16 %v1755_v23, %v1752_v15  ;;  %v2242_v27 = vadd.f32 %v2241_v18, %v1755_v23  ;;  %v2312_v28 = vmul.f32 %v1755_v23, %v1755_v23  ;;  %v1470_v29 = vpop.f32.mrf.mxu0 }
 0x188   : > { %v1759_v30 = vpop.f32.mrf.mxu1 }
 0x189   : > { %3067 = vst [vmem:[%s3593_s29 + $0x70] sm:$0xff] %v2967_v26   ;;  %v2375_v31 = vadd.f32 %v2374_v22, %v2312_v28  ;;  %v1760_v32 = vadd.f32 %v1759_v30, %v1470_v29  ;;  %v1472_v33 = vpop.f32.mrf.mxu0 }
 0x18a   : > { %v1761_v34 = vpop.f32.mrf.mxu1 }
 0x18b   : > { %v2313_v35 = vmul.f32 %v1760_v32, %v1760_v32  ;;  %v1473_v36 = vpop.f32.mrf.mxu0  ;;  %v2243_v38 = vadd.f32 %v2242_v27, %v1760_v32 }
 0x18c   : > { %v1762_v37 = vpop.f32.mrf.mxu1 }
 0x18d   : > { %v1763_v39 = vadd.f32 %v1762_v37, %v1473_v36  ;;  %v1475_v40 = vpop.f32.mrf.mxu0  ;;  %v2376_v42 = vadd.f32 %v2375_v31, %v2313_v35 }
 0x18e   : > { %v1764_v41 = vpop.f32.mrf.mxu1 }
 0x18f   : > { %v2972_v43 = vpack.c.bf16 %v1763_v39, %v1760_v32  ;;  %v3632_v44 = vadd.f32 %v2243_v38, %v1763_v39  ;;  %v2314_v45 = vmul.f32 %v1763_v39, %v1763_v39  ;;  %v1478_v46 = vpop.f32.mrf.mxu0 }
 0x190   : > { %v1767_v47 = vpop.f32.mrf.mxu1 }
 0x191   : > { %3068 = vst [vmem:[%s3593_s29 + $0x78] sm:$0xff] %v2972_v43   ;;  %v3635_v48 = vadd.f32 %v2376_v42, %v2314_v45  ;;  %v1480_v49 = vpop.f32.mrf.mxu0  ;;  %v3637_v53 = vadd.f32 %v1767_v47, %v1478_v46 }
 0x192   : > { %v1769_v50 = vpop.f32.mrf.mxu1 }
 0x193   : > { %v1481_v51 = vpop.f32.mrf.mxu0 }
 0x194   : > { %v1770_v52 = vpop.f32.mrf.mxu1 }
 0x195   : > { %v3639_v54 = vadd.f32 %v1770_v52, %v1481_v51  ;;  %v1483_v55 = vpop.f32.mrf.mxu0 }
 0x196   : > { %v1772_v56 = vpop.f32.mrf.mxu1 }
 0x197   : > { %v2977_v57 = vpack.c.bf16 %v3639_v54, %v3637_v53  ;;  %v1486_v58 = vpop.f32.mrf.mxu0 }
 0x198   : > { %v1775_v59 = vpop.f32.mrf.mxu1 }
 0x199   : > { %3069 = vst [vmem:[%s3593_s29 + $0x80] sm:$0xff] %v2977_v57   ;;  %v1488_v60 = vpop.f32.mrf.mxu0  ;;  %v3644_v0 = vadd.f32 %v1775_v59, %v1486_v58 }
 0x19a   : > { %v1777_v61 = vpop.f32.mrf.mxu1 }
 0x19b   : > { %v1489_v62 = vpop.f32.mrf.mxu0 }
 0x19c   : > { %v1778_v63 = vpop.f32.mrf.mxu1 }
 0x19d   : > { %v3646_v1 = vadd.f32 %v1778_v63, %v1489_v62  ;;  %v1491_v2 = vpop.f32.mrf.mxu0 }
 0x19e   : > { %v1780_v3 = vpop.f32.mrf.mxu1 }
 0x19f   : > { %v2982_v4 = vpack.c.bf16 %v3646_v1, %v3644_v0  ;;  %v1494_v5 = vpop.f32.mrf.mxu0 }
 0x1a0   : > { %v1783_v6 = vpop.f32.mrf.mxu1 }
 0x1a1   : > { %3070 = vst [vmem:[%s3593_s29 + $0x88] sm:$0xff] %v2982_v4   ;;  %v1496_v7 = vpop.f32.mrf.mxu0  ;;  %v3651_v11 = vadd.f32 %v1783_v6, %v1494_v5 }
 0x1a2   : > { %v1785_v8 = vpop.f32.mrf.mxu1 }
 0x1a3   : > { %v1497_v9 = vpop.f32.mrf.mxu0 }
 0x1a4   : > { %v1786_v10 = vpop.f32.mrf.mxu1 }
 0x1a5   : > { %v3653_v12 = vadd.f32 %v1786_v10, %v1497_v9  ;;  %v1499_v13 = vpop.f32.mrf.mxu0 }
 0x1a6   : > { %v1788_v14 = vpop.f32.mrf.mxu1  ;;  %v2315_v13 = vmul.f32 %v3637_v53, %v3637_v53 }
 0x1a7   : > { %v2987_v15 = vpack.c.bf16 %v3653_v12, %v3651_v11  ;;  %v1502_v16 = vpop.f32.mrf.mxu0 }
 0x1a8   : > { %v1791_v17 = vpop.f32.mrf.mxu1 }
 0x1a9   : > { %3071 = vst [vmem:[%s3593_s29 + $0x90] sm:$0xff] %v2987_v15   ;;  %v1504_v18 = vpop.f32.mrf.mxu0  ;;  %v3658_v22 = vadd.f32 %v1791_v17, %v1502_v16  ;;  %v2316_v17 = vmul.f32 %v3639_v54, %v3639_v54 }
 0x1aa   : > { %v1793_v19 = vpop.f32.mrf.mxu1 }
 0x1ab   : > { %v1505_v20 = vpop.f32.mrf.mxu0  ;;  %v2245_v19 = vadd.f32 %v3632_v44, %v3637_v53 }
 0x1ac   : > { %v1794_v21 = vpop.f32.mrf.mxu1 }
 0x1ad   : > { %v3660_v23 = vadd.f32 %v1794_v21, %v1505_v20  ;;  %v1507_v24 = vpop.f32.mrf.mxu0  ;;  %v2378_v21 = vadd.f32 %v3635_v48, %v2315_v13 }
 0x1ae   : > { %v1796_v25 = vpop.f32.mrf.mxu1  ;;  %v2317_v24 = vmul.f32 %v3644_v0, %v3644_v0 }
 0x1af   : > { %v2992_v26 = vpack.c.bf16 %v3660_v23, %v3658_v22  ;;  %v1510_v27 = vpop.f32.mrf.mxu0 }
 0x1b0   : > { %v1799_v28 = vpop.f32.mrf.mxu1 }
 0x1b1   : > { %3072 = vst [vmem:[%s3593_s29 + $0x98] sm:$0xff] %v2992_v26   ;;  %v1512_v29 = vpop.f32.mrf.mxu0  ;;  %v3665_v33 = vadd.f32 %v1799_v28, %v1510_v27  ;;  %v2246_v26 = vadd.f32 %v2245_v19, %v3639_v54  ;;  %v2379_v28 = vadd.f32 %v2378_v21, %v2316_v17 }
 0x1b2   : > { %v1801_v30 = vpop.f32.mrf.mxu1  ;;  %v2318_v29 = vmul.f32 %v3646_v1, %v3646_v1 }
 0x1b3   : > { %v1513_v31 = vpop.f32.mrf.mxu0 }
 0x1b4   : > { %v1802_v32 = vpop.f32.mrf.mxu1 }
 0x1b5   : > { %v3667_v34 = vadd.f32 %v1802_v32, %v1513_v31  ;;  %v1515_v35 = vpop.f32.mrf.mxu0  ;;  %v2247_v31 = vadd.f32 %v2246_v26, %v3644_v0  ;;  %v2380_v32 = vadd.f32 %v2379_v28, %v2317_v24  ;;  %v2320_v0 = vmul.f32 %v3653_v12, %v3653_v12 }
 0x1b6   : > { %v1804_v36 = vpop.f32.mrf.mxu1  ;;  %v2319_v35 = vmul.f32 %v3651_v11, %v3651_v11 }
 0x1b7   : > { %v2997_v37 = vpack.c.bf16 %v3667_v34, %v3665_v33  ;;  %v1518_v38 = vpop.f32.mrf.mxu0  ;;  %v2248_v54 = vadd.f32 %v2247_v31, %v3646_v1 }
 0x1b8   : > { %v1807_v39 = vpop.f32.mrf.mxu1 }
 0x1b9   : > { %3073 = vst [vmem:[%s3593_s29 + $0xa0] sm:$0xff] %v2997_v37   ;;  %v1520_v40 = vpop.f32.mrf.mxu0  ;;  %v3672_v45 = vadd.f32 %v1807_v39, %v1518_v38  ;;  %v2381_v39 = vadd.f32 %v2380_v32, %v2318_v29 }
 0x1ba   : > { %v1809_v41 = vpop.f32.mrf.mxu1 }
 0x1bb   : > { %v1521_v42 = vpop.f32.mrf.mxu0  ;;  %v2249_v41 = vadd.f32 %v2248_v54, %v3651_v11  ;;  %v2325_v13 = vmul.f32 %v3672_v45, %v3672_v45 }
 0x1bc   : > { %v1810_v43 = vpop.f32.mrf.mxu1 }
 0x1bd   : > { %v3674_v46 = vadd.f32 %v1810_v43, %v1521_v42  ;;  %v1523_v47 = vpop.f32.mrf.mxu0  ;;  %v2382_v43 = vadd.f32 %v2381_v39, %v2319_v35  ;;  %v2250_v1 = vadd.f32 %v2249_v41, %v3653_v12 }
 0x1be   : > { %v1812_v49 = vpop.f32.mrf.mxu1  ;;  %v2321_v47 = vmul.f32 %v3658_v22, %v3658_v22 }
 0x1bf   : > { %v3002_v50 = vpack.c.bf16 %v3674_v46, %v3672_v45  ;;  %v1526_v51 = vpop.f32.mrf.mxu0  ;;  %v2326_v17 = vmul.f32 %v3674_v46, %v3674_v46 }
 0x1c0   : > { %v1815_v52 = vpop.f32.mrf.mxu1 }
 0x1c1   : > { %3074 = vst [vmem:[%s3593_s29 + $0xa8] sm:$0xff] %v3002_v50   ;;  %v1528_v55 = vpop.f32.mrf.mxu0  ;;  %v3679_v59 = vadd.f32 %v1815_v52, %v1526_v51  ;;  %v2383_v51 = vadd.f32 %v2382_v43, %v2320_v0  ;;  %v2322_v52 = vmul.f32 %v3660_v23, %v3660_v23 }
 0x1c2   : > { %v1817_v56 = vpop.f32.mrf.mxu1 }
 0x1c3   : > { %v1529_v57 = vpop.f32.mrf.mxu0  ;;  %v2251_v56 = vadd.f32 %v2250_v1, %v3658_v22  ;;  %v2324_v22 = vmul.f32 %v3667_v34, %v3667_v34 }
 0x1c4   : > { %v1818_v58 = vpop.f32.mrf.mxu1 }
 0x1c5   : > { %v3681_v60 = vadd.f32 %v1818_v58, %v1529_v57  ;;  %v1531_v61 = vpop.f32.mrf.mxu0  ;;  %v2252_v12 = vadd.f32 %v2251_v56, %v3660_v23 }
 0x1c6   : > { %v1820_v62 = vpop.f32.mrf.mxu1  ;;  %v2384_v61 = vadd.f32 %v2383_v51, %v2321_v47 }
 0x1c7   : > { %v3007_v63 = vpack.c.bf16 %v3681_v60, %v3679_v59  ;;  %v1534_v2 = vpop.f32.mrf.mxu0  ;;  %v2323_v62 = vmul.f32 %v3665_v33, %v3665_v33 }
 0x1c8   : > { %v1823_v3 = vpop.f32.mrf.mxu1 }
 0x1c9   : > { %3075 = vst [vmem:[%s3593_s29 + $0xb0] sm:$0xff] %v3007_v63   ;;  %v1536_v4 = vpop.f32.mrf.mxu0  ;;  %v3686_v8 = vadd.f32 %v1823_v3, %v1534_v2 }
 0x1ca   : > { %v1825_v5 = vpop.f32.mrf.mxu1  ;;  %v2385_v4 = vadd.f32 %v2384_v61, %v2322_v52 }
 0x1cb   : > { %v1537_v6 = vpop.f32.mrf.mxu0  ;;  %v2329_v35 = vmul.f32 %v3686_v8, %v3686_v8 }
 0x1cc   : > { %v1826_v7 = vpop.f32.mrf.mxu1 }
 0x1cd   : > { %v3688_v9 = vadd.f32 %v1826_v7, %v1537_v6  ;;  %v1539_v10 = vpop.f32.mrf.mxu0  ;;  %v2253_v6 = vadd.f32 %v2252_v12, %v3665_v33 }
 0x1ce   : > { %v1828_v14 = vpop.f32.mrf.mxu1  ;;  %v2386_v10 = vadd.f32 %v2385_v4, %v2323_v62 }
 0x1cf   : > { %v3012_v15 = vpack.c.bf16 %v3688_v9, %v3686_v8  ;;  %v1542_v16 = vpop.f32.mrf.mxu0  ;;  %v2254_v23 = vadd.f32 %v2253_v6, %v3667_v34 }
 0x1d0   : > { %v1831_v18 = vpop.f32.mrf.mxu1 }
 0x1d1   : > { %3076 = vst [vmem:[%s3593_s29 + $0xb8] sm:$0xff] %v3012_v15   ;;  %v1544_v20 = vpop.f32.mrf.mxu0  ;;  %v3706_v44 = vadd.f32 %v1831_v18, %v1542_v16  ;;  %v2387_v16 = vadd.f32 %v2386_v10, %v2324_v22  ;;  %v2255_v19 = vadd.f32 %v2254_v23, %v3672_v45 }
 0x1d2   : > { %v1833_v25 = vpop.f32.mrf.mxu1 }
 0x1d3   : > { %v1545_v27 = vpop.f32.mrf.mxu0  ;;  %v2388_v24 = vadd.f32 %v2387_v16, %v2325_v13  ;;  %v2327_v25 = vmul.f32 %v3679_v59, %v3679_v59  ;;  %v2256_v34 = vadd.f32 %v2255_v19, %v3674_v46  ;;  %v2331_v43 = vmul.f32 %v3706_v44, %v3706_v44 }
 0x1d4   : > { %v1834_v30 = vpop.f32.mrf.mxu1 }
 0x1d5   : > { %v3708_v53 = vadd.f32 %v1834_v30, %v1545_v27  ;;  %v1547_v48 = vpop.f32.mrf.mxu0  ;;  %v2389_v29 = vadd.f32 %v2388_v24, %v2326_v17  ;;  %v2328_v30 = vmul.f32 %v3681_v60, %v3681_v60  ;;  %v2257_v45 = vadd.f32 %v2256_v34, %v3679_v59 }
 0x1d6   : > { %v1836_v36 = vpop.f32.mrf.mxu1 }
 0x1d7   : > { %v3017_v37 = vpack.c.bf16 %v3708_v53, %v3706_v44  ;;  %v1550_v38 = vpop.f32.mrf.mxu0  ;;  %v2390_v32 = vadd.f32 %v2389_v29, %v2327_v25  ;;  %v2258_v54 = vadd.f32 %v2257_v45, %v3681_v60  ;;  %v2332_v51 = vmul.f32 %v3708_v53, %v3708_v53 }
 0x1d8   : > { %v1839_v40 = vpop.f32.mrf.mxu1 }
 0x1d9   : > { %3077 = vst [vmem:[%s3593_s29 + $0xc0] sm:$0xff] %v3017_v37   ;;  %v1552_v42 = vpop.f32.mrf.mxu0  ;;  %v3725_v57 = vadd.f32 %v1839_v40, %v1550_v38  ;;  %v2391_v37 = vadd.f32 %v2390_v32, %v2328_v30  ;;  %v2330_v38 = vmul.f32 %v3688_v9, %v3688_v9  ;;  %v2259_v0 = vadd.f32 %v2258_v54, %v3686_v8 }
 0x1da   : > { %v1841_v49 = vpop.f32.mrf.mxu1 }
 0x1db   : > { %v1553_v50 = vpop.f32.mrf.mxu0  ;;  %v2392_v42 = vadd.f32 %v2391_v37, %v2329_v35  ;;  %v2260_v49 = vadd.f32 %v2259_v0, %v3688_v9 }
 0x1dc   : > { %v1842_v55 = vpop.f32.mrf.mxu1 }
 0x1dd   : > { %v3727_v11 = vadd.f32 %v1842_v55, %v1553_v50  ;;  %v1555_v58 = vpop.f32.mrf.mxu0  ;;  %v2393_v50 = vadd.f32 %v2392_v42, %v2330_v38  ;;  %v2261_v55 = vadd.f32 %v2260_v49, %v3706_v44 }
 0x1de   : > { %v1844_v63 = vpop.f32.mrf.mxu1  ;;  %v2333_v58 = vmul.f32 %v3725_v57, %v3725_v57 }
 0x1df   : > { %v3022_v2 = vpack.c.bf16 %v3727_v11, %v3725_v57  ;;  %v1558_v3 = vpop.f32.mrf.mxu0  ;;  %v2394_v56 = vadd.f32 %v2393_v50, %v2331_v43  ;;  %v2262_v62 = vadd.f32 %v2261_v55, %v3708_v53  ;;  %v2334_v12 = vmul.f32 %v3727_v11, %v3727_v11 }
 0x1e0   : > { %v1847_v5 = vpop.f32.mrf.mxu1 }
 0x1e1   : > { %3078 = vst [vmem:[%s3593_s29 + $0xc8] sm:$0xff] %v3022_v2   ;;  %v1560_v7 = vpop.f32.mrf.mxu0  ;;  %v1848_v20 = vadd.f32 %v1847_v5, %v1558_v3  ;;  %v2395_v9 = vadd.f32 %v2394_v56, %v2332_v51  ;;  %v2263_v3 = vadd.f32 %v2262_v62, %v3725_v57 }
 0x1e2   : > { %v1849_v14 = vpop.f32.mrf.mxu1 }
 0x1e3   : > { %v1561_v15 = vpop.f32.mrf.mxu0  ;;  %v2396_v5 = vadd.f32 %v2395_v9, %v2333_v58  ;;  %v2335_v6 = vmul.f32 %v1848_v20, %v1848_v20  ;;  %v2264_v10 = vadd.f32 %v2263_v3, %v3727_v11 }
 0x1e4   : > { %v1850_v18 = vpop.f32.mrf.mxu1 }
 0x1e5   : > { %v3744_v33 = vadd.f32 %v1850_v18, %v1561_v15  ;;  %v1563_v21 = vpop.f32.mrf.mxu0  ;;  %v2397_v53 = vadd.f32 %v2396_v5, %v2334_v12  ;;  %v2265_v16 = vadd.f32 %v2264_v10, %v1848_v20 }
 0x1e6   : > { %v1852_v26 = vpop.f32.mrf.mxu1 }
 0x1e7   : > { %v3027_v27 = vpack.c.bf16 %v3744_v33, %v1848_v20  ;;  %v1566_v28 = vpop.f32.mrf.mxu0  ;;  %v2336_v23 = vmul.f32 %v3744_v33, %v3744_v33  ;;  %v2398_v18 = vadd.f32 %v2397_v53, %v2335_v6  ;;  %v2266_v19 = vadd.f32 %v2265_v16, %v3744_v33 }
 0x1e8   : > { %v1855_v31 = vpop.f32.mrf.mxu1 }
 0x1e9   : > { %3079 = vst [vmem:[%s3593_s29 + $0xd0] sm:$0xff] %v3027_v27   ;;  %v1568_v48 = vpop.f32.mrf.mxu0  ;;  %v1856_v40 = vadd.f32 %v1855_v31, %v1566_v28  ;;  %v2399_v25 = vadd.f32 %v2398_v18, %v2336_v23 }
 0x1ea   : > { %v1857_v36 = vpop.f32.mrf.mxu1 }
 0x1eb   : > { %v1569_v46 = vpop.f32.mrf.mxu0  ;;  %v2337_v21 = vmul.f32 %v1856_v40, %v1856_v40  ;;  %v2267_v11 = vadd.f32 %v2266_v19, %v1856_v40 }
 0x1ec   : > { %v1858_v39 = vpop.f32.mrf.mxu1 }
 0x1ed   : > { %v1859_v59 = vadd.f32 %v1858_v39, %v1569_v46  ;;  %v1571_v41 = vpop.f32.mrf.mxu0  ;;  %v2400_v31 = vadd.f32 %v2399_v25, %v2337_v21 }
 0x1ee   : > { %v1860_v47 = vpop.f32.mrf.mxu1 }
 0x1ef   : > { %v3032_v60 = vpack.c.bf16 %v1859_v59, %v1856_v40  ;;  %v1574_v1 = vpop.f32.mrf.mxu0  ;;  %v2338_v34 = vmul.f32 %v1859_v59, %v1859_v59  ;;  %v2268_v45 = vadd.f32 %v2267_v11, %v1859_v59 }
 0x1f0   : > { %v1863_v52 = vpop.f32.mrf.mxu1 }
 0x1f1   : > { %3080 = vst [vmem:[%s3593_s29 + $0xd8] sm:$0xff] %v3032_v60   ;;  %v1576_v8 = vpop.f32.mrf.mxu0  ;;  %v1864_v4 = vadd.f32 %v1863_v52, %v1574_v1  ;;  %v2401_v36 = vadd.f32 %v2400_v31, %v2338_v34 }
 0x1f2   : > { %v1865_v61 = vpop.f32.mrf.mxu1 }
 0x1f3   : > { %v1577_v63 = vpop.f32.mrf.mxu0  ;;  %v2339_v20 = vmul.f32 %v1864_v4, %v1864_v4  ;;  %v2269_v54 = vadd.f32 %v2268_v45, %v1864_v4 }
 0x1f4   : > { %v1866_v2 = vpop.f32.mrf.mxu1 }
 0x1f5   : > { %v1867_v44 = vadd.f32 %v1866_v2, %v1577_v63  ;;  %v1579_v22 = vpop.f32.mrf.mxu0  ;;  %v2402_v38 = vadd.f32 %v2401_v36, %v2339_v20 }
 0x1f6   : > { %v1868_v7 = vpop.f32.mrf.mxu1 }
 0x1f7   : > { %v3037_v13 = vpack.c.bf16 %v1867_v44, %v1864_v4  ;;  %v1582_v14 = vpop.f32.mrf.mxu0  ;;  %v2340_v33 = vmul.f32 %v1867_v44, %v1867_v44  ;;  %v2270_v39 = vadd.f32 %v2269_v54, %v1867_v44 }
 0x1f8   : > { %v1871_v15 = vpop.f32.mrf.mxu1 }
 0x1f9   : > { %3081 = vst [vmem:[%s3593_s29 + $0xe0] sm:$0xff] %v3037_v13   ;;  %v1584_v17 = vpop.f32.mrf.mxu0  ;;  %v1872_v27 = vadd.f32 %v1871_v15, %v1582_v14  ;;  %v2403_v43 = vadd.f32 %v2402_v38, %v2340_v33 }
 0x1fa   : > { %v1873_v57 = vpop.f32.mrf.mxu1 }
 0x1fb   : > { %v1585_v24 = vpop.f32.mrf.mxu0  ;;  %v2341_v0 = vmul.f32 %v1872_v27, %v1872_v27  ;;  %v2271_v47 = vadd.f32 %v2270_v39, %v1872_v27 }
 0x1fc   : > { %v1874_v26 = vpop.f32.mrf.mxu1 }
 0x1fd   : > { %v1875_v28 = vadd.f32 %v1874_v26, %v1585_v24  ;;  %v1587_v29 = vpop.f32.mrf.mxu0  ;;  %v2404_v50 = vadd.f32 %v2403_v43, %v2341_v0 }
 0x1fe   : > { %v1876_v30 = vpop.f32.mrf.mxu1 }
 0x1ff   : > { %v3042_v48 = vpack.c.bf16 %v1875_v28, %v1872_v27  ;;  %v1590_v32 = vpop.f32.mrf.mxu0  ;;  %v2342_v59 = vmul.f32 %v1875_v28, %v1875_v28  ;;  %v2272_v51 = vadd.f32 %v2271_v47, %v1875_v28 }
 0x200   : > { %v1879_v35 = vpop.f32.mrf.mxu1 }
 0x201   : > { %3082 = vst [vmem:[%s3593_s29 + $0xe8] sm:$0xff] %v3042_v48   ;;  %v1592_v46 = vpop.f32.mrf.mxu0  ;;  %v1880_v40 = vadd.f32 %v1879_v35, %v1590_v32  ;;  %v2405_v58 = vadd.f32 %v2404_v50, %v2342_v59 }
 0x202   : > { %v1881_v37 = vpop.f32.mrf.mxu1 }
 0x203   : > { %v1593_v41 = vpop.f32.mrf.mxu0  ;;  %v2343_v52 = vmul.f32 %v1880_v40, %v1880_v40  ;;  %v2273_v61 = vadd.f32 %v2272_v51, %v1880_v40 }
 0x204   : > { %v1882_v42 = vpop.f32.mrf.mxu1 }
 0x205   : > { %v1883_v49 = vadd.f32 %v1882_v42, %v1593_v41  ;;  %v1595_v60 = vpop.f32.mrf.mxu0  ;;  %v2406_v2 = vadd.f32 %v2405_v58, %v2343_v52 }
 0x206   : > { %v1884_v1 = vpop.f32.mrf.mxu1 }
 0x207   : > { %v3047_v55 = vpack.c.bf16 %v1883_v49, %v1880_v40  ;;  %v1598_v8 = vpop.f32.mrf.mxu0  ;;  %v2344_v62 = vmul.f32 %v1883_v49, %v1883_v49  ;;  %v2274_v3 = vadd.f32 %v2273_v61, %v1883_v49 }
 0x208   : > { %v1887_v56 = vpop.f32.mrf.mxu1 }
 0x209   : > { %3083 = vst [vmem:[%s3593_s29 + $0xf0] sm:$0xff] %v3047_v55   ;;  %v1888_v63 = vadd.f32 %v1887_v56, %v1598_v8  ;;  %v1600_v9 = vpop.f32.mrf.mxu0  ;;  %v2407_v5 = vadd.f32 %v2406_v2, %v2344_v62 }
 0x20a   : > { %v1889_v12 = vpop.f32.mrf.mxu1 }
 0x20b   : > { %v2345_v4 = vmul.f32 %v1888_v63, %v1888_v63  ;;  %v1601_v44 = vpop.f32.mrf.mxu0  ;;  %v2275_v6 = vadd.f32 %v2274_v3, %v1888_v63 }
 0x20c   : > { %v1890_v22 = vpop.f32.mrf.mxu1 }
 0x20d   : > { %v1891_v7 = vadd.f32 %v1890_v22, %v1601_v44  ;;  %v1603_v10 = vpop.f32.mrf.mxu0  ;;  %v2408_v14 = vadd.f32 %v2407_v5, %v2345_v4 }
 0x20e   : > { %v1892_v13 = vpop.f32.mrf.mxu1 }
 0x20f   : > { %v3052_v53 = vpack.c.bf16 %v1891_v7, %v1888_v63  ;;  %v2276_v23 = vadd.f32 %v2275_v6, %v1891_v7  ;;  %v2346_v15 = vmul.f32 %v1891_v7, %v1891_v7 }
 0x211   : > { %3084 = vst [vmem:[%s3593_s29 + $0xf8] sm:$0xff] %v3052_v53   ;;  %v2277_v16 = vrot.slane %v2276_v23, 4  ;;  %v2409_v17 = vadd.f32 %v2408_v14, %v2346_v15 }
 0x213   : > { %v2278_v18 = vadd.f32 %v2277_v16, %v2276_v23  ;;  %v2410_v57 = vrot.slane %v2409_v17, 4 }
 0x215   : > { %v2279_v19 = vrot.slane %v2278_v18, 2  ;;  %v2411_v21 = vadd.f32 %v2410_v57, %v2409_v17 }
 0x217   : > { %v2280_v24 = vadd.f32 %v2279_v19, %v2278_v18  ;;  %v2412_v25 = vrot.slane %v2411_v21, 2 }
 0x219   : > { %v2281_v26 = vrot.slane %v2280_v24, 1  ;;  %v2413_v11 = vadd.f32 %v2412_v25, %v2411_v21 }
 0x21b   : > { %v2282_v34 = vadd.f32 %v2281_v26, %v2280_v24  ;;  %v2414_v27 = vrot.slane %v2413_v11, 1 }
 0x21d   : > { %v2415_v28 = vadd.f32 %v2414_v27, %v2413_v11  ;;  %2416 = vst [vmem:[%s283_s7] sm:$0xff] %v2282_v34 }
 0x21f   : > { %2417 = vst [vmem:[%s289_s10] sm:$0xff] %v2415_v28 }
 0x220 PF: > { %s15_s17 = sadd.s32 1, %s3356_s17   ;;  %s3802_s15 = smov %s3352_s16 }
 0x221   : > { %p12_p5 = scmp.ge.s32.totalorder %s15_s17, 6   ;;  %s3803_s16 = smov %s3805_s18 }
 0x223   :  { %14 = sbr.rel (!%p12_p5) target bundleno = 2 (0x2), region = 85 }

// kernel: generator_forward.19
= control target key start
LH: loop header
LB: loop body
LE: loop exit
PB: predicated region body
PF: predicated region fallthrough
CT: control target
= control target key end

     0   :  { %s8246_s12 = smov 0   ;;  %s8248_s13 = smov 0   ;;  %s9413_s0 = inlined_call_operand.vmem [shape: bf16[4,2048,512], index: 0, kind: input, shape index: {}]   ;;  %s9414_s1 = inlined_call_operand.vmem [shape: bf16[4,512,128], index: 1, kind: input, shape index: {}]   ;;  %s9415_s2 = inlined_call_operand.vmem [shape: f32[1,128], index: 2, kind: input, shape index: {}]   ;;  %s9416_s3 = inlined_call_operand.vmem [shape: f32[4,2048,128], index: 3, kind: output, shape index: {}]  }
   0x1   :  { %s8250_s14 = smov 0  }
   0x2 LB: > { %s25_s15 = sadd.s32 1, %s8219_s13  ;;  %p6301_p0 = scmp.ge.s32.totalorder %s8223_s14, 1  ;;  %s8223_s14 = sphi %s8250_s14, %s13_s14   ;;  %s8219_s13 = sphi %s8248_s13, %s9418_s13   ;;  %s8215_s12 = sphi %s8246_s12, %s9417_s12  }
   0x3   : > { %p27_p1 = scmp.ge.s32.totalorder %s25_s15, 4  ;;  %p169_p2 = scmp.lt.s32.totalorder %s8223_s14, 5 }
   0x5   : > { %s9420_s15 = smov (%p27_p1, %s25_s15), 0  ;;  %p170_p3 = pnand %p6301_p0, %p169_p2 }
   0x6   : > { %p208_p4 = scmp.lt.s32.totalorder (!%p170_p3), %s8215_s12, 3 }
   0x7   : > { %173 = sbr.rel (%p170_p3) target bundleno = 1311 (0x51f), region = 32 }
   0xc   : > { %v8225_v0 = vmov 0   ;;  %s9422_s12 = smov (!%p208_p4, %s8215_s12), 3 }
   0xd   : > { %3569 = vmatprep.subr.bf16.mxu0 %v8225_v0  ;;  %4626 = vmatprep.subr.bf16.mxu1 %v8225_v0  ;;  %s6856_s16 = sshll.u32 %s9422_s12, 8  ;;  %s6855_s20 = sshll.u32 %s9422_s12, 12 }
   0xe   : > { %s8272_s19 = scalar_lea.vmem %s9414_s1, %s6856_s16  ;;  %s8309_s23 = scalar_lea.vmem %s9413_s0, %s6855_s20 }
   0xf   : > { %v6883_v1 = vld [vmem:[%s8272_s19 + $0x38] sm:$0xff]   ;;  %v6885_v3 = vld [vmem:[%s8272_s19 + $0x30] sm:$0xff]   ;;  %v6887_v5 = vld [vmem:[%s8272_s19 + $0x28] sm:$0xff]   ;;  %s6857_s26 = sshll.u32 %s9422_s12, 11 }
  0x10   : > { %v6884_v2 = vld [vmem:[%s8272_s19 + $0xb8] sm:$0xff]   ;;  %3570 = vmatpush1.bf16.msra.mxu0 %v6883_v1  ;;  %v6886_v4 = vld [vmem:[%s8272_s19 + $0xb0] sm:$0xff]   ;;  %v6888_v6 = vld [vmem:[%s8272_s19 + $0xa8] sm:$0xff]   ;;  %s8465_s29 = scalar_lea.vmem %s9416_s3, %s6857_s26 }
  0x11   : > { %4627 = vmatpush1.bf16.msra.mxu1 %v6884_v2  ;;  %3571 = vmatprep.subr.bf16.mxu0 %v8225_v0  ;;  %v6889_v7 = vld [vmem:[%s8272_s19 + $0x20] sm:$0xff]   ;;  %v6891_v9 = vld [vmem:[%s8272_s19 + $0x18] sm:$0xff]   ;;  %v6893_v11 = vld [vmem:[%s8272_s19 + $0x10] sm:$0xff]  }
  0x12   : > { %4628 = vmatprep.subr.bf16.mxu1 %v8225_v0  ;;  %v6890_v8 = vld [vmem:[%s8272_s19 + $0xa0] sm:$0xff]   ;;  %v6892_v10 = vld [vmem:[%s8272_s19 + $0x98] sm:$0xff]   ;;  %v6894_v12 = vld [vmem:[%s8272_s19 + $0x90] sm:$0xff]  }
  0x13   : > { %v6895_v13 = vld [vmem:[%s8272_s19 + $0x8] sm:$0xff]   ;;  %v6897_v15 = vld [vmem:[%s8272_s19] sm:$0xff]   ;;  %v6899_v17 = vld [vmem:[%s8272_s19 + $0x78] sm:$0xff]  }
  0x14   : > { %3572 = vmatpush1.bf16.msra.mxu0 %v6885_v3  ;;  %v6896_v14 = vld [vmem:[%s8272_s19 + $0x88] sm:$0xff]   ;;  %v6898_v16 = vld [vmem:[%s8272_s19 + $0x80] sm:$0xff]   ;;  %v6900_v18 = vld [vmem:[%s8272_s19 + $0xf8] sm:$0xff]  }
  0x15   : > { %4629 = vmatpush1.bf16.msra.mxu1 %v6886_v4  ;;  %3573 = vmatprep.subr.bf16.mxu0 %v8225_v0  ;;  %v6917_v19 = vld [vmem:[%s8309_s23 + $0x4] ss:$16 sps:$4 sm:$0xff]   ;;  %v6920_v21 = vld [vmem:[%s8309_s23 + $0xc] ss:$16 sps:$4 sm:$0xff]   ;;  %v6915_v35 = vld [vmem:[%s8309_s23] ss:$16 sps:$4 sm:$0xff]  }
  0x16   : > { %4630 = vmatprep.subr.bf16.mxu1 %v8225_v0  ;;  %v6901_v20 = vld [vmem:[%s8272_s19 + $0x70] sm:$0xff]   ;;  %3601 = vmatprep.mubr.bf16.mxu0 %v6917_v19  ;;  %v6903_v23 = vld [vmem:[%s8272_s19 + $0x68] sm:$0xff]   ;;  %v6905_v25 = vld [vmem:[%s8272_s19 + $0x60] sm:$0xff]  }
  0x17   : > { %v6902_v22 = vld [vmem:[%s8272_s19 + $0xf0] sm:$0xff]   ;;  %4658 = vmatprep.mubr.bf16.mxu1 %v6920_v21  ;;  %v6904_v24 = vld [vmem:[%s8272_s19 + $0xe8] sm:$0xff]   ;;  %v6906_v26 = vld [vmem:[%s8272_s19 + $0xe0] sm:$0xff]  }
  0x18   : > { %3574 = vmatpush1.bf16.msra.mxu0 %v6887_v5  ;;  %v6907_v27 = vld [vmem:[%s8272_s19 + $0x58] sm:$0xff]   ;;  %v6909_v29 = vld [vmem:[%s8272_s19 + $0x50] sm:$0xff]   ;;  %v6911_v31 = vld [vmem:[%s8272_s19 + $0x48] sm:$0xff]  }
  0x19   : > { %4631 = vmatpush1.bf16.msra.mxu1 %v6888_v6  ;;  %3575 = vmatprep.subr.bf16.mxu0 %v8225_v0  ;;  %v6908_v28 = vld [vmem:[%s8272_s19 + $0xd8] sm:$0xff]   ;;  %v6910_v30 = vld [vmem:[%s8272_s19 + $0xd0] sm:$0xff]   ;;  %v6912_v32 = vld [vmem:[%s8272_s19 + $0xc8] sm:$0xff]  }
  0x1a   : > { %4632 = vmatprep.subr.bf16.mxu1 %v8225_v0  ;;  %v6913_v33 = vld [vmem:[%s8272_s19 + $0x40] sm:$0xff]   ;;  %v6918_v36 = vld [vmem:[%s8309_s23 + $0x8] ss:$16 sps:$4 sm:$0xff]   ;;  %v6923_v38 = vld [vmem:[%s8309_s23 + $0x2c] ss:$16 sps:$4 sm:$0xff]  }
  0x1b   : > { %v6914_v34 = vld [vmem:[%s8272_s19 + $0xc0] sm:$0xff]   ;;  %v6926_v40 = vld [vmem:[%s8309_s23 + $0x28] ss:$16 sps:$4 sm:$0xff]   ;;  %v6929_v42 = vld [vmem:[%s8309_s23 + $0x4c] ss:$16 sps:$4 sm:$0xff]  }
  0x1c   : > { %3576 = vmatpush1.bf16.msra.mxu0 %v6889_v7  ;;  %v6921_v37 = vld [vmem:[%s8309_s23 + $0x24] ss:$16 sps:$4 sm:$0xff]   ;;  %v6925_v39 = vld [vmem:[%s8309_s23 + $0x20] ss:$16 sps:$4 sm:$0xff]   ;;  %v6932_v44 = vld [vmem:[%s8309_s23 + $0x48] ss:$16 sps:$4 sm:$0xff]  }
  0x1d   : > { %4633 = vmatpush1.bf16.msra.mxu1 %v6890_v8  ;;  %3577 = vmatprep.subr.bf16.mxu0 %v8225_v0  ;;  %v6927_v41 = vld [vmem:[%s8309_s23 + $0x44] ss:$16 sps:$4 sm:$0xff]   ;;  %v6931_v43 = vld [vmem:[%s8309_s23 + $0x40] ss:$16 sps:$4 sm:$0xff]   ;;  %v6935_v46 = vld [vmem:[%s8309_s23 + $0x6c] ss:$16 sps:$4 sm:$0xff]  }
  0x1e   : > { %4634 = vmatprep.subr.bf16.mxu1 %v8225_v0  ;;  %v6933_v45 = vld [vmem:[%s8309_s23 + $0x64] ss:$16 sps:$4 sm:$0xff]   ;;  %v6937_v47 = vld [vmem:[%s8309_s23 + $0x60] ss:$16 sps:$4 sm:$0xff]   ;;  %v6938_v48 = vld [vmem:[%s8309_s23 + $0x68] ss:$16 sps:$4 sm:$0xff]  }
  0x1f   : > { %v6939_v49 = vld [vmem:[%s8309_s23 + $0x84] ss:$16 sps:$4 sm:$0xff]   ;;  %v6941_v50 = vld [vmem:[%s8309_s23 + $0x8c] ss:$16 sps:$4 sm:$0xff]   ;;  %v6943_v51 = vld [vmem:[%s8309_s23 + $0x80] ss:$16 sps:$4 sm:$0xff]  }
  0x20   : > { %3578 = vmatpush1.bf16.msra.mxu0 %v6891_v9  ;;  %v6944_v52 = vld [vmem:[%s8309_s23 + $0x88] ss:$16 sps:$4 sm:$0xff]   ;;  %v6945_v53 = vld [vmem:[%s8309_s23 + $0xa4] ss:$16 sps:$4 sm:$0xff]   ;;  %v6947_v54 = vld [vmem:[%s8309_s23 + $0xac] ss:$16 sps:$4 sm:$0xff]  }
  0x21   : > { %4635 = vmatpush1.bf16.msra.mxu1 %v6892_v10  ;;  %3579 = vmatprep.subr.bf16.mxu0 %v8225_v0  ;;  %v6949_v55 = vld [vmem:[%s8309_s23 + $0xa0] ss:$16 sps:$4 sm:$0xff]   ;;  %v6950_v56 = vld [vmem:[%s8309_s23 + $0xa8] ss:$16 sps:$4 sm:$0xff]   ;;  %v6951_v57 = vld [vmem:[%s8309_s23 + $0xc4] ss:$16 sps:$4 sm:$0xff]  }
  0x22   : > { %4636 = vmatprep.subr.bf16.mxu1 %v8225_v0  ;;  %v6953_v58 = vld [vmem:[%s8309_s23 + $0xcc] ss:$16 sps:$4 sm:$0xff]   ;;  %v6955_v59 = vld [vmem:[%s8309_s23 + $0xc0] ss:$16 sps:$4 sm:$0xff]   ;;  %v6956_v60 = vld [vmem:[%s8309_s23 + $0xc8] ss:$16 sps:$4 sm:$0xff]  }
  0x23   : > { %v6957_v61 = vld [vmem:[%s8309_s23 + $0xe4] ss:$16 sps:$4 sm:$0xff]   ;;  %v6959_v62 = vld [vmem:[%s8309_s23 + $0xec] ss:$16 sps:$4 sm:$0xff]   ;;  %v6961_v63 = vld [vmem:[%s8309_s23 + $0xe0] ss:$16 sps:$4 sm:$0xff]  }
  0x24   : > { %3580 = vmatpush1.bf16.msra.mxu0 %v6893_v11  ;;  %v6963_v1 = vld [vmem:[%s8309_s23 + $0x104] ss:$16 sps:$4 sm:$0xff]   ;;  %v6965_v2 = vld [vmem:[%s8309_s23 + $0x10c] ss:$16 sps:$4 sm:$0xff]   ;;  %v6967_v3 = vld [vmem:[%s8309_s23 + $0x100] ss:$16 sps:$4 sm:$0xff]  }
  0x25   : > { %4637 = vmatpush1.bf16.msra.mxu1 %v6894_v12  ;;  %3581 = vmatprep.subr.bf16.mxu0 %v8225_v0  ;;  %v6968_v4 = vld [vmem:[%s8309_s23 + $0x108] ss:$16 sps:$4 sm:$0xff]   ;;  %v6969_v5 = vld [vmem:[%s8309_s23 + $0x124] ss:$16 sps:$4 sm:$0xff]   ;;  %v6971_v6 = vld [vmem:[%s8309_s23 + $0x12c] ss:$16 sps:$4 sm:$0xff]  }
  0x26   : > { %4638 = vmatprep.subr.bf16.mxu1 %v8225_v0  ;;  %v6973_v7 = vld [vmem:[%s8309_s23 + $0x120] ss:$16 sps:$4 sm:$0xff]   ;;  %v6974_v8 = vld [vmem:[%s8309_s23 + $0x128] ss:$16 sps:$4 sm:$0xff]   ;;  %v6975_v9 = vld [vmem:[%s8309_s23 + $0x144] ss:$16 sps:$4 sm:$0xff]  }
  0x27   : > { %v6977_v10 = vld [vmem:[%s8309_s23 + $0x14c] ss:$16 sps:$4 sm:$0xff]   ;;  %v6979_v11 = vld [vmem:[%s8309_s23 + $0x140] ss:$16 sps:$4 sm:$0xff]   ;;  %v6980_v12 = vld [vmem:[%s8309_s23 + $0x148] ss:$16 sps:$4 sm:$0xff]  }
  0x28   : > { %3582 = vmatpush1.bf16.msra.mxu0 %v6895_v13  ;;  %v6981_v13 = vld [vmem:[%s8309_s23 + $0x164] ss:$16 sps:$4 sm:$0xff]   ;;  %v6991_v19 = vld [vmem:[%s8309_s23 + $0x180] ss:$16 sps:$4 sm:$0xff]  }
  0x29   : > { %4639 = vmatpush1.bf16.msra.mxu1 %v6896_v14  ;;  %3583 = vmatprep.subr.bf16.mxu0 %v8225_v0  ;;  %v6983_v14 = vld [vmem:[%s8309_s23 + $0x16c] ss:$16 sps:$4 sm:$0xff]   ;;  %v6993_v21 = vld [vmem:[%s8309_s23 + $0x1a4] ss:$16 sps:$4 sm:$0xff]  }
  0x2a   : > { %4640 = vmatprep.subr.bf16.mxu1 %v8225_v0 }
  0x2c   : > { %3584 = vmatpush1.bf16.msra.mxu0 %v6897_v15  ;;  %v6985_v15 = vld [vmem:[%s8309_s23 + $0x160] ss:$16 sps:$4 sm:$0xff]  }
  0x2d   : > { %4641 = vmatpush1.bf16.msra.mxu1 %v6898_v16  ;;  %3585 = vmatprep.subr.bf16.mxu0 %v8225_v0  ;;  %v6986_v16 = vld [vmem:[%s8309_s23 + $0x168] ss:$16 sps:$4 sm:$0xff]  }
  0x2e   : > { %4642 = vmatprep.subr.bf16.mxu1 %v8225_v0 }
  0x30   : > { %3586 = vmatpush2.bf16.msra.mxu0 %v6899_v17  ;;  %v6987_v17 = vld [vmem:[%s8309_s23 + $0x184] ss:$16 sps:$4 sm:$0xff]  }
  0x31   : > { %4643 = vmatpush2.bf16.msra.mxu1 %v6900_v18  ;;  %3587 = vmatprep.subr.bf16.mxu0 %v8225_v0  ;;  %v6989_v18 = vld [vmem:[%s8309_s23 + $0x18c] ss:$16 sps:$4 sm:$0xff]  }
  0x32   : > { %4644 = vmatprep.subr.bf16.mxu1 %v8225_v0 }
  0x34   : > { %3588 = vmatpush2.bf16.msra.mxu0 %v6901_v20  ;;  %v6992_v20 = vld [vmem:[%s8309_s23 + $0x188] ss:$16 sps:$4 sm:$0xff]  }
  0x35   : > { %4645 = vmatpush2.bf16.msra.mxu1 %v6902_v22  ;;  %3589 = vmatprep.subr.bf16.mxu0 %v8225_v0  ;;  %v6995_v22 = vld [vmem:[%s8309_s23 + $0x1ac] ss:$16 sps:$4 sm:$0xff]  }
  0x36   : > { %4646 = vmatprep.subr.bf16.mxu1 %v8225_v0 }
  0x38   : > { %3590 = vmatpush2.bf16.msra.mxu0 %v6903_v23  ;;  %v6997_v23 = vld [vmem:[%s8309_s23 + $0x1a0] ss:$16 sps:$4 sm:$0xff]  }
  0x39   : > { %4647 = vmatpush2.bf16.msra.mxu1 %v6904_v24  ;;  %3591 = vmatprep.subr.bf16.mxu0 %v8225_v0  ;;  %v6998_v24 = vld [vmem:[%s8309_s23 + $0x1a8] ss:$16 sps:$4 sm:$0xff]  }
  0x3a   : > { %4648 = vmatprep.subr.bf16.mxu1 %v8225_v0 }
  0x3c   : > { %3592 = vmatpush2.bf16.msra.mxu0 %v6905_v25  ;;  %v6999_v25 = vld [vmem:[%s8309_s23 + $0x1c4] ss:$16 sps:$4 sm:$0xff]  }
  0x3d   : > { %4649 = vmatpush2.bf16.msra.mxu1 %v6906_v26  ;;  %3593 = vmatprep.subr.bf16.mxu0 %v8225_v0  ;;  %v7001_v26 = vld [vmem:[%s8309_s23 + $0x1cc] ss:$16 sps:$4 sm:$0xff]  }
  0x3e   : > { %4650 = vmatprep.subr.bf16.mxu1 %v8225_v0 }
  0x40   : > { %3594 = vmatpush2.bf16.msra.mxu0 %v6907_v27  ;;  %v7003_v27 = vld [vmem:[%s8309_s23 + $0x1c0] ss:$16 sps:$4 sm:$0xff]  }
  0x41   : > { %4651 = vmatpush2.bf16.msra.mxu1 %v6908_v28  ;;  %3595 = vmatprep.subr.bf16.mxu0 %v8225_v0  ;;  %v7004_v28 = vld [vmem:[%s8309_s23 + $0x1c8] ss:$16 sps:$4 sm:$0xff]  }
  0x42   : > { %4652 = vmatprep.subr.bf16.mxu1 %v8225_v0 }
  0x44   : > { %3596 = vmatpush2.bf16.msra.mxu0 %v6909_v29  ;;  %v7005_v29 = vld [vmem:[%s8309_s23 + $0x1e4] ss:$16 sps:$4 sm:$0xff]  }
  0x45   : > { %4653 = vmatpush2.bf16.msra.mxu1 %v6910_v30  ;;  %3597 = vmatprep.subr.bf16.mxu0 %v8225_v0  ;;  %v7007_v30 = vld [vmem:[%s8309_s23 + $0x1ec] ss:$16 sps:$4 sm:$0xff]  }
  0x46   : > { %4654 = vmatprep.subr.bf16.mxu1 %v8225_v0 }
  0x48   : > { %3598 = vmatpush2.bf16.msra.mxu0 %v6911_v31  ;;  %v7009_v31 = vld [vmem:[%s8309_s23 + $0x1e0] ss:$16 sps:$4 sm:$0xff]  }
  0x49   : > { %4655 = vmatpush2.bf16.msra.mxu1 %v6912_v32  ;;  %3599 = vmatprep.subr.bf16.mxu0 %v8225_v0  ;;  %v7010_v32 = vld [vmem:[%s8309_s23 + $0x1e8] ss:$16 sps:$4 sm:$0xff]  }
  0x4a   : > { %4656 = vmatprep.subr.bf16.mxu1 %v8225_v0  ;;  %v6962_v0 = vld [vmem:[%s8309_s23 + $0xe8] ss:$16 sps:$4 sm:$0xff]  }
  0x4c   : > { %3600 = vmatpush2.bf16.msra.mxu0 %v6913_v33  ;;  %v7011_v33 = vld [vmem:[%s8309_s23 + $0x204] ss:$16 sps:$4 sm:$0xff]  }
  0x4d   : > { %4657 = vmatpush2.bf16.msra.mxu1 %v6914_v34  ;;  %v7013_v34 = vld [vmem:[%s8309_s23 + $0x20c] ss:$16 sps:$4 sm:$0xff]  }
  0x4f   : > { %3602 = vmatmul.mubr.bf16.vlgmr.msra.gmra.mxu0 %v6915_v35  ;;  %v7015_v35 = vld [vmem:[%s8309_s23 + $0x200] ss:$16 sps:$4 sm:$0xff]  }
  0x50   : > { %4659 = vmatmul.mubr.bf16.vlgmr.msra.gmra.mxu1 %v6918_v36  ;;  %3609 = vmatprep.mubr.bf16.mxu0 %v6921_v37  ;;  %v7016_v36 = vld [vmem:[%s8309_s23 + $0x208] ss:$16 sps:$4 sm:$0xff]   ;;  %v7017_v37 = vld [vmem:[%s8309_s23 + $0x224] ss:$16 sps:$4 sm:$0xff]  }
  0x51   : > { %4666 = vmatprep.mubr.bf16.mxu1 %v6923_v38  ;;  %v7019_v38 = vld [vmem:[%s8309_s23 + $0x22c] ss:$16 sps:$4 sm:$0xff]  }
  0x57   : > { %3610 = vmatmul.mubr.bf16.gmra.mxu0 %v6925_v39  ;;  %v7021_v39 = vld [vmem:[%s8309_s23 + $0x220] ss:$16 sps:$4 sm:$0xff]  }
  0x58   : > { %4667 = vmatmul.mubr.bf16.gmra.mxu1 %v6926_v40  ;;  %3617 = vmatprep.mubr.bf16.mxu0 %v6927_v41  ;;  %v7022_v40 = vld [vmem:[%s8309_s23 + $0x228] ss:$16 sps:$4 sm:$0xff]   ;;  %v7023_v41 = vld [vmem:[%s8309_s23 + $0x244] ss:$16 sps:$4 sm:$0xff]  }
  0x59   : > { %4674 = vmatprep.mubr.bf16.mxu1 %v6929_v42  ;;  %v7025_v42 = vld [vmem:[%s8309_s23 + $0x24c] ss:$16 sps:$4 sm:$0xff]  }
  0x5f   : > { %3618 = vmatmul.mubr.bf16.gmra.mxu0 %v6931_v43  ;;  %v7027_v43 = vld [vmem:[%s8309_s23 + $0x240] ss:$16 sps:$4 sm:$0xff]  }
  0x60   : > { %4675 = vmatmul.mubr.bf16.gmra.mxu1 %v6932_v44  ;;  %3625 = vmatprep.mubr.bf16.mxu0 %v6933_v45  ;;  %v7028_v44 = vld [vmem:[%s8309_s23 + $0x248] ss:$16 sps:$4 sm:$0xff]   ;;  %v7029_v45 = vld [vmem:[%s8309_s23 + $0x264] ss:$16 sps:$4 sm:$0xff]  }
  0x61   : > { %4682 = vmatprep.mubr.bf16.mxu1 %v6935_v46  ;;  %v7031_v46 = vld [vmem:[%s8309_s23 + $0x26c] ss:$16 sps:$4 sm:$0xff]  }
  0x67   : > { %3626 = vmatmul.mubr.bf16.gmra.mxu0 %v6937_v47  ;;  %v7033_v47 = vld [vmem:[%s8309_s23 + $0x260] ss:$16 sps:$4 sm:$0xff]  }
  0x68   : > { %4683 = vmatmul.mubr.bf16.gmra.mxu1 %v6938_v48  ;;  %3633 = vmatprep.mubr.bf16.mxu0 %v6939_v49  ;;  %v7034_v48 = vld [vmem:[%s8309_s23 + $0x268] ss:$16 sps:$4 sm:$0xff]   ;;  %v7035_v49 = vld [vmem:[%s8309_s23 + $0x284] ss:$16 sps:$4 sm:$0xff]  }
  0x69   : > { %4690 = vmatprep.mubr.bf16.mxu1 %v6941_v50  ;;  %v7037_v50 = vld [vmem:[%s8309_s23 + $0x28c] ss:$16 sps:$4 sm:$0xff]  }
  0x6f   : > { %3634 = vmatmul.mubr.bf16.gmra.mxu0 %v6943_v51  ;;  %v7039_v51 = vld [vmem:[%s8309_s23 + $0x280] ss:$16 sps:$4 sm:$0xff]  }
  0x70   : > { %4691 = vmatmul.mubr.bf16.gmra.mxu1 %v6944_v52  ;;  %3641 = vmatprep.mubr.bf16.mxu0 %v6945_v53  ;;  %v7040_v52 = vld [vmem:[%s8309_s23 + $0x288] ss:$16 sps:$4 sm:$0xff]   ;;  %v7041_v53 = vld [vmem:[%s8309_s23 + $0x2a4] ss:$16 sps:$4 sm:$0xff]  }
  0x71   : > { %4698 = vmatprep.mubr.bf16.mxu1 %v6947_v54  ;;  %v7043_v54 = vld [vmem:[%s8309_s23 + $0x2ac] ss:$16 sps:$4 sm:$0xff]  }
  0x77   : > { %3642 = vmatmul.mubr.bf16.gmra.mxu0 %v6949_v55  ;;  %v7045_v55 = vld [vmem:[%s8309_s23 + $0x2a0] ss:$16 sps:$4 sm:$0xff]  }
  0x78   : > { %4699 = vmatmul.mubr.bf16.gmra.mxu1 %v6950_v56  ;;  %3649 = vmatprep.mubr.bf16.mxu0 %v6951_v57  ;;  %v7046_v56 = vld [vmem:[%s8309_s23 + $0x2a8] ss:$16 sps:$4 sm:$0xff]   ;;  %v7047_v57 = vld [vmem:[%s8309_s23 + $0x2c4] ss:$16 sps:$4 sm:$0xff]  }
  0x79   : > { %4706 = vmatprep.mubr.bf16.mxu1 %v6953_v58  ;;  %v7049_v58 = vld [vmem:[%s8309_s23 + $0x2cc] ss:$16 sps:$4 sm:$0xff]  }
  0x7f   : > { %3650 = vmatmul.mubr.bf16.gmra.mxu0 %v6955_v59  ;;  %v7051_v59 = vld [vmem:[%s8309_s23 + $0x2c0] ss:$16 sps:$4 sm:$0xff]  }
  0x80   : > { %4707 = vmatmul.mubr.bf16.gmra.mxu1 %v6956_v60  ;;  %3657 = vmatprep.mubr.bf16.mxu0 %v6957_v61  ;;  %v7052_v60 = vld [vmem:[%s8309_s23 + $0x2c8] ss:$16 sps:$4 sm:$0xff]   ;;  %v7053_v61 = vld [vmem:[%s8309_s23 + $0x2e4] ss:$16 sps:$4 sm:$0xff]  }
  0x81   : > { %4714 = vmatprep.mubr.bf16.mxu1 %v6959_v62  ;;  %v7055_v62 = vld [vmem:[%s8309_s23 + $0x2ec] ss:$16 sps:$4 sm:$0xff]  }
  0x87   : > { %3658 = vmatmul.mubr.bf16.gmra.mxu0 %v6961_v63  ;;  %v7057_v63 = vld [vmem:[%s8309_s23 + $0x2e0] ss:$16 sps:$4 sm:$0xff]  }
  0x88   : > { %4715 = vmatmul.mubr.bf16.gmra.mxu1 %v6962_v0  ;;  %3665 = vmatprep.mubr.bf16.mxu0 %v6963_v1  ;;  %v7058_v0 = vld [vmem:[%s8309_s23 + $0x2e8] ss:$16 sps:$4 sm:$0xff]   ;;  %v7059_v1 = vld [vmem:[%s8309_s23 + $0x304] ss:$16 sps:$4 sm:$0xff]  }
  0x89   : > { %4722 = vmatprep.mubr.bf16.mxu1 %v6965_v2  ;;  %v7061_v2 = vld [vmem:[%s8309_s23 + $0x30c] ss:$16 sps:$4 sm:$0xff]  }
  0x8f   : > { %3666 = vmatmul.mubr.bf16.gmra.mxu0 %v6967_v3  ;;  %v7063_v3 = vld [vmem:[%s8309_s23 + $0x300] ss:$16 sps:$4 sm:$0xff]  }
  0x90   : > { %4723 = vmatmul.mubr.bf16.gmra.mxu1 %v6968_v4  ;;  %3673 = vmatprep.mubr.bf16.mxu0 %v6969_v5  ;;  %v7064_v4 = vld [vmem:[%s8309_s23 + $0x308] ss:$16 sps:$4 sm:$0xff]   ;;  %v7065_v5 = vld [vmem:[%s8309_s23 + $0x324] ss:$16 sps:$4 sm:$0xff]  }
  0x91   : > { %4730 = vmatprep.mubr.bf16.mxu1 %v6971_v6  ;;  %v8446_v6 = vld [vmem:[%s9415_s2] ss:$0 sm:$0xff] }
  0x97   : > { %3674 = vmatmul.mubr.bf16.gmra.mxu0 %v6973_v7  ;;  %v7067_v7 = vld [vmem:[%s8309_s23 + $0x32c] ss:$16 sps:$4 sm:$0xff]  }
  0x98   : > { %4731 = vmatmul.mubr.bf16.gmra.mxu1 %v6974_v8  ;;  %3681 = vmatprep.mubr.bf16.mxu0 %v6975_v9 }
  0x99   : > { %4738 = vmatprep.mubr.bf16.mxu1 %v6977_v10 }
  0x9f   : > { %3682 = vmatmul.mubr.bf16.gmra.mxu0 %v6979_v11 }
  0xa0   : > { %4739 = vmatmul.mubr.bf16.gmra.mxu1 %v6980_v12  ;;  %3689 = vmatprep.mubr.bf16.mxu0 %v6981_v13 }
  0xa1   : > { %4746 = vmatprep.mubr.bf16.mxu1 %v6983_v14 }
  0xa7   : > { %3690 = vmatmul.mubr.bf16.gmra.mxu0 %v6985_v15  ;;  %v7069_v15 = vld [vmem:[%s8309_s23 + $0x320] ss:$16 sps:$4 sm:$0xff]  }
  0xa8   : > { %4747 = vmatmul.mubr.bf16.gmra.mxu1 %v6986_v16  ;;  %3697 = vmatprep.mubr.bf16.mxu0 %v6987_v17 }
  0xa9   : > { %4754 = vmatprep.mubr.bf16.mxu1 %v6989_v18  ;;  %v7070_v18 = vld [vmem:[%s8309_s23 + $0x328] ss:$16 sps:$4 sm:$0xff]  }
  0xaf   : > { %3698 = vmatmul.mubr.bf16.gmra.mxu0 %v6991_v19  ;;  %v7071_v19 = vld [vmem:[%s8309_s23 + $0x344] ss:$16 sps:$4 sm:$0xff]  }
  0xb0   : > { %4755 = vmatmul.mubr.bf16.gmra.mxu1 %v6992_v20  ;;  %3705 = vmatprep.mubr.bf16.mxu0 %v6993_v21  ;;  %v7073_v21 = vld [vmem:[%s8309_s23 + $0x34c] ss:$16 sps:$4 sm:$0xff]  }
  0xb1   : > { %4762 = vmatprep.mubr.bf16.mxu1 %v6995_v22 }
  0xb7   : > { %3706 = vmatmul.mubr.bf16.gmra.mxu0 %v6997_v23 }
  0xb8   : > { %4763 = vmatmul.mubr.bf16.gmra.mxu1 %v6998_v24  ;;  %3713 = vmatprep.mubr.bf16.mxu0 %v6999_v25 }
  0xb9   : > { %4770 = vmatprep.mubr.bf16.mxu1 %v7001_v26 }
  0xbf   : > { %3714 = vmatmul.mubr.bf16.gmra.mxu0 %v7003_v27 }
  0xc0   : > { %4771 = vmatmul.mubr.bf16.gmra.mxu1 %v7004_v28  ;;  %3721 = vmatprep.mubr.bf16.mxu0 %v7005_v29 }
  0xc1   : > { %4778 = vmatprep.mubr.bf16.mxu1 %v7007_v30 }
  0xc7   : > { %3722 = vmatmul.mubr.bf16.gmra.mxu0 %v7009_v31  ;;  %v7075_v31 = vld [vmem:[%s8309_s23 + $0x340] ss:$16 sps:$4 sm:$0xff]  }
  0xc8   : > { %4779 = vmatmul.mubr.bf16.gmra.mxu1 %v7010_v32  ;;  %3729 = vmatprep.mubr.bf16.mxu0 %v7011_v33 }
  0xc9   : > { %4786 = vmatprep.mubr.bf16.mxu1 %v7013_v34  ;;  %v7076_v34 = vld [vmem:[%s8309_s23 + $0x348] ss:$16 sps:$4 sm:$0xff]  }
  0xcf   : > { %3730 = vmatmul.mubr.bf16.gmra.mxu0 %v7015_v35  ;;  %v7077_v35 = vld [vmem:[%s8309_s23 + $0x364] ss:$16 sps:$4 sm:$0xff]  }
  0xd0   : > { %4787 = vmatmul.mubr.bf16.gmra.mxu1 %v7016_v36  ;;  %3737 = vmatprep.mubr.bf16.mxu0 %v7017_v37  ;;  %v7079_v37 = vld [vmem:[%s8309_s23 + $0x36c] ss:$16 sps:$4 sm:$0xff]  }
  0xd1   : > { %4794 = vmatprep.mubr.bf16.mxu1 %v7019_v38 }
  0xd7   : > { %3738 = vmatmul.mubr.bf16.gmra.mxu0 %v7021_v39 }
  0xd8   : > { %4795 = vmatmul.mubr.bf16.gmra.mxu1 %v7022_v40  ;;  %3745 = vmatprep.mubr.bf16.mxu0 %v7023_v41 }
  0xd9   : > { %4802 = vmatprep.mubr.bf16.mxu1 %v7025_v42 }
  0xdf   : > { %3746 = vmatmul.mubr.bf16.gmra.mxu0 %v7027_v43 }
  0xe0   : > { %4803 = vmatmul.mubr.bf16.gmra.mxu1 %v7028_v44  ;;  %3753 = vmatprep.mubr.bf16.mxu0 %v7029_v45 }
  0xe1   : > { %4810 = vmatprep.mubr.bf16.mxu1 %v7031_v46 }
  0xe7   : > { %3754 = vmatmul.mubr.bf16.gmra.mxu0 %v7033_v47 }
  0xe8   : > { %4811 = vmatmul.mubr.bf16.gmra.mxu1 %v7034_v48  ;;  %3761 = vmatprep.mubr.bf16.mxu0 %v7035_v49  ;;  %v7081_v48 = vld [vmem:[%s8309_s23 + $0x360] ss:$16 sps:$4 sm:$0xff]  }
  0xe9   : > { %4818 = vmatprep.mubr.bf16.mxu1 %v7037_v50 }
  0xef   : > { %3762 = vmatmul.mubr.bf16.gmra.mxu0 %v7039_v51  ;;  %v7082_v51 = vld [vmem:[%s8309_s23 + $0x368] ss:$16 sps:$4 sm:$0xff]  }
  0xf0   : > { %4819 = vmatmul.mubr.bf16.gmra.mxu1 %v7040_v52  ;;  %3769 = vmatprep.mubr.bf16.mxu0 %v7041_v53  ;;  %v7085_v52 = vld [vmem:[%s8309_s23 + $0x384] ss:$16 sps:$4 sm:$0xff]  }
  0xf1   : > { %4826 = vmatprep.mubr.bf16.mxu1 %v7043_v54 }
  0xf7   : > { %3770 = vmatmul.mubr.bf16.gmra.mxu0 %v7045_v55  ;;  %v7088_v55 = vld [vmem:[%s8309_s23 + $0x38c] ss:$16 sps:$4 sm:$0xff]  }
  0xf8   : > { %4827 = vmatmul.mubr.bf16.gmra.mxu1 %v7046_v56  ;;  %3777 = vmatprep.mubr.bf16.mxu0 %v7047_v57 }
  0xf9   : > { %4834 = vmatprep.mubr.bf16.mxu1 %v7049_v58 }
  0xff   : > { %3778 = vmatmul.mubr.bf16.gmra.mxu0 %v7051_v59 }
 0x100   : > { %4835 = vmatmul.mubr.bf16.gmra.mxu1 %v7052_v60  ;;  %3785 = vmatprep.mubr.bf16.mxu0 %v7053_v61 }
 0x101   : > { %4842 = vmatprep.mubr.bf16.mxu1 %v7055_v62 }
 0x107   : > { %3786 = vmatmul.mubr.bf16.gmra.mxu0 %v7057_v63 }
 0x108   : > { %4843 = vmatmul.mubr.bf16.gmra.mxu1 %v7058_v0  ;;  %3793 = vmatprep.mubr.bf16.mxu0 %v7059_v1 }
 0x109   : > { %4850 = vmatprep.mubr.bf16.mxu1 %v7061_v2  ;;  %v7083_v2 = vld [vmem:[%s8309_s23 + $0x380] ss:$16 sps:$4 sm:$0xff]  }
 0x10f   : > { %v3603_v8 = vpop.f32.mrf.mxu0  ;;  %3794 = vmatmul.mubr.bf16.gmra.mxu0 %v7063_v3 }
 0x110   : > { %v3604_v9 = vadd.f32 %v8446_v6, %v3603_v8  ;;  %v4660_v10 = vpop.f32.mrf.mxu1  ;;  %4851 = vmatmul.mubr.bf16.gmra.mxu1 %v7064_v4  ;;  %3801 = vmatprep.mubr.bf16.mxu0 %v7065_v5  ;;  %v7086_v5 = vld [vmem:[%s8309_s23 + $0x388] ss:$16 sps:$4 sm:$0xff]  }
 0x111   : > { %v3605_v11 = vpop.f32.mrf.mxu0  ;;  %4858 = vmatprep.mubr.bf16.mxu1 %v7067_v7  ;;  %v7091_v7 = vld [vmem:[%s8309_s23 + $0x3a4] ss:$16 sps:$4 sm:$0xff]  }
 0x112   : > { %v4661_v12 = vadd.f32 %v4660_v10, %v3604_v9  ;;  %v4662_v13 = vpop.f32.mrf.mxu1  ;;  %v7094_v10 = vld [vmem:[%s8309_s23 + $0x3ac] ss:$16 sps:$4 sm:$0xff]  }
 0x113   : > { %v3606_v14 = vpop.f32.mrf.mxu0 }
 0x114   : > { %7683 = vtanh.f32 %v4661_v12  ;;  %v3607_v16 = vadd.f32 %v8446_v6, %v3606_v14  ;;  %v4663_v17 = vpop.f32.mrf.mxu1 }
 0x115   : > { %v3608_v20 = vpop.f32.mrf.mxu0 }
 0x116   : > { %v4664_v22 = vadd.f32 %v4663_v17, %v3607_v16  ;;  %v4665_v23 = vpop.f32.mrf.mxu1 }
 0x117   : > { %v3611_v24 = vpop.f32.mrf.mxu0  ;;  %3802 = vmatmul.mubr.bf16.gmra.mxu0 %v7069_v15 }
 0x118   : > { %7685 = vtanh.f32 %v4664_v22  ;;  %v3612_v25 = vadd.f32 %v8446_v6, %v3611_v24  ;;  %v4668_v26 = vpop.f32.mrf.mxu1  ;;  %4859 = vmatmul.mubr.bf16.gmra.mxu1 %v7070_v18  ;;  %3809 = vmatprep.mubr.bf16.mxu0 %v7071_v19  ;;  %v7092_v24 = vld [vmem:[%s8309_s23 + $0x3a8] ss:$16 sps:$4 sm:$0xff]  }
 0x119   : > { %v3613_v27 = vpop.f32.mrf.mxu0  ;;  %4866 = vmatprep.mubr.bf16.mxu1 %v7073_v21  ;;  %v7089_v21 = vld [vmem:[%s8309_s23 + $0x3a0] ss:$16 sps:$4 sm:$0xff]  }
 0x11a   : > { %v4669_v28 = vadd.f32 %v4668_v26, %v3612_v25  ;;  %v4670_v29 = vpop.f32.mrf.mxu1  ;;  %v7097_v25 = vld [vmem:[%s8309_s23 + $0x3c4] ss:$16 sps:$4 sm:$0xff]  }
 0x11b   : > { %v3614_v30 = vpop.f32.mrf.mxu0 }
 0x11c   : > { %7687 = vtanh.f32 %v4669_v28  ;;  %v3615_v32 = vadd.f32 %v8446_v6, %v3614_v30  ;;  %v4671_v33 = vpop.f32.mrf.mxu1  ;;  %v7100_v28 = vld [vmem:[%s8309_s23 + $0x3cc] ss:$16 sps:$4 sm:$0xff]  }
 0x11d   : > { %v3616_v36 = vpop.f32.mrf.mxu0 }
 0x11e   : > { %v4672_v38 = vadd.f32 %v4671_v33, %v3615_v32  ;;  %v4673_v39 = vpop.f32.mrf.mxu1 }
 0x11f   : > { %v3619_v40 = vpop.f32.mrf.mxu0  ;;  %3810 = vmatmul.mubr.bf16.gmra.mxu0 %v7075_v31  ;;  %v7095_v39 = vld [vmem:[%s8309_s23 + $0x3c0] ss:$16 sps:$4 sm:$0xff]  }
 0x120   : > { %7689 = vtanh.f32 %v4672_v38  ;;  %v3620_v41 = vadd.f32 %v8446_v6, %v3619_v40  ;;  %v4676_v42 = vpop.f32.mrf.mxu1  ;;  %4867 = vmatmul.mubr.bf16.gmra.mxu1 %v7076_v34  ;;  %3817 = vmatprep.mubr.bf16.mxu0 %v7077_v35 }
 0x121   : > { %v7684_v43 = vpop.eup %7683  ;;  %v3621_v44 = vpop.f32.mrf.mxu0  ;;  %4874 = vmatprep.mubr.bf16.mxu1 %v7079_v37 }
 0x122   : > { %5939 = vst [vmem:[%s8465_s29] sm:$0xff] %v7684_v43  ;;  %v4677_v45 = vadd.f32 %v4676_v42, %v3620_v41  ;;  %v4678_v46 = vpop.f32.mrf.mxu1  ;;  %v7098_v42 = vld [vmem:[%s8309_s23 + $0x3c8] ss:$16 sps:$4 sm:$0xff]   ;;  %v7103_v43 = vld [vmem:[%s8309_s23 + $0x3e4] ss:$16 sps:$4 sm:$0xff]  }
 0x123   : > { %v3622_v47 = vpop.f32.mrf.mxu0  ;;  %v7106_v46 = vld [vmem:[%s8309_s23 + $0x3ec] ss:$16 sps:$4 sm:$0xff]  }
 0x124   : > { %7691 = vtanh.f32 %v4677_v45  ;;  %v3623_v49 = vadd.f32 %v8446_v6, %v3622_v47  ;;  %v4679_v50 = vpop.f32.mrf.mxu1 }
 0x125   : > { %v7686_v53 = vpop.eup %7685  ;;  %v3624_v54 = vpop.f32.mrf.mxu0 }
 0x126   : > { %5940 = vst [vmem:[%s8465_s29 + $0x8] sm:$0xff] %v7686_v53  ;;  %v4680_v56 = vadd.f32 %v4679_v50, %v3623_v49  ;;  %v4681_v57 = vpop.f32.mrf.mxu1 }
 0x127   : > { %v3627_v58 = vpop.f32.mrf.mxu0  ;;  %3818 = vmatmul.mubr.bf16.gmra.mxu0 %v7081_v48  ;;  %v7101_v57 = vld [vmem:[%s8309_s23 + $0x3e0] ss:$16 sps:$4 sm:$0xff]  }
 0x128   : > { %7693 = vtanh.f32 %v4680_v56  ;;  %v3628_v59 = vadd.f32 %v8446_v6, %v3627_v58  ;;  %v4684_v60 = vpop.f32.mrf.mxu1  ;;  %4875 = vmatmul.mubr.bf16.gmra.mxu1 %v7082_v51  ;;  %3825 = vmatprep.mubr.bf16.mxu0 %v7085_v52 }
 0x129   : > { %v7688_v61 = vpop.eup %7687  ;;  %v3629_v62 = vpop.f32.mrf.mxu0  ;;  %4882 = vmatprep.mubr.bf16.mxu1 %v7088_v55 }
 0x12a   : > { %5941 = vst [vmem:[%s8465_s29 + $0x10] sm:$0xff] %v7688_v61  ;;  %v4685_v63 = vadd.f32 %v4684_v60, %v3628_v59  ;;  %v4686_v0 = vpop.f32.mrf.mxu1  ;;  %v7104_v60 = vld [vmem:[%s8309_s23 + $0x3e8] ss:$16 sps:$4 sm:$0xff]   ;;  %v7109_v61 = vld [vmem:[%s8309_s23 + $0x404] ss:$16 sps:$4 sm:$0xff]  }
 0x12b   : > { %v3630_v1 = vpop.f32.mrf.mxu0  ;;  %v7112_v0 = vld [vmem:[%s8309_s23 + $0x40c] ss:$16 sps:$4 sm:$0xff]  }
 0x12c   : > { %7695 = vtanh.f32 %v4685_v63  ;;  %v3631_v3 = vadd.f32 %v8446_v6, %v3630_v1  ;;  %v4687_v4 = vpop.f32.mrf.mxu1 }
 0x12d   : > { %v7690_v8 = vpop.eup %7689  ;;  %v3632_v9 = vpop.f32.mrf.mxu0 }
 0x12e   : > { %5942 = vst [vmem:[%s8465_s29 + $0x18] sm:$0xff] %v7690_v8  ;;  %v4688_v11 = vadd.f32 %v4687_v4, %v3631_v3  ;;  %v4689_v12 = vpop.f32.mrf.mxu1 }
 0x12f   : > { %v3635_v13 = vpop.f32.mrf.mxu0  ;;  %3826 = vmatmul.mubr.bf16.gmra.mxu0 %v7083_v2  ;;  %v7107_v12 = vld [vmem:[%s8309_s23 + $0x400] ss:$16 sps:$4 sm:$0xff]  }
 0x130   : > { %7697 = vtanh.f32 %v4688_v11  ;;  %v3636_v14 = vadd.f32 %v8446_v6, %v3635_v13  ;;  %v4692_v15 = vpop.f32.mrf.mxu1  ;;  %4883 = vmatmul.mubr.bf16.gmra.mxu1 %v7086_v5  ;;  %3833 = vmatprep.mubr.bf16.mxu0 %v7091_v7 }
 0x131   : > { %v7692_v16 = vpop.eup %7691  ;;  %v3637_v17 = vpop.f32.mrf.mxu0  ;;  %4890 = vmatprep.mubr.bf16.mxu1 %v7094_v10 }
 0x132   : > { %5943 = vst [vmem:[%s8465_s29 + $0x20] sm:$0xff] %v7692_v16  ;;  %v4693_v18 = vadd.f32 %v4692_v15, %v3636_v14  ;;  %v4694_v19 = vpop.f32.mrf.mxu1  ;;  %v7110_v15 = vld [vmem:[%s8309_s23 + $0x408] ss:$16 sps:$4 sm:$0xff]   ;;  %v7115_v16 = vld [vmem:[%s8309_s23 + $0x424] ss:$16 sps:$4 sm:$0xff]  }
 0x133   : > { %v3638_v20 = vpop.f32.mrf.mxu0  ;;  %v7118_v19 = vld [vmem:[%s8309_s23 + $0x42c] ss:$16 sps:$4 sm:$0xff]  }
 0x134   : > { %7699 = vtanh.f32 %v4693_v18  ;;  %v3639_v22 = vadd.f32 %v8446_v6, %v3638_v20  ;;  %v4695_v23 = vpop.f32.mrf.mxu1 }
 0x135   : > { %v7694_v26 = vpop.eup %7693  ;;  %v3640_v27 = vpop.f32.mrf.mxu0 }
 0x136   : > { %5944 = vst [vmem:[%s8465_s29 + $0x28] sm:$0xff] %v7694_v26  ;;  %v4696_v29 = vadd.f32 %v4695_v23, %v3639_v22  ;;  %v4697_v30 = vpop.f32.mrf.mxu1 }
 0x137   : > { %v3643_v31 = vpop.f32.mrf.mxu0  ;;  %3834 = vmatmul.mubr.bf16.gmra.mxu0 %v7089_v21  ;;  %v7113_v30 = vld [vmem:[%s8309_s23 + $0x420] ss:$16 sps:$4 sm:$0xff]  }
 0x138   : > { %7701 = vtanh.f32 %v4696_v29  ;;  %v3644_v32 = vadd.f32 %v8446_v6, %v3643_v31  ;;  %v4700_v33 = vpop.f32.mrf.mxu1  ;;  %4891 = vmatmul.mubr.bf16.gmra.mxu1 %v7092_v24  ;;  %3841 = vmatprep.mubr.bf16.mxu0 %v7097_v25 }
 0x139   : > { %v7696_v34 = vpop.eup %7695  ;;  %v3645_v35 = vpop.f32.mrf.mxu0  ;;  %4898 = vmatprep.mubr.bf16.mxu1 %v7100_v28 }
 0x13a   : > { %5945 = vst [vmem:[%s8465_s29 + $0x30] sm:$0xff] %v7696_v34  ;;  %v4701_v36 = vadd.f32 %v4700_v33, %v3644_v32  ;;  %v4702_v37 = vpop.f32.mrf.mxu1  ;;  %v7116_v33 = vld [vmem:[%s8309_s23 + $0x428] ss:$16 sps:$4 sm:$0xff]   ;;  %v7121_v34 = vld [vmem:[%s8309_s23 + $0x444] ss:$16 sps:$4 sm:$0xff]  }
 0x13b   : > { %v3646_v38 = vpop.f32.mrf.mxu0  ;;  %v7124_v37 = vld [vmem:[%s8309_s23 + $0x44c] ss:$16 sps:$4 sm:$0xff]  }
 0x13c   : > { %7703 = vtanh.f32 %v4701_v36  ;;  %v3647_v40 = vadd.f32 %v8446_v6, %v3646_v38  ;;  %v4703_v41 = vpop.f32.mrf.mxu1 }
 0x13d   : > { %v7698_v44 = vpop.eup %7697  ;;  %v3648_v45 = vpop.f32.mrf.mxu0 }
 0x13e   : > { %5946 = vst [vmem:[%s8465_s29 + $0x38] sm:$0xff] %v7698_v44  ;;  %v4704_v47 = vadd.f32 %v4703_v41, %v3647_v40  ;;  %v4705_v48 = vpop.f32.mrf.mxu1 }
 0x13f   : > { %v3651_v49 = vpop.f32.mrf.mxu0  ;;  %3842 = vmatmul.mubr.bf16.gmra.mxu0 %v7095_v39  ;;  %v7119_v48 = vld [vmem:[%s8309_s23 + $0x440] ss:$16 sps:$4 sm:$0xff]  }
 0x140   : > { %7705 = vtanh.f32 %v4704_v47  ;;  %v3652_v50 = vadd.f32 %v8446_v6, %v3651_v49  ;;  %v4708_v51 = vpop.f32.mrf.mxu1  ;;  %4899 = vmatmul.mubr.bf16.gmra.mxu1 %v7098_v42  ;;  %3849 = vmatprep.mubr.bf16.mxu0 %v7103_v43 }
 0x141   : > { %v7700_v52 = vpop.eup %7699  ;;  %v3653_v53 = vpop.f32.mrf.mxu0  ;;  %4906 = vmatprep.mubr.bf16.mxu1 %v7106_v46 }
 0x142   : > { %5947 = vst [vmem:[%s8465_s29 + $0x40] sm:$0xff] %v7700_v52  ;;  %v4709_v54 = vadd.f32 %v4708_v51, %v3652_v50  ;;  %v4710_v55 = vpop.f32.mrf.mxu1  ;;  %v7122_v51 = vld [vmem:[%s8309_s23 + $0x448] ss:$16 sps:$4 sm:$0xff]   ;;  %v7127_v52 = vld [vmem:[%s8309_s23 + $0x464] ss:$16 sps:$4 sm:$0xff]  }
 0x143   : > { %v3654_v56 = vpop.f32.mrf.mxu0  ;;  %v7130_v55 = vld [vmem:[%s8309_s23 + $0x46c] ss:$16 sps:$4 sm:$0xff]  }
 0x144   : > { %7707 = vtanh.f32 %v4709_v54  ;;  %v3655_v58 = vadd.f32 %v8446_v6, %v3654_v56  ;;  %v4711_v59 = vpop.f32.mrf.mxu1 }
 0x145   : > { %v7702_v62 = vpop.eup %7701  ;;  %v3656_v63 = vpop.f32.mrf.mxu0 }
 0x146   : > { %5948 = vst [vmem:[%s8465_s29 + $0x48] sm:$0xff] %v7702_v62  ;;  %v4712_v1 = vadd.f32 %v4711_v59, %v3655_v58  ;;  %v4713_v2 = vpop.f32.mrf.mxu1 }
 0x147   : > { %v3659_v3 = vpop.f32.mrf.mxu0  ;;  %3850 = vmatmul.mubr.bf16.gmra.mxu0 %v7101_v57  ;;  %v7125_v2 = vld [vmem:[%s8309_s23 + $0x460] ss:$16 sps:$4 sm:$0xff]  }
 0x148   : > { %7709 = vtanh.f32 %v4712_v1  ;;  %v3660_v4 = vadd.f32 %v8446_v6, %v3659_v3  ;;  %v4716_v5 = vpop.f32.mrf.mxu1  ;;  %4907 = vmatmul.mubr.bf16.gmra.mxu1 %v7104_v60  ;;  %3857 = vmatprep.mubr.bf16.mxu0 %v7109_v61 }
 0x149   : > { %v7704_v7 = vpop.eup %7703  ;;  %v3661_v8 = vpop.f32.mrf.mxu0  ;;  %4914 = vmatprep.mubr.bf16.mxu1 %v7112_v0 }
 0x14a   : > { %5949 = vst [vmem:[%s8465_s29 + $0x50] sm:$0xff] %v7704_v7  ;;  %v4717_v9 = vadd.f32 %v4716_v5, %v3660_v4  ;;  %v4718_v10 = vpop.f32.mrf.mxu1  ;;  %v7128_v5 = vld [vmem:[%s8309_s23 + $0x468] ss:$16 sps:$4 sm:$0xff]   ;;  %v7133_v7 = vld [vmem:[%s8309_s23 + $0x484] ss:$16 sps:$4 sm:$0xff]  }
 0x14b   : > { %v3662_v11 = vpop.f32.mrf.mxu0  ;;  %v7136_v10 = vld [vmem:[%s8309_s23 + $0x48c] ss:$16 sps:$4 sm:$0xff]  }
 0x14c   : > { %7711 = vtanh.f32 %v4717_v9  ;;  %v3663_v13 = vadd.f32 %v8446_v6, %v3662_v11  ;;  %v4719_v14 = vpop.f32.mrf.mxu1 }
 0x14d   : > { %v7706_v17 = vpop.eup %7705  ;;  %v3664_v18 = vpop.f32.mrf.mxu0 }
 0x14e   : > { %5950 = vst [vmem:[%s8465_s29 + $0x58] sm:$0xff] %v7706_v17  ;;  %v4720_v20 = vadd.f32 %v4719_v14, %v3663_v13  ;;  %v4721_v21 = vpop.f32.mrf.mxu1 }
 0x14f   : > { %v3667_v22 = vpop.f32.mrf.mxu0  ;;  %3858 = vmatmul.mubr.bf16.gmra.mxu0 %v7107_v12  ;;  %v7131_v21 = vld [vmem:[%s8309_s23 + $0x480] ss:$16 sps:$4 sm:$0xff]  }
 0x150   : > { %7713 = vtanh.f32 %v4720_v20  ;;  %v3668_v23 = vadd.f32 %v8446_v6, %v3667_v22  ;;  %v4724_v24 = vpop.f32.mrf.mxu1  ;;  %4915 = vmatmul.mubr.bf16.gmra.mxu1 %v7110_v15  ;;  %3865 = vmatprep.mubr.bf16.mxu0 %v7115_v16 }
 0x151   : > { %v7708_v25 = vpop.eup %7707  ;;  %v3669_v26 = vpop.f32.mrf.mxu0  ;;  %4922 = vmatprep.mubr.bf16.mxu1 %v7118_v19 }
 0x152   : > { %5951 = vst [vmem:[%s8465_s29 + $0x60] sm:$0xff] %v7708_v25  ;;  %v4725_v27 = vadd.f32 %v4724_v24, %v3668_v23  ;;  %v4726_v28 = vpop.f32.mrf.mxu1  ;;  %v7134_v24 = vld [vmem:[%s8309_s23 + $0x488] ss:$16 sps:$4 sm:$0xff]   ;;  %v7139_v25 = vld [vmem:[%s8309_s23 + $0x4a4] ss:$16 sps:$4 sm:$0xff]  }
 0x153   : > { %v3670_v29 = vpop.f32.mrf.mxu0  ;;  %v7142_v28 = vld [vmem:[%s8309_s23 + $0x4ac] ss:$16 sps:$4 sm:$0xff]  }
 0x154   : > { %7715 = vtanh.f32 %v4725_v27  ;;  %v3671_v31 = vadd.f32 %v8446_v6, %v3670_v29  ;;  %v4727_v32 = vpop.f32.mrf.mxu1 }
 0x155   : > { %v7710_v35 = vpop.eup %7709  ;;  %v3672_v36 = vpop.f32.mrf.mxu0 }
 0x156   : > { %5952 = vst [vmem:[%s8465_s29 + $0x68] sm:$0xff] %v7710_v35  ;;  %v4728_v38 = vadd.f32 %v4727_v32, %v3671_v31  ;;  %v4729_v39 = vpop.f32.mrf.mxu1 }
 0x157   : > { %v3675_v40 = vpop.f32.mrf.mxu0  ;;  %3866 = vmatmul.mubr.bf16.gmra.mxu0 %v7113_v30  ;;  %v7137_v39 = vld [vmem:[%s8309_s23 + $0x4a0] ss:$16 sps:$4 sm:$0xff]  }
 0x158   : > { %7717 = vtanh.f32 %v4728_v38  ;;  %v3676_v41 = vadd.f32 %v8446_v6, %v3675_v40  ;;  %v4732_v42 = vpop.f32.mrf.mxu1  ;;  %4923 = vmatmul.mubr.bf16.gmra.mxu1 %v7116_v33  ;;  %3873 = vmatprep.mubr.bf16.mxu0 %v7121_v34 }
 0x159   : > { %v7712_v43 = vpop.eup %7711  ;;  %v3677_v44 = vpop.f32.mrf.mxu0  ;;  %4930 = vmatprep.mubr.bf16.mxu1 %v7124_v37 }
 0x15a   : > { %5953 = vst [vmem:[%s8465_s29 + $0x70] sm:$0xff] %v7712_v43  ;;  %v4733_v45 = vadd.f32 %v4732_v42, %v3676_v41  ;;  %v4734_v46 = vpop.f32.mrf.mxu1  ;;  %v7140_v42 = vld [vmem:[%s8309_s23 + $0x4a8] ss:$16 sps:$4 sm:$0xff]   ;;  %v7145_v43 = vld [vmem:[%s8309_s23 + $0x4c4] ss:$16 sps:$4 sm:$0xff]  }
 0x15b   : > { %v3678_v47 = vpop.f32.mrf.mxu0  ;;  %v7148_v46 = vld [vmem:[%s8309_s23 + $0x4cc] ss:$16 sps:$4 sm:$0xff]  }
 0x15c   : > { %7719 = vtanh.f32 %v4733_v45  ;;  %v3679_v49 = vadd.f32 %v8446_v6, %v3678_v47  ;;  %v4735_v50 = vpop.f32.mrf.mxu1 }
 0x15d   : > { %v7714_v53 = vpop.eup %7713  ;;  %v3680_v54 = vpop.f32.mrf.mxu0 }
 0x15e   : > { %5954 = vst [vmem:[%s8465_s29 + $0x78] sm:$0xff] %v7714_v53  ;;  %v4736_v56 = vadd.f32 %v4735_v50, %v3679_v49  ;;  %v4737_v57 = vpop.f32.mrf.mxu1 }
 0x15f   : > { %v3683_v58 = vpop.f32.mrf.mxu0  ;;  %3874 = vmatmul.mubr.bf16.gmra.mxu0 %v7119_v48  ;;  %v7143_v57 = vld [vmem:[%s8309_s23 + $0x4c0] ss:$16 sps:$4 sm:$0xff]  }
 0x160   : > { %7721 = vtanh.f32 %v4736_v56  ;;  %v3684_v59 = vadd.f32 %v8446_v6, %v3683_v58  ;;  %v4740_v60 = vpop.f32.mrf.mxu1  ;;  %4931 = vmatmul.mubr.bf16.gmra.mxu1 %v7122_v51  ;;  %3881 = vmatprep.mubr.bf16.mxu0 %v7127_v52 }
 0x161   : > { %v7716_v61 = vpop.eup %7715  ;;  %v3685_v62 = vpop.f32.mrf.mxu0  ;;  %4938 = vmatprep.mubr.bf16.mxu1 %v7130_v55 }
 0x162   : > { %5955 = vst [vmem:[%s8465_s29 + $0x80] sm:$0xff] %v7716_v61  ;;  %v4741_v63 = vadd.f32 %v4740_v60, %v3684_v59  ;;  %v4742_v0 = vpop.f32.mrf.mxu1  ;;  %v7146_v60 = vld [vmem:[%s8309_s23 + $0x4c8] ss:$16 sps:$4 sm:$0xff]   ;;  %v7151_v61 = vld [vmem:[%s8309_s23 + $0x4e4] ss:$16 sps:$4 sm:$0xff]  }
 0x163   : > { %v3686_v1 = vpop.f32.mrf.mxu0  ;;  %v7154_v0 = vld [vmem:[%s8309_s23 + $0x4ec] ss:$16 sps:$4 sm:$0xff]  }
 0x164   : > { %7723 = vtanh.f32 %v4741_v63  ;;  %v3687_v3 = vadd.f32 %v8446_v6, %v3686_v1  ;;  %v4743_v4 = vpop.f32.mrf.mxu1 }
 0x165   : > { %v7718_v8 = vpop.eup %7717  ;;  %v3688_v9 = vpop.f32.mrf.mxu0 }
 0x166   : > { %5956 = vst [vmem:[%s8465_s29 + $0x88] sm:$0xff] %v7718_v8  ;;  %v4744_v11 = vadd.f32 %v4743_v4, %v3687_v3  ;;  %v4745_v12 = vpop.f32.mrf.mxu1 }
 0x167   : > { %v3691_v13 = vpop.f32.mrf.mxu0  ;;  %3882 = vmatmul.mubr.bf16.gmra.mxu0 %v7125_v2  ;;  %v7149_v12 = vld [vmem:[%s8309_s23 + $0x4e0] ss:$16 sps:$4 sm:$0xff]  }
 0x168   : > { %7725 = vtanh.f32 %v4744_v11  ;;  %v3692_v14 = vadd.f32 %v8446_v6, %v3691_v13  ;;  %v4748_v15 = vpop.f32.mrf.mxu1  ;;  %4939 = vmatmul.mubr.bf16.gmra.mxu1 %v7128_v5  ;;  %3889 = vmatprep.mubr.bf16.mxu0 %v7133_v7 }
 0x169   : > { %v7720_v16 = vpop.eup %7719  ;;  %v3693_v17 = vpop.f32.mrf.mxu0  ;;  %4946 = vmatprep.mubr.bf16.mxu1 %v7136_v10 }
 0x16a   : > { %5957 = vst [vmem:[%s8465_s29 + $0x90] sm:$0xff] %v7720_v16  ;;  %v4749_v18 = vadd.f32 %v4748_v15, %v3692_v14  ;;  %v4750_v19 = vpop.f32.mrf.mxu1  ;;  %v7152_v15 = vld [vmem:[%s8309_s23 + $0x4e8] ss:$16 sps:$4 sm:$0xff]   ;;  %v7157_v16 = vld [vmem:[%s8309_s23 + $0x504] ss:$16 sps:$4 sm:$0xff]  }
 0x16b   : > { %v3694_v20 = vpop.f32.mrf.mxu0  ;;  %v7160_v19 = vld [vmem:[%s8309_s23 + $0x50c] ss:$16 sps:$4 sm:$0xff]  }
 0x16c   : > { %7727 = vtanh.f32 %v4749_v18  ;;  %v3695_v22 = vadd.f32 %v8446_v6, %v3694_v20  ;;  %v4751_v23 = vpop.f32.mrf.mxu1 }
 0x16d   : > { %v7722_v26 = vpop.eup %7721  ;;  %v3696_v27 = vpop.f32.mrf.mxu0 }
 0x16e   : > { %5958 = vst [vmem:[%s8465_s29 + $0x98] sm:$0xff] %v7722_v26  ;;  %v4752_v29 = vadd.f32 %v4751_v23, %v3695_v22  ;;  %v4753_v30 = vpop.f32.mrf.mxu1 }
 0x16f   : > { %v3699_v31 = vpop.f32.mrf.mxu0  ;;  %3890 = vmatmul.mubr.bf16.gmra.mxu0 %v7131_v21  ;;  %v7155_v30 = vld [vmem:[%s8309_s23 + $0x500] ss:$16 sps:$4 sm:$0xff]  }
 0x170   : > { %7729 = vtanh.f32 %v4752_v29  ;;  %v3700_v32 = vadd.f32 %v8446_v6, %v3699_v31  ;;  %v4756_v33 = vpop.f32.mrf.mxu1  ;;  %4947 = vmatmul.mubr.bf16.gmra.mxu1 %v7134_v24  ;;  %3897 = vmatprep.mubr.bf16.mxu0 %v7139_v25 }
 0x171   : > { %v7724_v34 = vpop.eup %7723  ;;  %v3701_v35 = vpop.f32.mrf.mxu0  ;;  %4954 = vmatprep.mubr.bf16.mxu1 %v7142_v28 }
 0x172   : > { %5959 = vst [vmem:[%s8465_s29 + $0xa0] sm:$0xff] %v7724_v34  ;;  %v4757_v36 = vadd.f32 %v4756_v33, %v3700_v32  ;;  %v4758_v37 = vpop.f32.mrf.mxu1  ;;  %v7158_v33 = vld [vmem:[%s8309_s23 + $0x508] ss:$16 sps:$4 sm:$0xff]   ;;  %v7163_v34 = vld [vmem:[%s8309_s23 + $0x524] ss:$16 sps:$4 sm:$0xff]  }
 0x173   : > { %v3702_v38 = vpop.f32.mrf.mxu0  ;;  %v7166_v37 = vld [vmem:[%s8309_s23 + $0x52c] ss:$16 sps:$4 sm:$0xff]  }
 0x174   : > { %7731 = vtanh.f32 %v4757_v36  ;;  %v3703_v40 = vadd.f32 %v8446_v6, %v3702_v38  ;;  %v4759_v41 = vpop.f32.mrf.mxu1 }
 0x175   : > { %v7726_v44 = vpop.eup %7725  ;;  %v3704_v45 = vpop.f32.mrf.mxu0 }
 0x176   : > { %5960 = vst [vmem:[%s8465_s29 + $0xa8] sm:$0xff] %v7726_v44  ;;  %v4760_v47 = vadd.f32 %v4759_v41, %v3703_v40  ;;  %v4761_v48 = vpop.f32.mrf.mxu1 }
 0x177   : > { %v3707_v49 = vpop.f32.mrf.mxu0  ;;  %3898 = vmatmul.mubr.bf16.gmra.mxu0 %v7137_v39  ;;  %v7161_v48 = vld [vmem:[%s8309_s23 + $0x520] ss:$16 sps:$4 sm:$0xff]  }
 0x178   : > { %7733 = vtanh.f32 %v4760_v47  ;;  %v3708_v50 = vadd.f32 %v8446_v6, %v3707_v49  ;;  %v4764_v51 = vpop.f32.mrf.mxu1  ;;  %4955 = vmatmul.mubr.bf16.gmra.mxu1 %v7140_v42  ;;  %3905 = vmatprep.mubr.bf16.mxu0 %v7145_v43 }
 0x179   : > { %v7728_v52 = vpop.eup %7727  ;;  %v3709_v53 = vpop.f32.mrf.mxu0  ;;  %4962 = vmatprep.mubr.bf16.mxu1 %v7148_v46 }
 0x17a   : > { %5961 = vst [vmem:[%s8465_s29 + $0xb0] sm:$0xff] %v7728_v52  ;;  %v4765_v54 = vadd.f32 %v4764_v51, %v3708_v50  ;;  %v4766_v55 = vpop.f32.mrf.mxu1  ;;  %v7164_v51 = vld [vmem:[%s8309_s23 + $0x528] ss:$16 sps:$4 sm:$0xff]   ;;  %v7169_v52 = vld [vmem:[%s8309_s23 + $0x544] ss:$16 sps:$4 sm:$0xff]  }
 0x17b   : > { %v3710_v56 = vpop.f32.mrf.mxu0  ;;  %v7172_v55 = vld [vmem:[%s8309_s23 + $0x54c] ss:$16 sps:$4 sm:$0xff]  }
 0x17c   : > { %7735 = vtanh.f32 %v4765_v54  ;;  %v3711_v58 = vadd.f32 %v8446_v6, %v3710_v56  ;;  %v4767_v59 = vpop.f32.mrf.mxu1 }
 0x17d   : > { %v7730_v62 = vpop.eup %7729  ;;  %v3712_v63 = vpop.f32.mrf.mxu0 }
 0x17e   : > { %5962 = vst [vmem:[%s8465_s29 + $0xb8] sm:$0xff] %v7730_v62  ;;  %v4768_v1 = vadd.f32 %v4767_v59, %v3711_v58  ;;  %v4769_v2 = vpop.f32.mrf.mxu1 }
 0x17f   : > { %v3715_v3 = vpop.f32.mrf.mxu0  ;;  %3906 = vmatmul.mubr.bf16.gmra.mxu0 %v7143_v57  ;;  %v7167_v2 = vld [vmem:[%s8309_s23 + $0x540] ss:$16 sps:$4 sm:$0xff]  }
 0x180   : > { %7737 = vtanh.f32 %v4768_v1  ;;  %v3716_v4 = vadd.f32 %v8446_v6, %v3715_v3  ;;  %v4772_v5 = vpop.f32.mrf.mxu1  ;;  %4963 = vmatmul.mubr.bf16.gmra.mxu1 %v7146_v60  ;;  %3913 = vmatprep.mubr.bf16.mxu0 %v7151_v61 }
 0x181   : > { %v7732_v7 = vpop.eup %7731  ;;  %v3717_v8 = vpop.f32.mrf.mxu0  ;;  %4970 = vmatprep.mubr.bf16.mxu1 %v7154_v0 }
 0x182   : > { %5963 = vst [vmem:[%s8465_s29 + $0xc0] sm:$0xff] %v7732_v7  ;;  %v4773_v9 = vadd.f32 %v4772_v5, %v3716_v4  ;;  %v4774_v10 = vpop.f32.mrf.mxu1  ;;  %v7170_v5 = vld [vmem:[%s8309_s23 + $0x548] ss:$16 sps:$4 sm:$0xff]   ;;  %v7175_v7 = vld [vmem:[%s8309_s23 + $0x564] ss:$16 sps:$4 sm:$0xff]  }
 0x183   : > { %v3718_v11 = vpop.f32.mrf.mxu0  ;;  %v7178_v10 = vld [vmem:[%s8309_s23 + $0x56c] ss:$16 sps:$4 sm:$0xff]  }
 0x184   : > { %7739 = vtanh.f32 %v4773_v9  ;;  %v3719_v13 = vadd.f32 %v8446_v6, %v3718_v11  ;;  %v4775_v14 = vpop.f32.mrf.mxu1 }
 0x185   : > { %v7734_v17 = vpop.eup %7733  ;;  %v3720_v18 = vpop.f32.mrf.mxu0 }
 0x186   : > { %5964 = vst [vmem:[%s8465_s29 + $0xc8] sm:$0xff] %v7734_v17  ;;  %v4776_v20 = vadd.f32 %v4775_v14, %v3719_v13  ;;  %v4777_v21 = vpop.f32.mrf.mxu1 }
 0x187   : > { %v3723_v22 = vpop.f32.mrf.mxu0  ;;  %3914 = vmatmul.mubr.bf16.gmra.mxu0 %v7149_v12  ;;  %v7173_v21 = vld [vmem:[%s8309_s23 + $0x560] ss:$16 sps:$4 sm:$0xff]  }
 0x188   : > { %7741 = vtanh.f32 %v4776_v20  ;;  %v3724_v23 = vadd.f32 %v8446_v6, %v3723_v22  ;;  %v4780_v24 = vpop.f32.mrf.mxu1  ;;  %4971 = vmatmul.mubr.bf16.gmra.mxu1 %v7152_v15  ;;  %3921 = vmatprep.mubr.bf16.mxu0 %v7157_v16 }
 0x189   : > { %v7736_v25 = vpop.eup %7735  ;;  %v3725_v26 = vpop.f32.mrf.mxu0  ;;  %4978 = vmatprep.mubr.bf16.mxu1 %v7160_v19 }
 0x18a   : > { %5965 = vst [vmem:[%s8465_s29 + $0xd0] sm:$0xff] %v7736_v25  ;;  %v4781_v27 = vadd.f32 %v4780_v24, %v3724_v23  ;;  %v4782_v28 = vpop.f32.mrf.mxu1  ;;  %v7176_v24 = vld [vmem:[%s8309_s23 + $0x568] ss:$16 sps:$4 sm:$0xff]   ;;  %v7181_v25 = vld [vmem:[%s8309_s23 + $0x584] ss:$16 sps:$4 sm:$0xff]  }
 0x18b   : > { %v3726_v29 = vpop.f32.mrf.mxu0  ;;  %v7184_v28 = vld [vmem:[%s8309_s23 + $0x58c] ss:$16 sps:$4 sm:$0xff]  }
 0x18c   : > { %7743 = vtanh.f32 %v4781_v27  ;;  %v3727_v31 = vadd.f32 %v8446_v6, %v3726_v29  ;;  %v4783_v32 = vpop.f32.mrf.mxu1 }
 0x18d   : > { %v7738_v35 = vpop.eup %7737  ;;  %v3728_v36 = vpop.f32.mrf.mxu0 }
 0x18e   : > { %5966 = vst [vmem:[%s8465_s29 + $0xd8] sm:$0xff] %v7738_v35  ;;  %v4784_v38 = vadd.f32 %v4783_v32, %v3727_v31  ;;  %v4785_v39 = vpop.f32.mrf.mxu1 }
 0x18f   : > { %v3731_v40 = vpop.f32.mrf.mxu0  ;;  %3922 = vmatmul.mubr.bf16.gmra.mxu0 %v7155_v30  ;;  %v7179_v39 = vld [vmem:[%s8309_s23 + $0x580] ss:$16 sps:$4 sm:$0xff]  }
 0x190   : > { %7745 = vtanh.f32 %v4784_v38  ;;  %v3732_v41 = vadd.f32 %v8446_v6, %v3731_v40  ;;  %v4788_v42 = vpop.f32.mrf.mxu1  ;;  %4979 = vmatmul.mubr.bf16.gmra.mxu1 %v7158_v33  ;;  %3929 = vmatprep.mubr.bf16.mxu0 %v7163_v34 }
 0x191   : > { %v7740_v43 = vpop.eup %7739  ;;  %v3733_v44 = vpop.f32.mrf.mxu0  ;;  %4986 = vmatprep.mubr.bf16.mxu1 %v7166_v37 }
 0x192   : > { %5967 = vst [vmem:[%s8465_s29 + $0xe0] sm:$0xff] %v7740_v43  ;;  %v4789_v45 = vadd.f32 %v4788_v42, %v3732_v41  ;;  %v4790_v46 = vpop.f32.mrf.mxu1  ;;  %v7182_v42 = vld [vmem:[%s8309_s23 + $0x588] ss:$16 sps:$4 sm:$0xff]   ;;  %v7187_v43 = vld [vmem:[%s8309_s23 + $0x5a4] ss:$16 sps:$4 sm:$0xff]  }
 0x193   : > { %v3734_v47 = vpop.f32.mrf.mxu0  ;;  %v7190_v46 = vld [vmem:[%s8309_s23 + $0x5ac] ss:$16 sps:$4 sm:$0xff]  }
 0x194   : > { %7747 = vtanh.f32 %v4789_v45  ;;  %v3735_v49 = vadd.f32 %v8446_v6, %v3734_v47  ;;  %v4791_v50 = vpop.f32.mrf.mxu1 }
 0x195   : > { %v7742_v53 = vpop.eup %7741  ;;  %v3736_v54 = vpop.f32.mrf.mxu0 }
 0x196   : > { %5968 = vst [vmem:[%s8465_s29 + $0xe8] sm:$0xff] %v7742_v53  ;;  %v4792_v56 = vadd.f32 %v4791_v50, %v3735_v49  ;;  %v4793_v57 = vpop.f32.mrf.mxu1  ;;  %v8614_v50 = vld [vmem:[%s9415_s2] ss:$0 sm:$0xff] }
 0x197   : > { %v3739_v58 = vpop.f32.mrf.mxu0  ;;  %3930 = vmatmul.mubr.bf16.gmra.mxu0 %v7161_v48  ;;  %v7185_v57 = vld [vmem:[%s8309_s23 + $0x5a0] ss:$16 sps:$4 sm:$0xff]  }
 0x198   : > { %7749 = vtanh.f32 %v4792_v56  ;;  %v3740_v59 = vadd.f32 %v8446_v6, %v3739_v58  ;;  %v4796_v60 = vpop.f32.mrf.mxu1  ;;  %4987 = vmatmul.mubr.bf16.gmra.mxu1 %v7164_v51  ;;  %3937 = vmatprep.mubr.bf16.mxu0 %v7169_v52 }
 0x199   : > { %v7744_v61 = vpop.eup %7743  ;;  %v3741_v62 = vpop.f32.mrf.mxu0  ;;  %4994 = vmatprep.mubr.bf16.mxu1 %v7172_v55 }
 0x19a   : > { %5969 = vst [vmem:[%s8465_s29 + $0xf0] sm:$0xff] %v7744_v61  ;;  %v4797_v63 = vadd.f32 %v4796_v60, %v3740_v59  ;;  %v4798_v0 = vpop.f32.mrf.mxu1  ;;  %v7188_v60 = vld [vmem:[%s8309_s23 + $0x5a8] ss:$16 sps:$4 sm:$0xff]   ;;  %v7193_v61 = vld [vmem:[%s8309_s23 + $0x5c4] ss:$16 sps:$4 sm:$0xff]  }
 0x19b   : > { %v3742_v1 = vpop.f32.mrf.mxu0  ;;  %v7196_v0 = vld [vmem:[%s8309_s23 + $0x5cc] ss:$16 sps:$4 sm:$0xff]  }
 0x19c   : > { %7751 = vtanh.f32 %v4797_v63  ;;  %v3743_v3 = vadd.f32 %v8446_v6, %v3742_v1  ;;  %v4799_v4 = vpop.f32.mrf.mxu1 }
 0x19d   : > { %v7746_v8 = vpop.eup %7745  ;;  %v3744_v9 = vpop.f32.mrf.mxu0 }
 0x19e   : > { %5970 = vst [vmem:[%s8465_s29 + $0xf8] sm:$0xff] %v7746_v8  ;;  %v4800_v11 = vadd.f32 %v4799_v4, %v3743_v3  ;;  %v4801_v12 = vpop.f32.mrf.mxu1 }
 0x19f   : > { %v3747_v13 = vpop.f32.mrf.mxu0  ;;  %3938 = vmatmul.mubr.bf16.gmra.mxu0 %v7167_v2  ;;  %v7191_v12 = vld [vmem:[%s8309_s23 + $0x5c0] ss:$16 sps:$4 sm:$0xff]  }
 0x1a0   : > { %7753 = vtanh.f32 %v4800_v11  ;;  %v3748_v14 = vadd.f32 %v8446_v6, %v3747_v13  ;;  %v4804_v15 = vpop.f32.mrf.mxu1  ;;  %4995 = vmatmul.mubr.bf16.gmra.mxu1 %v7170_v5  ;;  %3945 = vmatprep.mubr.bf16.mxu0 %v7175_v7 }
 0x1a1   : > { %v7748_v16 = vpop.eup %7747  ;;  %v3749_v17 = vpop.f32.mrf.mxu0  ;;  %5002 = vmatprep.mubr.bf16.mxu1 %v7178_v10 }
 0x1a2   : > { %5971 = vst [vmem:[%s8465_s29 + $0x100] sm:$0xff] %v7748_v16  ;;  %v4805_v18 = vadd.f32 %v4804_v15, %v3748_v14  ;;  %v4806_v19 = vpop.f32.mrf.mxu1  ;;  %v7194_v15 = vld [vmem:[%s8309_s23 + $0x5c8] ss:$16 sps:$4 sm:$0xff]   ;;  %v7199_v16 = vld [vmem:[%s8309_s23 + $0x5e4] ss:$16 sps:$4 sm:$0xff]  }
 0x1a3   : > { %v3750_v20 = vpop.f32.mrf.mxu0  ;;  %v7202_v19 = vld [vmem:[%s8309_s23 + $0x5ec] ss:$16 sps:$4 sm:$0xff]  }
 0x1a4   : > { %7755 = vtanh.f32 %v4805_v18  ;;  %v3751_v22 = vadd.f32 %v8446_v6, %v3750_v20  ;;  %v4807_v23 = vpop.f32.mrf.mxu1 }
 0x1a5   : > { %v7750_v26 = vpop.eup %7749  ;;  %v3752_v27 = vpop.f32.mrf.mxu0 }
 0x1a6   : > { %5972 = vst [vmem:[%s8465_s29 + $0x108] sm:$0xff] %v7750_v26  ;;  %v4808_v29 = vadd.f32 %v4807_v23, %v3751_v22  ;;  %v4809_v30 = vpop.f32.mrf.mxu1 }
 0x1a7   : > { %v3755_v31 = vpop.f32.mrf.mxu0  ;;  %3946 = vmatmul.mubr.bf16.gmra.mxu0 %v7173_v21  ;;  %v7197_v30 = vld [vmem:[%s8309_s23 + $0x5e0] ss:$16 sps:$4 sm:$0xff]  }
 0x1a8   : > { %7757 = vtanh.f32 %v4808_v29  ;;  %v3756_v32 = vadd.f32 %v8446_v6, %v3755_v31  ;;  %v4812_v33 = vpop.f32.mrf.mxu1  ;;  %5003 = vmatmul.mubr.bf16.gmra.mxu1 %v7176_v24  ;;  %3953 = vmatprep.mubr.bf16.mxu0 %v7181_v25 }
 0x1a9   : > { %v7752_v34 = vpop.eup %7751  ;;  %v3757_v35 = vpop.f32.mrf.mxu0  ;;  %5010 = vmatprep.mubr.bf16.mxu1 %v7184_v28 }
 0x1aa   : > { %5973 = vst [vmem:[%s8465_s29 + $0x110] sm:$0xff] %v7752_v34  ;;  %v4813_v36 = vadd.f32 %v4812_v33, %v3756_v32  ;;  %v4814_v37 = vpop.f32.mrf.mxu1  ;;  %v7200_v33 = vld [vmem:[%s8309_s23 + $0x5e8] ss:$16 sps:$4 sm:$0xff]   ;;  %v7205_v34 = vld [vmem:[%s8309_s23 + $0x604] ss:$16 sps:$4 sm:$0xff]  }
 0x1ab   : > { %v3758_v38 = vpop.f32.mrf.mxu0  ;;  %v7208_v37 = vld [vmem:[%s8309_s23 + $0x60c] ss:$16 sps:$4 sm:$0xff]  }
 0x1ac   : > { %7759 = vtanh.f32 %v4813_v36  ;;  %v3759_v40 = vadd.f32 %v8446_v6, %v3758_v38  ;;  %v4815_v41 = vpop.f32.mrf.mxu1 }
 0x1ad   : > { %v7754_v44 = vpop.eup %7753  ;;  %v3760_v45 = vpop.f32.mrf.mxu0 }
 0x1ae   : > { %5974 = vst [vmem:[%s8465_s29 + $0x118] sm:$0xff] %v7754_v44  ;;  %v4816_v47 = vadd.f32 %v4815_v41, %v3759_v40  ;;  %v4817_v48 = vpop.f32.mrf.mxu1 }
 0x1af   : > { %v3763_v49 = vpop.f32.mrf.mxu0  ;;  %3954 = vmatmul.mubr.bf16.gmra.mxu0 %v7179_v39  ;;  %v7203_v48 = vld [vmem:[%s8309_s23 + $0x600] ss:$16 sps:$4 sm:$0xff]  }
 0x1b0   : > { %7761 = vtanh.f32 %v4816_v47  ;;  %v3764_v6 = vadd.f32 %v8614_v50, %v3763_v49  ;;  %v4820_v51 = vpop.f32.mrf.mxu1  ;;  %5011 = vmatmul.mubr.bf16.gmra.mxu1 %v7182_v42  ;;  %3961 = vmatprep.mubr.bf16.mxu0 %v7187_v43 }
 0x1b1   : > { %v7756_v52 = vpop.eup %7755  ;;  %v3765_v53 = vpop.f32.mrf.mxu0  ;;  %5018 = vmatprep.mubr.bf16.mxu1 %v7190_v46 }
 0x1b2   : > { %5975 = vst [vmem:[%s8465_s29 + $0x120] sm:$0xff] %v7756_v52  ;;  %v4821_v54 = vadd.f32 %v4820_v51, %v3764_v6  ;;  %v4822_v55 = vpop.f32.mrf.mxu1  ;;  %v7206_v51 = vld [vmem:[%s8309_s23 + $0x608] ss:$16 sps:$4 sm:$0xff]   ;;  %v7211_v52 = vld [vmem:[%s8309_s23 + $0x624] ss:$16 sps:$4 sm:$0xff]  }
 0x1b3   : > { %v3766_v56 = vpop.f32.mrf.mxu0  ;;  %v7214_v55 = vld [vmem:[%s8309_s23 + $0x62c] ss:$16 sps:$4 sm:$0xff]  }
 0x1b4   : > { %7763 = vtanh.f32 %v4821_v54  ;;  %v3767_v58 = vadd.f32 %v8614_v50, %v3766_v56  ;;  %v4823_v59 = vpop.f32.mrf.mxu1 }
 0x1b5   : > { %v7758_v62 = vpop.eup %7757  ;;  %v3768_v63 = vpop.f32.mrf.mxu0 }
 0x1b6   : > { %5976 = vst [vmem:[%s8465_s29 + $0x128] sm:$0xff] %v7758_v62  ;;  %v4824_v1 = vadd.f32 %v4823_v59, %v3767_v58  ;;  %v4825_v2 = vpop.f32.mrf.mxu1 }
 0x1b7   : > { %v3771_v3 = vpop.f32.mrf.mxu0  ;;  %3962 = vmatmul.mubr.bf16.gmra.mxu0 %v7185_v57  ;;  %v7209_v2 = vld [vmem:[%s8309_s23 + $0x620] ss:$16 sps:$4 sm:$0xff]  }
 0x1b8   : > { %7765 = vtanh.f32 %v4824_v1  ;;  %v3772_v4 = vadd.f32 %v8614_v50, %v3771_v3  ;;  %v4828_v5 = vpop.f32.mrf.mxu1  ;;  %5019 = vmatmul.mubr.bf16.gmra.mxu1 %v7188_v60  ;;  %3969 = vmatprep.mubr.bf16.mxu0 %v7193_v61 }
 0x1b9   : > { %v7760_v7 = vpop.eup %7759  ;;  %v3773_v8 = vpop.f32.mrf.mxu0  ;;  %5026 = vmatprep.mubr.bf16.mxu1 %v7196_v0 }
 0x1ba   : > { %5977 = vst [vmem:[%s8465_s29 + $0x130] sm:$0xff] %v7760_v7  ;;  %v4829_v9 = vadd.f32 %v4828_v5, %v3772_v4  ;;  %v4830_v10 = vpop.f32.mrf.mxu1  ;;  %v7212_v5 = vld [vmem:[%s8309_s23 + $0x628] ss:$16 sps:$4 sm:$0xff]   ;;  %v7217_v7 = vld [vmem:[%s8309_s23 + $0x644] ss:$16 sps:$4 sm:$0xff]  }
 0x1bb   : > { %v3774_v11 = vpop.f32.mrf.mxu0  ;;  %v7220_v10 = vld [vmem:[%s8309_s23 + $0x64c] ss:$16 sps:$4 sm:$0xff]  }
 0x1bc   : > { %7767 = vtanh.f32 %v4829_v9  ;;  %v3775_v13 = vadd.f32 %v8614_v50, %v3774_v11  ;;  %v4831_v14 = vpop.f32.mrf.mxu1 }
 0x1bd   : > { %v7762_v17 = vpop.eup %7761  ;;  %v3776_v18 = vpop.f32.mrf.mxu0 }
 0x1be   : > { %5978 = vst [vmem:[%s8465_s29 + $0x138] sm:$0xff] %v7762_v17  ;;  %v4832_v20 = vadd.f32 %v4831_v14, %v3775_v13  ;;  %v4833_v21 = vpop.f32.mrf.mxu1 }
 0x1bf   : > { %v3779_v22 = vpop.f32.mrf.mxu0  ;;  %3970 = vmatmul.mubr.bf16.gmra.mxu0 %v7191_v12  ;;  %v7215_v21 = vld [vmem:[%s8309_s23 + $0x640] ss:$16 sps:$4 sm:$0xff]  }
 0x1c0   : > { %7769 = vtanh.f32 %v4832_v20  ;;  %v3780_v23 = vadd.f32 %v8614_v50, %v3779_v22  ;;  %v4836_v24 = vpop.f32.mrf.mxu1  ;;  %5027 = vmatmul.mubr.bf16.gmra.mxu1 %v7194_v15  ;;  %3977 = vmatprep.mubr.bf16.mxu0 %v7199_v16 }
 0x1c1   : > { %v7764_v25 = vpop.eup %7763  ;;  %v3781_v26 = vpop.f32.mrf.mxu0  ;;  %5034 = vmatprep.mubr.bf16.mxu1 %v7202_v19 }
 0x1c2   : > { %5979 = vst [vmem:[%s8465_s29 + $0x140] sm:$0xff] %v7764_v25  ;;  %v4837_v27 = vadd.f32 %v4836_v24, %v3780_v23  ;;  %v4838_v28 = vpop.f32.mrf.mxu1  ;;  %v7218_v24 = vld [vmem:[%s8309_s23 + $0x648] ss:$16 sps:$4 sm:$0xff]   ;;  %v7223_v25 = vld [vmem:[%s8309_s23 + $0x664] ss:$16 sps:$4 sm:$0xff]  }
 0x1c3   : > { %v3782_v29 = vpop.f32.mrf.mxu0  ;;  %v7226_v28 = vld [vmem:[%s8309_s23 + $0x66c] ss:$16 sps:$4 sm:$0xff]  }
 0x1c4   : > { %7771 = vtanh.f32 %v4837_v27  ;;  %v3783_v31 = vadd.f32 %v8614_v50, %v3782_v29  ;;  %v4839_v32 = vpop.f32.mrf.mxu1 }
 0x1c5   : > { %v7766_v35 = vpop.eup %7765  ;;  %v3784_v36 = vpop.f32.mrf.mxu0 }
 0x1c6   : > { %5980 = vst [vmem:[%s8465_s29 + $0x148] sm:$0xff] %v7766_v35  ;;  %v4840_v38 = vadd.f32 %v4839_v32, %v3783_v31  ;;  %v4841_v39 = vpop.f32.mrf.mxu1 }
 0x1c7   : > { %v3787_v40 = vpop.f32.mrf.mxu0  ;;  %3978 = vmatmul.mubr.bf16.gmra.mxu0 %v7197_v30  ;;  %v7221_v39 = vld [vmem:[%s8309_s23 + $0x660] ss:$16 sps:$4 sm:$0xff]  }
 0x1c8   : > { %7773 = vtanh.f32 %v4840_v38  ;;  %v3788_v41 = vadd.f32 %v8614_v50, %v3787_v40  ;;  %v4844_v42 = vpop.f32.mrf.mxu1  ;;  %5035 = vmatmul.mubr.bf16.gmra.mxu1 %v7200_v33  ;;  %3985 = vmatprep.mubr.bf16.mxu0 %v7205_v34 }
 0x1c9   : > { %v7768_v43 = vpop.eup %7767  ;;  %v3789_v44 = vpop.f32.mrf.mxu0  ;;  %5042 = vmatprep.mubr.bf16.mxu1 %v7208_v37 }
 0x1ca   : > { %5981 = vst [vmem:[%s8465_s29 + $0x150] sm:$0xff] %v7768_v43  ;;  %v4845_v45 = vadd.f32 %v4844_v42, %v3788_v41  ;;  %v4846_v46 = vpop.f32.mrf.mxu1  ;;  %v7224_v42 = vld [vmem:[%s8309_s23 + $0x668] ss:$16 sps:$4 sm:$0xff]   ;;  %v7229_v43 = vld [vmem:[%s8309_s23 + $0x684] ss:$16 sps:$4 sm:$0xff]  }
 0x1cb   : > { %v3790_v47 = vpop.f32.mrf.mxu0  ;;  %v7232_v46 = vld [vmem:[%s8309_s23 + $0x68c] ss:$16 sps:$4 sm:$0xff]  }
 0x1cc   : > { %7775 = vtanh.f32 %v4845_v45  ;;  %v3791_v49 = vadd.f32 %v8614_v50, %v3790_v47  ;;  %v4847_v6 = vpop.f32.mrf.mxu1 }
 0x1cd   : > { %v7770_v53 = vpop.eup %7769  ;;  %v3792_v54 = vpop.f32.mrf.mxu0 }
 0x1ce   : > { %5982 = vst [vmem:[%s8465_s29 + $0x158] sm:$0xff] %v7770_v53  ;;  %v4848_v56 = vadd.f32 %v4847_v6, %v3791_v49  ;;  %v4849_v57 = vpop.f32.mrf.mxu1 }
 0x1cf   : > { %v3795_v58 = vpop.f32.mrf.mxu0  ;;  %3986 = vmatmul.mubr.bf16.gmra.mxu0 %v7203_v48  ;;  %v7227_v57 = vld [vmem:[%s8309_s23 + $0x680] ss:$16 sps:$4 sm:$0xff]  }
 0x1d0   : > { %7777 = vtanh.f32 %v4848_v56  ;;  %v3796_v59 = vadd.f32 %v8614_v50, %v3795_v58  ;;  %v4852_v60 = vpop.f32.mrf.mxu1  ;;  %5043 = vmatmul.mubr.bf16.gmra.mxu1 %v7206_v51  ;;  %3993 = vmatprep.mubr.bf16.mxu0 %v7211_v52 }
 0x1d1   : > { %v7772_v61 = vpop.eup %7771  ;;  %v3797_v62 = vpop.f32.mrf.mxu0  ;;  %5050 = vmatprep.mubr.bf16.mxu1 %v7214_v55 }
 0x1d2   : > { %5983 = vst [vmem:[%s8465_s29 + $0x160] sm:$0xff] %v7772_v61  ;;  %v4853_v63 = vadd.f32 %v4852_v60, %v3796_v59  ;;  %v4854_v0 = vpop.f32.mrf.mxu1  ;;  %v7230_v60 = vld [vmem:[%s8309_s23 + $0x688] ss:$16 sps:$4 sm:$0xff]   ;;  %v7235_v61 = vld [vmem:[%s8309_s23 + $0x6a4] ss:$16 sps:$4 sm:$0xff]  }
 0x1d3   : > { %v3798_v1 = vpop.f32.mrf.mxu0  ;;  %v7238_v0 = vld [vmem:[%s8309_s23 + $0x6ac] ss:$16 sps:$4 sm:$0xff]  }
 0x1d4   : > { %7779 = vtanh.f32 %v4853_v63  ;;  %v3799_v3 = vadd.f32 %v8614_v50, %v3798_v1  ;;  %v4855_v4 = vpop.f32.mrf.mxu1 }
 0x1d5   : > { %v7774_v8 = vpop.eup %7773  ;;  %v3800_v9 = vpop.f32.mrf.mxu0 }
 0x1d6   : > { %5984 = vst [vmem:[%s8465_s29 + $0x168] sm:$0xff] %v7774_v8  ;;  %v4856_v11 = vadd.f32 %v4855_v4, %v3799_v3  ;;  %v4857_v12 = vpop.f32.mrf.mxu1 }
 0x1d7   : > { %v3803_v13 = vpop.f32.mrf.mxu0  ;;  %3994 = vmatmul.mubr.bf16.gmra.mxu0 %v7209_v2  ;;  %v7233_v12 = vld [vmem:[%s8309_s23 + $0x6a0] ss:$16 sps:$4 sm:$0xff]  }
 0x1d8   : > { %7781 = vtanh.f32 %v4856_v11  ;;  %v3804_v14 = vadd.f32 %v8614_v50, %v3803_v13  ;;  %v4860_v15 = vpop.f32.mrf.mxu1  ;;  %5051 = vmatmul.mubr.bf16.gmra.mxu1 %v7212_v5  ;;  %4001 = vmatprep.mubr.bf16.mxu0 %v7217_v7 }
 0x1d9   : > { %v7776_v16 = vpop.eup %7775  ;;  %v3805_v17 = vpop.f32.mrf.mxu0  ;;  %5058 = vmatprep.mubr.bf16.mxu1 %v7220_v10 }
 0x1da   : > { %5985 = vst [vmem:[%s8465_s29 + $0x170] sm:$0xff] %v7776_v16  ;;  %v4861_v18 = vadd.f32 %v4860_v15, %v3804_v14  ;;  %v4862_v19 = vpop.f32.mrf.mxu1  ;;  %v7236_v15 = vld [vmem:[%s8309_s23 + $0x6a8] ss:$16 sps:$4 sm:$0xff]   ;;  %v7241_v16 = vld [vmem:[%s8309_s23 + $0x6c4] ss:$16 sps:$4 sm:$0xff]  }
 0x1db   : > { %v3806_v20 = vpop.f32.mrf.mxu0  ;;  %v7244_v19 = vld [vmem:[%s8309_s23 + $0x6cc] ss:$16 sps:$4 sm:$0xff]  }
 0x1dc   : > { %7783 = vtanh.f32 %v4861_v18  ;;  %v3807_v22 = vadd.f32 %v8614_v50, %v3806_v20  ;;  %v4863_v23 = vpop.f32.mrf.mxu1 }
 0x1dd   : > { %v7778_v26 = vpop.eup %7777  ;;  %v3808_v27 = vpop.f32.mrf.mxu0 }
 0x1de   : > { %5986 = vst [vmem:[%s8465_s29 + $0x178] sm:$0xff] %v7778_v26  ;;  %v4864_v29 = vadd.f32 %v4863_v23, %v3807_v22  ;;  %v4865_v30 = vpop.f32.mrf.mxu1 }
 0x1df   : > { %v3811_v31 = vpop.f32.mrf.mxu0  ;;  %4002 = vmatmul.mubr.bf16.gmra.mxu0 %v7215_v21  ;;  %v7239_v30 = vld [vmem:[%s8309_s23 + $0x6c0] ss:$16 sps:$4 sm:$0xff]  }
 0x1e0   : > { %7785 = vtanh.f32 %v4864_v29  ;;  %v3812_v32 = vadd.f32 %v8614_v50, %v3811_v31  ;;  %v4868_v33 = vpop.f32.mrf.mxu1  ;;  %5059 = vmatmul.mubr.bf16.gmra.mxu1 %v7218_v24  ;;  %4009 = vmatprep.mubr.bf16.mxu0 %v7223_v25 }
 0x1e1   : > { %v7780_v34 = vpop.eup %7779  ;;  %v3813_v35 = vpop.f32.mrf.mxu0  ;;  %5066 = vmatprep.mubr.bf16.mxu1 %v7226_v28 }
 0x1e2   : > { %5987 = vst [vmem:[%s8465_s29 + $0x180] sm:$0xff] %v7780_v34  ;;  %v4869_v36 = vadd.f32 %v4868_v33, %v3812_v32  ;;  %v4870_v37 = vpop.f32.mrf.mxu1  ;;  %v7242_v33 = vld [vmem:[%s8309_s23 + $0x6c8] ss:$16 sps:$4 sm:$0xff]   ;;  %v7247_v34 = vld [vmem:[%s8309_s23 + $0x6e4] ss:$16 sps:$4 sm:$0xff]  }
 0x1e3   : > { %v3814_v38 = vpop.f32.mrf.mxu0  ;;  %v7250_v37 = vld [vmem:[%s8309_s23 + $0x6ec] ss:$16 sps:$4 sm:$0xff]  }
 0x1e4   : > { %7787 = vtanh.f32 %v4869_v36  ;;  %v3815_v40 = vadd.f32 %v8614_v50, %v3814_v38  ;;  %v4871_v41 = vpop.f32.mrf.mxu1 }
 0x1e5   : > { %v7782_v44 = vpop.eup %7781  ;;  %v3816_v45 = vpop.f32.mrf.mxu0 }
 0x1e6   : > { %5988 = vst [vmem:[%s8465_s29 + $0x188] sm:$0xff] %v7782_v44  ;;  %v4872_v47 = vadd.f32 %v4871_v41, %v3815_v40  ;;  %v4873_v48 = vpop.f32.mrf.mxu1 }
 0x1e7   : > { %v3819_v49 = vpop.f32.mrf.mxu0  ;;  %4010 = vmatmul.mubr.bf16.gmra.mxu0 %v7221_v39  ;;  %v7245_v48 = vld [vmem:[%s8309_s23 + $0x6e0] ss:$16 sps:$4 sm:$0xff]  }
 0x1e8   : > { %7789 = vtanh.f32 %v4872_v47  ;;  %v3820_v6 = vadd.f32 %v8614_v50, %v3819_v49  ;;  %v4876_v51 = vpop.f32.mrf.mxu1  ;;  %5067 = vmatmul.mubr.bf16.gmra.mxu1 %v7224_v42  ;;  %4017 = vmatprep.mubr.bf16.mxu0 %v7229_v43 }
 0x1e9   : > { %v7784_v52 = vpop.eup %7783  ;;  %v3821_v53 = vpop.f32.mrf.mxu0  ;;  %5074 = vmatprep.mubr.bf16.mxu1 %v7232_v46 }
 0x1ea   : > { %5989 = vst [vmem:[%s8465_s29 + $0x190] sm:$0xff] %v7784_v52  ;;  %v4877_v54 = vadd.f32 %v4876_v51, %v3820_v6  ;;  %v4878_v55 = vpop.f32.mrf.mxu1  ;;  %v7248_v51 = vld [vmem:[%s8309_s23 + $0x6e8] ss:$16 sps:$4 sm:$0xff]   ;;  %v7253_v52 = vld [vmem:[%s8309_s23 + $0x704] ss:$16 sps:$4 sm:$0xff]  }
 0x1eb   : > { %v3822_v56 = vpop.f32.mrf.mxu0  ;;  %v7256_v55 = vld [vmem:[%s8309_s23 + $0x70c] ss:$16 sps:$4 sm:$0xff]  }
 0x1ec   : > { %7791 = vtanh.f32 %v4877_v54  ;;  %v3823_v58 = vadd.f32 %v8614_v50, %v3822_v56  ;;  %v4879_v59 = vpop.f32.mrf.mxu1 }
 0x1ed   : > { %v7786_v62 = vpop.eup %7785  ;;  %v3824_v63 = vpop.f32.mrf.mxu0 }
 0x1ee   : > { %5990 = vst [vmem:[%s8465_s29 + $0x198] sm:$0xff] %v7786_v62  ;;  %v4880_v1 = vadd.f32 %v4879_v59, %v3823_v58  ;;  %v4881_v2 = vpop.f32.mrf.mxu1 }
 0x1ef   : > { %v3827_v3 = vpop.f32.mrf.mxu0  ;;  %4018 = vmatmul.mubr.bf16.gmra.mxu0 %v7227_v57  ;;  %v7251_v2 = vld [vmem:[%s8309_s23 + $0x700] ss:$16 sps:$4 sm:$0xff]  }
 0x1f0   : > { %7793 = vtanh.f32 %v4880_v1  ;;  %v3828_v4 = vadd.f32 %v8614_v50, %v3827_v3  ;;  %v4884_v5 = vpop.f32.mrf.mxu1  ;;  %5075 = vmatmul.mubr.bf16.gmra.mxu1 %v7230_v60  ;;  %4025 = vmatprep.mubr.bf16.mxu0 %v7235_v61 }
 0x1f1   : > { %v7788_v7 = vpop.eup %7787  ;;  %v3829_v8 = vpop.f32.mrf.mxu0  ;;  %5082 = vmatprep.mubr.bf16.mxu1 %v7238_v0 }
 0x1f2   : > { %5991 = vst [vmem:[%s8465_s29 + $0x1a0] sm:$0xff] %v7788_v7  ;;  %v4885_v9 = vadd.f32 %v4884_v5, %v3828_v4  ;;  %v4886_v10 = vpop.f32.mrf.mxu1  ;;  %v7254_v5 = vld [vmem:[%s8309_s23 + $0x708] ss:$16 sps:$4 sm:$0xff]   ;;  %v7259_v7 = vld [vmem:[%s8309_s23 + $0x724] ss:$16 sps:$4 sm:$0xff]  }
 0x1f3   : > { %v3830_v11 = vpop.f32.mrf.mxu0  ;;  %v7262_v10 = vld [vmem:[%s8309_s23 + $0x72c] ss:$16 sps:$4 sm:$0xff]  }
 0x1f4   : > { %7795 = vtanh.f32 %v4885_v9  ;;  %v3831_v13 = vadd.f32 %v8614_v50, %v3830_v11  ;;  %v4887_v14 = vpop.f32.mrf.mxu1 }
 0x1f5   : > { %v7790_v17 = vpop.eup %7789  ;;  %v3832_v18 = vpop.f32.mrf.mxu0 }
 0x1f6   : > { %5992 = vst [vmem:[%s8465_s29 + $0x1a8] sm:$0xff] %v7790_v17  ;;  %v4888_v20 = vadd.f32 %v4887_v14, %v3831_v13  ;;  %v4889_v21 = vpop.f32.mrf.mxu1 }
 0x1f7   : > { %v3835_v22 = vpop.f32.mrf.mxu0  ;;  %4026 = vmatmul.mubr.bf16.gmra.mxu0 %v7233_v12  ;;  %v7257_v21 = vld [vmem:[%s8309_s23 + $0x720] ss:$16 sps:$4 sm:$0xff]  }
 0x1f8   : > { %7797 = vtanh.f32 %v4888_v20  ;;  %v3836_v23 = vadd.f32 %v8614_v50, %v3835_v22  ;;  %v4892_v24 = vpop.f32.mrf.mxu1  ;;  %5083 = vmatmul.mubr.bf16.gmra.mxu1 %v7236_v15  ;;  %4033 = vmatprep.mubr.bf16.mxu0 %v7241_v16 }
 0x1f9   : > { %v7792_v25 = vpop.eup %7791  ;;  %v3837_v26 = vpop.f32.mrf.mxu0  ;;  %5090 = vmatprep.mubr.bf16.mxu1 %v7244_v19 }
 0x1fa   : > { %5993 = vst [vmem:[%s8465_s29 + $0x1b0] sm:$0xff] %v7792_v25  ;;  %v4893_v27 = vadd.f32 %v4892_v24, %v3836_v23  ;;  %v4894_v28 = vpop.f32.mrf.mxu1  ;;  %v7260_v24 = vld [vmem:[%s8309_s23 + $0x728] ss:$16 sps:$4 sm:$0xff]   ;;  %v7265_v25 = vld [vmem:[%s8309_s23 + $0x744] ss:$16 sps:$4 sm:$0xff]  }
 0x1fb   : > { %v3838_v29 = vpop.f32.mrf.mxu0  ;;  %v7268_v28 = vld [vmem:[%s8309_s23 + $0x74c] ss:$16 sps:$4 sm:$0xff]  }
 0x1fc   : > { %7799 = vtanh.f32 %v4893_v27  ;;  %v3839_v31 = vadd.f32 %v8614_v50, %v3838_v29  ;;  %v4895_v32 = vpop.f32.mrf.mxu1 }
 0x1fd   : > { %v7794_v35 = vpop.eup %7793  ;;  %v3840_v36 = vpop.f32.mrf.mxu0 }
 0x1fe   : > { %5994 = vst [vmem:[%s8465_s29 + $0x1b8] sm:$0xff] %v7794_v35  ;;  %v4896_v38 = vadd.f32 %v4895_v32, %v3839_v31  ;;  %v4897_v39 = vpop.f32.mrf.mxu1 }
 0x1ff   : > { %v3843_v40 = vpop.f32.mrf.mxu0  ;;  %4034 = vmatmul.mubr.bf16.gmra.mxu0 %v7239_v30  ;;  %v7263_v39 = vld [vmem:[%s8309_s23 + $0x740] ss:$16 sps:$4 sm:$0xff]  }
 0x200   : > { %7801 = vtanh.f32 %v4896_v38  ;;  %v3844_v41 = vadd.f32 %v8614_v50, %v3843_v40  ;;  %v4900_v42 = vpop.f32.mrf.mxu1  ;;  %5091 = vmatmul.mubr.bf16.gmra.mxu1 %v7242_v33  ;;  %4041 = vmatprep.mubr.bf16.mxu0 %v7247_v34 }
 0x201   : > { %v7796_v43 = vpop.eup %7795  ;;  %v3845_v44 = vpop.f32.mrf.mxu0  ;;  %5098 = vmatprep.mubr.bf16.mxu1 %v7250_v37 }
 0x202   : > { %5995 = vst [vmem:[%s8465_s29 + $0x1c0] sm:$0xff] %v7796_v43  ;;  %v4901_v45 = vadd.f32 %v4900_v42, %v3844_v41  ;;  %v4902_v46 = vpop.f32.mrf.mxu1  ;;  %v7266_v42 = vld [vmem:[%s8309_s23 + $0x748] ss:$16 sps:$4 sm:$0xff]   ;;  %v7271_v43 = vld [vmem:[%s8309_s23 + $0x764] ss:$16 sps:$4 sm:$0xff]  }
 0x203   : > { %v3846_v47 = vpop.f32.mrf.mxu0  ;;  %v7274_v46 = vld [vmem:[%s8309_s23 + $0x76c] ss:$16 sps:$4 sm:$0xff]  }
 0x204   : > { %7803 = vtanh.f32 %v4901_v45  ;;  %v3847_v49 = vadd.f32 %v8614_v50, %v3846_v47  ;;  %v4903_v6 = vpop.f32.mrf.mxu1 }
 0x205   : > { %v7798_v53 = vpop.eup %7797  ;;  %v3848_v54 = vpop.f32.mrf.mxu0 }
 0x206   : > { %5996 = vst [vmem:[%s8465_s29 + $0x1c8] sm:$0xff] %v7798_v53  ;;  %v4904_v56 = vadd.f32 %v4903_v6, %v3847_v49  ;;  %v4905_v57 = vpop.f32.mrf.mxu1 }
 0x207   : > { %v3851_v58 = vpop.f32.mrf.mxu0  ;;  %4042 = vmatmul.mubr.bf16.gmra.mxu0 %v7245_v48  ;;  %v7269_v57 = vld [vmem:[%s8309_s23 + $0x760] ss:$16 sps:$4 sm:$0xff]  }
 0x208   : > { %7805 = vtanh.f32 %v4904_v56  ;;  %v3852_v59 = vadd.f32 %v8614_v50, %v3851_v58  ;;  %v4908_v60 = vpop.f32.mrf.mxu1  ;;  %5099 = vmatmul.mubr.bf16.gmra.mxu1 %v7248_v51  ;;  %4049 = vmatprep.mubr.bf16.mxu0 %v7253_v52 }
 0x209   : > { %v7800_v61 = vpop.eup %7799  ;;  %v3853_v62 = vpop.f32.mrf.mxu0  ;;  %5106 = vmatprep.mubr.bf16.mxu1 %v7256_v55 }
 0x20a   : > { %5997 = vst [vmem:[%s8465_s29 + $0x1d0] sm:$0xff] %v7800_v61  ;;  %v4909_v63 = vadd.f32 %v4908_v60, %v3852_v59  ;;  %v4910_v0 = vpop.f32.mrf.mxu1  ;;  %v7272_v60 = vld [vmem:[%s8309_s23 + $0x768] ss:$16 sps:$4 sm:$0xff]   ;;  %v7277_v61 = vld [vmem:[%s8309_s23 + $0x784] ss:$16 sps:$4 sm:$0xff]  }
 0x20b   : > { %v3854_v1 = vpop.f32.mrf.mxu0  ;;  %v7280_v0 = vld [vmem:[%s8309_s23 + $0x78c] ss:$16 sps:$4 sm:$0xff]  }
 0x20c   : > { %7807 = vtanh.f32 %v4909_v63  ;;  %v3855_v3 = vadd.f32 %v8614_v50, %v3854_v1  ;;  %v4911_v4 = vpop.f32.mrf.mxu1 }
 0x20d   : > { %v7802_v8 = vpop.eup %7801  ;;  %v3856_v9 = vpop.f32.mrf.mxu0 }
 0x20e   : > { %5998 = vst [vmem:[%s8465_s29 + $0x1d8] sm:$0xff] %v7802_v8  ;;  %v4912_v11 = vadd.f32 %v4911_v4, %v3855_v3  ;;  %v4913_v12 = vpop.f32.mrf.mxu1 }
 0x20f   : > { %v3859_v13 = vpop.f32.mrf.mxu0  ;;  %4050 = vmatmul.mubr.bf16.gmra.mxu0 %v7251_v2  ;;  %v7275_v12 = vld [vmem:[%s8309_s23 + $0x780] ss:$16 sps:$4 sm:$0xff]  }
 0x210   : > { %7809 = vtanh.f32 %v4912_v11  ;;  %v3860_v14 = vadd.f32 %v8614_v50, %v3859_v13  ;;  %v4916_v15 = vpop.f32.mrf.mxu1  ;;  %5107 = vmatmul.mubr.bf16.gmra.mxu1 %v7254_v5  ;;  %4057 = vmatprep.mubr.bf16.mxu0 %v7259_v7 }
 0x211   : > { %v7804_v16 = vpop.eup %7803  ;;  %v3861_v17 = vpop.f32.mrf.mxu0  ;;  %5114 = vmatprep.mubr.bf16.mxu1 %v7262_v10 }
 0x212   : > { %5999 = vst [vmem:[%s8465_s29 + $0x1e0] sm:$0xff] %v7804_v16  ;;  %v4917_v18 = vadd.f32 %v4916_v15, %v3860_v14  ;;  %v4918_v19 = vpop.f32.mrf.mxu1  ;;  %v7278_v15 = vld [vmem:[%s8309_s23 + $0x788] ss:$16 sps:$4 sm:$0xff]   ;;  %v7283_v16 = vld [vmem:[%s8309_s23 + $0x7a4] ss:$16 sps:$4 sm:$0xff]  }
 0x213   : > { %v3862_v20 = vpop.f32.mrf.mxu0  ;;  %v7286_v19 = vld [vmem:[%s8309_s23 + $0x7ac] ss:$16 sps:$4 sm:$0xff]  }
 0x214   : > { %7811 = vtanh.f32 %v4917_v18  ;;  %v3863_v22 = vadd.f32 %v8614_v50, %v3862_v20  ;;  %v4919_v23 = vpop.f32.mrf.mxu1 }
 0x215   : > { %v7806_v26 = vpop.eup %7805  ;;  %v3864_v27 = vpop.f32.mrf.mxu0 }
 0x216   : > { %6000 = vst [vmem:[%s8465_s29 + $0x1e8] sm:$0xff] %v7806_v26  ;;  %v4920_v29 = vadd.f32 %v4919_v23, %v3863_v22  ;;  %v4921_v30 = vpop.f32.mrf.mxu1 }
 0x217   : > { %v3867_v31 = vpop.f32.mrf.mxu0  ;;  %4058 = vmatmul.mubr.bf16.gmra.mxu0 %v7257_v21  ;;  %v7281_v30 = vld [vmem:[%s8309_s23 + $0x7a0] ss:$16 sps:$4 sm:$0xff]  }
 0x218   : > { %7813 = vtanh.f32 %v4920_v29  ;;  %v3868_v32 = vadd.f32 %v8614_v50, %v3867_v31  ;;  %v4924_v33 = vpop.f32.mrf.mxu1  ;;  %5115 = vmatmul.mubr.bf16.gmra.mxu1 %v7260_v24  ;;  %4065 = vmatprep.mubr.bf16.mxu0 %v7265_v25 }
 0x219   : > { %v7808_v34 = vpop.eup %7807  ;;  %v3869_v35 = vpop.f32.mrf.mxu0  ;;  %5122 = vmatprep.mubr.bf16.mxu1 %v7268_v28 }
 0x21a   : > { %6001 = vst [vmem:[%s8465_s29 + $0x1f0] sm:$0xff] %v7808_v34  ;;  %v4925_v36 = vadd.f32 %v4924_v33, %v3868_v32  ;;  %v4926_v37 = vpop.f32.mrf.mxu1  ;;  %v7284_v33 = vld [vmem:[%s8309_s23 + $0x7a8] ss:$16 sps:$4 sm:$0xff]   ;;  %v7289_v34 = vld [vmem:[%s8309_s23 + $0x7c4] ss:$16 sps:$4 sm:$0xff]  }
 0x21b   : > { %v3870_v38 = vpop.f32.mrf.mxu0  ;;  %v7292_v37 = vld [vmem:[%s8309_s23 + $0x7cc] ss:$16 sps:$4 sm:$0xff]  }
 0x21c   : > { %7815 = vtanh.f32 %v4925_v36  ;;  %v3871_v40 = vadd.f32 %v8614_v50, %v3870_v38  ;;  %v4927_v41 = vpop.f32.mrf.mxu1 }
 0x21d   : > { %v7810_v44 = vpop.eup %7809  ;;  %v3872_v45 = vpop.f32.mrf.mxu0 }
 0x21e   : > { %6002 = vst [vmem:[%s8465_s29 + $0x1f8] sm:$0xff] %v7810_v44  ;;  %v4928_v47 = vadd.f32 %v4927_v41, %v3871_v40  ;;  %v4929_v48 = vpop.f32.mrf.mxu1 }
 0x21f   : > { %v3875_v49 = vpop.f32.mrf.mxu0  ;;  %4066 = vmatmul.mubr.bf16.gmra.mxu0 %v7263_v39  ;;  %v7287_v48 = vld [vmem:[%s8309_s23 + $0x7c0] ss:$16 sps:$4 sm:$0xff]  }
 0x220   : > { %7817 = vtanh.f32 %v4928_v47  ;;  %v3876_v6 = vadd.f32 %v8614_v50, %v3875_v49  ;;  %v4932_v51 = vpop.f32.mrf.mxu1  ;;  %5123 = vmatmul.mubr.bf16.gmra.mxu1 %v7266_v42  ;;  %4073 = vmatprep.mubr.bf16.mxu0 %v7271_v43 }
 0x221   : > { %v7812_v52 = vpop.eup %7811  ;;  %v3877_v53 = vpop.f32.mrf.mxu0  ;;  %5130 = vmatprep.mubr.bf16.mxu1 %v7274_v46 }
 0x222   : > { %6003 = vst [vmem:[%s8465_s29 + $0x200] sm:$0xff] %v7812_v52  ;;  %v4933_v54 = vadd.f32 %v4932_v51, %v3876_v6  ;;  %v4934_v55 = vpop.f32.mrf.mxu1  ;;  %v7290_v51 = vld [vmem:[%s8309_s23 + $0x7c8] ss:$16 sps:$4 sm:$0xff]   ;;  %v7295_v52 = vld [vmem:[%s8309_s23 + $0x7e4] ss:$16 sps:$4 sm:$0xff]  }
 0x223   : > { %v3878_v56 = vpop.f32.mrf.mxu0  ;;  %v7298_v55 = vld [vmem:[%s8309_s23 + $0x7ec] ss:$16 sps:$4 sm:$0xff]  }
 0x224   : > { %7819 = vtanh.f32 %v4933_v54  ;;  %v3879_v58 = vadd.f32 %v8614_v50, %v3878_v56  ;;  %v4935_v59 = vpop.f32.mrf.mxu1 }
 0x225   : > { %v7814_v62 = vpop.eup %7813  ;;  %v3880_v63 = vpop.f32.mrf.mxu0 }
 0x226   : > { %6004 = vst [vmem:[%s8465_s29 + $0x208] sm:$0xff] %v7814_v62  ;;  %v4936_v1 = vadd.f32 %v4935_v59, %v3879_v58  ;;  %v4937_v2 = vpop.f32.mrf.mxu1 }
 0x227   : > { %v3883_v3 = vpop.f32.mrf.mxu0  ;;  %4074 = vmatmul.mubr.bf16.gmra.mxu0 %v7269_v57  ;;  %v7293_v2 = vld [vmem:[%s8309_s23 + $0x7e0] ss:$16 sps:$4 sm:$0xff]  }
 0x228   : > { %7821 = vtanh.f32 %v4936_v1  ;;  %v3884_v4 = vadd.f32 %v8614_v50, %v3883_v3  ;;  %v4940_v5 = vpop.f32.mrf.mxu1  ;;  %5131 = vmatmul.mubr.bf16.gmra.mxu1 %v7272_v60  ;;  %4081 = vmatprep.mubr.bf16.mxu0 %v7277_v61 }
 0x229   : > { %v7816_v7 = vpop.eup %7815  ;;  %v3885_v8 = vpop.f32.mrf.mxu0  ;;  %5138 = vmatprep.mubr.bf16.mxu1 %v7280_v0 }
 0x22a   : > { %6005 = vst [vmem:[%s8465_s29 + $0x210] sm:$0xff] %v7816_v7  ;;  %v4941_v9 = vadd.f32 %v4940_v5, %v3884_v4  ;;  %v4942_v10 = vpop.f32.mrf.mxu1  ;;  %v7296_v5 = vld [vmem:[%s8309_s23 + $0x7e8] ss:$16 sps:$4 sm:$0xff]   ;;  %v7301_v7 = vld [vmem:[%s8309_s23 + $0x804] ss:$16 sps:$4 sm:$0xff]  }
 0x22b   : > { %v3886_v11 = vpop.f32.mrf.mxu0  ;;  %v7304_v10 = vld [vmem:[%s8309_s23 + $0x80c] ss:$16 sps:$4 sm:$0xff]  }
 0x22c   : > { %7823 = vtanh.f32 %v4941_v9  ;;  %v3887_v13 = vadd.f32 %v8614_v50, %v3886_v11  ;;  %v4943_v14 = vpop.f32.mrf.mxu1 }
 0x22d   : > { %v7818_v17 = vpop.eup %7817  ;;  %v3888_v18 = vpop.f32.mrf.mxu0 }
 0x22e   : > { %6006 = vst [vmem:[%s8465_s29 + $0x218] sm:$0xff] %v7818_v17  ;;  %v4944_v20 = vadd.f32 %v4943_v14, %v3887_v13  ;;  %v4945_v21 = vpop.f32.mrf.mxu1 }
 0x22f   : > { %v3891_v22 = vpop.f32.mrf.mxu0  ;;  %4082 = vmatmul.mubr.bf16.gmra.mxu0 %v7275_v12  ;;  %v7299_v21 = vld [vmem:[%s8309_s23 + $0x800] ss:$16 sps:$4 sm:$0xff]  }
 0x230   : > { %7825 = vtanh.f32 %v4944_v20  ;;  %v3892_v23 = vadd.f32 %v8614_v50, %v3891_v22  ;;  %v4948_v24 = vpop.f32.mrf.mxu1  ;;  %5139 = vmatmul.mubr.bf16.gmra.mxu1 %v7278_v15  ;;  %4089 = vmatprep.mubr.bf16.mxu0 %v7283_v16 }
 0x231   : > { %v7820_v25 = vpop.eup %7819  ;;  %v3893_v26 = vpop.f32.mrf.mxu0  ;;  %5146 = vmatprep.mubr.bf16.mxu1 %v7286_v19 }
 0x232   : > { %6007 = vst [vmem:[%s8465_s29 + $0x220] sm:$0xff] %v7820_v25  ;;  %v4949_v27 = vadd.f32 %v4948_v24, %v3892_v23  ;;  %v4950_v28 = vpop.f32.mrf.mxu1  ;;  %v7302_v24 = vld [vmem:[%s8309_s23 + $0x808] ss:$16 sps:$4 sm:$0xff]   ;;  %v7307_v25 = vld [vmem:[%s8309_s23 + $0x824] ss:$16 sps:$4 sm:$0xff]  }
 0x233   : > { %v3894_v29 = vpop.f32.mrf.mxu0  ;;  %v7310_v28 = vld [vmem:[%s8309_s23 + $0x82c] ss:$16 sps:$4 sm:$0xff]  }
 0x234   : > { %7827 = vtanh.f32 %v4949_v27  ;;  %v3895_v31 = vadd.f32 %v8614_v50, %v3894_v29  ;;  %v4951_v32 = vpop.f32.mrf.mxu1 }
 0x235   : > { %v7822_v35 = vpop.eup %7821  ;;  %v3896_v36 = vpop.f32.mrf.mxu0 }
 0x236   : > { %6008 = vst [vmem:[%s8465_s29 + $0x228] sm:$0xff] %v7822_v35  ;;  %v4952_v38 = vadd.f32 %v4951_v32, %v3895_v31  ;;  %v4953_v39 = vpop.f32.mrf.mxu1  ;;  %v8779_v32 = vld [vmem:[%s9415_s2] ss:$0 sm:$0xff] }
 0x237   : > { %v3899_v40 = vpop.f32.mrf.mxu0  ;;  %4090 = vmatmul.mubr.bf16.gmra.mxu0 %v7281_v30  ;;  %v7305_v39 = vld [vmem:[%s8309_s23 + $0x820] ss:$16 sps:$4 sm:$0xff]  }
 0x238   : > { %7829 = vtanh.f32 %v4952_v38  ;;  %v3900_v41 = vadd.f32 %v8614_v50, %v3899_v40  ;;  %v4956_v42 = vpop.f32.mrf.mxu1  ;;  %5147 = vmatmul.mubr.bf16.gmra.mxu1 %v7284_v33  ;;  %4097 = vmatprep.mubr.bf16.mxu0 %v7289_v34 }
 0x239   : > { %v7824_v43 = vpop.eup %7823  ;;  %v3901_v44 = vpop.f32.mrf.mxu0  ;;  %5154 = vmatprep.mubr.bf16.mxu1 %v7292_v37 }
 0x23a   : > { %6009 = vst [vmem:[%s8465_s29 + $0x230] sm:$0xff] %v7824_v43  ;;  %v4957_v45 = vadd.f32 %v4956_v42, %v3900_v41  ;;  %v4958_v46 = vpop.f32.mrf.mxu1  ;;  %v7308_v42 = vld [vmem:[%s8309_s23 + $0x828] ss:$16 sps:$4 sm:$0xff]   ;;  %v7313_v43 = vld [vmem:[%s8309_s23 + $0x844] ss:$16 sps:$4 sm:$0xff]  }
 0x23b   : > { %v3902_v47 = vpop.f32.mrf.mxu0  ;;  %v7316_v46 = vld [vmem:[%s8309_s23 + $0x84c] ss:$16 sps:$4 sm:$0xff]  }
 0x23c   : > { %7831 = vtanh.f32 %v4957_v45  ;;  %v3903_v49 = vadd.f32 %v8614_v50, %v3902_v47  ;;  %v4959_v6 = vpop.f32.mrf.mxu1 }
 0x23d   : > { %v7826_v53 = vpop.eup %7825  ;;  %v3904_v54 = vpop.f32.mrf.mxu0 }
 0x23e   : > { %6010 = vst [vmem:[%s8465_s29 + $0x238] sm:$0xff] %v7826_v53  ;;  %v4960_v56 = vadd.f32 %v4959_v6, %v3903_v49  ;;  %v4961_v57 = vpop.f32.mrf.mxu1 }
 0x23f   : > { %v3907_v58 = vpop.f32.mrf.mxu0  ;;  %4098 = vmatmul.mubr.bf16.gmra.mxu0 %v7287_v48  ;;  %v7311_v57 = vld [vmem:[%s8309_s23 + $0x840] ss:$16 sps:$4 sm:$0xff]  }
 0x240   : > { %7833 = vtanh.f32 %v4960_v56  ;;  %v3908_v59 = vadd.f32 %v8614_v50, %v3907_v58  ;;  %v4964_v60 = vpop.f32.mrf.mxu1  ;;  %5155 = vmatmul.mubr.bf16.gmra.mxu1 %v7290_v51  ;;  %4105 = vmatprep.mubr.bf16.mxu0 %v7295_v52 }
 0x241   : > { %v7828_v61 = vpop.eup %7827  ;;  %v3909_v62 = vpop.f32.mrf.mxu0  ;;  %5162 = vmatprep.mubr.bf16.mxu1 %v7298_v55 }
 0x242   : > { %6011 = vst [vmem:[%s8465_s29 + $0x240] sm:$0xff] %v7828_v61  ;;  %v4965_v63 = vadd.f32 %v4964_v60, %v3908_v59  ;;  %v4966_v0 = vpop.f32.mrf.mxu1  ;;  %v7314_v60 = vld [vmem:[%s8309_s23 + $0x848] ss:$16 sps:$4 sm:$0xff]   ;;  %v7319_v61 = vld [vmem:[%s8309_s23 + $0x864] ss:$16 sps:$4 sm:$0xff]  }
 0x243   : > { %v3910_v1 = vpop.f32.mrf.mxu0  ;;  %v7322_v0 = vld [vmem:[%s8309_s23 + $0x86c] ss:$16 sps:$4 sm:$0xff]  }
 0x244   : > { %7835 = vtanh.f32 %v4965_v63  ;;  %v3911_v3 = vadd.f32 %v8614_v50, %v3910_v1  ;;  %v4967_v4 = vpop.f32.mrf.mxu1 }
 0x245   : > { %v7830_v8 = vpop.eup %7829  ;;  %v3912_v9 = vpop.f32.mrf.mxu0 }
 0x246   : > { %6012 = vst [vmem:[%s8465_s29 + $0x248] sm:$0xff] %v7830_v8  ;;  %v4968_v11 = vadd.f32 %v4967_v4, %v3911_v3  ;;  %v4969_v12 = vpop.f32.mrf.mxu1 }
 0x247   : > { %v3915_v13 = vpop.f32.mrf.mxu0  ;;  %4106 = vmatmul.mubr.bf16.gmra.mxu0 %v7293_v2  ;;  %v7317_v12 = vld [vmem:[%s8309_s23 + $0x860] ss:$16 sps:$4 sm:$0xff]  }
 0x248   : > { %7837 = vtanh.f32 %v4968_v11  ;;  %v3916_v14 = vadd.f32 %v8614_v50, %v3915_v13  ;;  %v4972_v15 = vpop.f32.mrf.mxu1  ;;  %5163 = vmatmul.mubr.bf16.gmra.mxu1 %v7296_v5  ;;  %4113 = vmatprep.mubr.bf16.mxu0 %v7301_v7 }
 0x249   : > { %v7832_v16 = vpop.eup %7831  ;;  %v3917_v17 = vpop.f32.mrf.mxu0  ;;  %5170 = vmatprep.mubr.bf16.mxu1 %v7304_v10 }
 0x24a   : > { %6013 = vst [vmem:[%s8465_s29 + $0x250] sm:$0xff] %v7832_v16  ;;  %v4973_v18 = vadd.f32 %v4972_v15, %v3916_v14  ;;  %v4974_v19 = vpop.f32.mrf.mxu1  ;;  %v7320_v15 = vld [vmem:[%s8309_s23 + $0x868] ss:$16 sps:$4 sm:$0xff]   ;;  %v7325_v16 = vld [vmem:[%s8309_s23 + $0x884] ss:$16 sps:$4 sm:$0xff]  }
 0x24b   : > { %v3918_v20 = vpop.f32.mrf.mxu0  ;;  %v7328_v19 = vld [vmem:[%s8309_s23 + $0x88c] ss:$16 sps:$4 sm:$0xff]  }
 0x24c   : > { %7839 = vtanh.f32 %v4973_v18  ;;  %v3919_v22 = vadd.f32 %v8614_v50, %v3918_v20  ;;  %v4975_v23 = vpop.f32.mrf.mxu1 }
 0x24d   : > { %v7834_v26 = vpop.eup %7833  ;;  %v3920_v27 = vpop.f32.mrf.mxu0 }
 0x24e   : > { %6014 = vst [vmem:[%s8465_s29 + $0x258] sm:$0xff] %v7834_v26  ;;  %v4976_v29 = vadd.f32 %v4975_v23, %v3919_v22  ;;  %v4977_v30 = vpop.f32.mrf.mxu1 }
 0x24f   : > { %v3923_v31 = vpop.f32.mrf.mxu0  ;;  %4114 = vmatmul.mubr.bf16.gmra.mxu0 %v7299_v21  ;;  %v7323_v30 = vld [vmem:[%s8309_s23 + $0x880] ss:$16 sps:$4 sm:$0xff]  }
 0x250   : > { %7841 = vtanh.f32 %v4976_v29  ;;  %v3924_v50 = vadd.f32 %v8779_v32, %v3923_v31  ;;  %v4980_v33 = vpop.f32.mrf.mxu1  ;;  %5171 = vmatmul.mubr.bf16.gmra.mxu1 %v7302_v24  ;;  %4121 = vmatprep.mubr.bf16.mxu0 %v7307_v25 }
 0x251   : > { %v7836_v34 = vpop.eup %7835  ;;  %v3925_v35 = vpop.f32.mrf.mxu0  ;;  %5178 = vmatprep.mubr.bf16.mxu1 %v7310_v28 }
 0x252   : > { %6015 = vst [vmem:[%s8465_s29 + $0x260] sm:$0xff] %v7836_v34  ;;  %v4981_v36 = vadd.f32 %v4980_v33, %v3924_v50  ;;  %v4982_v37 = vpop.f32.mrf.mxu1  ;;  %v7326_v33 = vld [vmem:[%s8309_s23 + $0x888] ss:$16 sps:$4 sm:$0xff]   ;;  %v7331_v34 = vld [vmem:[%s8309_s23 + $0x8a4] ss:$16 sps:$4 sm:$0xff]  }
 0x253   : > { %v3926_v38 = vpop.f32.mrf.mxu0  ;;  %v7334_v37 = vld [vmem:[%s8309_s23 + $0x8ac] ss:$16 sps:$4 sm:$0xff]  }
 0x254   : > { %7843 = vtanh.f32 %v4981_v36  ;;  %v3927_v40 = vadd.f32 %v8779_v32, %v3926_v38  ;;  %v4983_v41 = vpop.f32.mrf.mxu1 }
 0x255   : > { %v7838_v44 = vpop.eup %7837  ;;  %v3928_v45 = vpop.f32.mrf.mxu0 }
 0x256   : > { %6016 = vst [vmem:[%s8465_s29 + $0x268] sm:$0xff] %v7838_v44  ;;  %v4984_v47 = vadd.f32 %v4983_v41, %v3927_v40  ;;  %v4985_v48 = vpop.f32.mrf.mxu1 }
 0x257   : > { %v3931_v49 = vpop.f32.mrf.mxu0  ;;  %4122 = vmatmul.mubr.bf16.gmra.mxu0 %v7305_v39  ;;  %v7329_v48 = vld [vmem:[%s8309_s23 + $0x8a0] ss:$16 sps:$4 sm:$0xff]  }
 0x258   : > { %7845 = vtanh.f32 %v4984_v47  ;;  %v3932_v6 = vadd.f32 %v8779_v32, %v3931_v49  ;;  %v4988_v51 = vpop.f32.mrf.mxu1  ;;  %5179 = vmatmul.mubr.bf16.gmra.mxu1 %v7308_v42  ;;  %4129 = vmatprep.mubr.bf16.mxu0 %v7313_v43 }
 0x259   : > { %v7840_v52 = vpop.eup %7839  ;;  %v3933_v53 = vpop.f32.mrf.mxu0  ;;  %5186 = vmatprep.mubr.bf16.mxu1 %v7316_v46 }
 0x25a   : > { %6017 = vst [vmem:[%s8465_s29 + $0x270] sm:$0xff] %v7840_v52  ;;  %v4989_v54 = vadd.f32 %v4988_v51, %v3932_v6  ;;  %v4990_v55 = vpop.f32.mrf.mxu1  ;;  %v7332_v51 = vld [vmem:[%s8309_s23 + $0x8a8] ss:$16 sps:$4 sm:$0xff]   ;;  %v7337_v52 = vld [vmem:[%s8309_s23 + $0x8c4] ss:$16 sps:$4 sm:$0xff]  }
 0x25b   : > { %v3934_v56 = vpop.f32.mrf.mxu0  ;;  %v7340_v55 = vld [vmem:[%s8309_s23 + $0x8cc] ss:$16 sps:$4 sm:$0xff]  }
 0x25c   : > { %7847 = vtanh.f32 %v4989_v54  ;;  %v3935_v58 = vadd.f32 %v8779_v32, %v3934_v56  ;;  %v4991_v59 = vpop.f32.mrf.mxu1 }
 0x25d   : > { %v7842_v62 = vpop.eup %7841  ;;  %v3936_v63 = vpop.f32.mrf.mxu0 }
 0x25e   : > { %6018 = vst [vmem:[%s8465_s29 + $0x278] sm:$0xff] %v7842_v62  ;;  %v4992_v1 = vadd.f32 %v4991_v59, %v3935_v58  ;;  %v4993_v2 = vpop.f32.mrf.mxu1 }
 0x25f   : > { %v3939_v3 = vpop.f32.mrf.mxu0  ;;  %4130 = vmatmul.mubr.bf16.gmra.mxu0 %v7311_v57  ;;  %v7335_v2 = vld [vmem:[%s8309_s23 + $0x8c0] ss:$16 sps:$4 sm:$0xff]  }
 0x260   : > { %7849 = vtanh.f32 %v4992_v1  ;;  %v3940_v4 = vadd.f32 %v8779_v32, %v3939_v3  ;;  %v4996_v5 = vpop.f32.mrf.mxu1  ;;  %5187 = vmatmul.mubr.bf16.gmra.mxu1 %v7314_v60  ;;  %4137 = vmatprep.mubr.bf16.mxu0 %v7319_v61 }
 0x261   : > { %v7844_v7 = vpop.eup %7843  ;;  %v3941_v8 = vpop.f32.mrf.mxu0  ;;  %5194 = vmatprep.mubr.bf16.mxu1 %v7322_v0 }
 0x262   : > { %6019 = vst [vmem:[%s8465_s29 + $0x280] sm:$0xff] %v7844_v7  ;;  %v4997_v9 = vadd.f32 %v4996_v5, %v3940_v4  ;;  %v4998_v10 = vpop.f32.mrf.mxu1  ;;  %v7338_v5 = vld [vmem:[%s8309_s23 + $0x8c8] ss:$16 sps:$4 sm:$0xff]   ;;  %v7343_v7 = vld [vmem:[%s8309_s23 + $0x8e4] ss:$16 sps:$4 sm:$0xff]  }
 0x263   : > { %v3942_v11 = vpop.f32.mrf.mxu0  ;;  %v7346_v10 = vld [vmem:[%s8309_s23 + $0x8ec] ss:$16 sps:$4 sm:$0xff]  }
 0x264   : > { %7851 = vtanh.f32 %v4997_v9  ;;  %v3943_v13 = vadd.f32 %v8779_v32, %v3942_v11  ;;  %v4999_v14 = vpop.f32.mrf.mxu1 }
 0x265   : > { %v7846_v17 = vpop.eup %7845  ;;  %v3944_v18 = vpop.f32.mrf.mxu0 }
 0x266   : > { %6020 = vst [vmem:[%s8465_s29 + $0x288] sm:$0xff] %v7846_v17  ;;  %v5000_v20 = vadd.f32 %v4999_v14, %v3943_v13  ;;  %v5001_v21 = vpop.f32.mrf.mxu1 }
 0x267   : > { %v3947_v22 = vpop.f32.mrf.mxu0  ;;  %4138 = vmatmul.mubr.bf16.gmra.mxu0 %v7317_v12  ;;  %v7341_v21 = vld [vmem:[%s8309_s23 + $0x8e0] ss:$16 sps:$4 sm:$0xff]  }
 0x268   : > { %7853 = vtanh.f32 %v5000_v20  ;;  %v3948_v23 = vadd.f32 %v8779_v32, %v3947_v22  ;;  %v5004_v24 = vpop.f32.mrf.mxu1  ;;  %5195 = vmatmul.mubr.bf16.gmra.mxu1 %v7320_v15  ;;  %4145 = vmatprep.mubr.bf16.mxu0 %v7325_v16 }
 0x269   : > { %v7848_v25 = vpop.eup %7847  ;;  %v3949_v26 = vpop.f32.mrf.mxu0  ;;  %5202 = vmatprep.mubr.bf16.mxu1 %v7328_v19 }
 0x26a   : > { %6021 = vst [vmem:[%s8465_s29 + $0x290] sm:$0xff] %v7848_v25  ;;  %v5005_v27 = vadd.f32 %v5004_v24, %v3948_v23  ;;  %v5006_v28 = vpop.f32.mrf.mxu1  ;;  %v7344_v24 = vld [vmem:[%s8309_s23 + $0x8e8] ss:$16 sps:$4 sm:$0xff]   ;;  %v7349_v25 = vld [vmem:[%s8309_s23 + $0x904] ss:$16 sps:$4 sm:$0xff]  }
 0x26b   : > { %v3950_v29 = vpop.f32.mrf.mxu0  ;;  %v7352_v28 = vld [vmem:[%s8309_s23 + $0x90c] ss:$16 sps:$4 sm:$0xff]  }
 0x26c   : > { %7855 = vtanh.f32 %v5005_v27  ;;  %v3951_v31 = vadd.f32 %v8779_v32, %v3950_v29  ;;  %v5007_v50 = vpop.f32.mrf.mxu1 }
 0x26d   : > { %v7850_v35 = vpop.eup %7849  ;;  %v3952_v36 = vpop.f32.mrf.mxu0 }
 0x26e   : > { %6022 = vst [vmem:[%s8465_s29 + $0x298] sm:$0xff] %v7850_v35  ;;  %v5008_v38 = vadd.f32 %v5007_v50, %v3951_v31  ;;  %v5009_v39 = vpop.f32.mrf.mxu1 }
 0x26f   : > { %v3955_v40 = vpop.f32.mrf.mxu0  ;;  %4146 = vmatmul.mubr.bf16.gmra.mxu0 %v7323_v30  ;;  %v7347_v39 = vld [vmem:[%s8309_s23 + $0x900] ss:$16 sps:$4 sm:$0xff]  }
 0x270   : > { %7857 = vtanh.f32 %v5008_v38  ;;  %v3956_v41 = vadd.f32 %v8779_v32, %v3955_v40  ;;  %v5012_v42 = vpop.f32.mrf.mxu1  ;;  %5203 = vmatmul.mubr.bf16.gmra.mxu1 %v7326_v33  ;;  %4153 = vmatprep.mubr.bf16.mxu0 %v7331_v34 }
 0x271   : > { %v7852_v43 = vpop.eup %7851  ;;  %v3957_v44 = vpop.f32.mrf.mxu0  ;;  %5210 = vmatprep.mubr.bf16.mxu1 %v7334_v37 }
 0x272   : > { %6023 = vst [vmem:[%s8465_s29 + $0x2a0] sm:$0xff] %v7852_v43  ;;  %v5013_v45 = vadd.f32 %v5012_v42, %v3956_v41  ;;  %v5014_v46 = vpop.f32.mrf.mxu1  ;;  %v7350_v42 = vld [vmem:[%s8309_s23 + $0x908] ss:$16 sps:$4 sm:$0xff]   ;;  %v7355_v43 = vld [vmem:[%s8309_s23 + $0x924] ss:$16 sps:$4 sm:$0xff]  }
 0x273   : > { %v3958_v47 = vpop.f32.mrf.mxu0  ;;  %v7358_v46 = vld [vmem:[%s8309_s23 + $0x92c] ss:$16 sps:$4 sm:$0xff]  }
 0x274   : > { %7859 = vtanh.f32 %v5013_v45  ;;  %v3959_v49 = vadd.f32 %v8779_v32, %v3958_v47  ;;  %v5015_v6 = vpop.f32.mrf.mxu1 }
 0x275   : > { %v7854_v53 = vpop.eup %7853  ;;  %v3960_v54 = vpop.f32.mrf.mxu0 }
 0x276   : > { %6024 = vst [vmem:[%s8465_s29 + $0x2a8] sm:$0xff] %v7854_v53  ;;  %v5016_v56 = vadd.f32 %v5015_v6, %v3959_v49  ;;  %v5017_v57 = vpop.f32.mrf.mxu1 }
 0x277   : > { %v3963_v58 = vpop.f32.mrf.mxu0  ;;  %4154 = vmatmul.mubr.bf16.gmra.mxu0 %v7329_v48  ;;  %v7353_v57 = vld [vmem:[%s8309_s23 + $0x920] ss:$16 sps:$4 sm:$0xff]  }
 0x278   : > { %7861 = vtanh.f32 %v5016_v56  ;;  %v3964_v59 = vadd.f32 %v8779_v32, %v3963_v58  ;;  %v5020_v60 = vpop.f32.mrf.mxu1  ;;  %5211 = vmatmul.mubr.bf16.gmra.mxu1 %v7332_v51  ;;  %4161 = vmatprep.mubr.bf16.mxu0 %v7337_v52 }
 0x279   : > { %v7856_v61 = vpop.eup %7855  ;;  %v3965_v62 = vpop.f32.mrf.mxu0  ;;  %5218 = vmatprep.mubr.bf16.mxu1 %v7340_v55 }
 0x27a   : > { %6025 = vst [vmem:[%s8465_s29 + $0x2b0] sm:$0xff] %v7856_v61  ;;  %v5021_v63 = vadd.f32 %v5020_v60, %v3964_v59  ;;  %v5022_v0 = vpop.f32.mrf.mxu1  ;;  %v7356_v60 = vld [vmem:[%s8309_s23 + $0x928] ss:$16 sps:$4 sm:$0xff]   ;;  %v7361_v61 = vld [vmem:[%s8309_s23 + $0x944] ss:$16 sps:$4 sm:$0xff]  }
 0x27b   : > { %v3966_v1 = vpop.f32.mrf.mxu0  ;;  %v7364_v0 = vld [vmem:[%s8309_s23 + $0x94c] ss:$16 sps:$4 sm:$0xff]  }
 0x27c   : > { %7863 = vtanh.f32 %v5021_v63  ;;  %v3967_v3 = vadd.f32 %v8779_v32, %v3966_v1  ;;  %v5023_v4 = vpop.f32.mrf.mxu1 }
 0x27d   : > { %v7858_v8 = vpop.eup %7857  ;;  %v3968_v9 = vpop.f32.mrf.mxu0 }
 0x27e   : > { %6026 = vst [vmem:[%s8465_s29 + $0x2b8] sm:$0xff] %v7858_v8  ;;  %v5024_v11 = vadd.f32 %v5023_v4, %v3967_v3  ;;  %v5025_v12 = vpop.f32.mrf.mxu1 }
 0x27f   : > { %v3971_v13 = vpop.f32.mrf.mxu0  ;;  %4162 = vmatmul.mubr.bf16.gmra.mxu0 %v7335_v2  ;;  %v7359_v12 = vld [vmem:[%s8309_s23 + $0x940] ss:$16 sps:$4 sm:$0xff]  }
 0x280   : > { %7865 = vtanh.f32 %v5024_v11  ;;  %v3972_v14 = vadd.f32 %v8779_v32, %v3971_v13  ;;  %v5028_v15 = vpop.f32.mrf.mxu1  ;;  %5219 = vmatmul.mubr.bf16.gmra.mxu1 %v7338_v5  ;;  %4169 = vmatprep.mubr.bf16.mxu0 %v7343_v7 }
 0x281   : > { %v7860_v16 = vpop.eup %7859  ;;  %v3973_v17 = vpop.f32.mrf.mxu0  ;;  %5226 = vmatprep.mubr.bf16.mxu1 %v7346_v10 }
 0x282   : > { %6027 = vst [vmem:[%s8465_s29 + $0x2c0] sm:$0xff] %v7860_v16  ;;  %v5029_v18 = vadd.f32 %v5028_v15, %v3972_v14  ;;  %v5030_v19 = vpop.f32.mrf.mxu1  ;;  %v7362_v15 = vld [vmem:[%s8309_s23 + $0x948] ss:$16 sps:$4 sm:$0xff]   ;;  %v7367_v16 = vld [vmem:[%s8309_s23 + $0x964] ss:$16 sps:$4 sm:$0xff]  }
 0x283   : > { %v3974_v20 = vpop.f32.mrf.mxu0  ;;  %v7370_v19 = vld [vmem:[%s8309_s23 + $0x96c] ss:$16 sps:$4 sm:$0xff]  }
 0x284   : > { %7867 = vtanh.f32 %v5029_v18  ;;  %v3975_v22 = vadd.f32 %v8779_v32, %v3974_v20  ;;  %v5031_v23 = vpop.f32.mrf.mxu1 }
 0x285   : > { %v7862_v26 = vpop.eup %7861  ;;  %v3976_v27 = vpop.f32.mrf.mxu0 }
 0x286   : > { %6028 = vst [vmem:[%s8465_s29 + $0x2c8] sm:$0xff] %v7862_v26  ;;  %v5032_v29 = vadd.f32 %v5031_v23, %v3975_v22  ;;  %v5033_v30 = vpop.f32.mrf.mxu1 }
 0x287   : > { %v3979_v31 = vpop.f32.mrf.mxu0  ;;  %4170 = vmatmul.mubr.bf16.gmra.mxu0 %v7341_v21  ;;  %v7365_v30 = vld [vmem:[%s8309_s23 + $0x960] ss:$16 sps:$4 sm:$0xff]  }
 0x288   : > { %7869 = vtanh.f32 %v5032_v29  ;;  %v3980_v50 = vadd.f32 %v8779_v32, %v3979_v31  ;;  %v5036_v33 = vpop.f32.mrf.mxu1  ;;  %5227 = vmatmul.mubr.bf16.gmra.mxu1 %v7344_v24  ;;  %4177 = vmatprep.mubr.bf16.mxu0 %v7349_v25 }
 0x289   : > { %v7864_v34 = vpop.eup %7863  ;;  %v3981_v35 = vpop.f32.mrf.mxu0  ;;  %5234 = vmatprep.mubr.bf16.mxu1 %v7352_v28 }
 0x28a   : > { %6029 = vst [vmem:[%s8465_s29 + $0x2d0] sm:$0xff] %v7864_v34  ;;  %v5037_v36 = vadd.f32 %v5036_v33, %v3980_v50  ;;  %v5038_v37 = vpop.f32.mrf.mxu1  ;;  %v7368_v33 = vld [vmem:[%s8309_s23 + $0x968] ss:$16 sps:$4 sm:$0xff]   ;;  %v7373_v34 = vld [vmem:[%s8309_s23 + $0x984] ss:$16 sps:$4 sm:$0xff]  }
 0x28b   : > { %v3982_v38 = vpop.f32.mrf.mxu0  ;;  %v7376_v37 = vld [vmem:[%s8309_s23 + $0x98c] ss:$16 sps:$4 sm:$0xff]  }
 0x28c   : > { %7871 = vtanh.f32 %v5037_v36  ;;  %v3983_v40 = vadd.f32 %v8779_v32, %v3982_v38  ;;  %v5039_v41 = vpop.f32.mrf.mxu1 }
 0x28d   : > { %v7866_v44 = vpop.eup %7865  ;;  %v3984_v45 = vpop.f32.mrf.mxu0 }
 0x28e   : > { %6030 = vst [vmem:[%s8465_s29 + $0x2d8] sm:$0xff] %v7866_v44  ;;  %v5040_v47 = vadd.f32 %v5039_v41, %v3983_v40  ;;  %v5041_v48 = vpop.f32.mrf.mxu1 }
 0x28f   : > { %v3987_v49 = vpop.f32.mrf.mxu0  ;;  %4178 = vmatmul.mubr.bf16.gmra.mxu0 %v7347_v39  ;;  %v7371_v48 = vld [vmem:[%s8309_s23 + $0x980] ss:$16 sps:$4 sm:$0xff]  }
 0x290   : > { %7873 = vtanh.f32 %v5040_v47  ;;  %v3988_v6 = vadd.f32 %v8779_v32, %v3987_v49  ;;  %v5044_v51 = vpop.f32.mrf.mxu1  ;;  %5235 = vmatmul.mubr.bf16.gmra.mxu1 %v7350_v42  ;;  %4185 = vmatprep.mubr.bf16.mxu0 %v7355_v43 }
 0x291   : > { %v7868_v52 = vpop.eup %7867  ;;  %v3989_v53 = vpop.f32.mrf.mxu0  ;;  %5242 = vmatprep.mubr.bf16.mxu1 %v7358_v46 }
 0x292   : > { %6031 = vst [vmem:[%s8465_s29 + $0x2e0] sm:$0xff] %v7868_v52  ;;  %v5045_v54 = vadd.f32 %v5044_v51, %v3988_v6  ;;  %v5046_v55 = vpop.f32.mrf.mxu1  ;;  %v7374_v51 = vld [vmem:[%s8309_s23 + $0x988] ss:$16 sps:$4 sm:$0xff]   ;;  %v7379_v52 = vld [vmem:[%s8309_s23 + $0x9a4] ss:$16 sps:$4 sm:$0xff]  }
 0x293   : > { %v3990_v56 = vpop.f32.mrf.mxu0  ;;  %v7382_v55 = vld [vmem:[%s8309_s23 + $0x9ac] ss:$16 sps:$4 sm:$0xff]  }
 0x294   : > { %7875 = vtanh.f32 %v5045_v54  ;;  %v3991_v58 = vadd.f32 %v8779_v32, %v3990_v56  ;;  %v5047_v59 = vpop.f32.mrf.mxu1 }
 0x295   : > { %v7870_v62 = vpop.eup %7869  ;;  %v3992_v63 = vpop.f32.mrf.mxu0 }
 0x296   : > { %6032 = vst [vmem:[%s8465_s29 + $0x2e8] sm:$0xff] %v7870_v62  ;;  %v5048_v1 = vadd.f32 %v5047_v59, %v3991_v58  ;;  %v5049_v2 = vpop.f32.mrf.mxu1 }
 0x297   : > { %v3995_v3 = vpop.f32.mrf.mxu0  ;;  %4186 = vmatmul.mubr.bf16.gmra.mxu0 %v7353_v57  ;;  %v7377_v2 = vld [vmem:[%s8309_s23 + $0x9a0] ss:$16 sps:$4 sm:$0xff]  }
 0x298   : > { %7877 = vtanh.f32 %v5048_v1  ;;  %v3996_v4 = vadd.f32 %v8779_v32, %v3995_v3  ;;  %v5052_v5 = vpop.f32.mrf.mxu1  ;;  %5243 = vmatmul.mubr.bf16.gmra.mxu1 %v7356_v60  ;;  %4193 = vmatprep.mubr.bf16.mxu0 %v7361_v61 }
 0x299   : > { %v7872_v7 = vpop.eup %7871  ;;  %v3997_v8 = vpop.f32.mrf.mxu0  ;;  %5250 = vmatprep.mubr.bf16.mxu1 %v7364_v0 }
 0x29a   : > { %6033 = vst [vmem:[%s8465_s29 + $0x2f0] sm:$0xff] %v7872_v7  ;;  %v5053_v9 = vadd.f32 %v5052_v5, %v3996_v4  ;;  %v5054_v10 = vpop.f32.mrf.mxu1  ;;  %v7380_v5 = vld [vmem:[%s8309_s23 + $0x9a8] ss:$16 sps:$4 sm:$0xff]   ;;  %v7385_v7 = vld [vmem:[%s8309_s23 + $0x9c4] ss:$16 sps:$4 sm:$0xff]  }
 0x29b   : > { %v3998_v11 = vpop.f32.mrf.mxu0  ;;  %v7388_v10 = vld [vmem:[%s8309_s23 + $0x9cc] ss:$16 sps:$4 sm:$0xff]  }
 0x29c   : > { %7879 = vtanh.f32 %v5053_v9  ;;  %v3999_v13 = vadd.f32 %v8779_v32, %v3998_v11  ;;  %v5055_v14 = vpop.f32.mrf.mxu1 }
 0x29d   : > { %v7874_v17 = vpop.eup %7873  ;;  %v4000_v18 = vpop.f32.mrf.mxu0 }
 0x29e   : > { %6034 = vst [vmem:[%s8465_s29 + $0x2f8] sm:$0xff] %v7874_v17  ;;  %v5056_v20 = vadd.f32 %v5055_v14, %v3999_v13  ;;  %v5057_v21 = vpop.f32.mrf.mxu1 }
 0x29f   : > { %v4003_v22 = vpop.f32.mrf.mxu0  ;;  %4194 = vmatmul.mubr.bf16.gmra.mxu0 %v7359_v12  ;;  %v7383_v21 = vld [vmem:[%s8309_s23 + $0x9c0] ss:$16 sps:$4 sm:$0xff]  }
 0x2a0   : > { %7881 = vtanh.f32 %v5056_v20  ;;  %v4004_v23 = vadd.f32 %v8779_v32, %v4003_v22  ;;  %v5060_v24 = vpop.f32.mrf.mxu1  ;;  %5251 = vmatmul.mubr.bf16.gmra.mxu1 %v7362_v15  ;;  %4201 = vmatprep.mubr.bf16.mxu0 %v7367_v16 }
 0x2a1   : > { %v7876_v25 = vpop.eup %7875  ;;  %v4005_v26 = vpop.f32.mrf.mxu0  ;;  %5258 = vmatprep.mubr.bf16.mxu1 %v7370_v19 }
 0x2a2   : > { %6035 = vst [vmem:[%s8465_s29 + $0x300] sm:$0xff] %v7876_v25  ;;  %v5061_v27 = vadd.f32 %v5060_v24, %v4004_v23  ;;  %v5062_v28 = vpop.f32.mrf.mxu1  ;;  %v7386_v24 = vld [vmem:[%s8309_s23 + $0x9c8] ss:$16 sps:$4 sm:$0xff]   ;;  %v7391_v25 = vld [vmem:[%s8309_s23 + $0x9e4] ss:$16 sps:$4 sm:$0xff]  }
 0x2a3   : > { %v4006_v29 = vpop.f32.mrf.mxu0  ;;  %v7394_v28 = vld [vmem:[%s8309_s23 + $0x9ec] ss:$16 sps:$4 sm:$0xff]  }
 0x2a4   : > { %7883 = vtanh.f32 %v5061_v27  ;;  %v4007_v31 = vadd.f32 %v8779_v32, %v4006_v29  ;;  %v5063_v50 = vpop.f32.mrf.mxu1 }
 0x2a5   : > { %v7878_v35 = vpop.eup %7877  ;;  %v4008_v36 = vpop.f32.mrf.mxu0 }
 0x2a6   : > { %6036 = vst [vmem:[%s8465_s29 + $0x308] sm:$0xff] %v7878_v35  ;;  %v5064_v38 = vadd.f32 %v5063_v50, %v4007_v31  ;;  %v5065_v39 = vpop.f32.mrf.mxu1 }
 0x2a7   : > { %v4011_v40 = vpop.f32.mrf.mxu0  ;;  %4202 = vmatmul.mubr.bf16.gmra.mxu0 %v7365_v30  ;;  %v7389_v39 = vld [vmem:[%s8309_s23 + $0x9e0] ss:$16 sps:$4 sm:$0xff]  }
 0x2a8   : > { %7885 = vtanh.f32 %v5064_v38  ;;  %v4012_v41 = vadd.f32 %v8779_v32, %v4011_v40  ;;  %v5068_v42 = vpop.f32.mrf.mxu1  ;;  %5259 = vmatmul.mubr.bf16.gmra.mxu1 %v7368_v33  ;;  %4209 = vmatprep.mubr.bf16.mxu0 %v7373_v34 }
 0x2a9   : > { %v7880_v43 = vpop.eup %7879  ;;  %v4013_v44 = vpop.f32.mrf.mxu0  ;;  %5266 = vmatprep.mubr.bf16.mxu1 %v7376_v37 }
 0x2aa   : > { %6037 = vst [vmem:[%s8465_s29 + $0x310] sm:$0xff] %v7880_v43  ;;  %v5069_v45 = vadd.f32 %v5068_v42, %v4012_v41  ;;  %v5070_v46 = vpop.f32.mrf.mxu1  ;;  %v7392_v42 = vld [vmem:[%s8309_s23 + $0x9e8] ss:$16 sps:$4 sm:$0xff]   ;;  %v7397_v43 = vld [vmem:[%s8309_s23 + $0xa04] ss:$16 sps:$4 sm:$0xff]  }
 0x2ab   : > { %v4014_v47 = vpop.f32.mrf.mxu0  ;;  %v7400_v46 = vld [vmem:[%s8309_s23 + $0xa0c] ss:$16 sps:$4 sm:$0xff]  }
 0x2ac   : > { %7887 = vtanh.f32 %v5069_v45  ;;  %v4015_v49 = vadd.f32 %v8779_v32, %v4014_v47  ;;  %v5071_v6 = vpop.f32.mrf.mxu1 }
 0x2ad   : > { %v7882_v53 = vpop.eup %7881  ;;  %v4016_v54 = vpop.f32.mrf.mxu0 }
 0x2ae   : > { %6038 = vst [vmem:[%s8465_s29 + $0x318] sm:$0xff] %v7882_v53  ;;  %v5072_v56 = vadd.f32 %v5071_v6, %v4015_v49  ;;  %v5073_v57 = vpop.f32.mrf.mxu1 }
 0x2af   : > { %v4019_v58 = vpop.f32.mrf.mxu0  ;;  %4210 = vmatmul.mubr.bf16.gmra.mxu0 %v7371_v48  ;;  %v7395_v57 = vld [vmem:[%s8309_s23 + $0xa00] ss:$16 sps:$4 sm:$0xff]  }
 0x2b0   : > { %7889 = vtanh.f32 %v5072_v56  ;;  %v4020_v59 = vadd.f32 %v8779_v32, %v4019_v58  ;;  %v5076_v60 = vpop.f32.mrf.mxu1  ;;  %5267 = vmatmul.mubr.bf16.gmra.mxu1 %v7374_v51  ;;  %4217 = vmatprep.mubr.bf16.mxu0 %v7379_v52 }
 0x2b1   : > { %v7884_v61 = vpop.eup %7883  ;;  %v4021_v62 = vpop.f32.mrf.mxu0  ;;  %5274 = vmatprep.mubr.bf16.mxu1 %v7382_v55 }
 0x2b2   : > { %6039 = vst [vmem:[%s8465_s29 + $0x320] sm:$0xff] %v7884_v61  ;;  %v5077_v63 = vadd.f32 %v5076_v60, %v4020_v59  ;;  %v5078_v0 = vpop.f32.mrf.mxu1  ;;  %v7398_v60 = vld [vmem:[%s8309_s23 + $0xa08] ss:$16 sps:$4 sm:$0xff]   ;;  %v7403_v61 = vld [vmem:[%s8309_s23 + $0xa24] ss:$16 sps:$4 sm:$0xff]  }
 0x2b3   : > { %v4022_v1 = vpop.f32.mrf.mxu0  ;;  %v7406_v0 = vld [vmem:[%s8309_s23 + $0xa2c] ss:$16 sps:$4 sm:$0xff]  }
 0x2b4   : > { %7891 = vtanh.f32 %v5077_v63  ;;  %v4023_v3 = vadd.f32 %v8779_v32, %v4022_v1  ;;  %v5079_v4 = vpop.f32.mrf.mxu1 }
 0x2b5   : > { %v7886_v8 = vpop.eup %7885  ;;  %v4024_v9 = vpop.f32.mrf.mxu0 }
 0x2b6   : > { %6040 = vst [vmem:[%s8465_s29 + $0x328] sm:$0xff] %v7886_v8  ;;  %v5080_v11 = vadd.f32 %v5079_v4, %v4023_v3  ;;  %v5081_v12 = vpop.f32.mrf.mxu1 }
 0x2b7   : > { %v4027_v13 = vpop.f32.mrf.mxu0  ;;  %4218 = vmatmul.mubr.bf16.gmra.mxu0 %v7377_v2  ;;  %v7401_v12 = vld [vmem:[%s8309_s23 + $0xa20] ss:$16 sps:$4 sm:$0xff]  }
 0x2b8   : > { %7893 = vtanh.f32 %v5080_v11  ;;  %v4028_v14 = vadd.f32 %v8779_v32, %v4027_v13  ;;  %v5084_v15 = vpop.f32.mrf.mxu1  ;;  %5275 = vmatmul.mubr.bf16.gmra.mxu1 %v7380_v5  ;;  %4225 = vmatprep.mubr.bf16.mxu0 %v7385_v7 }
 0x2b9   : > { %v7888_v16 = vpop.eup %7887  ;;  %v4029_v17 = vpop.f32.mrf.mxu0  ;;  %5282 = vmatprep.mubr.bf16.mxu1 %v7388_v10 }
 0x2ba   : > { %6041 = vst [vmem:[%s8465_s29 + $0x330] sm:$0xff] %v7888_v16  ;;  %v5085_v18 = vadd.f32 %v5084_v15, %v4028_v14  ;;  %v5086_v19 = vpop.f32.mrf.mxu1  ;;  %v7404_v15 = vld [vmem:[%s8309_s23 + $0xa28] ss:$16 sps:$4 sm:$0xff]   ;;  %v7409_v16 = vld [vmem:[%s8309_s23 + $0xa44] ss:$16 sps:$4 sm:$0xff]  }
 0x2bb   : > { %v4030_v20 = vpop.f32.mrf.mxu0  ;;  %v7412_v19 = vld [vmem:[%s8309_s23 + $0xa4c] ss:$16 sps:$4 sm:$0xff]  }
 0x2bc   : > { %7895 = vtanh.f32 %v5085_v18  ;;  %v4031_v22 = vadd.f32 %v8779_v32, %v4030_v20  ;;  %v5087_v23 = vpop.f32.mrf.mxu1 }
 0x2bd   : > { %v7890_v26 = vpop.eup %7889  ;;  %v4032_v27 = vpop.f32.mrf.mxu0 }
 0x2be   : > { %6042 = vst [vmem:[%s8465_s29 + $0x338] sm:$0xff] %v7890_v26  ;;  %v5088_v29 = vadd.f32 %v5087_v23, %v4031_v22  ;;  %v5089_v30 = vpop.f32.mrf.mxu1 }
 0x2bf   : > { %v4035_v31 = vpop.f32.mrf.mxu0  ;;  %4226 = vmatmul.mubr.bf16.gmra.mxu0 %v7383_v21  ;;  %v7407_v30 = vld [vmem:[%s8309_s23 + $0xa40] ss:$16 sps:$4 sm:$0xff]  }
 0x2c0   : > { %7897 = vtanh.f32 %v5088_v29  ;;  %v4036_v50 = vadd.f32 %v8779_v32, %v4035_v31  ;;  %v5092_v33 = vpop.f32.mrf.mxu1  ;;  %5283 = vmatmul.mubr.bf16.gmra.mxu1 %v7386_v24  ;;  %4233 = vmatprep.mubr.bf16.mxu0 %v7391_v25 }
 0x2c1   : > { %v7892_v34 = vpop.eup %7891  ;;  %v4037_v35 = vpop.f32.mrf.mxu0  ;;  %5290 = vmatprep.mubr.bf16.mxu1 %v7394_v28 }
 0x2c2   : > { %6043 = vst [vmem:[%s8465_s29 + $0x340] sm:$0xff] %v7892_v34  ;;  %v5093_v36 = vadd.f32 %v5092_v33, %v4036_v50  ;;  %v5094_v37 = vpop.f32.mrf.mxu1  ;;  %v7410_v33 = vld [vmem:[%s8309_s23 + $0xa48] ss:$16 sps:$4 sm:$0xff]   ;;  %v7415_v34 = vld [vmem:[%s8309_s23 + $0xa64] ss:$16 sps:$4 sm:$0xff]  }
 0x2c3   : > { %v4038_v38 = vpop.f32.mrf.mxu0  ;;  %v7418_v37 = vld [vmem:[%s8309_s23 + $0xa6c] ss:$16 sps:$4 sm:$0xff]  }
 0x2c4   : > { %7899 = vtanh.f32 %v5093_v36  ;;  %v4039_v40 = vadd.f32 %v8779_v32, %v4038_v38  ;;  %v5095_v41 = vpop.f32.mrf.mxu1 }
 0x2c5   : > { %v7894_v44 = vpop.eup %7893  ;;  %v4040_v45 = vpop.f32.mrf.mxu0 }
 0x2c6   : > { %6044 = vst [vmem:[%s8465_s29 + $0x348] sm:$0xff] %v7894_v44  ;;  %v5096_v47 = vadd.f32 %v5095_v41, %v4039_v40  ;;  %v5097_v48 = vpop.f32.mrf.mxu1 }
 0x2c7   : > { %v4043_v49 = vpop.f32.mrf.mxu0  ;;  %4234 = vmatmul.mubr.bf16.gmra.mxu0 %v7389_v39  ;;  %v7413_v48 = vld [vmem:[%s8309_s23 + $0xa60] ss:$16 sps:$4 sm:$0xff]  }
 0x2c8   : > { %7901 = vtanh.f32 %v5096_v47  ;;  %v4044_v6 = vadd.f32 %v8779_v32, %v4043_v49  ;;  %v5100_v51 = vpop.f32.mrf.mxu1  ;;  %5291 = vmatmul.mubr.bf16.gmra.mxu1 %v7392_v42  ;;  %4241 = vmatprep.mubr.bf16.mxu0 %v7397_v43 }
 0x2c9   : > { %v7896_v52 = vpop.eup %7895  ;;  %v4045_v53 = vpop.f32.mrf.mxu0  ;;  %5298 = vmatprep.mubr.bf16.mxu1 %v7400_v46 }
 0x2ca   : > { %6045 = vst [vmem:[%s8465_s29 + $0x350] sm:$0xff] %v7896_v52  ;;  %v5101_v54 = vadd.f32 %v5100_v51, %v4044_v6  ;;  %v5102_v55 = vpop.f32.mrf.mxu1  ;;  %v7416_v51 = vld [vmem:[%s8309_s23 + $0xa68] ss:$16 sps:$4 sm:$0xff]   ;;  %v7421_v52 = vld [vmem:[%s8309_s23 + $0xa84] ss:$16 sps:$4 sm:$0xff]  }
 0x2cb   : > { %v4046_v56 = vpop.f32.mrf.mxu0  ;;  %v7424_v55 = vld [vmem:[%s8309_s23 + $0xa8c] ss:$16 sps:$4 sm:$0xff]  }
 0x2cc   : > { %7903 = vtanh.f32 %v5101_v54  ;;  %v4047_v58 = vadd.f32 %v8779_v32, %v4046_v56  ;;  %v5103_v59 = vpop.f32.mrf.mxu1 }
 0x2cd   : > { %v7898_v62 = vpop.eup %7897  ;;  %v4048_v63 = vpop.f32.mrf.mxu0 }
 0x2ce   : > { %6046 = vst [vmem:[%s8465_s29 + $0x358] sm:$0xff] %v7898_v62  ;;  %v5104_v1 = vadd.f32 %v5103_v59, %v4047_v58  ;;  %v5105_v2 = vpop.f32.mrf.mxu1 }
 0x2cf   : > { %v4051_v3 = vpop.f32.mrf.mxu0  ;;  %4242 = vmatmul.mubr.bf16.gmra.mxu0 %v7395_v57  ;;  %v7419_v2 = vld [vmem:[%s8309_s23 + $0xa80] ss:$16 sps:$4 sm:$0xff]  }
 0x2d0   : > { %7905 = vtanh.f32 %v5104_v1  ;;  %v4052_v4 = vadd.f32 %v8779_v32, %v4051_v3  ;;  %v5108_v5 = vpop.f32.mrf.mxu1  ;;  %5299 = vmatmul.mubr.bf16.gmra.mxu1 %v7398_v60  ;;  %4249 = vmatprep.mubr.bf16.mxu0 %v7403_v61 }
 0x2d1   : > { %v7900_v7 = vpop.eup %7899  ;;  %v4053_v8 = vpop.f32.mrf.mxu0  ;;  %5306 = vmatprep.mubr.bf16.mxu1 %v7406_v0 }
 0x2d2   : > { %6047 = vst [vmem:[%s8465_s29 + $0x360] sm:$0xff] %v7900_v7  ;;  %v5109_v9 = vadd.f32 %v5108_v5, %v4052_v4  ;;  %v5110_v10 = vpop.f32.mrf.mxu1  ;;  %v7422_v5 = vld [vmem:[%s8309_s23 + $0xa88] ss:$16 sps:$4 sm:$0xff]   ;;  %v7427_v7 = vld [vmem:[%s8309_s23 + $0xaa4] ss:$16 sps:$4 sm:$0xff]  }
 0x2d3   : > { %v4054_v11 = vpop.f32.mrf.mxu0  ;;  %v7430_v10 = vld [vmem:[%s8309_s23 + $0xaac] ss:$16 sps:$4 sm:$0xff]  }
 0x2d4   : > { %7907 = vtanh.f32 %v5109_v9  ;;  %v4055_v13 = vadd.f32 %v8779_v32, %v4054_v11  ;;  %v5111_v14 = vpop.f32.mrf.mxu1 }
 0x2d5   : > { %v7902_v17 = vpop.eup %7901  ;;  %v4056_v18 = vpop.f32.mrf.mxu0 }
 0x2d6   : > { %6048 = vst [vmem:[%s8465_s29 + $0x368] sm:$0xff] %v7902_v17  ;;  %v5112_v20 = vadd.f32 %v5111_v14, %v4055_v13  ;;  %v5113_v21 = vpop.f32.mrf.mxu1  ;;  %v8944_v14 = vld [vmem:[%s9415_s2] ss:$0 sm:$0xff] }
 0x2d7   : > { %v4059_v22 = vpop.f32.mrf.mxu0  ;;  %4250 = vmatmul.mubr.bf16.gmra.mxu0 %v7401_v12  ;;  %v7425_v21 = vld [vmem:[%s8309_s23 + $0xaa0] ss:$16 sps:$4 sm:$0xff]  }
 0x2d8   : > { %7909 = vtanh.f32 %v5112_v20  ;;  %v4060_v23 = vadd.f32 %v8779_v32, %v4059_v22  ;;  %v5116_v24 = vpop.f32.mrf.mxu1  ;;  %5307 = vmatmul.mubr.bf16.gmra.mxu1 %v7404_v15  ;;  %4257 = vmatprep.mubr.bf16.mxu0 %v7409_v16 }
 0x2d9   : > { %v7904_v25 = vpop.eup %7903  ;;  %v4061_v26 = vpop.f32.mrf.mxu0  ;;  %5314 = vmatprep.mubr.bf16.mxu1 %v7412_v19 }
 0x2da   : > { %6049 = vst [vmem:[%s8465_s29 + $0x370] sm:$0xff] %v7904_v25  ;;  %v5117_v27 = vadd.f32 %v5116_v24, %v4060_v23  ;;  %v5118_v28 = vpop.f32.mrf.mxu1  ;;  %v7428_v24 = vld [vmem:[%s8309_s23 + $0xaa8] ss:$16 sps:$4 sm:$0xff]   ;;  %v7433_v25 = vld [vmem:[%s8309_s23 + $0xac4] ss:$16 sps:$4 sm:$0xff]  }
 0x2db   : > { %v4062_v29 = vpop.f32.mrf.mxu0  ;;  %v7436_v28 = vld [vmem:[%s8309_s23 + $0xacc] ss:$16 sps:$4 sm:$0xff]  }
 0x2dc   : > { %7911 = vtanh.f32 %v5117_v27  ;;  %v4063_v31 = vadd.f32 %v8779_v32, %v4062_v29  ;;  %v5119_v50 = vpop.f32.mrf.mxu1 }
 0x2dd   : > { %v7906_v35 = vpop.eup %7905  ;;  %v4064_v36 = vpop.f32.mrf.mxu0 }
 0x2de   : > { %6050 = vst [vmem:[%s8465_s29 + $0x378] sm:$0xff] %v7906_v35  ;;  %v5120_v38 = vadd.f32 %v5119_v50, %v4063_v31  ;;  %v5121_v39 = vpop.f32.mrf.mxu1 }
 0x2df   : > { %v4067_v40 = vpop.f32.mrf.mxu0  ;;  %4258 = vmatmul.mubr.bf16.gmra.mxu0 %v7407_v30  ;;  %v7431_v39 = vld [vmem:[%s8309_s23 + $0xac0] ss:$16 sps:$4 sm:$0xff]  }
 0x2e0   : > { %7913 = vtanh.f32 %v5120_v38  ;;  %v4068_v41 = vadd.f32 %v8779_v32, %v4067_v40  ;;  %v5124_v42 = vpop.f32.mrf.mxu1  ;;  %5315 = vmatmul.mubr.bf16.gmra.mxu1 %v7410_v33  ;;  %4265 = vmatprep.mubr.bf16.mxu0 %v7415_v34 }
 0x2e1   : > { %v7908_v43 = vpop.eup %7907  ;;  %v4069_v44 = vpop.f32.mrf.mxu0  ;;  %5322 = vmatprep.mubr.bf16.mxu1 %v7418_v37 }
 0x2e2   : > { %6051 = vst [vmem:[%s8465_s29 + $0x380] sm:$0xff] %v7908_v43  ;;  %v5125_v45 = vadd.f32 %v5124_v42, %v4068_v41  ;;  %v5126_v46 = vpop.f32.mrf.mxu1  ;;  %v7434_v42 = vld [vmem:[%s8309_s23 + $0xac8] ss:$16 sps:$4 sm:$0xff]   ;;  %v7439_v43 = vld [vmem:[%s8309_s23 + $0xae4] ss:$16 sps:$4 sm:$0xff]  }
 0x2e3   : > { %v4070_v47 = vpop.f32.mrf.mxu0  ;;  %v7442_v46 = vld [vmem:[%s8309_s23 + $0xaec] ss:$16 sps:$4 sm:$0xff]  }
 0x2e4   : > { %7915 = vtanh.f32 %v5125_v45  ;;  %v4071_v49 = vadd.f32 %v8779_v32, %v4070_v47  ;;  %v5127_v6 = vpop.f32.mrf.mxu1 }
 0x2e5   : > { %v7910_v53 = vpop.eup %7909  ;;  %v4072_v54 = vpop.f32.mrf.mxu0 }
 0x2e6   : > { %6052 = vst [vmem:[%s8465_s29 + $0x388] sm:$0xff] %v7910_v53  ;;  %v5128_v56 = vadd.f32 %v5127_v6, %v4071_v49  ;;  %v5129_v57 = vpop.f32.mrf.mxu1 }
 0x2e7   : > { %v4075_v58 = vpop.f32.mrf.mxu0  ;;  %4266 = vmatmul.mubr.bf16.gmra.mxu0 %v7413_v48  ;;  %v7437_v57 = vld [vmem:[%s8309_s23 + $0xae0] ss:$16 sps:$4 sm:$0xff]  }
 0x2e8   : > { %7917 = vtanh.f32 %v5128_v56  ;;  %v4076_v59 = vadd.f32 %v8779_v32, %v4075_v58  ;;  %v5132_v60 = vpop.f32.mrf.mxu1  ;;  %5323 = vmatmul.mubr.bf16.gmra.mxu1 %v7416_v51  ;;  %4273 = vmatprep.mubr.bf16.mxu0 %v7421_v52 }
 0x2e9   : > { %v7912_v61 = vpop.eup %7911  ;;  %v4077_v62 = vpop.f32.mrf.mxu0  ;;  %5330 = vmatprep.mubr.bf16.mxu1 %v7424_v55 }
 0x2ea   : > { %6053 = vst [vmem:[%s8465_s29 + $0x390] sm:$0xff] %v7912_v61  ;;  %v5133_v63 = vadd.f32 %v5132_v60, %v4076_v59  ;;  %v5134_v0 = vpop.f32.mrf.mxu1  ;;  %v7440_v60 = vld [vmem:[%s8309_s23 + $0xae8] ss:$16 sps:$4 sm:$0xff]   ;;  %v7445_v61 = vld [vmem:[%s8309_s23 + $0xb04] ss:$16 sps:$4 sm:$0xff]  }
 0x2eb   : > { %v4078_v1 = vpop.f32.mrf.mxu0  ;;  %v7448_v0 = vld [vmem:[%s8309_s23 + $0xb0c] ss:$16 sps:$4 sm:$0xff]  }
 0x2ec   : > { %7919 = vtanh.f32 %v5133_v63  ;;  %v4079_v3 = vadd.f32 %v8779_v32, %v4078_v1  ;;  %v5135_v4 = vpop.f32.mrf.mxu1 }
 0x2ed   : > { %v7914_v8 = vpop.eup %7913  ;;  %v4080_v9 = vpop.f32.mrf.mxu0 }
 0x2ee   : > { %6054 = vst [vmem:[%s8465_s29 + $0x398] sm:$0xff] %v7914_v8  ;;  %v5136_v11 = vadd.f32 %v5135_v4, %v4079_v3  ;;  %v5137_v12 = vpop.f32.mrf.mxu1 }
 0x2ef   : > { %v4083_v13 = vpop.f32.mrf.mxu0  ;;  %4274 = vmatmul.mubr.bf16.gmra.mxu0 %v7419_v2  ;;  %v7443_v12 = vld [vmem:[%s8309_s23 + $0xb00] ss:$16 sps:$4 sm:$0xff]  }
 0x2f0   : > { %7921 = vtanh.f32 %v5136_v11  ;;  %v4084_v32 = vadd.f32 %v8944_v14, %v4083_v13  ;;  %v5140_v15 = vpop.f32.mrf.mxu1  ;;  %5331 = vmatmul.mubr.bf16.gmra.mxu1 %v7422_v5  ;;  %4281 = vmatprep.mubr.bf16.mxu0 %v7427_v7 }
 0x2f1   : > { %v7916_v16 = vpop.eup %7915  ;;  %v4085_v17 = vpop.f32.mrf.mxu0  ;;  %5338 = vmatprep.mubr.bf16.mxu1 %v7430_v10 }
 0x2f2   : > { %6055 = vst [vmem:[%s8465_s29 + $0x3a0] sm:$0xff] %v7916_v16  ;;  %v5141_v18 = vadd.f32 %v5140_v15, %v4084_v32  ;;  %v5142_v19 = vpop.f32.mrf.mxu1  ;;  %v7446_v15 = vld [vmem:[%s8309_s23 + $0xb08] ss:$16 sps:$4 sm:$0xff]   ;;  %v7451_v16 = vld [vmem:[%s8309_s23 + $0xb24] ss:$16 sps:$4 sm:$0xff]  }
 0x2f3   : > { %v4086_v20 = vpop.f32.mrf.mxu0  ;;  %v7454_v19 = vld [vmem:[%s8309_s23 + $0xb2c] ss:$16 sps:$4 sm:$0xff]  }
 0x2f4   : > { %7923 = vtanh.f32 %v5141_v18  ;;  %v4087_v22 = vadd.f32 %v8944_v14, %v4086_v20  ;;  %v5143_v23 = vpop.f32.mrf.mxu1 }
 0x2f5   : > { %v7918_v26 = vpop.eup %7917  ;;  %v4088_v27 = vpop.f32.mrf.mxu0 }
 0x2f6   : > { %6056 = vst [vmem:[%s8465_s29 + $0x3a8] sm:$0xff] %v7918_v26  ;;  %v5144_v29 = vadd.f32 %v5143_v23, %v4087_v22  ;;  %v5145_v30 = vpop.f32.mrf.mxu1 }
 0x2f7   : > { %v4091_v31 = vpop.f32.mrf.mxu0  ;;  %4282 = vmatmul.mubr.bf16.gmra.mxu0 %v7425_v21  ;;  %v7449_v30 = vld [vmem:[%s8309_s23 + $0xb20] ss:$16 sps:$4 sm:$0xff]  }
 0x2f8   : > { %7925 = vtanh.f32 %v5144_v29  ;;  %v4092_v50 = vadd.f32 %v8944_v14, %v4091_v31  ;;  %v5148_v33 = vpop.f32.mrf.mxu1  ;;  %5339 = vmatmul.mubr.bf16.gmra.mxu1 %v7428_v24  ;;  %4289 = vmatprep.mubr.bf16.mxu0 %v7433_v25 }
 0x2f9   : > { %v7920_v34 = vpop.eup %7919  ;;  %v4093_v35 = vpop.f32.mrf.mxu0  ;;  %5346 = vmatprep.mubr.bf16.mxu1 %v7436_v28 }
 0x2fa   : > { %6057 = vst [vmem:[%s8465_s29 + $0x3b0] sm:$0xff] %v7920_v34  ;;  %v5149_v36 = vadd.f32 %v5148_v33, %v4092_v50  ;;  %v5150_v37 = vpop.f32.mrf.mxu1  ;;  %v7452_v33 = vld [vmem:[%s8309_s23 + $0xb28] ss:$16 sps:$4 sm:$0xff]   ;;  %v7457_v34 = vld [vmem:[%s8309_s23 + $0xb44] ss:$16 sps:$4 sm:$0xff]  }
 0x2fb   : > { %v4094_v38 = vpop.f32.mrf.mxu0  ;;  %v7460_v37 = vld [vmem:[%s8309_s23 + $0xb4c] ss:$16 sps:$4 sm:$0xff]  }
 0x2fc   : > { %7927 = vtanh.f32 %v5149_v36  ;;  %v4095_v40 = vadd.f32 %v8944_v14, %v4094_v38  ;;  %v5151_v41 = vpop.f32.mrf.mxu1 }
 0x2fd   : > { %v7922_v44 = vpop.eup %7921  ;;  %v4096_v45 = vpop.f32.mrf.mxu0 }
 0x2fe   : > { %6058 = vst [vmem:[%s8465_s29 + $0x3b8] sm:$0xff] %v7922_v44  ;;  %v5152_v47 = vadd.f32 %v5151_v41, %v4095_v40  ;;  %v5153_v48 = vpop.f32.mrf.mxu1 }
 0x2ff   : > { %v4099_v49 = vpop.f32.mrf.mxu0  ;;  %4290 = vmatmul.mubr.bf16.gmra.mxu0 %v7431_v39  ;;  %v7455_v48 = vld [vmem:[%s8309_s23 + $0xb40] ss:$16 sps:$4 sm:$0xff]  }
 0x300   : > { %7929 = vtanh.f32 %v5152_v47  ;;  %v4100_v6 = vadd.f32 %v8944_v14, %v4099_v49  ;;  %v5156_v51 = vpop.f32.mrf.mxu1  ;;  %5347 = vmatmul.mubr.bf16.gmra.mxu1 %v7434_v42  ;;  %4297 = vmatprep.mubr.bf16.mxu0 %v7439_v43 }
 0x301   : > { %v7924_v52 = vpop.eup %7923  ;;  %v4101_v53 = vpop.f32.mrf.mxu0  ;;  %5354 = vmatprep.mubr.bf16.mxu1 %v7442_v46 }
 0x302   : > { %6059 = vst [vmem:[%s8465_s29 + $0x3c0] sm:$0xff] %v7924_v52  ;;  %v5157_v54 = vadd.f32 %v5156_v51, %v4100_v6  ;;  %v5158_v55 = vpop.f32.mrf.mxu1  ;;  %v7458_v51 = vld [vmem:[%s8309_s23 + $0xb48] ss:$16 sps:$4 sm:$0xff]   ;;  %v7463_v52 = vld [vmem:[%s8309_s23 + $0xb64] ss:$16 sps:$4 sm:$0xff]  }
 0x303   : > { %v4102_v56 = vpop.f32.mrf.mxu0  ;;  %v7466_v55 = vld [vmem:[%s8309_s23 + $0xb6c] ss:$16 sps:$4 sm:$0xff]  }
 0x304   : > { %7931 = vtanh.f32 %v5157_v54  ;;  %v4103_v58 = vadd.f32 %v8944_v14, %v4102_v56  ;;  %v5159_v59 = vpop.f32.mrf.mxu1 }
 0x305   : > { %v7926_v62 = vpop.eup %7925  ;;  %v4104_v63 = vpop.f32.mrf.mxu0 }
 0x306   : > { %6060 = vst [vmem:[%s8465_s29 + $0x3c8] sm:$0xff] %v7926_v62  ;;  %v5160_v1 = vadd.f32 %v5159_v59, %v4103_v58  ;;  %v5161_v2 = vpop.f32.mrf.mxu1 }
 0x307   : > { %v4107_v3 = vpop.f32.mrf.mxu0  ;;  %4298 = vmatmul.mubr.bf16.gmra.mxu0 %v7437_v57  ;;  %v7461_v2 = vld [vmem:[%s8309_s23 + $0xb60] ss:$16 sps:$4 sm:$0xff]  }
 0x308   : > { %7933 = vtanh.f32 %v5160_v1  ;;  %v4108_v4 = vadd.f32 %v8944_v14, %v4107_v3  ;;  %v5164_v5 = vpop.f32.mrf.mxu1  ;;  %5355 = vmatmul.mubr.bf16.gmra.mxu1 %v7440_v60  ;;  %4305 = vmatprep.mubr.bf16.mxu0 %v7445_v61 }
 0x309   : > { %v7928_v7 = vpop.eup %7927  ;;  %v4109_v8 = vpop.f32.mrf.mxu0  ;;  %5362 = vmatprep.mubr.bf16.mxu1 %v7448_v0 }
 0x30a   : > { %6061 = vst [vmem:[%s8465_s29 + $0x3d0] sm:$0xff] %v7928_v7  ;;  %v5165_v9 = vadd.f32 %v5164_v5, %v4108_v4  ;;  %v5166_v10 = vpop.f32.mrf.mxu1  ;;  %v7464_v5 = vld [vmem:[%s8309_s23 + $0xb68] ss:$16 sps:$4 sm:$0xff]   ;;  %v7469_v7 = vld [vmem:[%s8309_s23 + $0xb84] ss:$16 sps:$4 sm:$0xff]  }
 0x30b   : > { %v4110_v11 = vpop.f32.mrf.mxu0  ;;  %v7472_v10 = vld [vmem:[%s8309_s23 + $0xb8c] ss:$16 sps:$4 sm:$0xff]  }
 0x30c   : > { %7935 = vtanh.f32 %v5165_v9  ;;  %v4111_v13 = vadd.f32 %v8944_v14, %v4110_v11  ;;  %v5167_v32 = vpop.f32.mrf.mxu1 }
 0x30d   : > { %v7930_v17 = vpop.eup %7929  ;;  %v4112_v18 = vpop.f32.mrf.mxu0 }
 0x30e   : > { %6062 = vst [vmem:[%s8465_s29 + $0x3d8] sm:$0xff] %v7930_v17  ;;  %v5168_v20 = vadd.f32 %v5167_v32, %v4111_v13  ;;  %v5169_v21 = vpop.f32.mrf.mxu1 }
 0x30f   : > { %v4115_v22 = vpop.f32.mrf.mxu0  ;;  %4306 = vmatmul.mubr.bf16.gmra.mxu0 %v7443_v12  ;;  %v7467_v21 = vld [vmem:[%s8309_s23 + $0xb80] ss:$16 sps:$4 sm:$0xff]  }
 0x310   : > { %7937 = vtanh.f32 %v5168_v20  ;;  %v4116_v23 = vadd.f32 %v8944_v14, %v4115_v22  ;;  %v5172_v24 = vpop.f32.mrf.mxu1  ;;  %5363 = vmatmul.mubr.bf16.gmra.mxu1 %v7446_v15  ;;  %4313 = vmatprep.mubr.bf16.mxu0 %v7451_v16 }
 0x311   : > { %v7932_v25 = vpop.eup %7931  ;;  %v4117_v26 = vpop.f32.mrf.mxu0  ;;  %5370 = vmatprep.mubr.bf16.mxu1 %v7454_v19 }
 0x312   : > { %6063 = vst [vmem:[%s8465_s29 + $0x3e0] sm:$0xff] %v7932_v25  ;;  %v5173_v27 = vadd.f32 %v5172_v24, %v4116_v23  ;;  %v5174_v28 = vpop.f32.mrf.mxu1  ;;  %v7470_v24 = vld [vmem:[%s8309_s23 + $0xb88] ss:$16 sps:$4 sm:$0xff]   ;;  %v7475_v25 = vld [vmem:[%s8309_s23 + $0xba4] ss:$16 sps:$4 sm:$0xff]  }
 0x313   : > { %v4118_v29 = vpop.f32.mrf.mxu0  ;;  %v7478_v28 = vld [vmem:[%s8309_s23 + $0xbac] ss:$16 sps:$4 sm:$0xff]  }
 0x314   : > { %7939 = vtanh.f32 %v5173_v27  ;;  %v4119_v31 = vadd.f32 %v8944_v14, %v4118_v29  ;;  %v5175_v50 = vpop.f32.mrf.mxu1 }
 0x315   : > { %v7934_v35 = vpop.eup %7933  ;;  %v4120_v36 = vpop.f32.mrf.mxu0 }
 0x316   : > { %6064 = vst [vmem:[%s8465_s29 + $0x3e8] sm:$0xff] %v7934_v35  ;;  %v5176_v38 = vadd.f32 %v5175_v50, %v4119_v31  ;;  %v5177_v39 = vpop.f32.mrf.mxu1 }
 0x317   : > { %v4123_v40 = vpop.f32.mrf.mxu0  ;;  %4314 = vmatmul.mubr.bf16.gmra.mxu0 %v7449_v30  ;;  %v7473_v39 = vld [vmem:[%s8309_s23 + $0xba0] ss:$16 sps:$4 sm:$0xff]  }
 0x318   : > { %7941 = vtanh.f32 %v5176_v38  ;;  %v4124_v41 = vadd.f32 %v8944_v14, %v4123_v40  ;;  %v5180_v42 = vpop.f32.mrf.mxu1  ;;  %5371 = vmatmul.mubr.bf16.gmra.mxu1 %v7452_v33  ;;  %4321 = vmatprep.mubr.bf16.mxu0 %v7457_v34 }
 0x319   : > { %v7936_v43 = vpop.eup %7935  ;;  %v4125_v44 = vpop.f32.mrf.mxu0  ;;  %5378 = vmatprep.mubr.bf16.mxu1 %v7460_v37 }
 0x31a   : > { %6065 = vst [vmem:[%s8465_s29 + $0x3f0] sm:$0xff] %v7936_v43  ;;  %v5181_v45 = vadd.f32 %v5180_v42, %v4124_v41  ;;  %v5182_v46 = vpop.f32.mrf.mxu1  ;;  %v7476_v42 = vld [vmem:[%s8309_s23 + $0xba8] ss:$16 sps:$4 sm:$0xff]   ;;  %v7481_v43 = vld [vmem:[%s8309_s23 + $0xbc4] ss:$16 sps:$4 sm:$0xff]  }
 0x31b   : > { %v4126_v47 = vpop.f32.mrf.mxu0  ;;  %v7484_v46 = vld [vmem:[%s8309_s23 + $0xbcc] ss:$16 sps:$4 sm:$0xff]  }
 0x31c   : > { %7943 = vtanh.f32 %v5181_v45  ;;  %v4127_v49 = vadd.f32 %v8944_v14, %v4126_v47  ;;  %v5183_v6 = vpop.f32.mrf.mxu1 }
 0x31d   : > { %v7938_v53 = vpop.eup %7937  ;;  %v4128_v54 = vpop.f32.mrf.mxu0 }
 0x31e   : > { %6066 = vst [vmem:[%s8465_s29 + $0x3f8] sm:$0xff] %v7938_v53  ;;  %v5184_v56 = vadd.f32 %v5183_v6, %v4127_v49  ;;  %v5185_v57 = vpop.f32.mrf.mxu1 }
 0x31f   : > { %v4131_v58 = vpop.f32.mrf.mxu0  ;;  %4322 = vmatmul.mubr.bf16.gmra.mxu0 %v7455_v48  ;;  %v7479_v57 = vld [vmem:[%s8309_s23 + $0xbc0] ss:$16 sps:$4 sm:$0xff]  }
 0x320   : > { %7945 = vtanh.f32 %v5184_v56  ;;  %v4132_v59 = vadd.f32 %v8944_v14, %v4131_v58  ;;  %v5188_v60 = vpop.f32.mrf.mxu1  ;;  %5379 = vmatmul.mubr.bf16.gmra.mxu1 %v7458_v51  ;;  %4329 = vmatprep.mubr.bf16.mxu0 %v7463_v52 }
 0x321   : > { %v7940_v61 = vpop.eup %7939  ;;  %v4133_v62 = vpop.f32.mrf.mxu0  ;;  %5386 = vmatprep.mubr.bf16.mxu1 %v7466_v55 }
 0x322   : > { %6067 = vst [vmem:[%s8465_s29 + $0x400] sm:$0xff] %v7940_v61  ;;  %v5189_v63 = vadd.f32 %v5188_v60, %v4132_v59  ;;  %v5190_v0 = vpop.f32.mrf.mxu1  ;;  %v7482_v60 = vld [vmem:[%s8309_s23 + $0xbc8] ss:$16 sps:$4 sm:$0xff]   ;;  %v7487_v61 = vld [vmem:[%s8309_s23 + $0xbe4] ss:$16 sps:$4 sm:$0xff]  }
 0x323   : > { %v4134_v1 = vpop.f32.mrf.mxu0  ;;  %v7490_v0 = vld [vmem:[%s8309_s23 + $0xbec] ss:$16 sps:$4 sm:$0xff]  }
 0x324   : > { %7947 = vtanh.f32 %v5189_v63  ;;  %v4135_v3 = vadd.f32 %v8944_v14, %v4134_v1  ;;  %v5191_v4 = vpop.f32.mrf.mxu1 }
 0x325   : > { %v7942_v8 = vpop.eup %7941  ;;  %v4136_v9 = vpop.f32.mrf.mxu0 }
 0x326   : > { %6068 = vst [vmem:[%s8465_s29 + $0x408] sm:$0xff] %v7942_v8  ;;  %v5192_v11 = vadd.f32 %v5191_v4, %v4135_v3  ;;  %v5193_v12 = vpop.f32.mrf.mxu1 }
 0x327   : > { %v4139_v13 = vpop.f32.mrf.mxu0  ;;  %4330 = vmatmul.mubr.bf16.gmra.mxu0 %v7461_v2  ;;  %v7485_v12 = vld [vmem:[%s8309_s23 + $0xbe0] ss:$16 sps:$4 sm:$0xff]  }
 0x328   : > { %7949 = vtanh.f32 %v5192_v11  ;;  %v4140_v32 = vadd.f32 %v8944_v14, %v4139_v13  ;;  %v5196_v15 = vpop.f32.mrf.mxu1  ;;  %5387 = vmatmul.mubr.bf16.gmra.mxu1 %v7464_v5  ;;  %4337 = vmatprep.mubr.bf16.mxu0 %v7469_v7 }
 0x329   : > { %v7944_v16 = vpop.eup %7943  ;;  %v4141_v17 = vpop.f32.mrf.mxu0  ;;  %5394 = vmatprep.mubr.bf16.mxu1 %v7472_v10 }
 0x32a   : > { %6069 = vst [vmem:[%s8465_s29 + $0x410] sm:$0xff] %v7944_v16  ;;  %v5197_v18 = vadd.f32 %v5196_v15, %v4140_v32  ;;  %v5198_v19 = vpop.f32.mrf.mxu1  ;;  %v7488_v15 = vld [vmem:[%s8309_s23 + $0xbe8] ss:$16 sps:$4 sm:$0xff]   ;;  %v7493_v16 = vld [vmem:[%s8309_s23 + $0xc04] ss:$16 sps:$4 sm:$0xff]  }
 0x32b   : > { %v4142_v20 = vpop.f32.mrf.mxu0  ;;  %v7496_v19 = vld [vmem:[%s8309_s23 + $0xc0c] ss:$16 sps:$4 sm:$0xff]  }
 0x32c   : > { %7951 = vtanh.f32 %v5197_v18  ;;  %v4143_v22 = vadd.f32 %v8944_v14, %v4142_v20  ;;  %v5199_v23 = vpop.f32.mrf.mxu1 }
 0x32d   : > { %v7946_v26 = vpop.eup %7945  ;;  %v4144_v27 = vpop.f32.mrf.mxu0 }
 0x32e   : > { %6070 = vst [vmem:[%s8465_s29 + $0x418] sm:$0xff] %v7946_v26  ;;  %v5200_v29 = vadd.f32 %v5199_v23, %v4143_v22  ;;  %v5201_v30 = vpop.f32.mrf.mxu1 }
 0x32f   : > { %v4147_v31 = vpop.f32.mrf.mxu0  ;;  %4338 = vmatmul.mubr.bf16.gmra.mxu0 %v7467_v21  ;;  %v7491_v30 = vld [vmem:[%s8309_s23 + $0xc00] ss:$16 sps:$4 sm:$0xff]  }
 0x330   : > { %7953 = vtanh.f32 %v5200_v29  ;;  %v4148_v50 = vadd.f32 %v8944_v14, %v4147_v31  ;;  %v5204_v33 = vpop.f32.mrf.mxu1  ;;  %5395 = vmatmul.mubr.bf16.gmra.mxu1 %v7470_v24  ;;  %4345 = vmatprep.mubr.bf16.mxu0 %v7475_v25 }
 0x331   : > { %v7948_v34 = vpop.eup %7947  ;;  %v4149_v35 = vpop.f32.mrf.mxu0  ;;  %5402 = vmatprep.mubr.bf16.mxu1 %v7478_v28 }
 0x332   : > { %6071 = vst [vmem:[%s8465_s29 + $0x420] sm:$0xff] %v7948_v34  ;;  %v5205_v36 = vadd.f32 %v5204_v33, %v4148_v50  ;;  %v5206_v37 = vpop.f32.mrf.mxu1  ;;  %v7494_v33 = vld [vmem:[%s8309_s23 + $0xc08] ss:$16 sps:$4 sm:$0xff]   ;;  %v7499_v34 = vld [vmem:[%s8309_s23 + $0xc24] ss:$16 sps:$4 sm:$0xff]  }
 0x333   : > { %v4150_v38 = vpop.f32.mrf.mxu0  ;;  %v7502_v37 = vld [vmem:[%s8309_s23 + $0xc2c] ss:$16 sps:$4 sm:$0xff]  }
 0x334   : > { %7955 = vtanh.f32 %v5205_v36  ;;  %v4151_v40 = vadd.f32 %v8944_v14, %v4150_v38  ;;  %v5207_v41 = vpop.f32.mrf.mxu1 }
 0x335   : > { %v7950_v44 = vpop.eup %7949  ;;  %v4152_v45 = vpop.f32.mrf.mxu0 }
 0x336   : > { %6072 = vst [vmem:[%s8465_s29 + $0x428] sm:$0xff] %v7950_v44  ;;  %v5208_v47 = vadd.f32 %v5207_v41, %v4151_v40  ;;  %v5209_v48 = vpop.f32.mrf.mxu1 }
 0x337   : > { %v4155_v49 = vpop.f32.mrf.mxu0  ;;  %4346 = vmatmul.mubr.bf16.gmra.mxu0 %v7473_v39  ;;  %v7497_v48 = vld [vmem:[%s8309_s23 + $0xc20] ss:$16 sps:$4 sm:$0xff]  }
 0x338   : > { %7957 = vtanh.f32 %v5208_v47  ;;  %v4156_v6 = vadd.f32 %v8944_v14, %v4155_v49  ;;  %v5212_v51 = vpop.f32.mrf.mxu1  ;;  %5403 = vmatmul.mubr.bf16.gmra.mxu1 %v7476_v42  ;;  %4353 = vmatprep.mubr.bf16.mxu0 %v7481_v43 }
 0x339   : > { %v7952_v52 = vpop.eup %7951  ;;  %v4157_v53 = vpop.f32.mrf.mxu0  ;;  %5410 = vmatprep.mubr.bf16.mxu1 %v7484_v46 }
 0x33a   : > { %6073 = vst [vmem:[%s8465_s29 + $0x430] sm:$0xff] %v7952_v52  ;;  %v5213_v54 = vadd.f32 %v5212_v51, %v4156_v6  ;;  %v5214_v55 = vpop.f32.mrf.mxu1  ;;  %v7500_v51 = vld [vmem:[%s8309_s23 + $0xc28] ss:$16 sps:$4 sm:$0xff]   ;;  %v7505_v52 = vld [vmem:[%s8309_s23 + $0xc44] ss:$16 sps:$4 sm:$0xff]  }
 0x33b   : > { %v4158_v56 = vpop.f32.mrf.mxu0  ;;  %v7508_v55 = vld [vmem:[%s8309_s23 + $0xc4c] ss:$16 sps:$4 sm:$0xff]  }
 0x33c   : > { %7959 = vtanh.f32 %v5213_v54  ;;  %v4159_v58 = vadd.f32 %v8944_v14, %v4158_v56  ;;  %v5215_v59 = vpop.f32.mrf.mxu1 }
 0x33d   : > { %v7954_v62 = vpop.eup %7953  ;;  %v4160_v63 = vpop.f32.mrf.mxu0 }
 0x33e   : > { %6074 = vst [vmem:[%s8465_s29 + $0x438] sm:$0xff] %v7954_v62  ;;  %v5216_v1 = vadd.f32 %v5215_v59, %v4159_v58  ;;  %v5217_v2 = vpop.f32.mrf.mxu1 }
 0x33f   : > { %v4163_v3 = vpop.f32.mrf.mxu0  ;;  %4354 = vmatmul.mubr.bf16.gmra.mxu0 %v7479_v57  ;;  %v7503_v2 = vld [vmem:[%s8309_s23 + $0xc40] ss:$16 sps:$4 sm:$0xff]  }
 0x340   : > { %7961 = vtanh.f32 %v5216_v1  ;;  %v4164_v4 = vadd.f32 %v8944_v14, %v4163_v3  ;;  %v5220_v5 = vpop.f32.mrf.mxu1  ;;  %5411 = vmatmul.mubr.bf16.gmra.mxu1 %v7482_v60  ;;  %4361 = vmatprep.mubr.bf16.mxu0 %v7487_v61 }
 0x341   : > { %v7956_v7 = vpop.eup %7955  ;;  %v4165_v8 = vpop.f32.mrf.mxu0  ;;  %5418 = vmatprep.mubr.bf16.mxu1 %v7490_v0 }
 0x342   : > { %6075 = vst [vmem:[%s8465_s29 + $0x440] sm:$0xff] %v7956_v7  ;;  %v5221_v9 = vadd.f32 %v5220_v5, %v4164_v4  ;;  %v5222_v10 = vpop.f32.mrf.mxu1  ;;  %v7506_v5 = vld [vmem:[%s8309_s23 + $0xc48] ss:$16 sps:$4 sm:$0xff]   ;;  %v7511_v7 = vld [vmem:[%s8309_s23 + $0xc64] ss:$16 sps:$4 sm:$0xff]  }
 0x343   : > { %v4166_v11 = vpop.f32.mrf.mxu0  ;;  %v7514_v10 = vld [vmem:[%s8309_s23 + $0xc6c] ss:$16 sps:$4 sm:$0xff]  }
 0x344   : > { %7963 = vtanh.f32 %v5221_v9  ;;  %v4167_v13 = vadd.f32 %v8944_v14, %v4166_v11  ;;  %v5223_v32 = vpop.f32.mrf.mxu1 }
 0x345   : > { %v7958_v17 = vpop.eup %7957  ;;  %v4168_v18 = vpop.f32.mrf.mxu0 }
 0x346   : > { %6076 = vst [vmem:[%s8465_s29 + $0x448] sm:$0xff] %v7958_v17  ;;  %v5224_v20 = vadd.f32 %v5223_v32, %v4167_v13  ;;  %v5225_v21 = vpop.f32.mrf.mxu1 }
 0x347   : > { %v4171_v22 = vpop.f32.mrf.mxu0  ;;  %4362 = vmatmul.mubr.bf16.gmra.mxu0 %v7485_v12  ;;  %v7509_v21 = vld [vmem:[%s8309_s23 + $0xc60] ss:$16 sps:$4 sm:$0xff]  }
 0x348   : > { %7965 = vtanh.f32 %v5224_v20  ;;  %v4172_v23 = vadd.f32 %v8944_v14, %v4171_v22  ;;  %v5228_v24 = vpop.f32.mrf.mxu1  ;;  %5419 = vmatmul.mubr.bf16.gmra.mxu1 %v7488_v15  ;;  %4369 = vmatprep.mubr.bf16.mxu0 %v7493_v16 }
 0x349   : > { %v7960_v25 = vpop.eup %7959  ;;  %v4173_v26 = vpop.f32.mrf.mxu0  ;;  %5426 = vmatprep.mubr.bf16.mxu1 %v7496_v19 }
 0x34a   : > { %6077 = vst [vmem:[%s8465_s29 + $0x450] sm:$0xff] %v7960_v25  ;;  %v5229_v27 = vadd.f32 %v5228_v24, %v4172_v23  ;;  %v5230_v28 = vpop.f32.mrf.mxu1  ;;  %v7512_v24 = vld [vmem:[%s8309_s23 + $0xc68] ss:$16 sps:$4 sm:$0xff]   ;;  %v7517_v25 = vld [vmem:[%s8309_s23 + $0xc84] ss:$16 sps:$4 sm:$0xff]  }
 0x34b   : > { %v4174_v29 = vpop.f32.mrf.mxu0  ;;  %v7520_v28 = vld [vmem:[%s8309_s23 + $0xc8c] ss:$16 sps:$4 sm:$0xff]  }
 0x34c   : > { %7967 = vtanh.f32 %v5229_v27  ;;  %v4175_v31 = vadd.f32 %v8944_v14, %v4174_v29  ;;  %v5231_v50 = vpop.f32.mrf.mxu1 }
 0x34d   : > { %v7962_v35 = vpop.eup %7961  ;;  %v4176_v36 = vpop.f32.mrf.mxu0 }
 0x34e   : > { %6078 = vst [vmem:[%s8465_s29 + $0x458] sm:$0xff] %v7962_v35  ;;  %v5232_v38 = vadd.f32 %v5231_v50, %v4175_v31  ;;  %v5233_v39 = vpop.f32.mrf.mxu1 }
 0x34f   : > { %v4179_v40 = vpop.f32.mrf.mxu0  ;;  %4370 = vmatmul.mubr.bf16.gmra.mxu0 %v7491_v30  ;;  %v7515_v39 = vld [vmem:[%s8309_s23 + $0xc80] ss:$16 sps:$4 sm:$0xff]  }
 0x350   : > { %7969 = vtanh.f32 %v5232_v38  ;;  %v4180_v41 = vadd.f32 %v8944_v14, %v4179_v40  ;;  %v5236_v42 = vpop.f32.mrf.mxu1  ;;  %5427 = vmatmul.mubr.bf16.gmra.mxu1 %v7494_v33  ;;  %4377 = vmatprep.mubr.bf16.mxu0 %v7499_v34 }
 0x351   : > { %v7964_v43 = vpop.eup %7963  ;;  %v4181_v44 = vpop.f32.mrf.mxu0  ;;  %5434 = vmatprep.mubr.bf16.mxu1 %v7502_v37 }
 0x352   : > { %6079 = vst [vmem:[%s8465_s29 + $0x460] sm:$0xff] %v7964_v43  ;;  %v5237_v45 = vadd.f32 %v5236_v42, %v4180_v41  ;;  %v5238_v46 = vpop.f32.mrf.mxu1  ;;  %v7518_v42 = vld [vmem:[%s8309_s23 + $0xc88] ss:$16 sps:$4 sm:$0xff]   ;;  %v7523_v43 = vld [vmem:[%s8309_s23 + $0xca4] ss:$16 sps:$4 sm:$0xff]  }
 0x353   : > { %v4182_v47 = vpop.f32.mrf.mxu0  ;;  %v7526_v46 = vld [vmem:[%s8309_s23 + $0xcac] ss:$16 sps:$4 sm:$0xff]  }
 0x354   : > { %7971 = vtanh.f32 %v5237_v45  ;;  %v4183_v49 = vadd.f32 %v8944_v14, %v4182_v47  ;;  %v5239_v6 = vpop.f32.mrf.mxu1 }
 0x355   : > { %v7966_v53 = vpop.eup %7965  ;;  %v4184_v54 = vpop.f32.mrf.mxu0 }
 0x356   : > { %6080 = vst [vmem:[%s8465_s29 + $0x468] sm:$0xff] %v7966_v53  ;;  %v5240_v56 = vadd.f32 %v5239_v6, %v4183_v49  ;;  %v5241_v57 = vpop.f32.mrf.mxu1 }
 0x357   : > { %v4187_v58 = vpop.f32.mrf.mxu0  ;;  %4378 = vmatmul.mubr.bf16.gmra.mxu0 %v7497_v48  ;;  %v7521_v57 = vld [vmem:[%s8309_s23 + $0xca0] ss:$16 sps:$4 sm:$0xff]  }
 0x358   : > { %7973 = vtanh.f32 %v5240_v56  ;;  %v4188_v59 = vadd.f32 %v8944_v14, %v4187_v58  ;;  %v5244_v60 = vpop.f32.mrf.mxu1  ;;  %5435 = vmatmul.mubr.bf16.gmra.mxu1 %v7500_v51  ;;  %4385 = vmatprep.mubr.bf16.mxu0 %v7505_v52 }
 0x359   : > { %v7968_v61 = vpop.eup %7967  ;;  %v4189_v62 = vpop.f32.mrf.mxu0  ;;  %5442 = vmatprep.mubr.bf16.mxu1 %v7508_v55 }
 0x35a   : > { %6081 = vst [vmem:[%s8465_s29 + $0x470] sm:$0xff] %v7968_v61  ;;  %v5245_v63 = vadd.f32 %v5244_v60, %v4188_v59  ;;  %v5246_v0 = vpop.f32.mrf.mxu1  ;;  %v7524_v60 = vld [vmem:[%s8309_s23 + $0xca8] ss:$16 sps:$4 sm:$0xff]   ;;  %v7529_v61 = vld [vmem:[%s8309_s23 + $0xcc4] ss:$16 sps:$4 sm:$0xff]  }
 0x35b   : > { %v4190_v1 = vpop.f32.mrf.mxu0  ;;  %v7532_v0 = vld [vmem:[%s8309_s23 + $0xccc] ss:$16 sps:$4 sm:$0xff]  }
 0x35c   : > { %7975 = vtanh.f32 %v5245_v63  ;;  %v4191_v3 = vadd.f32 %v8944_v14, %v4190_v1  ;;  %v5247_v4 = vpop.f32.mrf.mxu1 }
 0x35d   : > { %v7970_v8 = vpop.eup %7969  ;;  %v4192_v9 = vpop.f32.mrf.mxu0 }
 0x35e   : > { %6082 = vst [vmem:[%s8465_s29 + $0x478] sm:$0xff] %v7970_v8  ;;  %v5248_v11 = vadd.f32 %v5247_v4, %v4191_v3  ;;  %v5249_v12 = vpop.f32.mrf.mxu1 }
 0x35f   : > { %v4195_v13 = vpop.f32.mrf.mxu0  ;;  %4386 = vmatmul.mubr.bf16.gmra.mxu0 %v7503_v2  ;;  %v7527_v12 = vld [vmem:[%s8309_s23 + $0xcc0] ss:$16 sps:$4 sm:$0xff]  }
 0x360   : > { %7977 = vtanh.f32 %v5248_v11  ;;  %v4196_v32 = vadd.f32 %v8944_v14, %v4195_v13  ;;  %v5252_v15 = vpop.f32.mrf.mxu1  ;;  %5443 = vmatmul.mubr.bf16.gmra.mxu1 %v7506_v5  ;;  %4393 = vmatprep.mubr.bf16.mxu0 %v7511_v7 }
 0x361   : > { %v7972_v16 = vpop.eup %7971  ;;  %v4197_v17 = vpop.f32.mrf.mxu0  ;;  %5450 = vmatprep.mubr.bf16.mxu1 %v7514_v10 }
 0x362   : > { %6083 = vst [vmem:[%s8465_s29 + $0x480] sm:$0xff] %v7972_v16  ;;  %v5253_v18 = vadd.f32 %v5252_v15, %v4196_v32  ;;  %v5254_v19 = vpop.f32.mrf.mxu1  ;;  %v7530_v15 = vld [vmem:[%s8309_s23 + $0xcc8] ss:$16 sps:$4 sm:$0xff]   ;;  %v7535_v16 = vld [vmem:[%s8309_s23 + $0xce4] ss:$16 sps:$4 sm:$0xff]  }
 0x363   : > { %v4198_v20 = vpop.f32.mrf.mxu0  ;;  %v7538_v19 = vld [vmem:[%s8309_s23 + $0xcec] ss:$16 sps:$4 sm:$0xff]  }
 0x364   : > { %7979 = vtanh.f32 %v5253_v18  ;;  %v4199_v22 = vadd.f32 %v8944_v14, %v4198_v20  ;;  %v5255_v23 = vpop.f32.mrf.mxu1 }
 0x365   : > { %v7974_v26 = vpop.eup %7973  ;;  %v4200_v27 = vpop.f32.mrf.mxu0 }
 0x366   : > { %6084 = vst [vmem:[%s8465_s29 + $0x488] sm:$0xff] %v7974_v26  ;;  %v5256_v29 = vadd.f32 %v5255_v23, %v4199_v22  ;;  %v5257_v30 = vpop.f32.mrf.mxu1 }
 0x367   : > { %v4203_v31 = vpop.f32.mrf.mxu0  ;;  %4394 = vmatmul.mubr.bf16.gmra.mxu0 %v7509_v21  ;;  %v7533_v30 = vld [vmem:[%s8309_s23 + $0xce0] ss:$16 sps:$4 sm:$0xff]  }
 0x368   : > { %7981 = vtanh.f32 %v5256_v29  ;;  %v4204_v50 = vadd.f32 %v8944_v14, %v4203_v31  ;;  %v5260_v33 = vpop.f32.mrf.mxu1  ;;  %5451 = vmatmul.mubr.bf16.gmra.mxu1 %v7512_v24  ;;  %4401 = vmatprep.mubr.bf16.mxu0 %v7517_v25 }
 0x369   : > { %v7976_v34 = vpop.eup %7975  ;;  %v4205_v35 = vpop.f32.mrf.mxu0  ;;  %5458 = vmatprep.mubr.bf16.mxu1 %v7520_v28 }
 0x36a   : > { %6085 = vst [vmem:[%s8465_s29 + $0x490] sm:$0xff] %v7976_v34  ;;  %v5261_v36 = vadd.f32 %v5260_v33, %v4204_v50  ;;  %v5262_v37 = vpop.f32.mrf.mxu1  ;;  %v7536_v33 = vld [vmem:[%s8309_s23 + $0xce8] ss:$16 sps:$4 sm:$0xff]   ;;  %v7541_v34 = vld [vmem:[%s8309_s23 + $0xd04] ss:$16 sps:$4 sm:$0xff]  }
 0x36b   : > { %v4206_v38 = vpop.f32.mrf.mxu0  ;;  %v7544_v37 = vld [vmem:[%s8309_s23 + $0xd0c] ss:$16 sps:$4 sm:$0xff]  }
 0x36c   : > { %7983 = vtanh.f32 %v5261_v36  ;;  %v4207_v40 = vadd.f32 %v8944_v14, %v4206_v38  ;;  %v5263_v41 = vpop.f32.mrf.mxu1 }
 0x36d   : > { %v7978_v44 = vpop.eup %7977  ;;  %v4208_v45 = vpop.f32.mrf.mxu0 }
 0x36e   : > { %6086 = vst [vmem:[%s8465_s29 + $0x498] sm:$0xff] %v7978_v44  ;;  %v5264_v47 = vadd.f32 %v5263_v41, %v4207_v40  ;;  %v5265_v48 = vpop.f32.mrf.mxu1 }
 0x36f   : > { %v4211_v49 = vpop.f32.mrf.mxu0  ;;  %4402 = vmatmul.mubr.bf16.gmra.mxu0 %v7515_v39  ;;  %v7539_v48 = vld [vmem:[%s8309_s23 + $0xd00] ss:$16 sps:$4 sm:$0xff]  }
 0x370   : > { %7985 = vtanh.f32 %v5264_v47  ;;  %v4212_v6 = vadd.f32 %v8944_v14, %v4211_v49  ;;  %v5268_v51 = vpop.f32.mrf.mxu1  ;;  %5459 = vmatmul.mubr.bf16.gmra.mxu1 %v7518_v42  ;;  %4409 = vmatprep.mubr.bf16.mxu0 %v7523_v43 }
 0x371   : > { %v7980_v52 = vpop.eup %7979  ;;  %v4213_v53 = vpop.f32.mrf.mxu0  ;;  %5466 = vmatprep.mubr.bf16.mxu1 %v7526_v46 }
 0x372   : > { %6087 = vst [vmem:[%s8465_s29 + $0x4a0] sm:$0xff] %v7980_v52  ;;  %v5269_v54 = vadd.f32 %v5268_v51, %v4212_v6  ;;  %v5270_v55 = vpop.f32.mrf.mxu1  ;;  %v7542_v51 = vld [vmem:[%s8309_s23 + $0xd08] ss:$16 sps:$4 sm:$0xff]   ;;  %v7547_v52 = vld [vmem:[%s8309_s23 + $0xd24] ss:$16 sps:$4 sm:$0xff]  }
 0x373   : > { %v4214_v56 = vpop.f32.mrf.mxu0  ;;  %v7550_v55 = vld [vmem:[%s8309_s23 + $0xd2c] ss:$16 sps:$4 sm:$0xff]  }
 0x374   : > { %7987 = vtanh.f32 %v5269_v54  ;;  %v4215_v58 = vadd.f32 %v8944_v14, %v4214_v56  ;;  %v5271_v59 = vpop.f32.mrf.mxu1 }
 0x375   : > { %v7982_v62 = vpop.eup %7981  ;;  %v4216_v63 = vpop.f32.mrf.mxu0 }
 0x376   : > { %6088 = vst [vmem:[%s8465_s29 + $0x4a8] sm:$0xff] %v7982_v62  ;;  %v5272_v1 = vadd.f32 %v5271_v59, %v4215_v58  ;;  %v5273_v2 = vpop.f32.mrf.mxu1  ;;  %v9109_v59 = vld [vmem:[%s9415_s2] ss:$0 sm:$0xff] }
 0x377   : > { %v4219_v3 = vpop.f32.mrf.mxu0  ;;  %4410 = vmatmul.mubr.bf16.gmra.mxu0 %v7521_v57  ;;  %v7545_v2 = vld [vmem:[%s8309_s23 + $0xd20] ss:$16 sps:$4 sm:$0xff]  }
 0x378   : > { %7989 = vtanh.f32 %v5272_v1  ;;  %v4220_v4 = vadd.f32 %v8944_v14, %v4219_v3  ;;  %v5276_v5 = vpop.f32.mrf.mxu1  ;;  %5467 = vmatmul.mubr.bf16.gmra.mxu1 %v7524_v60  ;;  %4417 = vmatprep.mubr.bf16.mxu0 %v7529_v61 }
 0x379   : > { %v7984_v7 = vpop.eup %7983  ;;  %v4221_v8 = vpop.f32.mrf.mxu0  ;;  %5474 = vmatprep.mubr.bf16.mxu1 %v7532_v0 }
 0x37a   : > { %6089 = vst [vmem:[%s8465_s29 + $0x4b0] sm:$0xff] %v7984_v7  ;;  %v5277_v9 = vadd.f32 %v5276_v5, %v4220_v4  ;;  %v5278_v10 = vpop.f32.mrf.mxu1  ;;  %v7548_v5 = vld [vmem:[%s8309_s23 + $0xd28] ss:$16 sps:$4 sm:$0xff]   ;;  %v7553_v7 = vld [vmem:[%s8309_s23 + $0xd44] ss:$16 sps:$4 sm:$0xff]  }
 0x37b   : > { %v4222_v11 = vpop.f32.mrf.mxu0  ;;  %v7556_v10 = vld [vmem:[%s8309_s23 + $0xd4c] ss:$16 sps:$4 sm:$0xff]  }
 0x37c   : > { %7991 = vtanh.f32 %v5277_v9  ;;  %v4223_v13 = vadd.f32 %v8944_v14, %v4222_v11  ;;  %v5279_v32 = vpop.f32.mrf.mxu1 }
 0x37d   : > { %v7986_v17 = vpop.eup %7985  ;;  %v4224_v18 = vpop.f32.mrf.mxu0 }
 0x37e   : > { %6090 = vst [vmem:[%s8465_s29 + $0x4b8] sm:$0xff] %v7986_v17  ;;  %v5280_v20 = vadd.f32 %v5279_v32, %v4223_v13  ;;  %v5281_v21 = vpop.f32.mrf.mxu1 }
 0x37f   : > { %v4227_v22 = vpop.f32.mrf.mxu0  ;;  %4418 = vmatmul.mubr.bf16.gmra.mxu0 %v7527_v12  ;;  %v7551_v21 = vld [vmem:[%s8309_s23 + $0xd40] ss:$16 sps:$4 sm:$0xff]  }
 0x380   : > { %7993 = vtanh.f32 %v5280_v20  ;;  %v4228_v23 = vadd.f32 %v8944_v14, %v4227_v22  ;;  %v5284_v24 = vpop.f32.mrf.mxu1  ;;  %5475 = vmatmul.mubr.bf16.gmra.mxu1 %v7530_v15  ;;  %4425 = vmatprep.mubr.bf16.mxu0 %v7535_v16 }
 0x381   : > { %v7988_v25 = vpop.eup %7987  ;;  %v4229_v26 = vpop.f32.mrf.mxu0  ;;  %5482 = vmatprep.mubr.bf16.mxu1 %v7538_v19 }
 0x382   : > { %6091 = vst [vmem:[%s8465_s29 + $0x4c0] sm:$0xff] %v7988_v25  ;;  %v5285_v27 = vadd.f32 %v5284_v24, %v4228_v23  ;;  %v5286_v28 = vpop.f32.mrf.mxu1  ;;  %v7554_v24 = vld [vmem:[%s8309_s23 + $0xd48] ss:$16 sps:$4 sm:$0xff]   ;;  %v7559_v25 = vld [vmem:[%s8309_s23 + $0xd64] ss:$16 sps:$4 sm:$0xff]  }
 0x383   : > { %v4230_v29 = vpop.f32.mrf.mxu0  ;;  %v7562_v28 = vld [vmem:[%s8309_s23 + $0xd6c] ss:$16 sps:$4 sm:$0xff]  }
 0x384   : > { %7995 = vtanh.f32 %v5285_v27  ;;  %v4231_v31 = vadd.f32 %v8944_v14, %v4230_v29  ;;  %v5287_v50 = vpop.f32.mrf.mxu1 }
 0x385   : > { %v7990_v35 = vpop.eup %7989  ;;  %v4232_v36 = vpop.f32.mrf.mxu0 }
 0x386   : > { %6092 = vst [vmem:[%s8465_s29 + $0x4c8] sm:$0xff] %v7990_v35  ;;  %v5288_v38 = vadd.f32 %v5287_v50, %v4231_v31  ;;  %v5289_v39 = vpop.f32.mrf.mxu1 }
 0x387   : > { %v4235_v40 = vpop.f32.mrf.mxu0  ;;  %4426 = vmatmul.mubr.bf16.gmra.mxu0 %v7533_v30  ;;  %v7557_v39 = vld [vmem:[%s8309_s23 + $0xd60] ss:$16 sps:$4 sm:$0xff]  }
 0x388   : > { %7997 = vtanh.f32 %v5288_v38  ;;  %v4236_v41 = vadd.f32 %v8944_v14, %v4235_v40  ;;  %v5292_v42 = vpop.f32.mrf.mxu1  ;;  %5483 = vmatmul.mubr.bf16.gmra.mxu1 %v7536_v33  ;;  %4433 = vmatprep.mubr.bf16.mxu0 %v7541_v34 }
 0x389   : > { %v7992_v43 = vpop.eup %7991  ;;  %v4237_v44 = vpop.f32.mrf.mxu0  ;;  %5490 = vmatprep.mubr.bf16.mxu1 %v7544_v37 }
 0x38a   : > { %6093 = vst [vmem:[%s8465_s29 + $0x4d0] sm:$0xff] %v7992_v43  ;;  %v5293_v45 = vadd.f32 %v5292_v42, %v4236_v41  ;;  %v5294_v46 = vpop.f32.mrf.mxu1  ;;  %v7560_v42 = vld [vmem:[%s8309_s23 + $0xd68] ss:$16 sps:$4 sm:$0xff]   ;;  %v7565_v43 = vld [vmem:[%s8309_s23 + $0xd84] ss:$16 sps:$4 sm:$0xff]  }
 0x38b   : > { %v4238_v47 = vpop.f32.mrf.mxu0  ;;  %v7568_v46 = vld [vmem:[%s8309_s23 + $0xd8c] ss:$16 sps:$4 sm:$0xff]  }
 0x38c   : > { %7999 = vtanh.f32 %v5293_v45  ;;  %v4239_v49 = vadd.f32 %v8944_v14, %v4238_v47  ;;  %v5295_v6 = vpop.f32.mrf.mxu1 }
 0x38d   : > { %v7994_v53 = vpop.eup %7993  ;;  %v4240_v54 = vpop.f32.mrf.mxu0 }
 0x38e   : > { %6094 = vst [vmem:[%s8465_s29 + $0x4d8] sm:$0xff] %v7994_v53  ;;  %v5296_v56 = vadd.f32 %v5295_v6, %v4239_v49  ;;  %v5297_v57 = vpop.f32.mrf.mxu1 }
 0x38f   : > { %v4243_v58 = vpop.f32.mrf.mxu0  ;;  %4434 = vmatmul.mubr.bf16.gmra.mxu0 %v7539_v48  ;;  %v7563_v57 = vld [vmem:[%s8309_s23 + $0xd80] ss:$16 sps:$4 sm:$0xff]  }
 0x390   : > { %8001 = vtanh.f32 %v5296_v56  ;;  %v4244_v14 = vadd.f32 %v9109_v59, %v4243_v58  ;;  %v5300_v60 = vpop.f32.mrf.mxu1  ;;  %5491 = vmatmul.mubr.bf16.gmra.mxu1 %v7542_v51  ;;  %4441 = vmatprep.mubr.bf16.mxu0 %v7547_v52 }
 0x391   : > { %v7996_v61 = vpop.eup %7995  ;;  %v4245_v62 = vpop.f32.mrf.mxu0  ;;  %5498 = vmatprep.mubr.bf16.mxu1 %v7550_v55 }
 0x392   : > { %6095 = vst [vmem:[%s8465_s29 + $0x4e0] sm:$0xff] %v7996_v61  ;;  %v5301_v63 = vadd.f32 %v5300_v60, %v4244_v14  ;;  %v5302_v0 = vpop.f32.mrf.mxu1  ;;  %v7566_v60 = vld [vmem:[%s8309_s23 + $0xd88] ss:$16 sps:$4 sm:$0xff]   ;;  %v7571_v61 = vld [vmem:[%s8309_s23 + $0xda4] ss:$16 sps:$4 sm:$0xff]  }
 0x393   : > { %v4246_v1 = vpop.f32.mrf.mxu0  ;;  %v7574_v0 = vld [vmem:[%s8309_s23 + $0xdac] ss:$16 sps:$4 sm:$0xff]  }
 0x394   : > { %8003 = vtanh.f32 %v5301_v63  ;;  %v4247_v3 = vadd.f32 %v9109_v59, %v4246_v1  ;;  %v5303_v4 = vpop.f32.mrf.mxu1 }
 0x395   : > { %v7998_v8 = vpop.eup %7997  ;;  %v4248_v9 = vpop.f32.mrf.mxu0 }
 0x396   : > { %6096 = vst [vmem:[%s8465_s29 + $0x4e8] sm:$0xff] %v7998_v8  ;;  %v5304_v11 = vadd.f32 %v5303_v4, %v4247_v3  ;;  %v5305_v12 = vpop.f32.mrf.mxu1 }
 0x397   : > { %v4251_v13 = vpop.f32.mrf.mxu0  ;;  %4442 = vmatmul.mubr.bf16.gmra.mxu0 %v7545_v2  ;;  %v7569_v12 = vld [vmem:[%s8309_s23 + $0xda0] ss:$16 sps:$4 sm:$0xff]  }
 0x398   : > { %8005 = vtanh.f32 %v5304_v11  ;;  %v4252_v32 = vadd.f32 %v9109_v59, %v4251_v13  ;;  %v5308_v15 = vpop.f32.mrf.mxu1  ;;  %5499 = vmatmul.mubr.bf16.gmra.mxu1 %v7548_v5  ;;  %4449 = vmatprep.mubr.bf16.mxu0 %v7553_v7 }
 0x399   : > { %v8000_v16 = vpop.eup %7999  ;;  %v4253_v17 = vpop.f32.mrf.mxu0  ;;  %5506 = vmatprep.mubr.bf16.mxu1 %v7556_v10 }
 0x39a   : > { %6097 = vst [vmem:[%s8465_s29 + $0x4f0] sm:$0xff] %v8000_v16  ;;  %v5309_v18 = vadd.f32 %v5308_v15, %v4252_v32  ;;  %v5310_v19 = vpop.f32.mrf.mxu1  ;;  %v7572_v15 = vld [vmem:[%s8309_s23 + $0xda8] ss:$16 sps:$4 sm:$0xff]   ;;  %v7577_v16 = vld [vmem:[%s8309_s23 + $0xdc4] ss:$16 sps:$4 sm:$0xff]  }
 0x39b   : > { %v4254_v20 = vpop.f32.mrf.mxu0  ;;  %v7580_v19 = vld [vmem:[%s8309_s23 + $0xdcc] ss:$16 sps:$4 sm:$0xff]  }
 0x39c   : > { %8007 = vtanh.f32 %v5309_v18  ;;  %v4255_v22 = vadd.f32 %v9109_v59, %v4254_v20  ;;  %v5311_v23 = vpop.f32.mrf.mxu1 }
 0x39d   : > { %v8002_v26 = vpop.eup %8001  ;;  %v4256_v27 = vpop.f32.mrf.mxu0 }
 0x39e   : > { %6098 = vst [vmem:[%s8465_s29 + $0x4f8] sm:$0xff] %v8002_v26  ;;  %v5312_v29 = vadd.f32 %v5311_v23, %v4255_v22  ;;  %v5313_v30 = vpop.f32.mrf.mxu1 }
 0x39f   : > { %v4259_v31 = vpop.f32.mrf.mxu0  ;;  %4450 = vmatmul.mubr.bf16.gmra.mxu0 %v7551_v21  ;;  %v7575_v30 = vld [vmem:[%s8309_s23 + $0xdc0] ss:$16 sps:$4 sm:$0xff]  }
 0x3a0   : > { %8009 = vtanh.f32 %v5312_v29  ;;  %v4260_v50 = vadd.f32 %v9109_v59, %v4259_v31  ;;  %v5316_v33 = vpop.f32.mrf.mxu1  ;;  %5507 = vmatmul.mubr.bf16.gmra.mxu1 %v7554_v24  ;;  %4457 = vmatprep.mubr.bf16.mxu0 %v7559_v25 }
 0x3a1   : > { %v8004_v34 = vpop.eup %8003  ;;  %v4261_v35 = vpop.f32.mrf.mxu0  ;;  %5514 = vmatprep.mubr.bf16.mxu1 %v7562_v28 }
 0x3a2   : > { %6099 = vst [vmem:[%s8465_s29 + $0x500] sm:$0xff] %v8004_v34  ;;  %v5317_v36 = vadd.f32 %v5316_v33, %v4260_v50  ;;  %v5318_v37 = vpop.f32.mrf.mxu1  ;;  %v7578_v33 = vld [vmem:[%s8309_s23 + $0xdc8] ss:$16 sps:$4 sm:$0xff]   ;;  %v7583_v34 = vld [vmem:[%s8309_s23 + $0xde4] ss:$16 sps:$4 sm:$0xff]  }
 0x3a3   : > { %v4262_v38 = vpop.f32.mrf.mxu0  ;;  %v7586_v37 = vld [vmem:[%s8309_s23 + $0xdec] ss:$16 sps:$4 sm:$0xff]  }
 0x3a4   : > { %8011 = vtanh.f32 %v5317_v36  ;;  %v4263_v40 = vadd.f32 %v9109_v59, %v4262_v38  ;;  %v5319_v41 = vpop.f32.mrf.mxu1 }
 0x3a5   : > { %v8006_v44 = vpop.eup %8005  ;;  %v4264_v45 = vpop.f32.mrf.mxu0 }
 0x3a6   : > { %6100 = vst [vmem:[%s8465_s29 + $0x508] sm:$0xff] %v8006_v44  ;;  %v5320_v47 = vadd.f32 %v5319_v41, %v4263_v40  ;;  %v5321_v48 = vpop.f32.mrf.mxu1 }
 0x3a7   : > { %v4267_v49 = vpop.f32.mrf.mxu0  ;;  %4458 = vmatmul.mubr.bf16.gmra.mxu0 %v7557_v39  ;;  %v7581_v48 = vld [vmem:[%s8309_s23 + $0xde0] ss:$16 sps:$4 sm:$0xff]  }
 0x3a8   : > { %8013 = vtanh.f32 %v5320_v47  ;;  %v4268_v6 = vadd.f32 %v9109_v59, %v4267_v49  ;;  %v5324_v51 = vpop.f32.mrf.mxu1  ;;  %5515 = vmatmul.mubr.bf16.gmra.mxu1 %v7560_v42  ;;  %4465 = vmatprep.mubr.bf16.mxu0 %v7565_v43 }
 0x3a9   : > { %v8008_v52 = vpop.eup %8007  ;;  %v4269_v53 = vpop.f32.mrf.mxu0  ;;  %5522 = vmatprep.mubr.bf16.mxu1 %v7568_v46 }
 0x3aa   : > { %6101 = vst [vmem:[%s8465_s29 + $0x510] sm:$0xff] %v8008_v52  ;;  %v5325_v54 = vadd.f32 %v5324_v51, %v4268_v6  ;;  %v5326_v55 = vpop.f32.mrf.mxu1  ;;  %v7584_v51 = vld [vmem:[%s8309_s23 + $0xde8] ss:$16 sps:$4 sm:$0xff]   ;;  %v7589_v52 = vld [vmem:[%s8309_s23 + $0xe04] ss:$16 sps:$4 sm:$0xff]  }
 0x3ab   : > { %v4270_v56 = vpop.f32.mrf.mxu0  ;;  %v7592_v55 = vld [vmem:[%s8309_s23 + $0xe0c] ss:$16 sps:$4 sm:$0xff]  }
 0x3ac   : > { %8015 = vtanh.f32 %v5325_v54  ;;  %v4271_v58 = vadd.f32 %v9109_v59, %v4270_v56  ;;  %v5327_v14 = vpop.f32.mrf.mxu1 }
 0x3ad   : > { %v8010_v62 = vpop.eup %8009  ;;  %v4272_v63 = vpop.f32.mrf.mxu0 }
 0x3ae   : > { %6102 = vst [vmem:[%s8465_s29 + $0x518] sm:$0xff] %v8010_v62  ;;  %v5328_v1 = vadd.f32 %v5327_v14, %v4271_v58  ;;  %v5329_v2 = vpop.f32.mrf.mxu1 }
 0x3af   : > { %v4275_v3 = vpop.f32.mrf.mxu0  ;;  %4466 = vmatmul.mubr.bf16.gmra.mxu0 %v7563_v57  ;;  %v7587_v2 = vld [vmem:[%s8309_s23 + $0xe00] ss:$16 sps:$4 sm:$0xff]  }
 0x3b0   : > { %8017 = vtanh.f32 %v5328_v1  ;;  %v4276_v4 = vadd.f32 %v9109_v59, %v4275_v3  ;;  %v5332_v5 = vpop.f32.mrf.mxu1  ;;  %5523 = vmatmul.mubr.bf16.gmra.mxu1 %v7566_v60  ;;  %4473 = vmatprep.mubr.bf16.mxu0 %v7571_v61 }
 0x3b1   : > { %v8012_v7 = vpop.eup %8011  ;;  %v4277_v8 = vpop.f32.mrf.mxu0  ;;  %5530 = vmatprep.mubr.bf16.mxu1 %v7574_v0 }
 0x3b2   : > { %6103 = vst [vmem:[%s8465_s29 + $0x520] sm:$0xff] %v8012_v7  ;;  %v5333_v9 = vadd.f32 %v5332_v5, %v4276_v4  ;;  %v5334_v10 = vpop.f32.mrf.mxu1  ;;  %v7590_v5 = vld [vmem:[%s8309_s23 + $0xe08] ss:$16 sps:$4 sm:$0xff]   ;;  %v7595_v7 = vld [vmem:[%s8309_s23 + $0xe24] ss:$16 sps:$4 sm:$0xff]  }
 0x3b3   : > { %v4278_v11 = vpop.f32.mrf.mxu0  ;;  %v7598_v10 = vld [vmem:[%s8309_s23 + $0xe2c] ss:$16 sps:$4 sm:$0xff]  }
 0x3b4   : > { %8019 = vtanh.f32 %v5333_v9  ;;  %v4279_v13 = vadd.f32 %v9109_v59, %v4278_v11  ;;  %v5335_v32 = vpop.f32.mrf.mxu1 }
 0x3b5   : > { %v8014_v17 = vpop.eup %8013  ;;  %v4280_v18 = vpop.f32.mrf.mxu0 }
 0x3b6   : > { %6104 = vst [vmem:[%s8465_s29 + $0x528] sm:$0xff] %v8014_v17  ;;  %v5336_v20 = vadd.f32 %v5335_v32, %v4279_v13  ;;  %v5337_v21 = vpop.f32.mrf.mxu1 }
 0x3b7   : > { %v4283_v22 = vpop.f32.mrf.mxu0  ;;  %4474 = vmatmul.mubr.bf16.gmra.mxu0 %v7569_v12  ;;  %v7593_v21 = vld [vmem:[%s8309_s23 + $0xe20] ss:$16 sps:$4 sm:$0xff]  }
 0x3b8   : > { %8021 = vtanh.f32 %v5336_v20  ;;  %v4284_v23 = vadd.f32 %v9109_v59, %v4283_v22  ;;  %v5340_v24 = vpop.f32.mrf.mxu1  ;;  %5531 = vmatmul.mubr.bf16.gmra.mxu1 %v7572_v15  ;;  %4481 = vmatprep.mubr.bf16.mxu0 %v7577_v16 }
 0x3b9   : > { %v8016_v25 = vpop.eup %8015  ;;  %v4285_v26 = vpop.f32.mrf.mxu0  ;;  %5538 = vmatprep.mubr.bf16.mxu1 %v7580_v19 }
 0x3ba   : > { %6105 = vst [vmem:[%s8465_s29 + $0x530] sm:$0xff] %v8016_v25  ;;  %v5341_v27 = vadd.f32 %v5340_v24, %v4284_v23  ;;  %v5342_v28 = vpop.f32.mrf.mxu1  ;;  %v7596_v24 = vld [vmem:[%s8309_s23 + $0xe28] ss:$16 sps:$4 sm:$0xff]   ;;  %v7601_v25 = vld [vmem:[%s8309_s23 + $0xe44] ss:$16 sps:$4 sm:$0xff]  }
 0x3bb   : > { %v4286_v29 = vpop.f32.mrf.mxu0  ;;  %v7604_v28 = vld [vmem:[%s8309_s23 + $0xe4c] ss:$16 sps:$4 sm:$0xff]  }
 0x3bc   : > { %8023 = vtanh.f32 %v5341_v27  ;;  %v4287_v31 = vadd.f32 %v9109_v59, %v4286_v29  ;;  %v5343_v50 = vpop.f32.mrf.mxu1 }
 0x3bd   : > { %v8018_v35 = vpop.eup %8017  ;;  %v4288_v36 = vpop.f32.mrf.mxu0 }
 0x3be   : > { %6106 = vst [vmem:[%s8465_s29 + $0x538] sm:$0xff] %v8018_v35  ;;  %v5344_v38 = vadd.f32 %v5343_v50, %v4287_v31  ;;  %v5345_v39 = vpop.f32.mrf.mxu1 }
 0x3bf   : > { %v4291_v40 = vpop.f32.mrf.mxu0  ;;  %4482 = vmatmul.mubr.bf16.gmra.mxu0 %v7575_v30  ;;  %v7599_v39 = vld [vmem:[%s8309_s23 + $0xe40] ss:$16 sps:$4 sm:$0xff]  }
 0x3c0   : > { %8025 = vtanh.f32 %v5344_v38  ;;  %v4292_v41 = vadd.f32 %v9109_v59, %v4291_v40  ;;  %v5348_v42 = vpop.f32.mrf.mxu1  ;;  %5539 = vmatmul.mubr.bf16.gmra.mxu1 %v7578_v33  ;;  %4489 = vmatprep.mubr.bf16.mxu0 %v7583_v34 }
 0x3c1   : > { %v8020_v43 = vpop.eup %8019  ;;  %v4293_v44 = vpop.f32.mrf.mxu0  ;;  %5546 = vmatprep.mubr.bf16.mxu1 %v7586_v37 }
 0x3c2   : > { %6107 = vst [vmem:[%s8465_s29 + $0x540] sm:$0xff] %v8020_v43  ;;  %v5349_v45 = vadd.f32 %v5348_v42, %v4292_v41  ;;  %v5350_v46 = vpop.f32.mrf.mxu1  ;;  %v7602_v42 = vld [vmem:[%s8309_s23 + $0xe48] ss:$16 sps:$4 sm:$0xff]   ;;  %v7607_v43 = vld [vmem:[%s8309_s23 + $0xe64] ss:$16 sps:$4 sm:$0xff]  }
 0x3c3   : > { %v4294_v47 = vpop.f32.mrf.mxu0  ;;  %v7610_v46 = vld [vmem:[%s8309_s23 + $0xe6c] ss:$16 sps:$4 sm:$0xff]  }
 0x3c4   : > { %8027 = vtanh.f32 %v5349_v45  ;;  %v4295_v49 = vadd.f32 %v9109_v59, %v4294_v47  ;;  %v5351_v6 = vpop.f32.mrf.mxu1 }
 0x3c5   : > { %v8022_v53 = vpop.eup %8021  ;;  %v4296_v54 = vpop.f32.mrf.mxu0 }
 0x3c6   : > { %6108 = vst [vmem:[%s8465_s29 + $0x548] sm:$0xff] %v8022_v53  ;;  %v5352_v56 = vadd.f32 %v5351_v6, %v4295_v49  ;;  %v5353_v57 = vpop.f32.mrf.mxu1 }
 0x3c7   : > { %v4299_v58 = vpop.f32.mrf.mxu0  ;;  %4490 = vmatmul.mubr.bf16.gmra.mxu0 %v7581_v48  ;;  %v7605_v57 = vld [vmem:[%s8309_s23 + $0xe60] ss:$16 sps:$4 sm:$0xff]  }
 0x3c8   : > { %8029 = vtanh.f32 %v5352_v56  ;;  %v4300_v14 = vadd.f32 %v9109_v59, %v4299_v58  ;;  %v5356_v60 = vpop.f32.mrf.mxu1  ;;  %5547 = vmatmul.mubr.bf16.gmra.mxu1 %v7584_v51  ;;  %4497 = vmatprep.mubr.bf16.mxu0 %v7589_v52 }
 0x3c9   : > { %v8024_v61 = vpop.eup %8023  ;;  %v4301_v62 = vpop.f32.mrf.mxu0  ;;  %5554 = vmatprep.mubr.bf16.mxu1 %v7592_v55 }
 0x3ca   : > { %6109 = vst [vmem:[%s8465_s29 + $0x550] sm:$0xff] %v8024_v61  ;;  %v5357_v63 = vadd.f32 %v5356_v60, %v4300_v14  ;;  %v5358_v0 = vpop.f32.mrf.mxu1  ;;  %v7608_v60 = vld [vmem:[%s8309_s23 + $0xe68] ss:$16 sps:$4 sm:$0xff]   ;;  %v7613_v61 = vld [vmem:[%s8309_s23 + $0xe84] ss:$16 sps:$4 sm:$0xff]  }
 0x3cb   : > { %v4302_v1 = vpop.f32.mrf.mxu0  ;;  %v7616_v0 = vld [vmem:[%s8309_s23 + $0xe8c] ss:$16 sps:$4 sm:$0xff]  }
 0x3cc   : > { %8031 = vtanh.f32 %v5357_v63  ;;  %v4303_v3 = vadd.f32 %v9109_v59, %v4302_v1  ;;  %v5359_v4 = vpop.f32.mrf.mxu1 }
 0x3cd   : > { %v8026_v8 = vpop.eup %8025  ;;  %v4304_v9 = vpop.f32.mrf.mxu0 }
 0x3ce   : > { %6110 = vst [vmem:[%s8465_s29 + $0x558] sm:$0xff] %v8026_v8  ;;  %v5360_v11 = vadd.f32 %v5359_v4, %v4303_v3  ;;  %v5361_v12 = vpop.f32.mrf.mxu1 }
 0x3cf   : > { %v4307_v13 = vpop.f32.mrf.mxu0  ;;  %4498 = vmatmul.mubr.bf16.gmra.mxu0 %v7587_v2  ;;  %v7611_v12 = vld [vmem:[%s8309_s23 + $0xe80] ss:$16 sps:$4 sm:$0xff]  }
 0x3d0   : > { %8033 = vtanh.f32 %v5360_v11  ;;  %v4308_v32 = vadd.f32 %v9109_v59, %v4307_v13  ;;  %v5364_v15 = vpop.f32.mrf.mxu1  ;;  %5555 = vmatmul.mubr.bf16.gmra.mxu1 %v7590_v5  ;;  %4505 = vmatprep.mubr.bf16.mxu0 %v7595_v7 }
 0x3d1   : > { %v8028_v16 = vpop.eup %8027  ;;  %v4309_v17 = vpop.f32.mrf.mxu0  ;;  %5562 = vmatprep.mubr.bf16.mxu1 %v7598_v10 }
 0x3d2   : > { %6111 = vst [vmem:[%s8465_s29 + $0x560] sm:$0xff] %v8028_v16  ;;  %v5365_v18 = vadd.f32 %v5364_v15, %v4308_v32  ;;  %v5366_v19 = vpop.f32.mrf.mxu1  ;;  %v7614_v15 = vld [vmem:[%s8309_s23 + $0xe88] ss:$16 sps:$4 sm:$0xff]   ;;  %v7619_v16 = vld [vmem:[%s8309_s23 + $0xea4] ss:$16 sps:$4 sm:$0xff]  }
 0x3d3   : > { %v4310_v20 = vpop.f32.mrf.mxu0  ;;  %v7622_v19 = vld [vmem:[%s8309_s23 + $0xeac] ss:$16 sps:$4 sm:$0xff]  }
 0x3d4   : > { %8035 = vtanh.f32 %v5365_v18  ;;  %v4311_v22 = vadd.f32 %v9109_v59, %v4310_v20  ;;  %v5367_v23 = vpop.f32.mrf.mxu1 }
 0x3d5   : > { %v8030_v26 = vpop.eup %8029  ;;  %v4312_v27 = vpop.f32.mrf.mxu0 }
 0x3d6   : > { %6112 = vst [vmem:[%s8465_s29 + $0x568] sm:$0xff] %v8030_v26  ;;  %v5368_v29 = vadd.f32 %v5367_v23, %v4311_v22  ;;  %v5369_v30 = vpop.f32.mrf.mxu1 }
 0x3d7   : > { %v4315_v31 = vpop.f32.mrf.mxu0  ;;  %4506 = vmatmul.mubr.bf16.gmra.mxu0 %v7593_v21  ;;  %v7617_v30 = vld [vmem:[%s8309_s23 + $0xea0] ss:$16 sps:$4 sm:$0xff]  }
 0x3d8   : > { %8037 = vtanh.f32 %v5368_v29  ;;  %v4316_v50 = vadd.f32 %v9109_v59, %v4315_v31  ;;  %v5372_v33 = vpop.f32.mrf.mxu1  ;;  %5563 = vmatmul.mubr.bf16.gmra.mxu1 %v7596_v24  ;;  %4513 = vmatprep.mubr.bf16.mxu0 %v7601_v25 }
 0x3d9   : > { %v8032_v34 = vpop.eup %8031  ;;  %v4317_v35 = vpop.f32.mrf.mxu0  ;;  %5570 = vmatprep.mubr.bf16.mxu1 %v7604_v28 }
 0x3da   : > { %6113 = vst [vmem:[%s8465_s29 + $0x570] sm:$0xff] %v8032_v34  ;;  %v5373_v36 = vadd.f32 %v5372_v33, %v4316_v50  ;;  %v5374_v37 = vpop.f32.mrf.mxu1  ;;  %v7620_v33 = vld [vmem:[%s8309_s23 + $0xea8] ss:$16 sps:$4 sm:$0xff]   ;;  %v7625_v34 = vld [vmem:[%s8309_s23 + $0xec4] ss:$16 sps:$4 sm:$0xff]  }
 0x3db   : > { %v4318_v38 = vpop.f32.mrf.mxu0  ;;  %v7628_v37 = vld [vmem:[%s8309_s23 + $0xecc] ss:$16 sps:$4 sm:$0xff]  }
 0x3dc   : > { %8039 = vtanh.f32 %v5373_v36  ;;  %v4319_v40 = vadd.f32 %v9109_v59, %v4318_v38  ;;  %v5375_v41 = vpop.f32.mrf.mxu1 }
 0x3dd   : > { %v8034_v44 = vpop.eup %8033  ;;  %v4320_v45 = vpop.f32.mrf.mxu0 }
 0x3de   : > { %6114 = vst [vmem:[%s8465_s29 + $0x578] sm:$0xff] %v8034_v44  ;;  %v5376_v47 = vadd.f32 %v5375_v41, %v4319_v40  ;;  %v5377_v48 = vpop.f32.mrf.mxu1 }
 0x3df   : > { %v4323_v49 = vpop.f32.mrf.mxu0  ;;  %4514 = vmatmul.mubr.bf16.gmra.mxu0 %v7599_v39  ;;  %v7623_v48 = vld [vmem:[%s8309_s23 + $0xec0] ss:$16 sps:$4 sm:$0xff]  }
 0x3e0   : > { %8041 = vtanh.f32 %v5376_v47  ;;  %v4324_v6 = vadd.f32 %v9109_v59, %v4323_v49  ;;  %v5380_v51 = vpop.f32.mrf.mxu1  ;;  %5571 = vmatmul.mubr.bf16.gmra.mxu1 %v7602_v42  ;;  %4521 = vmatprep.mubr.bf16.mxu0 %v7607_v43 }
 0x3e1   : > { %v8036_v52 = vpop.eup %8035  ;;  %v4325_v53 = vpop.f32.mrf.mxu0  ;;  %5578 = vmatprep.mubr.bf16.mxu1 %v7610_v46 }
 0x3e2   : > { %6115 = vst [vmem:[%s8465_s29 + $0x580] sm:$0xff] %v8036_v52  ;;  %v5381_v54 = vadd.f32 %v5380_v51, %v4324_v6  ;;  %v5382_v55 = vpop.f32.mrf.mxu1  ;;  %v7626_v51 = vld [vmem:[%s8309_s23 + $0xec8] ss:$16 sps:$4 sm:$0xff]   ;;  %v7631_v52 = vld [vmem:[%s8309_s23 + $0xee4] ss:$16 sps:$4 sm:$0xff]  }
 0x3e3   : > { %v4326_v56 = vpop.f32.mrf.mxu0  ;;  %v7634_v55 = vld [vmem:[%s8309_s23 + $0xeec] ss:$16 sps:$4 sm:$0xff]  }
 0x3e4   : > { %8043 = vtanh.f32 %v5381_v54  ;;  %v4327_v58 = vadd.f32 %v9109_v59, %v4326_v56  ;;  %v5383_v14 = vpop.f32.mrf.mxu1 }
 0x3e5   : > { %v8038_v62 = vpop.eup %8037  ;;  %v4328_v63 = vpop.f32.mrf.mxu0 }
 0x3e6   : > { %6116 = vst [vmem:[%s8465_s29 + $0x588] sm:$0xff] %v8038_v62  ;;  %v5384_v1 = vadd.f32 %v5383_v14, %v4327_v58  ;;  %v5385_v2 = vpop.f32.mrf.mxu1 }
 0x3e7   : > { %v4331_v3 = vpop.f32.mrf.mxu0  ;;  %4522 = vmatmul.mubr.bf16.gmra.mxu0 %v7605_v57  ;;  %v7629_v2 = vld [vmem:[%s8309_s23 + $0xee0] ss:$16 sps:$4 sm:$0xff]  }
 0x3e8   : > { %8045 = vtanh.f32 %v5384_v1  ;;  %v4332_v4 = vadd.f32 %v9109_v59, %v4331_v3  ;;  %v5388_v5 = vpop.f32.mrf.mxu1  ;;  %5579 = vmatmul.mubr.bf16.gmra.mxu1 %v7608_v60  ;;  %4529 = vmatprep.mubr.bf16.mxu0 %v7613_v61 }
 0x3e9   : > { %v8040_v7 = vpop.eup %8039  ;;  %v4333_v8 = vpop.f32.mrf.mxu0  ;;  %5586 = vmatprep.mubr.bf16.mxu1 %v7616_v0 }
 0x3ea   : > { %6117 = vst [vmem:[%s8465_s29 + $0x590] sm:$0xff] %v8040_v7  ;;  %v5389_v9 = vadd.f32 %v5388_v5, %v4332_v4  ;;  %v5390_v10 = vpop.f32.mrf.mxu1  ;;  %v7632_v5 = vld [vmem:[%s8309_s23 + $0xee8] ss:$16 sps:$4 sm:$0xff]   ;;  %v7637_v7 = vld [vmem:[%s8309_s23 + $0xf04] ss:$16 sps:$4 sm:$0xff]  }
 0x3eb   : > { %v4334_v11 = vpop.f32.mrf.mxu0  ;;  %v7640_v10 = vld [vmem:[%s8309_s23 + $0xf0c] ss:$16 sps:$4 sm:$0xff]  }
 0x3ec   : > { %8047 = vtanh.f32 %v5389_v9  ;;  %v4335_v13 = vadd.f32 %v9109_v59, %v4334_v11  ;;  %v5391_v32 = vpop.f32.mrf.mxu1 }
 0x3ed   : > { %v8042_v17 = vpop.eup %8041  ;;  %v4336_v18 = vpop.f32.mrf.mxu0 }
 0x3ee   : > { %6118 = vst [vmem:[%s8465_s29 + $0x598] sm:$0xff] %v8042_v17  ;;  %v5392_v20 = vadd.f32 %v5391_v32, %v4335_v13  ;;  %v5393_v21 = vpop.f32.mrf.mxu1 }
 0x3ef   : > { %v4339_v22 = vpop.f32.mrf.mxu0  ;;  %4530 = vmatmul.mubr.bf16.gmra.mxu0 %v7611_v12  ;;  %v7635_v21 = vld [vmem:[%s8309_s23 + $0xf00] ss:$16 sps:$4 sm:$0xff]  }
 0x3f0   : > { %8049 = vtanh.f32 %v5392_v20  ;;  %v4340_v23 = vadd.f32 %v9109_v59, %v4339_v22  ;;  %v5396_v24 = vpop.f32.mrf.mxu1  ;;  %5587 = vmatmul.mubr.bf16.gmra.mxu1 %v7614_v15  ;;  %4537 = vmatprep.mubr.bf16.mxu0 %v7619_v16 }
 0x3f1   : > { %v8044_v25 = vpop.eup %8043  ;;  %v4341_v26 = vpop.f32.mrf.mxu0  ;;  %5594 = vmatprep.mubr.bf16.mxu1 %v7622_v19 }
 0x3f2   : > { %6119 = vst [vmem:[%s8465_s29 + $0x5a0] sm:$0xff] %v8044_v25  ;;  %v5397_v27 = vadd.f32 %v5396_v24, %v4340_v23  ;;  %v5398_v28 = vpop.f32.mrf.mxu1  ;;  %v7638_v24 = vld [vmem:[%s8309_s23 + $0xf08] ss:$16 sps:$4 sm:$0xff]   ;;  %v7643_v25 = vld [vmem:[%s8309_s23 + $0xf24] ss:$16 sps:$4 sm:$0xff]  }
 0x3f3   : > { %v4342_v29 = vpop.f32.mrf.mxu0  ;;  %v7646_v28 = vld [vmem:[%s8309_s23 + $0xf2c] ss:$16 sps:$4 sm:$0xff]  }
 0x3f4   : > { %8051 = vtanh.f32 %v5397_v27  ;;  %v4343_v31 = vadd.f32 %v9109_v59, %v4342_v29  ;;  %v5399_v50 = vpop.f32.mrf.mxu1 }
 0x3f5   : > { %v8046_v35 = vpop.eup %8045  ;;  %v4344_v36 = vpop.f32.mrf.mxu0 }
 0x3f6   : > { %6120 = vst [vmem:[%s8465_s29 + $0x5a8] sm:$0xff] %v8046_v35  ;;  %v5400_v38 = vadd.f32 %v5399_v50, %v4343_v31  ;;  %v5401_v39 = vpop.f32.mrf.mxu1 }
 0x3f7   : > { %v4347_v40 = vpop.f32.mrf.mxu0  ;;  %4538 = vmatmul.mubr.bf16.gmra.mxu0 %v7617_v30  ;;  %v7641_v39 = vld [vmem:[%s8309_s23 + $0xf20] ss:$16 sps:$4 sm:$0xff]  }
 0x3f8   : > { %8053 = vtanh.f32 %v5400_v38  ;;  %v4348_v41 = vadd.f32 %v9109_v59, %v4347_v40  ;;  %v5404_v42 = vpop.f32.mrf.mxu1  ;;  %5595 = vmatmul.mubr.bf16.gmra.mxu1 %v7620_v33  ;;  %4545 = vmatprep.mubr.bf16.mxu0 %v7625_v34 }
 0x3f9   : > { %v8048_v43 = vpop.eup %8047  ;;  %v4349_v44 = vpop.f32.mrf.mxu0  ;;  %5602 = vmatprep.mubr.bf16.mxu1 %v7628_v37 }
 0x3fa   : > { %6121 = vst [vmem:[%s8465_s29 + $0x5b0] sm:$0xff] %v8048_v43  ;;  %v5405_v45 = vadd.f32 %v5404_v42, %v4348_v41  ;;  %v5406_v46 = vpop.f32.mrf.mxu1  ;;  %v7644_v42 = vld [vmem:[%s8309_s23 + $0xf28] ss:$16 sps:$4 sm:$0xff]   ;;  %v7649_v43 = vld [vmem:[%s8309_s23 + $0xf44] ss:$16 sps:$4 sm:$0xff]  }
 0x3fb   : > { %v4350_v47 = vpop.f32.mrf.mxu0  ;;  %v7652_v46 = vld [vmem:[%s8309_s23 + $0xf4c] ss:$16 sps:$4 sm:$0xff]  }
 0x3fc   : > { %8055 = vtanh.f32 %v5405_v45  ;;  %v4351_v49 = vadd.f32 %v9109_v59, %v4350_v47  ;;  %v5407_v6 = vpop.f32.mrf.mxu1 }
 0x3fd   : > { %v8050_v53 = vpop.eup %8049  ;;  %v4352_v54 = vpop.f32.mrf.mxu0 }
 0x3fe   : > { %6122 = vst [vmem:[%s8465_s29 + $0x5b8] sm:$0xff] %v8050_v53  ;;  %v5408_v56 = vadd.f32 %v5407_v6, %v4351_v49  ;;  %v5409_v57 = vpop.f32.mrf.mxu1 }
 0x3ff   : > { %v4355_v58 = vpop.f32.mrf.mxu0  ;;  %4546 = vmatmul.mubr.bf16.gmra.mxu0 %v7623_v48  ;;  %v7647_v57 = vld [vmem:[%s8309_s23 + $0xf40] ss:$16 sps:$4 sm:$0xff]  }
 0x400   : > { %8057 = vtanh.f32 %v5408_v56  ;;  %v4356_v14 = vadd.f32 %v9109_v59, %v4355_v58  ;;  %v5412_v60 = vpop.f32.mrf.mxu1  ;;  %5603 = vmatmul.mubr.bf16.gmra.mxu1 %v7626_v51  ;;  %4553 = vmatprep.mubr.bf16.mxu0 %v7631_v52 }
 0x401   : > { %v8052_v61 = vpop.eup %8051  ;;  %v4357_v62 = vpop.f32.mrf.mxu0  ;;  %5610 = vmatprep.mubr.bf16.mxu1 %v7634_v55 }
 0x402   : > { %6123 = vst [vmem:[%s8465_s29 + $0x5c0] sm:$0xff] %v8052_v61  ;;  %v5413_v63 = vadd.f32 %v5412_v60, %v4356_v14  ;;  %v5414_v0 = vpop.f32.mrf.mxu1  ;;  %v7650_v60 = vld [vmem:[%s8309_s23 + $0xf48] ss:$16 sps:$4 sm:$0xff]   ;;  %v7655_v61 = vld [vmem:[%s8309_s23 + $0xf64] ss:$16 sps:$4 sm:$0xff]  }
 0x403   : > { %v4358_v1 = vpop.f32.mrf.mxu0  ;;  %v7658_v0 = vld [vmem:[%s8309_s23 + $0xf6c] ss:$16 sps:$4 sm:$0xff]  }
 0x404   : > { %8059 = vtanh.f32 %v5413_v63  ;;  %v4359_v3 = vadd.f32 %v9109_v59, %v4358_v1  ;;  %v5415_v4 = vpop.f32.mrf.mxu1 }
 0x405   : > { %v8054_v8 = vpop.eup %8053  ;;  %v4360_v9 = vpop.f32.mrf.mxu0 }
 0x406   : > { %6124 = vst [vmem:[%s8465_s29 + $0x5c8] sm:$0xff] %v8054_v8  ;;  %v5416_v11 = vadd.f32 %v5415_v4, %v4359_v3  ;;  %v5417_v12 = vpop.f32.mrf.mxu1 }
 0x407   : > { %v4363_v13 = vpop.f32.mrf.mxu0  ;;  %4554 = vmatmul.mubr.bf16.gmra.mxu0 %v7629_v2  ;;  %v7653_v12 = vld [vmem:[%s8309_s23 + $0xf60] ss:$16 sps:$4 sm:$0xff]  }
 0x408   : > { %8061 = vtanh.f32 %v5416_v11  ;;  %v4364_v32 = vadd.f32 %v9109_v59, %v4363_v13  ;;  %v5420_v15 = vpop.f32.mrf.mxu1  ;;  %5611 = vmatmul.mubr.bf16.gmra.mxu1 %v7632_v5  ;;  %4561 = vmatprep.mubr.bf16.mxu0 %v7637_v7 }
 0x409   : > { %v8056_v16 = vpop.eup %8055  ;;  %v4365_v17 = vpop.f32.mrf.mxu0  ;;  %5618 = vmatprep.mubr.bf16.mxu1 %v7640_v10 }
 0x40a   : > { %6125 = vst [vmem:[%s8465_s29 + $0x5d0] sm:$0xff] %v8056_v16  ;;  %v5421_v18 = vadd.f32 %v5420_v15, %v4364_v32  ;;  %v5422_v19 = vpop.f32.mrf.mxu1  ;;  %v7656_v15 = vld [vmem:[%s8309_s23 + $0xf68] ss:$16 sps:$4 sm:$0xff]   ;;  %v7661_v16 = vld [vmem:[%s8309_s23 + $0xf84] ss:$16 sps:$4 sm:$0xff]  }
 0x40b   : > { %v4366_v20 = vpop.f32.mrf.mxu0  ;;  %v7664_v19 = vld [vmem:[%s8309_s23 + $0xf8c] ss:$16 sps:$4 sm:$0xff]  }
 0x40c   : > { %8063 = vtanh.f32 %v5421_v18  ;;  %v4367_v22 = vadd.f32 %v9109_v59, %v4366_v20  ;;  %v5423_v23 = vpop.f32.mrf.mxu1 }
 0x40d   : > { %v8058_v26 = vpop.eup %8057  ;;  %v4368_v27 = vpop.f32.mrf.mxu0 }
 0x40e   : > { %6126 = vst [vmem:[%s8465_s29 + $0x5d8] sm:$0xff] %v8058_v26  ;;  %v5424_v29 = vadd.f32 %v5423_v23, %v4367_v22  ;;  %v5425_v30 = vpop.f32.mrf.mxu1 }
 0x40f   : > { %v4371_v31 = vpop.f32.mrf.mxu0  ;;  %4562 = vmatmul.mubr.bf16.gmra.mxu0 %v7635_v21  ;;  %v7659_v30 = vld [vmem:[%s8309_s23 + $0xf80] ss:$16 sps:$4 sm:$0xff]  }
 0x410   : > { %8065 = vtanh.f32 %v5424_v29  ;;  %v4372_v50 = vadd.f32 %v9109_v59, %v4371_v31  ;;  %v5428_v33 = vpop.f32.mrf.mxu1  ;;  %5619 = vmatmul.mubr.bf16.gmra.mxu1 %v7638_v24  ;;  %4569 = vmatprep.mubr.bf16.mxu0 %v7643_v25 }
 0x411   : > { %v8060_v34 = vpop.eup %8059  ;;  %v4373_v35 = vpop.f32.mrf.mxu0  ;;  %5626 = vmatprep.mubr.bf16.mxu1 %v7646_v28 }
 0x412   : > { %6127 = vst [vmem:[%s8465_s29 + $0x5e0] sm:$0xff] %v8060_v34  ;;  %v5429_v36 = vadd.f32 %v5428_v33, %v4372_v50  ;;  %v5430_v37 = vpop.f32.mrf.mxu1  ;;  %v7662_v33 = vld [vmem:[%s8309_s23 + $0xf88] ss:$16 sps:$4 sm:$0xff]   ;;  %v7667_v34 = vld [vmem:[%s8309_s23 + $0xfa4] ss:$16 sps:$4 sm:$0xff]  }
 0x413   : > { %v4374_v38 = vpop.f32.mrf.mxu0  ;;  %v7670_v37 = vld [vmem:[%s8309_s23 + $0xfac] ss:$16 sps:$4 sm:$0xff]  }
 0x414   : > { %8067 = vtanh.f32 %v5429_v36  ;;  %v4375_v40 = vadd.f32 %v9109_v59, %v4374_v38  ;;  %v5431_v41 = vpop.f32.mrf.mxu1 }
 0x415   : > { %v8062_v44 = vpop.eup %8061  ;;  %v4376_v45 = vpop.f32.mrf.mxu0 }
 0x416   : > { %6128 = vst [vmem:[%s8465_s29 + $0x5e8] sm:$0xff] %v8062_v44  ;;  %v5432_v47 = vadd.f32 %v5431_v41, %v4375_v40  ;;  %v5433_v48 = vpop.f32.mrf.mxu1  ;;  %v9274_v41 = vld [vmem:[%s9415_s2] ss:$0 sm:$0xff] }
 0x417   : > { %v4379_v49 = vpop.f32.mrf.mxu0  ;;  %4570 = vmatmul.mubr.bf16.gmra.mxu0 %v7641_v39  ;;  %v7665_v48 = vld [vmem:[%s8309_s23 + $0xfa0] ss:$16 sps:$4 sm:$0xff]  }
 0x418   : > { %8069 = vtanh.f32 %v5432_v47  ;;  %v4380_v6 = vadd.f32 %v9109_v59, %v4379_v49  ;;  %v5436_v51 = vpop.f32.mrf.mxu1  ;;  %5627 = vmatmul.mubr.bf16.gmra.mxu1 %v7644_v42  ;;  %4577 = vmatprep.mubr.bf16.mxu0 %v7649_v43 }
 0x419   : > { %v8064_v52 = vpop.eup %8063  ;;  %v4381_v53 = vpop.f32.mrf.mxu0  ;;  %5634 = vmatprep.mubr.bf16.mxu1 %v7652_v46 }
 0x41a   : > { %6129 = vst [vmem:[%s8465_s29 + $0x5f0] sm:$0xff] %v8064_v52  ;;  %v5437_v54 = vadd.f32 %v5436_v51, %v4380_v6  ;;  %v5438_v55 = vpop.f32.mrf.mxu1  ;;  %v7668_v51 = vld [vmem:[%s8309_s23 + $0xfa8] ss:$16 sps:$4 sm:$0xff]   ;;  %v7673_v52 = vld [vmem:[%s8309_s23 + $0xfc4] ss:$16 sps:$4 sm:$0xff]  }
 0x41b   : > { %v4382_v56 = vpop.f32.mrf.mxu0  ;;  %v7676_v55 = vld [vmem:[%s8309_s23 + $0xfcc] ss:$16 sps:$4 sm:$0xff]  }
 0x41c   : > { %8071 = vtanh.f32 %v5437_v54  ;;  %v4383_v58 = vadd.f32 %v9109_v59, %v4382_v56  ;;  %v5439_v14 = vpop.f32.mrf.mxu1 }
 0x41d   : > { %v8066_v62 = vpop.eup %8065  ;;  %v4384_v63 = vpop.f32.mrf.mxu0 }
 0x41e   : > { %6130 = vst [vmem:[%s8465_s29 + $0x5f8] sm:$0xff] %v8066_v62  ;;  %v5440_v1 = vadd.f32 %v5439_v14, %v4383_v58  ;;  %v5441_v2 = vpop.f32.mrf.mxu1 }
 0x41f   : > { %v4387_v3 = vpop.f32.mrf.mxu0  ;;  %4578 = vmatmul.mubr.bf16.gmra.mxu0 %v7647_v57  ;;  %v7671_v2 = vld [vmem:[%s8309_s23 + $0xfc0] ss:$16 sps:$4 sm:$0xff]  }
 0x420   : > { %8073 = vtanh.f32 %v5440_v1  ;;  %v4388_v4 = vadd.f32 %v9109_v59, %v4387_v3  ;;  %v5444_v5 = vpop.f32.mrf.mxu1  ;;  %5635 = vmatmul.mubr.bf16.gmra.mxu1 %v7650_v60  ;;  %4585 = vmatprep.mubr.bf16.mxu0 %v7655_v61 }
 0x421   : > { %v8068_v7 = vpop.eup %8067  ;;  %v4389_v8 = vpop.f32.mrf.mxu0  ;;  %5642 = vmatprep.mubr.bf16.mxu1 %v7658_v0 }
 0x422   : > { %6131 = vst [vmem:[%s8465_s29 + $0x600] sm:$0xff] %v8068_v7  ;;  %v5445_v9 = vadd.f32 %v5444_v5, %v4388_v4  ;;  %v5446_v10 = vpop.f32.mrf.mxu1  ;;  %v7674_v5 = vld [vmem:[%s8309_s23 + $0xfc8] ss:$16 sps:$4 sm:$0xff]   ;;  %v7679_v7 = vld [vmem:[%s8309_s23 + $0xfe4] ss:$16 sps:$4 sm:$0xff]  }
 0x423   : > { %v4390_v11 = vpop.f32.mrf.mxu0  ;;  %v7682_v10 = vld [vmem:[%s8309_s23 + $0xfec] ss:$16 sps:$4 sm:$0xff]  }
 0x424   : > { %8075 = vtanh.f32 %v5445_v9  ;;  %v4391_v13 = vadd.f32 %v9109_v59, %v4390_v11  ;;  %v5447_v32 = vpop.f32.mrf.mxu1 }
 0x425   : > { %v8070_v17 = vpop.eup %8069  ;;  %v4392_v18 = vpop.f32.mrf.mxu0 }
 0x426   : > { %6132 = vst [vmem:[%s8465_s29 + $0x608] sm:$0xff] %v8070_v17  ;;  %v5448_v20 = vadd.f32 %v5447_v32, %v4391_v13  ;;  %v5449_v21 = vpop.f32.mrf.mxu1 }
 0x427   : > { %v4395_v22 = vpop.f32.mrf.mxu0  ;;  %4586 = vmatmul.mubr.bf16.gmra.mxu0 %v7653_v12  ;;  %v7677_v21 = vld [vmem:[%s8309_s23 + $0xfe0] ss:$16 sps:$4 sm:$0xff]  }
 0x428   : > { %8077 = vtanh.f32 %v5448_v20  ;;  %v4396_v23 = vadd.f32 %v9109_v59, %v4395_v22  ;;  %v5452_v24 = vpop.f32.mrf.mxu1  ;;  %5643 = vmatmul.mubr.bf16.gmra.mxu1 %v7656_v15  ;;  %4593 = vmatprep.mubr.bf16.mxu0 %v7661_v16 }
 0x429   : > { %v8072_v25 = vpop.eup %8071  ;;  %v4397_v26 = vpop.f32.mrf.mxu0  ;;  %5650 = vmatprep.mubr.bf16.mxu1 %v7664_v19 }
 0x42a   : > { %6133 = vst [vmem:[%s8465_s29 + $0x610] sm:$0xff] %v8072_v25  ;;  %v5453_v27 = vadd.f32 %v5452_v24, %v4396_v23  ;;  %v5454_v28 = vpop.f32.mrf.mxu1  ;;  %v7680_v24 = vld [vmem:[%s8309_s23 + $0xfe8] ss:$16 sps:$4 sm:$0xff]  }
 0x42b   : > { %v4398_v29 = vpop.f32.mrf.mxu0 }
 0x42c   : > { %8079 = vtanh.f32 %v5453_v27  ;;  %v4399_v31 = vadd.f32 %v9109_v59, %v4398_v29  ;;  %v5455_v50 = vpop.f32.mrf.mxu1 }
 0x42d   : > { %v8074_v35 = vpop.eup %8073  ;;  %v4400_v36 = vpop.f32.mrf.mxu0 }
 0x42e   : > { %6134 = vst [vmem:[%s8465_s29 + $0x618] sm:$0xff] %v8074_v35  ;;  %v5456_v38 = vadd.f32 %v5455_v50, %v4399_v31  ;;  %v5457_v39 = vpop.f32.mrf.mxu1 }
 0x42f   : > { %v4403_v40 = vpop.f32.mrf.mxu0  ;;  %4594 = vmatmul.mubr.bf16.gmra.mxu0 %v7659_v30 }
 0x430   : > { %8081 = vtanh.f32 %v5456_v38  ;;  %v4404_v59 = vadd.f32 %v9274_v41, %v4403_v40  ;;  %v5460_v42 = vpop.f32.mrf.mxu1  ;;  %5651 = vmatmul.mubr.bf16.gmra.mxu1 %v7662_v33  ;;  %4601 = vmatprep.mubr.bf16.mxu0 %v7667_v34 }
 0x431   : > { %v8076_v43 = vpop.eup %8075  ;;  %v4405_v44 = vpop.f32.mrf.mxu0  ;;  %5658 = vmatprep.mubr.bf16.mxu1 %v7670_v37 }
 0x432   : > { %6135 = vst [vmem:[%s8465_s29 + $0x620] sm:$0xff] %v8076_v43  ;;  %v5461_v45 = vadd.f32 %v5460_v42, %v4404_v59  ;;  %v5462_v46 = vpop.f32.mrf.mxu1 }
 0x433   : > { %v4406_v47 = vpop.f32.mrf.mxu0 }
 0x434   : > { %8083 = vtanh.f32 %v5461_v45  ;;  %v4407_v49 = vadd.f32 %v9274_v41, %v4406_v47  ;;  %v5463_v6 = vpop.f32.mrf.mxu1 }
 0x435   : > { %v8078_v53 = vpop.eup %8077  ;;  %v4408_v54 = vpop.f32.mrf.mxu0 }
 0x436   : > { %6136 = vst [vmem:[%s8465_s29 + $0x628] sm:$0xff] %v8078_v53  ;;  %v5464_v56 = vadd.f32 %v5463_v6, %v4407_v49  ;;  %v5465_v57 = vpop.f32.mrf.mxu1 }
 0x437   : > { %v4411_v58 = vpop.f32.mrf.mxu0  ;;  %4602 = vmatmul.mubr.bf16.gmra.mxu0 %v7665_v48 }
 0x438   : > { %8085 = vtanh.f32 %v5464_v56  ;;  %v4412_v14 = vadd.f32 %v9274_v41, %v4411_v58  ;;  %v5468_v60 = vpop.f32.mrf.mxu1  ;;  %5659 = vmatmul.mubr.bf16.gmra.mxu1 %v7668_v51  ;;  %4609 = vmatprep.mubr.bf16.mxu0 %v7673_v52 }
 0x439   : > { %v8080_v61 = vpop.eup %8079  ;;  %v4413_v62 = vpop.f32.mrf.mxu0  ;;  %5666 = vmatprep.mubr.bf16.mxu1 %v7676_v55 }
 0x43a   : > { %6137 = vst [vmem:[%s8465_s29 + $0x630] sm:$0xff] %v8080_v61  ;;  %v5469_v63 = vadd.f32 %v5468_v60, %v4412_v14  ;;  %v5470_v0 = vpop.f32.mrf.mxu1 }
 0x43b   : > { %v4414_v1 = vpop.f32.mrf.mxu0 }
 0x43c   : > { %8087 = vtanh.f32 %v5469_v63  ;;  %v4415_v3 = vadd.f32 %v9274_v41, %v4414_v1  ;;  %v5471_v4 = vpop.f32.mrf.mxu1 }
 0x43d   : > { %v8082_v8 = vpop.eup %8081  ;;  %v4416_v9 = vpop.f32.mrf.mxu0 }
 0x43e   : > { %6138 = vst [vmem:[%s8465_s29 + $0x638] sm:$0xff] %v8082_v8  ;;  %v5472_v11 = vadd.f32 %v5471_v4, %v4415_v3  ;;  %v5473_v12 = vpop.f32.mrf.mxu1 }
 0x43f   : > { %v4419_v13 = vpop.f32.mrf.mxu0  ;;  %4610 = vmatmul.mubr.bf16.gmra.mxu0 %v7671_v2 }
 0x440   : > { %8089 = vtanh.f32 %v5472_v11  ;;  %v4420_v32 = vadd.f32 %v9274_v41, %v4419_v13  ;;  %v5476_v15 = vpop.f32.mrf.mxu1  ;;  %5667 = vmatmul.mubr.bf16.gmra.mxu1 %v7674_v5  ;;  %4617 = vmatprep.mubr.bf16.mxu0 %v7679_v7 }
 0x441   : > { %v8084_v16 = vpop.eup %8083  ;;  %v4421_v17 = vpop.f32.mrf.mxu0  ;;  %5674 = vmatprep.mubr.bf16.mxu1 %v7682_v10 }
 0x442   : > { %6139 = vst [vmem:[%s8465_s29 + $0x640] sm:$0xff] %v8084_v16  ;;  %v5477_v18 = vadd.f32 %v5476_v15, %v4420_v32  ;;  %v5478_v19 = vpop.f32.mrf.mxu1 }
 0x443   : > { %v4422_v20 = vpop.f32.mrf.mxu0 }
 0x444   : > { %8091 = vtanh.f32 %v5477_v18  ;;  %v4423_v22 = vadd.f32 %v9274_v41, %v4422_v20  ;;  %v5479_v23 = vpop.f32.mrf.mxu1 }
 0x445   : > { %v8086_v25 = vpop.eup %8085  ;;  %v4424_v26 = vpop.f32.mrf.mxu0 }
 0x446   : > { %6140 = vst [vmem:[%s8465_s29 + $0x648] sm:$0xff] %v8086_v25  ;;  %v5480_v27 = vadd.f32 %v5479_v23, %v4423_v22  ;;  %v5481_v28 = vpop.f32.mrf.mxu1 }
 0x447   : > { %v4427_v29 = vpop.f32.mrf.mxu0  ;;  %4618 = vmatmul.mubr.bf16.gmra.mxu0 %v7677_v21 }
 0x448   : > { %8093 = vtanh.f32 %v5480_v27  ;;  %v4428_v30 = vadd.f32 %v9274_v41, %v4427_v29  ;;  %v5484_v31 = vpop.f32.mrf.mxu1  ;;  %5675 = vmatmul.mubr.bf16.gmra.mxu1 %v7680_v24 }
 0x449   : > { %v8088_v50 = vpop.eup %8087  ;;  %v4429_v33 = vpop.f32.mrf.mxu0 }
 0x44a   : > { %6141 = vst [vmem:[%s8465_s29 + $0x650] sm:$0xff] %v8088_v50  ;;  %v5485_v34 = vadd.f32 %v5484_v31, %v4428_v30  ;;  %v5486_v35 = vpop.f32.mrf.mxu1 }
 0x44b   : > { %v4430_v36 = vpop.f32.mrf.mxu0 }
 0x44c   : > { %8095 = vtanh.f32 %v5485_v34  ;;  %v4431_v37 = vadd.f32 %v9274_v41, %v4430_v36  ;;  %v5487_v38 = vpop.f32.mrf.mxu1 }
 0x44d   : > { %v8090_v39 = vpop.eup %8089  ;;  %v4432_v40 = vpop.f32.mrf.mxu0 }
 0x44e   : > { %6142 = vst [vmem:[%s8465_s29 + $0x658] sm:$0xff] %v8090_v39  ;;  %v5488_v59 = vadd.f32 %v5487_v38, %v4431_v37  ;;  %v5489_v42 = vpop.f32.mrf.mxu1 }
 0x44f   : > { %v4435_v43 = vpop.f32.mrf.mxu0 }
 0x450   : > { %8097 = vtanh.f32 %v5488_v59  ;;  %v4436_v44 = vadd.f32 %v9274_v41, %v4435_v43  ;;  %v5492_v45 = vpop.f32.mrf.mxu1 }
 0x451   : > { %v8092_v46 = vpop.eup %8091  ;;  %v4437_v47 = vpop.f32.mrf.mxu0 }
 0x452   : > { %6143 = vst [vmem:[%s8465_s29 + $0x660] sm:$0xff] %v8092_v46  ;;  %v5493_v48 = vadd.f32 %v5492_v45, %v4436_v44  ;;  %v5494_v49 = vpop.f32.mrf.mxu1 }
 0x453   : > { %v4438_v6 = vpop.f32.mrf.mxu0 }
 0x454   : > { %8099 = vtanh.f32 %v5493_v48  ;;  %v4439_v51 = vadd.f32 %v9274_v41, %v4438_v6  ;;  %v5495_v52 = vpop.f32.mrf.mxu1 }
 0x455   : > { %v8094_v53 = vpop.eup %8093  ;;  %v4440_v54 = vpop.f32.mrf.mxu0 }
 0x456   : > { %6144 = vst [vmem:[%s8465_s29 + $0x668] sm:$0xff] %v8094_v53  ;;  %v5496_v55 = vadd.f32 %v5495_v52, %v4439_v51  ;;  %v5497_v56 = vpop.f32.mrf.mxu1 }
 0x457   : > { %v4443_v57 = vpop.f32.mrf.mxu0 }
 0x458   : > { %8101 = vtanh.f32 %v5496_v55  ;;  %v4444_v58 = vadd.f32 %v9274_v41, %v4443_v57  ;;  %v5500_v14 = vpop.f32.mrf.mxu1 }
 0x459   : > { %v8096_v60 = vpop.eup %8095  ;;  %v4445_v61 = vpop.f32.mrf.mxu0 }
 0x45a   : > { %6145 = vst [vmem:[%s8465_s29 + $0x670] sm:$0xff] %v8096_v60  ;;  %v5501_v62 = vadd.f32 %v5500_v14, %v4444_v58  ;;  %v5502_v63 = vpop.f32.mrf.mxu1 }
 0x45b   : > { %v4446_v0 = vpop.f32.mrf.mxu0 }
 0x45c   : > { %8103 = vtanh.f32 %v5501_v62  ;;  %v4447_v1 = vadd.f32 %v9274_v41, %v4446_v0  ;;  %v5503_v2 = vpop.f32.mrf.mxu1 }
 0x45d   : > { %v8098_v3 = vpop.eup %8097  ;;  %v4448_v4 = vpop.f32.mrf.mxu0 }
 0x45e   : > { %6146 = vst [vmem:[%s8465_s29 + $0x678] sm:$0xff] %v8098_v3  ;;  %v5504_v5 = vadd.f32 %v5503_v2, %v4447_v1  ;;  %v5505_v7 = vpop.f32.mrf.mxu1 }
 0x45f   : > { %v4451_v8 = vpop.f32.mrf.mxu0 }
 0x460   : > { %8105 = vtanh.f32 %v5504_v5  ;;  %v4452_v9 = vadd.f32 %v9274_v41, %v4451_v8  ;;  %v5508_v10 = vpop.f32.mrf.mxu1 }
 0x461   : > { %v8100_v11 = vpop.eup %8099  ;;  %v4453_v12 = vpop.f32.mrf.mxu0 }
 0x462   : > { %6147 = vst [vmem:[%s8465_s29 + $0x680] sm:$0xff] %v8100_v11  ;;  %v5509_v13 = vadd.f32 %v5508_v10, %v4452_v9  ;;  %v5510_v32 = vpop.f32.mrf.mxu1 }
 0x463   : > { %v4454_v15 = vpop.f32.mrf.mxu0 }
 0x464   : > { %8107 = vtanh.f32 %v5509_v13  ;;  %v4455_v16 = vadd.f32 %v9274_v41, %v4454_v15  ;;  %v5511_v17 = vpop.f32.mrf.mxu1 }
 0x465   : > { %v8102_v18 = vpop.eup %8101  ;;  %v4456_v19 = vpop.f32.mrf.mxu0 }
 0x466   : > { %6148 = vst [vmem:[%s8465_s29 + $0x688] sm:$0xff] %v8102_v18  ;;  %v5512_v20 = vadd.f32 %v5511_v17, %v4455_v16  ;;  %v5513_v21 = vpop.f32.mrf.mxu1 }
 0x467   : > { %v4459_v22 = vpop.f32.mrf.mxu0 }
 0x468   : > { %8109 = vtanh.f32 %v5512_v20  ;;  %v4460_v23 = vadd.f32 %v9274_v41, %v4459_v22  ;;  %v5516_v24 = vpop.f32.mrf.mxu1 }
 0x469   : > { %v8104_v25 = vpop.eup %8103  ;;  %v4461_v26 = vpop.f32.mrf.mxu0 }
 0x46a   : > { %6149 = vst [vmem:[%s8465_s29 + $0x690] sm:$0xff] %v8104_v25  ;;  %v5517_v27 = vadd.f32 %v5516_v24, %v4460_v23  ;;  %v5518_v28 = vpop.f32.mrf.mxu1 }
 0x46b   : > { %v4462_v29 = vpop.f32.mrf.mxu0 }
 0x46c   : > { %8111 = vtanh.f32 %v5517_v27  ;;  %v4463_v30 = vadd.f32 %v9274_v41, %v4462_v29  ;;  %v5519_v31 = vpop.f32.mrf.mxu1 }
 0x46d   : > { %v8106_v50 = vpop.eup %8105  ;;  %v4464_v33 = vpop.f32.mrf.mxu0 }
 0x46e   : > { %6150 = vst [vmem:[%s8465_s29 + $0x698] sm:$0xff] %v8106_v50  ;;  %v5520_v34 = vadd.f32 %v5519_v31, %v4463_v30  ;;  %v5521_v35 = vpop.f32.mrf.mxu1 }
 0x46f   : > { %v4467_v36 = vpop.f32.mrf.mxu0 }
 0x470   : > { %8113 = vtanh.f32 %v5520_v34  ;;  %v4468_v37 = vadd.f32 %v9274_v41, %v4467_v36  ;;  %v5524_v38 = vpop.f32.mrf.mxu1 }
 0x471   : > { %v8108_v39 = vpop.eup %8107  ;;  %v4469_v40 = vpop.f32.mrf.mxu0 }
 0x472   : > { %6151 = vst [vmem:[%s8465_s29 + $0x6a0] sm:$0xff] %v8108_v39  ;;  %v5525_v59 = vadd.f32 %v5524_v38, %v4468_v37  ;;  %v5526_v42 = vpop.f32.mrf.mxu1 }
 0x473   : > { %v4470_v43 = vpop.f32.mrf.mxu0 }
 0x474   : > { %8115 = vtanh.f32 %v5525_v59  ;;  %v4471_v44 = vadd.f32 %v9274_v41, %v4470_v43  ;;  %v5527_v45 = vpop.f32.mrf.mxu1 }
 0x475   : > { %v8110_v46 = vpop.eup %8109  ;;  %v4472_v47 = vpop.f32.mrf.mxu0 }
 0x476   : > { %6152 = vst [vmem:[%s8465_s29 + $0x6a8] sm:$0xff] %v8110_v46  ;;  %v5528_v48 = vadd.f32 %v5527_v45, %v4471_v44  ;;  %v5529_v49 = vpop.f32.mrf.mxu1 }
 0x477   : > { %v4475_v6 = vpop.f32.mrf.mxu0 }
 0x478   : > { %8117 = vtanh.f32 %v5528_v48  ;;  %v4476_v51 = vadd.f32 %v9274_v41, %v4475_v6  ;;  %v5532_v52 = vpop.f32.mrf.mxu1 }
 0x479   : > { %v8112_v53 = vpop.eup %8111  ;;  %v4477_v54 = vpop.f32.mrf.mxu0 }
 0x47a   : > { %6153 = vst [vmem:[%s8465_s29 + $0x6b0] sm:$0xff] %v8112_v53  ;;  %v5533_v55 = vadd.f32 %v5532_v52, %v4476_v51  ;;  %v5534_v56 = vpop.f32.mrf.mxu1 }
 0x47b   : > { %v4478_v57 = vpop.f32.mrf.mxu0 }
 0x47c   : > { %8119 = vtanh.f32 %v5533_v55  ;;  %v4479_v58 = vadd.f32 %v9274_v41, %v4478_v57  ;;  %v5535_v14 = vpop.f32.mrf.mxu1 }
 0x47d   : > { %v8114_v60 = vpop.eup %8113  ;;  %v4480_v61 = vpop.f32.mrf.mxu0 }
 0x47e   : > { %6154 = vst [vmem:[%s8465_s29 + $0x6b8] sm:$0xff] %v8114_v60  ;;  %v5536_v62 = vadd.f32 %v5535_v14, %v4479_v58  ;;  %v5537_v63 = vpop.f32.mrf.mxu1 }
 0x47f   : > { %v4483_v0 = vpop.f32.mrf.mxu0 }
 0x480   : > { %8121 = vtanh.f32 %v5536_v62  ;;  %v4484_v1 = vadd.f32 %v9274_v41, %v4483_v0  ;;  %v5540_v2 = vpop.f32.mrf.mxu1 }
 0x481   : > { %v8116_v3 = vpop.eup %8115  ;;  %v4485_v4 = vpop.f32.mrf.mxu0 }
 0x482   : > { %6155 = vst [vmem:[%s8465_s29 + $0x6c0] sm:$0xff] %v8116_v3  ;;  %v5541_v5 = vadd.f32 %v5540_v2, %v4484_v1  ;;  %v5542_v7 = vpop.f32.mrf.mxu1 }
 0x483   : > { %v4486_v8 = vpop.f32.mrf.mxu0 }
 0x484   : > { %8123 = vtanh.f32 %v5541_v5  ;;  %v4487_v9 = vadd.f32 %v9274_v41, %v4486_v8  ;;  %v5543_v10 = vpop.f32.mrf.mxu1 }
 0x485   : > { %v8118_v11 = vpop.eup %8117  ;;  %v4488_v12 = vpop.f32.mrf.mxu0 }
 0x486   : > { %6156 = vst [vmem:[%s8465_s29 + $0x6c8] sm:$0xff] %v8118_v11  ;;  %v5544_v13 = vadd.f32 %v5543_v10, %v4487_v9  ;;  %v5545_v32 = vpop.f32.mrf.mxu1 }
 0x487   : > { %v4491_v15 = vpop.f32.mrf.mxu0 }
 0x488   : > { %8125 = vtanh.f32 %v5544_v13  ;;  %v4492_v16 = vadd.f32 %v9274_v41, %v4491_v15  ;;  %v5548_v17 = vpop.f32.mrf.mxu1 }
 0x489   : > { %v8120_v18 = vpop.eup %8119  ;;  %v4493_v19 = vpop.f32.mrf.mxu0 }
 0x48a   : > { %6157 = vst [vmem:[%s8465_s29 + $0x6d0] sm:$0xff] %v8120_v18  ;;  %v5549_v20 = vadd.f32 %v5548_v17, %v4492_v16  ;;  %v5550_v21 = vpop.f32.mrf.mxu1 }
 0x48b   : > { %v4494_v22 = vpop.f32.mrf.mxu0 }
 0x48c   : > { %8127 = vtanh.f32 %v5549_v20  ;;  %v4495_v23 = vadd.f32 %v9274_v41, %v4494_v22  ;;  %v5551_v24 = vpop.f32.mrf.mxu1 }
 0x48d   : > { %v8122_v25 = vpop.eup %8121  ;;  %v4496_v26 = vpop.f32.mrf.mxu0 }
 0x48e   : > { %6158 = vst [vmem:[%s8465_s29 + $0x6d8] sm:$0xff] %v8122_v25  ;;  %v5552_v27 = vadd.f32 %v5551_v24, %v4495_v23  ;;  %v5553_v28 = vpop.f32.mrf.mxu1 }
 0x48f   : > { %v4499_v29 = vpop.f32.mrf.mxu0 }
 0x490   : > { %8129 = vtanh.f32 %v5552_v27  ;;  %v4500_v30 = vadd.f32 %v9274_v41, %v4499_v29  ;;  %v5556_v31 = vpop.f32.mrf.mxu1 }
 0x491   : > { %v8124_v50 = vpop.eup %8123  ;;  %v4501_v33 = vpop.f32.mrf.mxu0 }
 0x492   : > { %6159 = vst [vmem:[%s8465_s29 + $0x6e0] sm:$0xff] %v8124_v50  ;;  %v5557_v34 = vadd.f32 %v5556_v31, %v4500_v30  ;;  %v5558_v35 = vpop.f32.mrf.mxu1 }
 0x493   : > { %v4502_v36 = vpop.f32.mrf.mxu0 }
 0x494   : > { %8131 = vtanh.f32 %v5557_v34  ;;  %v4503_v37 = vadd.f32 %v9274_v41, %v4502_v36  ;;  %v5559_v38 = vpop.f32.mrf.mxu1 }
 0x495   : > { %v8126_v39 = vpop.eup %8125  ;;  %v4504_v40 = vpop.f32.mrf.mxu0 }
 0x496   : > { %6160 = vst [vmem:[%s8465_s29 + $0x6e8] sm:$0xff] %v8126_v39  ;;  %v5560_v59 = vadd.f32 %v5559_v38, %v4503_v37  ;;  %v5561_v42 = vpop.f32.mrf.mxu1 }
 0x497   : > { %v4507_v43 = vpop.f32.mrf.mxu0 }
 0x498   : > { %8133 = vtanh.f32 %v5560_v59  ;;  %v4508_v44 = vadd.f32 %v9274_v41, %v4507_v43  ;;  %v5564_v45 = vpop.f32.mrf.mxu1 }
 0x499   : > { %v8128_v46 = vpop.eup %8127  ;;  %v4509_v47 = vpop.f32.mrf.mxu0 }
 0x49a   : > { %6161 = vst [vmem:[%s8465_s29 + $0x6f0] sm:$0xff] %v8128_v46  ;;  %v5565_v48 = vadd.f32 %v5564_v45, %v4508_v44  ;;  %v5566_v49 = vpop.f32.mrf.mxu1 }
 0x49b   : > { %v4510_v6 = vpop.f32.mrf.mxu0 }
 0x49c   : > { %8135 = vtanh.f32 %v5565_v48  ;;  %v4511_v51 = vadd.f32 %v9274_v41, %v4510_v6  ;;  %v5567_v52 = vpop.f32.mrf.mxu1 }
 0x49d   : > { %v8130_v53 = vpop.eup %8129  ;;  %v4512_v54 = vpop.f32.mrf.mxu0 }
 0x49e   : > { %6162 = vst [vmem:[%s8465_s29 + $0x6f8] sm:$0xff] %v8130_v53  ;;  %v5568_v55 = vadd.f32 %v5567_v52, %v4511_v51  ;;  %v5569_v56 = vpop.f32.mrf.mxu1 }
 0x49f   : > { %v4515_v57 = vpop.f32.mrf.mxu0 }
 0x4a0   : > { %8137 = vtanh.f32 %v5568_v55  ;;  %v4516_v58 = vadd.f32 %v9274_v41, %v4515_v57  ;;  %v5572_v14 = vpop.f32.mrf.mxu1 }
 0x4a1   : > { %v8132_v60 = vpop.eup %8131  ;;  %v4517_v61 = vpop.f32.mrf.mxu0 }
 0x4a2   : > { %6163 = vst [vmem:[%s8465_s29 + $0x700] sm:$0xff] %v8132_v60  ;;  %v5573_v62 = vadd.f32 %v5572_v14, %v4516_v58  ;;  %v5574_v63 = vpop.f32.mrf.mxu1 }
 0x4a3   : > { %v4518_v0 = vpop.f32.mrf.mxu0 }
 0x4a4   : > { %8139 = vtanh.f32 %v5573_v62  ;;  %v4519_v1 = vadd.f32 %v9274_v41, %v4518_v0  ;;  %v5575_v2 = vpop.f32.mrf.mxu1 }
 0x4a5   : > { %v8134_v3 = vpop.eup %8133  ;;  %v4520_v4 = vpop.f32.mrf.mxu0 }
 0x4a6   : > { %6164 = vst [vmem:[%s8465_s29 + $0x708] sm:$0xff] %v8134_v3  ;;  %v5576_v5 = vadd.f32 %v5575_v2, %v4519_v1  ;;  %v5577_v7 = vpop.f32.mrf.mxu1 }
 0x4a7   : > { %v4523_v8 = vpop.f32.mrf.mxu0 }
 0x4a8   : > { %8141 = vtanh.f32 %v5576_v5  ;;  %v4524_v9 = vadd.f32 %v9274_v41, %v4523_v8  ;;  %v5580_v10 = vpop.f32.mrf.mxu1 }
 0x4a9   : > { %v8136_v11 = vpop.eup %8135  ;;  %v4525_v12 = vpop.f32.mrf.mxu0 }
 0x4aa   : > { %6165 = vst [vmem:[%s8465_s29 + $0x710] sm:$0xff] %v8136_v11  ;;  %v5581_v13 = vadd.f32 %v5580_v10, %v4524_v9  ;;  %v5582_v32 = vpop.f32.mrf.mxu1 }
 0x4ab   : > { %v4526_v15 = vpop.f32.mrf.mxu0 }
 0x4ac   : > { %8143 = vtanh.f32 %v5581_v13  ;;  %v4527_v16 = vadd.f32 %v9274_v41, %v4526_v15  ;;  %v5583_v17 = vpop.f32.mrf.mxu1 }
 0x4ad   : > { %v8138_v18 = vpop.eup %8137  ;;  %v4528_v19 = vpop.f32.mrf.mxu0 }
 0x4ae   : > { %6166 = vst [vmem:[%s8465_s29 + $0x718] sm:$0xff] %v8138_v18  ;;  %v5584_v20 = vadd.f32 %v5583_v17, %v4527_v16  ;;  %v5585_v21 = vpop.f32.mrf.mxu1 }
 0x4af   : > { %v4531_v22 = vpop.f32.mrf.mxu0 }
 0x4b0   : > { %8145 = vtanh.f32 %v5584_v20  ;;  %v4532_v23 = vadd.f32 %v9274_v41, %v4531_v22  ;;  %v5588_v24 = vpop.f32.mrf.mxu1 }
 0x4b1   : > { %v8140_v25 = vpop.eup %8139  ;;  %v4533_v26 = vpop.f32.mrf.mxu0 }
 0x4b2   : > { %6167 = vst [vmem:[%s8465_s29 + $0x720] sm:$0xff] %v8140_v25  ;;  %v5589_v27 = vadd.f32 %v5588_v24, %v4532_v23  ;;  %v5590_v28 = vpop.f32.mrf.mxu1 }
 0x4b3   : > { %v4534_v29 = vpop.f32.mrf.mxu0 }
 0x4b4   : > { %8147 = vtanh.f32 %v5589_v27  ;;  %v4535_v30 = vadd.f32 %v9274_v41, %v4534_v29  ;;  %v5591_v31 = vpop.f32.mrf.mxu1 }
 0x4b5   : > { %v8142_v50 = vpop.eup %8141  ;;  %v4536_v33 = vpop.f32.mrf.mxu0 }
 0x4b6   : > { %6168 = vst [vmem:[%s8465_s29 + $0x728] sm:$0xff] %v8142_v50  ;;  %v5592_v34 = vadd.f32 %v5591_v31, %v4535_v30  ;;  %v5593_v35 = vpop.f32.mrf.mxu1 }
 0x4b7   : > { %v4539_v36 = vpop.f32.mrf.mxu0 }
 0x4b8   : > { %8149 = vtanh.f32 %v5592_v34  ;;  %v4540_v37 = vadd.f32 %v9274_v41, %v4539_v36  ;;  %v5596_v38 = vpop.f32.mrf.mxu1 }
 0x4b9   : > { %v8144_v39 = vpop.eup %8143  ;;  %v4541_v40 = vpop.f32.mrf.mxu0 }
 0x4ba   : > { %6169 = vst [vmem:[%s8465_s29 + $0x730] sm:$0xff] %v8144_v39  ;;  %v5597_v59 = vadd.f32 %v5596_v38, %v4540_v37  ;;  %v5598_v42 = vpop.f32.mrf.mxu1 }
 0x4bb   : > { %v4542_v43 = vpop.f32.mrf.mxu0 }
 0x4bc   : > { %8151 = vtanh.f32 %v5597_v59  ;;  %v4543_v44 = vadd.f32 %v9274_v41, %v4542_v43  ;;  %v5599_v45 = vpop.f32.mrf.mxu1 }
 0x4bd   : > { %v8146_v46 = vpop.eup %8145  ;;  %v4544_v47 = vpop.f32.mrf.mxu0 }
 0x4be   : > { %6170 = vst [vmem:[%s8465_s29 + $0x738] sm:$0xff] %v8146_v46  ;;  %v5600_v48 = vadd.f32 %v5599_v45, %v4543_v44  ;;  %v5601_v49 = vpop.f32.mrf.mxu1 }
 0x4bf   : > { %v4547_v6 = vpop.f32.mrf.mxu0 }
 0x4c0   : > { %8153 = vtanh.f32 %v5600_v48  ;;  %v4548_v51 = vadd.f32 %v9274_v41, %v4547_v6  ;;  %v5604_v52 = vpop.f32.mrf.mxu1 }
 0x4c1   : > { %v8148_v53 = vpop.eup %8147  ;;  %v4549_v54 = vpop.f32.mrf.mxu0 }
 0x4c2   : > { %6171 = vst [vmem:[%s8465_s29 + $0x740] sm:$0xff] %v8148_v53  ;;  %v5605_v55 = vadd.f32 %v5604_v52, %v4548_v51  ;;  %v5606_v56 = vpop.f32.mrf.mxu1 }
 0x4c3   : > { %v4550_v57 = vpop.f32.mrf.mxu0 }
 0x4c4   : > { %8155 = vtanh.f32 %v5605_v55  ;;  %v4551_v58 = vadd.f32 %v9274_v41, %v4550_v57  ;;  %v5607_v14 = vpop.f32.mrf.mxu1 }
 0x4c5   : > { %v8150_v60 = vpop.eup %8149  ;;  %v4552_v61 = vpop.f32.mrf.mxu0 }
 0x4c6   : > { %6172 = vst [vmem:[%s8465_s29 + $0x748] sm:$0xff] %v8150_v60  ;;  %v5608_v62 = vadd.f32 %v5607_v14, %v4551_v58  ;;  %v5609_v63 = vpop.f32.mrf.mxu1 }
 0x4c7   : > { %v4555_v0 = vpop.f32.mrf.mxu0 }
 0x4c8   : > { %8157 = vtanh.f32 %v5608_v62  ;;  %v4556_v1 = vadd.f32 %v9274_v41, %v4555_v0  ;;  %v5612_v2 = vpop.f32.mrf.mxu1 }
 0x4c9   : > { %v8152_v3 = vpop.eup %8151  ;;  %v4557_v4 = vpop.f32.mrf.mxu0 }
 0x4ca   : > { %6173 = vst [vmem:[%s8465_s29 + $0x750] sm:$0xff] %v8152_v3  ;;  %v5613_v5 = vadd.f32 %v5612_v2, %v4556_v1  ;;  %v5614_v7 = vpop.f32.mrf.mxu1 }
 0x4cb   : > { %v4558_v8 = vpop.f32.mrf.mxu0 }
 0x4cc   : > { %8159 = vtanh.f32 %v5613_v5  ;;  %v4559_v9 = vadd.f32 %v9274_v41, %v4558_v8  ;;  %v5615_v10 = vpop.f32.mrf.mxu1 }
 0x4cd   : > { %v8154_v11 = vpop.eup %8153  ;;  %v4560_v12 = vpop.f32.mrf.mxu0 }
 0x4ce   : > { %6174 = vst [vmem:[%s8465_s29 + $0x758] sm:$0xff] %v8154_v11  ;;  %v5616_v13 = vadd.f32 %v5615_v10, %v4559_v9  ;;  %v5617_v32 = vpop.f32.mrf.mxu1 }
 0x4cf   : > { %v4563_v15 = vpop.f32.mrf.mxu0 }
 0x4d0   : > { %8161 = vtanh.f32 %v5616_v13  ;;  %v4564_v16 = vadd.f32 %v9274_v41, %v4563_v15  ;;  %v5620_v17 = vpop.f32.mrf.mxu1 }
 0x4d1   : > { %v8156_v18 = vpop.eup %8155  ;;  %v4565_v19 = vpop.f32.mrf.mxu0 }
 0x4d2   : > { %6175 = vst [vmem:[%s8465_s29 + $0x760] sm:$0xff] %v8156_v18  ;;  %v5621_v20 = vadd.f32 %v5620_v17, %v4564_v16  ;;  %v5622_v21 = vpop.f32.mrf.mxu1 }
 0x4d3   : > { %v4566_v22 = vpop.f32.mrf.mxu0 }
 0x4d4   : > { %8163 = vtanh.f32 %v5621_v20  ;;  %v4567_v23 = vadd.f32 %v9274_v41, %v4566_v22  ;;  %v5623_v24 = vpop.f32.mrf.mxu1 }
 0x4d5   : > { %v8158_v25 = vpop.eup %8157  ;;  %v4568_v26 = vpop.f32.mrf.mxu0 }
 0x4d6   : > { %6176 = vst [vmem:[%s8465_s29 + $0x768] sm:$0xff] %v8158_v25  ;;  %v5624_v27 = vadd.f32 %v5623_v24, %v4567_v23  ;;  %v5625_v28 = vpop.f32.mrf.mxu1 }
 0x4d7   : > { %v4571_v29 = vpop.f32.mrf.mxu0 }
 0x4d8   : > { %8165 = vtanh.f32 %v5624_v27  ;;  %v4572_v30 = vadd.f32 %v9274_v41, %v4571_v29  ;;  %v5628_v31 = vpop.f32.mrf.mxu1 }
 0x4d9   : > { %v8160_v50 = vpop.eup %8159  ;;  %v4573_v33 = vpop.f32.mrf.mxu0 }
 0x4da   : > { %6177 = vst [vmem:[%s8465_s29 + $0x770] sm:$0xff] %v8160_v50  ;;  %v5629_v34 = vadd.f32 %v5628_v31, %v4572_v30  ;;  %v5630_v35 = vpop.f32.mrf.mxu1 }
 0x4db   : > { %v4574_v36 = vpop.f32.mrf.mxu0 }
 0x4dc   : > { %8167 = vtanh.f32 %v5629_v34  ;;  %v4575_v37 = vadd.f32 %v9274_v41, %v4574_v36  ;;  %v5631_v38 = vpop.f32.mrf.mxu1 }
 0x4dd   : > { %v8162_v39 = vpop.eup %8161  ;;  %v4576_v40 = vpop.f32.mrf.mxu0 }
 0x4de   : > { %6178 = vst [vmem:[%s8465_s29 + $0x778] sm:$0xff] %v8162_v39  ;;  %v5632_v59 = vadd.f32 %v5631_v38, %v4575_v37  ;;  %v5633_v42 = vpop.f32.mrf.mxu1 }
 0x4df   : > { %v4579_v43 = vpop.f32.mrf.mxu0 }
 0x4e0   : > { %8169 = vtanh.f32 %v5632_v59  ;;  %v4580_v44 = vadd.f32 %v9274_v41, %v4579_v43  ;;  %v5636_v45 = vpop.f32.mrf.mxu1 }
 0x4e1   : > { %v8164_v46 = vpop.eup %8163  ;;  %v4581_v47 = vpop.f32.mrf.mxu0 }
 0x4e2   : > { %6179 = vst [vmem:[%s8465_s29 + $0x780] sm:$0xff] %v8164_v46  ;;  %v5637_v48 = vadd.f32 %v5636_v45, %v4580_v44  ;;  %v5638_v49 = vpop.f32.mrf.mxu1 }
 0x4e3   : > { %v4582_v6 = vpop.f32.mrf.mxu0 }
 0x4e4   : > { %8171 = vtanh.f32 %v5637_v48  ;;  %v4583_v51 = vadd.f32 %v9274_v41, %v4582_v6  ;;  %v5639_v52 = vpop.f32.mrf.mxu1 }
 0x4e5   : > { %v8166_v53 = vpop.eup %8165  ;;  %v4584_v54 = vpop.f32.mrf.mxu0 }
 0x4e6   : > { %6180 = vst [vmem:[%s8465_s29 + $0x788] sm:$0xff] %v8166_v53  ;;  %v5640_v55 = vadd.f32 %v5639_v52, %v4583_v51  ;;  %v5641_v56 = vpop.f32.mrf.mxu1 }
 0x4e7   : > { %v4587_v57 = vpop.f32.mrf.mxu0 }
 0x4e8   : > { %8173 = vtanh.f32 %v5640_v55  ;;  %v4588_v58 = vadd.f32 %v9274_v41, %v4587_v57  ;;  %v5644_v14 = vpop.f32.mrf.mxu1 }
 0x4e9   : > { %v8168_v60 = vpop.eup %8167  ;;  %v4589_v61 = vpop.f32.mrf.mxu0 }
 0x4ea   : > { %6181 = vst [vmem:[%s8465_s29 + $0x790] sm:$0xff] %v8168_v60  ;;  %v5645_v62 = vadd.f32 %v5644_v14, %v4588_v58  ;;  %v5646_v63 = vpop.f32.mrf.mxu1  ;;  %v8200_v58 = vld [vmem:[%s9415_s2] ss:$0 sm:$0xff] }
 0x4eb   : > { %v4590_v0 = vpop.f32.mrf.mxu0 }
 0x4ec   : > { %8175 = vtanh.f32 %v5645_v62  ;;  %v4591_v1 = vadd.f32 %v9274_v41, %v4590_v0  ;;  %v5647_v2 = vpop.f32.mrf.mxu1 }
 0x4ed   : > { %v8170_v3 = vpop.eup %8169  ;;  %v4592_v4 = vpop.f32.mrf.mxu0 }
 0x4ee   : > { %6182 = vst [vmem:[%s8465_s29 + $0x798] sm:$0xff] %v8170_v3  ;;  %v5648_v5 = vadd.f32 %v5647_v2, %v4591_v1  ;;  %v5649_v7 = vpop.f32.mrf.mxu1 }
 0x4ef   : > { %v4595_v8 = vpop.f32.mrf.mxu0 }
 0x4f0   : > { %8177 = vtanh.f32 %v5648_v5  ;;  %v4596_v9 = vadd.f32 %v9274_v41, %v4595_v8  ;;  %v5652_v10 = vpop.f32.mrf.mxu1 }
 0x4f1   : > { %v8172_v11 = vpop.eup %8171  ;;  %v4597_v12 = vpop.f32.mrf.mxu0 }
 0x4f2   : > { %6183 = vst [vmem:[%s8465_s29 + $0x7a0] sm:$0xff] %v8172_v11  ;;  %v5653_v13 = vadd.f32 %v5652_v10, %v4596_v9  ;;  %v5654_v32 = vpop.f32.mrf.mxu1 }
 0x4f3   : > { %v4598_v15 = vpop.f32.mrf.mxu0 }
 0x4f4   : > { %8179 = vtanh.f32 %v5653_v13  ;;  %v4599_v16 = vadd.f32 %v9274_v41, %v4598_v15  ;;  %v5655_v17 = vpop.f32.mrf.mxu1 }
 0x4f5   : > { %v8174_v18 = vpop.eup %8173  ;;  %v4600_v19 = vpop.f32.mrf.mxu0 }
 0x4f6   : > { %6184 = vst [vmem:[%s8465_s29 + $0x7a8] sm:$0xff] %v8174_v18  ;;  %v5656_v20 = vadd.f32 %v5655_v17, %v4599_v16  ;;  %v5657_v21 = vpop.f32.mrf.mxu1 }
 0x4f7   : > { %v4603_v22 = vpop.f32.mrf.mxu0 }
 0x4f8   : > { %8181 = vtanh.f32 %v5656_v20  ;;  %v4604_v23 = vadd.f32 %v9274_v41, %v4603_v22  ;;  %v5660_v24 = vpop.f32.mrf.mxu1 }
 0x4f9   : > { %v8176_v25 = vpop.eup %8175  ;;  %v4605_v26 = vpop.f32.mrf.mxu0 }
 0x4fa   : > { %6185 = vst [vmem:[%s8465_s29 + $0x7b0] sm:$0xff] %v8176_v25  ;;  %v5661_v27 = vadd.f32 %v5660_v24, %v4604_v23  ;;  %v5662_v28 = vpop.f32.mrf.mxu1 }
 0x4fb   : > { %v4606_v29 = vpop.f32.mrf.mxu0 }
 0x4fc   : > { %8183 = vtanh.f32 %v5661_v27  ;;  %v4607_v30 = vadd.f32 %v9274_v41, %v4606_v29  ;;  %v5663_v31 = vpop.f32.mrf.mxu1 }
 0x4fd   : > { %v8178_v50 = vpop.eup %8177  ;;  %v4608_v33 = vpop.f32.mrf.mxu0 }
 0x4fe   : > { %6186 = vst [vmem:[%s8465_s29 + $0x7b8] sm:$0xff] %v8178_v50  ;;  %v5664_v34 = vadd.f32 %v5663_v31, %v4607_v30  ;;  %v5665_v35 = vpop.f32.mrf.mxu1 }
 0x4ff   : > { %v4611_v36 = vpop.f32.mrf.mxu0 }
 0x500   : > { %8185 = vtanh.f32 %v5664_v34  ;;  %v4612_v37 = vadd.f32 %v9274_v41, %v4611_v36  ;;  %v5668_v38 = vpop.f32.mrf.mxu1 }
 0x501   : > { %v8180_v39 = vpop.eup %8179  ;;  %v4613_v40 = vpop.f32.mrf.mxu0 }
 0x502   : > { %6187 = vst [vmem:[%s8465_s29 + $0x7c0] sm:$0xff] %v8180_v39  ;;  %v5669_v59 = vadd.f32 %v5668_v38, %v4612_v37  ;;  %v5670_v42 = vpop.f32.mrf.mxu1 }
 0x503   : > { %v4614_v43 = vpop.f32.mrf.mxu0 }
 0x504   : > { %8187 = vtanh.f32 %v5669_v59  ;;  %v4615_v44 = vadd.f32 %v9274_v41, %v4614_v43  ;;  %v5671_v45 = vpop.f32.mrf.mxu1 }
 0x505   : > { %v8182_v46 = vpop.eup %8181  ;;  %v4616_v47 = vpop.f32.mrf.mxu0 }
 0x506   : > { %6188 = vst [vmem:[%s8465_s29 + $0x7c8] sm:$0xff] %v8182_v46  ;;  %v5672_v48 = vadd.f32 %v5671_v45, %v4615_v44  ;;  %v5673_v49 = vpop.f32.mrf.mxu1 }
 0x507   : > { %v4619_v6 = vpop.f32.mrf.mxu0 }
 0x508   : > { %8189 = vtanh.f32 %v5672_v48  ;;  %v4620_v51 = vadd.f32 %v9274_v41, %v4619_v6  ;;  %v5676_v52 = vpop.f32.mrf.mxu1 }
 0x509   : > { %v8184_v53 = vpop.eup %8183  ;;  %v4621_v54 = vpop.f32.mrf.mxu0 }
 0x50a   : > { %6189 = vst [vmem:[%s8465_s29 + $0x7d0] sm:$0xff] %v8184_v53  ;;  %v5677_v55 = vadd.f32 %v5676_v52, %v4620_v51  ;;  %v5678_v56 = vpop.f32.mrf.mxu1 }
 0x50b   : > { %v4622_v57 = vpop.f32.mrf.mxu0 }
 0x50c   : > { %8191 = vtanh.f32 %v5677_v55  ;;  %v4623_v14 = vadd.f32 %v8200_v58, %v4622_v57  ;;  %v5679_v60 = vpop.f32.mrf.mxu1 }
 0x50d   : > { %v8186_v61 = vpop.eup %8185  ;;  %v4624_v41 = vpop.f32.mrf.mxu0 }
 0x50e   : > { %6190 = vst [vmem:[%s8465_s29 + $0x7d8] sm:$0xff] %v8186_v61  ;;  %v5680_v62 = vadd.f32 %v5679_v60, %v4623_v14  ;;  %v5681_v63 = vpop.f32.mrf.mxu1 }
 0x510   : > { %8193 = vtanh.f32 %v5680_v62 }
 0x511   : > { %v8188_v0 = vpop.eup %8187 }
 0x512   : > { %6191 = vst [vmem:[%s8465_s29 + $0x7e0] sm:$0xff] %v8188_v0 }
 0x515   : > { %v8190_v1 = vpop.eup %8189 }
 0x516   : > { %6192 = vst [vmem:[%s8465_s29 + $0x7e8] sm:$0xff] %v8190_v1 }
 0x519   : > { %v8192_v2 = vpop.eup %8191 }
 0x51a   : > { %6193 = vst [vmem:[%s8465_s29 + $0x7f0] sm:$0xff] %v8192_v2 }
 0x51d   : > { %v8194_v3 = vpop.eup %8193 }
 0x51e   : > { %6194 = vst [vmem:[%s8465_s29 + $0x7f8] sm:$0xff] %v8194_v3 }
 0x51f PF: > { %s13_s14 = sadd.s32 1, %s8223_s14   ;;  %s9417_s12 = smov %s8219_s13 }
 0x520   : > { %p10_p5 = scmp.ge.s32.totalorder %s13_s14, 6   ;;  %s9418_s13 = smov %s9420_s15 }
 0x522   :  { %12 = sbr.rel (!%p10_p5) target bundleno = 2 (0x2), region = 65 }

</bundles_post_ra>
